<compile_context>
chip_gen: v7x
topology: tpu7x:2x2x1
jax: 0.10.0
libtpu: 0.0.40
codegen_flags: <defaults>
</compile_context>

<pallas_src>
import functools
import numpy as np
import jax
import jax.numpy as jnp
from jax.experimental import pallas as pl
from jax.experimental.pallas import tpu as pltpu


# ------------------------------------------------------------------ kernel

def fused_aux_kernel(x_ref, pt_ref, wc_ref, bc_ref, w1_ref, b1_ref, w2_ref,
                     b2_ref, o_ref, conv_sc, *, nb, nc_in):
    # x_ref:   (nb*nc_in, HW)   f32  native-NCHW block (rows = sample-major, channel-minor)
    # pt_ref:  (HW, 16)         bf16 adaptive-avg-pool matrix, transposed
    # wc_ref:  (nc_in, 128)     bf16 1x1 conv weight (in, out)
    # bc_ref:  (1, 128)         f32  conv bias
    # w1_ref:  (16, 128, 1024)  bf16 fc1 weight, torch flatten order folded in
    # b1_ref:  (1, 1024)        f32
    # w2_ref:  (1024, NCpad)    bf16 fc2 weight, zero-padded to 128-lane multiple
    # b2_ref:  (1, NCpad)       f32
    # o_ref:   (nb, NCpad)      f32
    # conv_sc: (nb, 16, 128)    bf16 VMEM scratch holding the conv output tiles

    # ---- adaptive avg pool: one big matmul, M = nb*nc_in rows (good MXU fill)
    xb = x_ref[...].astype(jnp.bfloat16)                         # (nb*C, HW)
    pooled = jnp.dot(xb, pt_ref[...],
                     preferred_element_type=jnp.float32)         # (nb*C, 16) f32

    # ---- 1x1 conv per sample: tiny (C,16) transpose, then (16,C)@(C,128)
    wc = wc_ref[...]
    bc = bc_ref[...]
    for b in range(nb):
        pb = pooled[b * nc_in:(b + 1) * nc_in, :]                # (C, 16) f32
        pbt = pb.T.astype(jnp.bfloat16)                          # (16, C) bf16
        conv_b = jnp.dot(pbt, wc,
                         preferred_element_type=jnp.float32) + bc  # (16, 128)
        conv_sc[b] = conv_b.astype(jnp.bfloat16)

    # ---- fc1 (2048->1024) accumulated per pooling bin t (no in-kernel flatten)
    hdim = w1_ref.shape[2]
    acc = jnp.zeros((nb, hdim), jnp.float32)
    for t in range(16):
        acc = acc + jnp.dot(conv_sc[:, t, :], w1_ref[t],
                            preferred_element_type=jnp.float32)  # (nb, 1024)

    h = jnp.maximum(acc + b1_ref[...], 0.0).astype(jnp.bfloat16)
    # Dropout(0.7) = identity in eval mode.

    # ---- fc2 (1024 -> NCpad), lane-dense output
    out = jnp.dot(h, w2_ref[...],
                  preferred_element_type=jnp.float32) + b2_ref[...]
    o_ref[...] = out.astype(o_ref.dtype)


# ------------------------------------------------------------------ wrapper

def adaptive_pool_matrix(H, W, oh=4, ow=4):
    """P[i*ow+j, h*W+w] = 1/area if pixel (h,w) lies in adaptive bin (i,j)."""
    P = np.zeros((oh * ow, H * W), dtype=np.float32)
    for i in range(oh):
        h0 = (i * H) // oh
        h1 = -((-(i + 1) * H) // oh)
        for j in range(ow):
            w0 = (j * W) // ow
            w1 = -((-(j + 1) * W) // ow)
            area = float((h1 - h0) * (w1 - w0))
            for h in range(h0, h1):
                for w in range(w0, w1):
                    P[i * ow + j, h * W + w] = 1.0 / area
    return jnp.asarray(P)


def init_torch_params(key, in_channel, num_classes):
    """Parameters in PyTorch layout (out, in), f32."""
    ks = jax.random.split(key, 6)
    wc = jax.random.normal(ks[0], (128, in_channel), jnp.float32) * 0.05
    bc = jax.random.normal(ks[1], (128,), jnp.float32) * 0.05
    w1 = jax.random.normal(ks[2], (1024, 2048), jnp.float32) * 0.02
    b1 = jax.random.normal(ks[3], (1024,), jnp.float32) * 0.02
    w2 = jax.random.normal(ks[4], (num_classes, 1024), jnp.float32) * 0.02
    b2 = jax.random.normal(ks[5], (num_classes,), jnp.float32) * 0.02
    return (wc, bc, w1, b1, w2, b2)


def prepare_params(torch_params, num_classes):
    """Torch-layout params -> kernel layout (bf16 weights, f32 biases).

    - conv weight transposed to (C, 128) so 128 sits on the lane axis
    - fc1 weight restructured to (16, 128, 1024): w1r[t, k, :] = w1[:, k*16+t],
      i.e. torch's k-major flatten order is folded in so the kernel's per-bin
      accumulation needs no in-kernel flatten
    - classifier weight/bias zero-padded to a multiple of 128 output lanes
    """
    wc, bc, w1, b1, w2, b2 = torch_params
    nc = num_classes
    ncpad = 128 * pl.cdiv(nc, 128)

    wc_k = jnp.asarray(wc.T, jnp.bfloat16)                       # (C, 128)
    bc_k = jnp.asarray(bc.reshape(1, 128), jnp.float32)

    w1r = w1.T.reshape(128, 16, 1024).transpose(1, 0, 2)         # (16, 128, 1024)
    w1_k = jnp.asarray(w1r, jnp.bfloat16)
    b1_k = jnp.asarray(b1.reshape(1, 1024), jnp.float32)

    w2p = jnp.zeros((1024, ncpad), jnp.float32).at[:, :nc].set(w2.T)
    w2_k = jnp.asarray(w2p, jnp.bfloat16)
    b2_k = jnp.zeros((1, ncpad), jnp.float32).at[0, :nc].set(b2)
    return (wc_k, bc_k, w1_k, b1_k, w2_k, b2_k)


def inception_aux_forward(x, kernel_params, num_classes):
    """x: (N, C, H, W) float32 -> (N, num_classes) float32."""
    wc_k, bc_k, w1_k, b1_k, w2_k, b2_k = kernel_params
    N, C, H, W = x.shape
    assert C % 8 == 0, "in_channel must be a multiple of 8 (sublane tile)"
    HW = H * W
    ncpad = w2_k.shape[1]

    pt = adaptive_pool_matrix(H, W).T.astype(jnp.bfloat16)       # (HW, 16)
    x2 = x.reshape(N * C, HW)                                    # contiguous, free

    B = min(N, 16)                                               # samples per grid step
    kernel = functools.partial(fused_aux_kernel, nb=B, nc_in=C)

    out_pad = pl.pallas_call(
        kernel,
        grid=(pl.cdiv(N, B),),
        in_specs=[
            pl.BlockSpec((B * C, HW), lambda n: (n, 0)),          # x (native layout)
            pl.BlockSpec((HW, 16), lambda n: (0, 0)),             # pool matrix^T
            pl.BlockSpec((C, 128), lambda n: (0, 0)),             # conv weight
            pl.BlockSpec((1, 128), lambda n: (0, 0)),             # conv bias
            pl.BlockSpec((16, 128, 1024), lambda n: (0, 0, 0)),   # fc1 weight
            pl.BlockSpec((1, 1024), lambda n: (0, 0)),            # fc1 bias
            pl.BlockSpec((1024, ncpad), lambda n: (0, 0)),        # fc2 weight
            pl.BlockSpec((1, ncpad), lambda n: (0, 0)),           # fc2 bias
        ],
        out_specs=pl.BlockSpec((B, ncpad), lambda n: (n, 0)),
        out_shape=jax.ShapeDtypeStruct((N, ncpad), jnp.float32),
        scratch_shapes=[pltpu.VMEM((B, 16, 128), jnp.bfloat16)],
        compiler_params=pltpu.CompilerParams(
            dimension_semantics=("parallel",),
            vmem_limit_bytes=32 * 1024 * 1024),
    )(x2, pt, wc_k, bc_k, w1_k, b1_k, w2_k, b2_k)

    return out_pad[:, :num_classes]


# ------------------------------------------------------------------ reference

def reference_forward(x, torch_params, pmat_f32):
    """Plain-JAX torch-semantics reference, emulating the kernel's bf16/f32 mix."""
    wc, bc, w1, b1, w2, b2 = torch_params
    N, C, H, W = x.shape
    bf = jnp.bfloat16

    def r(a):  # round-trip through bf16 like the kernel does
        return a.astype(bf).astype(jnp.float32)

    xb = r(x).reshape(N, C, H * W)
    p = r(pmat_f32)                                           # (16, HW)
    pooled = jnp.einsum('nch,th->nct', xb, p)                 # (N, C, 16)
    pooled = r(pooled)
    conv = jnp.einsum('kc,nct->nkt', r(wc), pooled) + bc.reshape(1, 128, 1)
    conv = r(conv)                                            # (N, 128, 16)
    flat = conv.reshape(N, 2048)                              # torch k*16+t order
    h = jnp.maximum(flat @ r(w1).T + b1, 0.0)
    h = r(h)                                                  # Dropout = identity (eval)
    return h @ r(w2).T + b2


if __name__ == "__main__":
    N, C, H, W = 2, 16, 8, 8
    num_classes = 10

    key = jax.random.PRNGKey(0)
    kx, kp = jax.random.split(key)
    x = jax.random.normal(kx, (N, C, H, W), jnp.float32)
    torch_params = init_torch_params(kp, C, num_classes)
    kernel_params = prepare_params(torch_params, num_classes)

    out = inception_aux_forward(x, kernel_params, num_classes)
    out = jax.block_until_ready(out)

    ref = reference_forward(x, torch_params, adaptive_pool_matrix(H, W))
    assert out.shape == (N, num_classes)
    np.testing.assert_allclose(np.asarray(out), np.asarray(ref), rtol=2e-2, atol=2e-2)

    print("KERNEL_OK")
</pallas_src>

<mosaic_0001>
module attributes {stable_mosaic.version = 11 : i64} {
  func.func @fused_aux_kernel(%arg0: i32, %arg1: memref<32x64xf32, #tpu.memory_space<vmem>>, %arg2: memref<64x16xbf16, #tpu.memory_space<vmem>>, %arg3: memref<16x128xbf16, #tpu.memory_space<vmem>>, %arg4: memref<1x128xf32, #tpu.memory_space<vmem>>, %arg5: memref<16x128x1024xbf16, #tpu.memory_space<vmem>>, %arg6: memref<1x1024xf32, #tpu.memory_space<vmem>>, %arg7: memref<1024x128xbf16, #tpu.memory_space<vmem>>, %arg8: memref<1x128xf32, #tpu.memory_space<vmem>>, %arg9: memref<2x128xf32, #tpu.memory_space<vmem>>, %arg10: memref<2x16x128xbf16, #tpu.memory_space<vmem>>) attributes {dimension_semantics = [#tpu.dimension_semantics<parallel>], iteration_bounds = array<i64: 1>, scalar_prefetch = 0 : i64, scratch_operands = 1 : i64, tpu.core_type = #tpu.core_type<tc>, window_params = [{transform_indices = @transform_0, window_bounds = array<i64: 32, 64>}, {pipeline_mode = #tpu.pipeline_mode<synchronous>, transform_indices = @transform_1, window_bounds = array<i64: 64, 16>}, {pipeline_mode = #tpu.pipeline_mode<synchronous>, transform_indices = @transform_2, window_bounds = array<i64: 16, 128>}, {pipeline_mode = #tpu.pipeline_mode<synchronous>, transform_indices = @transform_3, window_bounds = array<i64: 1, 128>}, {pipeline_mode = #tpu.pipeline_mode<synchronous>, transform_indices = @transform_4, window_bounds = array<i64: 16, 128, 1024>}, {pipeline_mode = #tpu.pipeline_mode<synchronous>, transform_indices = @transform_5, window_bounds = array<i64: 1, 1024>}, {pipeline_mode = #tpu.pipeline_mode<synchronous>, transform_indices = @transform_6, window_bounds = array<i64: 1024, 128>}, {pipeline_mode = #tpu.pipeline_mode<synchronous>, transform_indices = @transform_7, window_bounds = array<i64: 1, 128>}, {transform_indices = @transform_8, window_bounds = array<i64: 2, 128>}]} {
    %c0 = arith.constant 0 : index
    %c0_0 = arith.constant 0 : index
    %0 = vector.load %arg1[%c0, %c0_0] : memref<32x64xf32, #tpu.memory_space<vmem>>, vector<32x64xf32>
    %1 = arith.truncf %0 : vector<32x64xf32> to vector<32x64xbf16>
    %c0_1 = arith.constant 0 : index
    %c0_2 = arith.constant 0 : index
    %2 = vector.load %arg2[%c0_1, %c0_2] : memref<64x16xbf16, #tpu.memory_space<vmem>>, vector<64x16xbf16>
    %cst = arith.constant dense<0.000000e+00> : vector<32x16xf32>
    %3 = tpu.matmul %1, %2, %cst {dimension_numbers = #tpu.dot_dimension_numbers<[1], [0], [0], [1], [0, 0, 1, 1], [], []>} : vector<32x64xbf16>, vector<64x16xbf16>, vector<32x16xf32> -> vector<32x16xf32>
    %c0_3 = arith.constant 0 : index
    %c0_4 = arith.constant 0 : index
    %4 = vector.load %arg3[%c0_3, %c0_4] : memref<16x128xbf16, #tpu.memory_space<vmem>>, vector<16x128xbf16>
    %c0_5 = arith.constant 0 : index
    %c0_6 = arith.constant 0 : index
    %5 = vector.load %arg4[%c0_5, %c0_6] : memref<1x128xf32, #tpu.memory_space<vmem>>, vector<1x128xf32>
    %6 = vector.extract_strided_slice %3 {offsets = [0, 0], sizes = [16, 16], strides = [1, 1]} : vector<32x16xf32> to vector<16x16xf32>
    %7 = tpu.transpose %6, [1, 0] : vector<16x16xf32> -> vector<16x16xf32>
    %8 = arith.truncf %7 : vector<16x16xf32> to vector<16x16xbf16>
    %cst_7 = arith.constant dense<0.000000e+00> : vector<16x128xf32>
    %9 = tpu.matmul %8, %4, %cst_7 {dimension_numbers = #tpu.dot_dimension_numbers<[1], [0], [0], [1], [0, 0, 1, 1], [], []>} : vector<16x16xbf16>, vector<16x128xbf16>, vector<16x128xf32> -> vector<16x128xf32>
    %10 = vector.broadcast %5 : vector<1x128xf32> to vector<16x128xf32>
    %11 = arith.addf %9, %10 : vector<16x128xf32>
    %12 = arith.truncf %11 : vector<16x128xf32> to vector<16x128xbf16>
    %c0_8 = arith.constant 0 : index
    %c0_9 = arith.constant 0 : index
    %c0_10 = arith.constant 0 : index
    %13 = vector.load %arg10[%c0_8, %c0_9, %c0_10] : memref<2x16x128xbf16, #tpu.memory_space<vmem>>, vector<1x16x128xbf16>
    %14 = vector.shape_cast %13 : vector<1x16x128xbf16> to vector<16x128xbf16>
    %15 = vector.shape_cast %12 : vector<16x128xbf16> to vector<1x16x128xbf16>
    tpu.vector_store %arg10[%c0_8, %c0_9, %c0_10], %15 {strides = array<i32>} : memref<2x16x128xbf16, #tpu.memory_space<vmem>>, vector<1x16x128xbf16>,
    %16 = vector.extract_strided_slice %3 {offsets = [16, 0], sizes = [16, 16], strides = [1, 1]} : vector<32x16xf32> to vector<16x16xf32>
    %17 = tpu.transpose %16, [1, 0] : vector<16x16xf32> -> vector<16x16xf32>
    %18 = arith.truncf %17 : vector<16x16xf32> to vector<16x16xbf16>
    %cst_11 = arith.constant dense<0.000000e+00> : vector<16x128xf32>
    %19 = tpu.matmul %18, %4, %cst_11 {dimension_numbers = #tpu.dot_dimension_numbers<[1], [0], [0], [1], [0, 0, 1, 1], [], []>} : vector<16x16xbf16>, vector<16x128xbf16>, vector<16x128xf32> -> vector<16x128xf32>
    %20 = vector.broadcast %5 : vector<1x128xf32> to vector<16x128xf32>
    %21 = arith.addf %19, %20 : vector<16x128xf32>
    %22 = arith.truncf %21 : vector<16x128xf32> to vector<16x128xbf16>
    %c1 = arith.constant 1 : index
    %c0_12 = arith.constant 0 : index
    %c0_13 = arith.constant 0 : index
    %23 = vector.load %arg10[%c1, %c0_12, %c0_13] : memref<2x16x128xbf16, #tpu.memory_space<vmem>>, vector<1x16x128xbf16>
    %24 = vector.shape_cast %23 : vector<1x16x128xbf16> to vector<16x128xbf16>
    %25 = vector.shape_cast %22 : vector<16x128xbf16> to vector<1x16x128xbf16>
    tpu.vector_store %arg10[%c1, %c0_12, %c0_13], %25 {strides = array<i32>} : memref<2x16x128xbf16, #tpu.memory_space<vmem>>, vector<1x16x128xbf16>,
    %cst_14 = arith.constant 0.000000e+00 : f32
    %26 = vector.broadcast %cst_14 : f32 to vector<2x1024xf32>
    %c0_15 = arith.constant 0 : index
    %c0_16 = arith.constant 0 : index
    %c0_17 = arith.constant 0 : index
    %27 = vector.load %arg10[%c0_15, %c0_16, %c0_17] : memref<2x16x128xbf16, #tpu.memory_space<vmem>>, vector<2x1x128xbf16>
    %28 = vector.shape_cast %27 : vector<2x1x128xbf16> to vector<2x128xbf16>
    %c0_18 = arith.constant 0 : index
    %c0_19 = arith.constant 0 : index
    %c0_20 = arith.constant 0 : index
    %29 = vector.load %arg5[%c0_18, %c0_19, %c0_20] : memref<16x128x1024xbf16, #tpu.memory_space<vmem>>, vector<1x128x1024xbf16>
    %30 = vector.shape_cast %29 : vector<1x128x1024xbf16> to vector<128x1024xbf16>
    %cst_21 = arith.constant dense<0.000000e+00> : vector<2x1024xf32>
    %31 = tpu.matmul %28, %30, %cst_21 {dimension_numbers = #tpu.dot_dimension_numbers<[1], [0], [0], [1], [0, 0, 1, 1], [], []>} : vector<2x128xbf16>, vector<128x1024xbf16>, vector<2x1024xf32> -> vector<2x1024xf32>
    %32 = arith.addf %26, %31 : vector<2x1024xf32>
    %c0_22 = arith.constant 0 : index
    %c1_23 = arith.constant 1 : index
    %c0_24 = arith.constant 0 : index
    %33 = vector.load %arg10[%c0_22, %c1_23, %c0_24] : memref<2x16x128xbf16, #tpu.memory_space<vmem>>, vector<2x1x128xbf16>
    %34 = vector.shape_cast %33 : vector<2x1x128xbf16> to vector<2x128xbf16>
    %c1_25 = arith.constant 1 : index
    %c0_26 = arith.constant 0 : index
    %c0_27 = arith.constant 0 : index
    %35 = vector.load %arg5[%c1_25, %c0_26, %c0_27] : memref<16x128x1024xbf16, #tpu.memory_space<vmem>>, vector<1x128x1024xbf16>
    %36 = vector.shape_cast %35 : vector<1x128x1024xbf16> to vector<128x1024xbf16>
    %cst_28 = arith.constant dense<0.000000e+00> : vector<2x1024xf32>
    %37 = tpu.matmul %34, %36, %cst_28 {dimension_numbers = #tpu.dot_dimension_numbers<[1], [0], [0], [1], [0, 0, 1, 1], [], []>} : vector<2x128xbf16>, vector<128x1024xbf16>, vector<2x1024xf32> -> vector<2x1024xf32>
    %38 = arith.addf %32, %37 : vector<2x1024xf32>
    %c0_29 = arith.constant 0 : index
    %c2 = arith.constant 2 : index
    %c0_30 = arith.constant 0 : index
    %39 = vector.load %arg10[%c0_29, %c2, %c0_30] : memref<2x16x128xbf16, #tpu.memory_space<vmem>>, vector<2x1x128xbf16>
    %40 = vector.shape_cast %39 : vector<2x1x128xbf16> to vector<2x128xbf16>
    %c2_31 = arith.constant 2 : index
    %c0_32 = arith.constant 0 : index
    %c0_33 = arith.constant 0 : index
    %41 = vector.load %arg5[%c2_31, %c0_32, %c0_33] : memref<16x128x1024xbf16, #tpu.memory_space<vmem>>, vector<1x128x1024xbf16>
    %42 = vector.shape_cast %41 : vector<1x128x1024xbf16> to vector<128x1024xbf16>
    %cst_34 = arith.constant dense<0.000000e+00> : vector<2x1024xf32>
    %43 = tpu.matmul %40, %42, %cst_34 {dimension_numbers = #tpu.dot_dimension_numbers<[1], [0], [0], [1], [0, 0, 1, 1], [], []>} : vector<2x128xbf16>, vector<128x1024xbf16>, vector<2x1024xf32> -> vector<2x1024xf32>
    %44 = arith.addf %38, %43 : vector<2x1024xf32>
    %c0_35 = arith.constant 0 : index
    %c3 = arith.constant 3 : index
    %c0_36 = arith.constant 0 : index
    %45 = vector.load %arg10[%c0_35, %c3, %c0_36] : memref<2x16x128xbf16, #tpu.memory_space<vmem>>, vector<2x1x128xbf16>
    %46 = vector.shape_cast %45 : vector<2x1x128xbf16> to vector<2x128xbf16>
    %c3_37 = arith.constant 3 : index
    %c0_38 = arith.constant 0 : index
    %c0_39 = arith.constant 0 : index
    %47 = vector.load %arg5[%c3_37, %c0_38, %c0_39] : memref<16x128x1024xbf16, #tpu.memory_space<vmem>>, vector<1x128x1024xbf16>
    %48 = vector.shape_cast %47 : vector<1x128x1024xbf16> to vector<128x1024xbf16>
    %cst_40 = arith.constant dense<0.000000e+00> : vector<2x1024xf32>
    %49 = tpu.matmul %46, %48, %cst_40 {dimension_numbers = #tpu.dot_dimension_numbers<[1], [0], [0], [1], [0, 0, 1, 1], [], []>} : vector<2x128xbf16>, vector<128x1024xbf16>, vector<2x1024xf32> -> vector<2x1024xf32>
    %50 = arith.addf %44, %49 : vector<2x1024xf32>
    %c0_41 = arith.constant 0 : index
    %c4 = arith.constant 4 : index
    %c0_42 = arith.constant 0 : index
    %51 = vector.load %arg10[%c0_41, %c4, %c0_42] : memref<2x16x128xbf16, #tpu.memory_space<vmem>>, vector<2x1x128xbf16>
    %52 = vector.shape_cast %51 : vector<2x1x128xbf16> to vector<2x128xbf16>
    %c4_43 = arith.constant 4 : index
    %c0_44 = arith.constant 0 : index
    %c0_45 = arith.constant 0 : index
    %53 = vector.load %arg5[%c4_43, %c0_44, %c0_45] : memref<16x128x1024xbf16, #tpu.memory_space<vmem>>, vector<1x128x1024xbf16>
    %54 = vector.shape_cast %53 : vector<1x128x1024xbf16> to vector<128x1024xbf16>
    %cst_46 = arith.constant dense<0.000000e+00> : vector<2x1024xf32>
    %55 = tpu.matmul %52, %54, %cst_46 {dimension_numbers = #tpu.dot_dimension_numbers<[1], [0], [0], [1], [0, 0, 1, 1], [], []>} : vector<2x128xbf16>, vector<128x1024xbf16>, vector<2x1024xf32> -> vector<2x1024xf32>
    %56 = arith.addf %50, %55 : vector<2x1024xf32>
    %c0_47 = arith.constant 0 : index
    %c5 = arith.constant 5 : index
    %c0_48 = arith.constant 0 : index
    %57 = vector.load %arg10[%c0_47, %c5, %c0_48] : memref<2x16x128xbf16, #tpu.memory_space<vmem>>, vector<2x1x128xbf16>
    %58 = vector.shape_cast %57 : vector<2x1x128xbf16> to vector<2x128xbf16>
    %c5_49 = arith.constant 5 : index
    %c0_50 = arith.constant 0 : index
    %c0_51 = arith.constant 0 : index
    %59 = vector.load %arg5[%c5_49, %c0_50, %c0_51] : memref<16x128x1024xbf16, #tpu.memory_space<vmem>>, vector<1x128x1024xbf16>
    %60 = vector.shape_cast %59 : vector<1x128x1024xbf16> to vector<128x1024xbf16>
    %cst_52 = arith.constant dense<0.000000e+00> : vector<2x1024xf32>
    %61 = tpu.matmul %58, %60, %cst_52 {dimension_numbers = #tpu.dot_dimension_numbers<[1], [0], [0], [1], [0, 0, 1, 1], [], []>} : vector<2x128xbf16>, vector<128x1024xbf16>, vector<2x1024xf32> -> vector<2x1024xf32>
    %62 = arith.addf %56, %61 : vector<2x1024xf32>
    %c0_53 = arith.constant 0 : index
    %c6 = arith.constant 6 : index
    %c0_54 = arith.constant 0 : index
    %63 = vector.load %arg10[%c0_53, %c6, %c0_54] : memref<2x16x128xbf16, #tpu.memory_space<vmem>>, vector<2x1x128xbf16>
    %64 = vector.shape_cast %63 : vector<2x1x128xbf16> to vector<2x128xbf16>
    %c6_55 = arith.constant 6 : index
    %c0_56 = arith.constant 0 : index
    %c0_57 = arith.constant 0 : index
    %65 = vector.load %arg5[%c6_55, %c0_56, %c0_57] : memref<16x128x1024xbf16, #tpu.memory_space<vmem>>, vector<1x128x1024xbf16>
    %66 = vector.shape_cast %65 : vector<1x128x1024xbf16> to vector<128x1024xbf16>
    %cst_58 = arith.constant dense<0.000000e+00> : vector<2x1024xf32>
    %67 = tpu.matmul %64, %66, %cst_58 {dimension_numbers = #tpu.dot_dimension_numbers<[1], [0], [0], [1], [0, 0, 1, 1], [], []>} : vector<2x128xbf16>, vector<128x1024xbf16>, vector<2x1024xf32> -> vector<2x1024xf32>
    %68 = arith.addf %62, %67 : vector<2x1024xf32>
    %c0_59 = arith.constant 0 : index
    %c7 = arith.constant 7 : index
    %c0_60 = arith.constant 0 : index
    %69 = vector.load %arg10[%c0_59, %c7, %c0_60] : memref<2x16x128xbf16, #tpu.memory_space<vmem>>, vector<2x1x128xbf16>
    %70 = vector.shape_cast %69 : vector<2x1x128xbf16> to vector<2x128xbf16>
    %c7_61 = arith.constant 7 : index
    %c0_62 = arith.constant 0 : index
    %c0_63 = arith.constant 0 : index
    %71 = vector.load %arg5[%c7_61, %c0_62, %c0_63] : memref<16x128x1024xbf16, #tpu.memory_space<vmem>>, vector<1x128x1024xbf16>
    %72 = vector.shape_cast %71 : vector<1x128x1024xbf16> to vector<128x1024xbf16>
    %cst_64 = arith.constant dense<0.000000e+00> : vector<2x1024xf32>
    %73 = tpu.matmul %70, %72, %cst_64 {dimension_numbers = #tpu.dot_dimension_numbers<[1], [0], [0], [1], [0, 0, 1, 1], [], []>} : vector<2x128xbf16>, vector<128x1024xbf16>, vector<2x1024xf32> -> vector<2x1024xf32>
    %74 = arith.addf %68, %73 : vector<2x1024xf32>
    %c0_65 = arith.constant 0 : index
    %c8 = arith.constant 8 : index
    %c0_66 = arith.constant 0 : index
    %75 = vector.load %arg10[%c0_65, %c8, %c0_66] : memref<2x16x128xbf16, #tpu.memory_space<vmem>>, vector<2x1x128xbf16>
    %76 = vector.shape_cast %75 : vector<2x1x128xbf16> to vector<2x128xbf16>
    %c8_67 = arith.constant 8 : index
    %c0_68 = arith.constant 0 : index
    %c0_69 = arith.constant 0 : index
    %77 = vector.load %arg5[%c8_67, %c0_68, %c0_69] : memref<16x128x1024xbf16, #tpu.memory_space<vmem>>, vector<1x128x1024xbf16>
    %78 = vector.shape_cast %77 : vector<1x128x1024xbf16> to vector<128x1024xbf16>
    %cst_70 = arith.constant dense<0.000000e+00> : vector<2x1024xf32>
    %79 = tpu.matmul %76, %78, %cst_70 {dimension_numbers = #tpu.dot_dimension_numbers<[1], [0], [0], [1], [0, 0, 1, 1], [], []>} : vector<2x128xbf16>, vector<128x1024xbf16>, vector<2x1024xf32> -> vector<2x1024xf32>
    %80 = arith.addf %74, %79 : vector<2x1024xf32>
    %c0_71 = arith.constant 0 : index
    %c9 = arith.constant 9 : index
    %c0_72 = arith.constant 0 : index
    %81 = vector.load %arg10[%c0_71, %c9, %c0_72] : memref<2x16x128xbf16, #tpu.memory_space<vmem>>, vector<2x1x128xbf16>
    %82 = vector.shape_cast %81 : vector<2x1x128xbf16> to vector<2x128xbf16>
    %c9_73 = arith.constant 9 : index
    %c0_74 = arith.constant 0 : index
    %c0_75 = arith.constant 0 : index
    %83 = vector.load %arg5[%c9_73, %c0_74, %c0_75] : memref<16x128x1024xbf16, #tpu.memory_space<vmem>>, vector<1x128x1024xbf16>
    %84 = vector.shape_cast %83 : vector<1x128x1024xbf16> to vector<128x1024xbf16>
    %cst_76 = arith.constant dense<0.000000e+00> : vector<2x1024xf32>
    %85 = tpu.matmul %82, %84, %cst_76 {dimension_numbers = #tpu.dot_dimension_numbers<[1], [0], [0], [1], [0, 0, 1, 1], [], []>} : vector<2x128xbf16>, vector<128x1024xbf16>, vector<2x1024xf32> -> vector<2x1024xf32>
    %86 = arith.addf %80, %85 : vector<2x1024xf32>
    %c0_77 = arith.constant 0 : index
    %c10 = arith.constant 10 : index
    %c0_78 = arith.constant 0 : index
    %87 = vector.load %arg10[%c0_77, %c10, %c0_78] : memref<2x16x128xbf16, #tpu.memory_space<vmem>>, vector<2x1x128xbf16>
    %88 = vector.shape_cast %87 : vector<2x1x128xbf16> to vector<2x128xbf16>
    %c10_79 = arith.constant 10 : index
    %c0_80 = arith.constant 0 : index
    %c0_81 = arith.constant 0 : index
    %89 = vector.load %arg5[%c10_79, %c0_80, %c0_81] : memref<16x128x1024xbf16, #tpu.memory_space<vmem>>, vector<1x128x1024xbf16>
    %90 = vector.shape_cast %89 : vector<1x128x1024xbf16> to vector<128x1024xbf16>
    %cst_82 = arith.constant dense<0.000000e+00> : vector<2x1024xf32>
    %91 = tpu.matmul %88, %90, %cst_82 {dimension_numbers = #tpu.dot_dimension_numbers<[1], [0], [0], [1], [0, 0, 1, 1], [], []>} : vector<2x128xbf16>, vector<128x1024xbf16>, vector<2x1024xf32> -> vector<2x1024xf32>
    %92 = arith.addf %86, %91 : vector<2x1024xf32>
    %c0_83 = arith.constant 0 : index
    %c11 = arith.constant 11 : index
    %c0_84 = arith.constant 0 : index
    %93 = vector.load %arg10[%c0_83, %c11, %c0_84] : memref<2x16x128xbf16, #tpu.memory_space<vmem>>, vector<2x1x128xbf16>
    %94 = vector.shape_cast %93 : vector<2x1x128xbf16> to vector<2x128xbf16>
    %c11_85 = arith.constant 11 : index
    %c0_86 = arith.constant 0 : index
    %c0_87 = arith.constant 0 : index
    %95 = vector.load %arg5[%c11_85, %c0_86, %c0_87] : memref<16x128x1024xbf16, #tpu.memory_space<vmem>>, vector<1x128x1024xbf16>
    %96 = vector.shape_cast %95 : vector<1x128x1024xbf16> to vector<128x1024xbf16>
    %cst_88 = arith.constant dense<0.000000e+00> : vector<2x1024xf32>
    %97 = tpu.matmul %94, %96, %cst_88 {dimension_numbers = #tpu.dot_dimension_numbers<[1], [0], [0], [1], [0, 0, 1, 1], [], []>} : vector<2x128xbf16>, vector<128x1024xbf16>, vector<2x1024xf32> -> vector<2x1024xf32>
    %98 = arith.addf %92, %97 : vector<2x1024xf32>
    %c0_89 = arith.constant 0 : index
    %c12 = arith.constant 12 : index
    %c0_90 = arith.constant 0 : index
    %99 = vector.load %arg10[%c0_89, %c12, %c0_90] : memref<2x16x128xbf16, #tpu.memory_space<vmem>>, vector<2x1x128xbf16>
    %100 = vector.shape_cast %99 : vector<2x1x128xbf16> to vector<2x128xbf16>
    %c12_91 = arith.constant 12 : index
    %c0_92 = arith.constant 0 : index
    %c0_93 = arith.constant 0 : index
    %101 = vector.load %arg5[%c12_91, %c0_92, %c0_93] : memref<16x128x1024xbf16, #tpu.memory_space<vmem>>, vector<1x128x1024xbf16>
    %102 = vector.shape_cast %101 : vector<1x128x1024xbf16> to vector<128x1024xbf16>
    %cst_94 = arith.constant dense<0.000000e+00> : vector<2x1024xf32>
    %103 = tpu.matmul %100, %102, %cst_94 {dimension_numbers = #tpu.dot_dimension_numbers<[1], [0], [0], [1], [0, 0, 1, 1], [], []>} : vector<2x128xbf16>, vector<128x1024xbf16>, vector<2x1024xf32> -> vector<2x1024xf32>
    %104 = arith.addf %98, %103 : vector<2x1024xf32>
    %c0_95 = arith.constant 0 : index
    %c13 = arith.constant 13 : index
    %c0_96 = arith.constant 0 : index
    %105 = vector.load %arg10[%c0_95, %c13, %c0_96] : memref<2x16x128xbf16, #tpu.memory_space<vmem>>, vector<2x1x128xbf16>
    %106 = vector.shape_cast %105 : vector<2x1x128xbf16> to vector<2x128xbf16>
    %c13_97 = arith.constant 13 : index
    %c0_98 = arith.constant 0 : index
    %c0_99 = arith.constant 0 : index
    %107 = vector.load %arg5[%c13_97, %c0_98, %c0_99] : memref<16x128x1024xbf16, #tpu.memory_space<vmem>>, vector<1x128x1024xbf16>
    %108 = vector.shape_cast %107 : vector<1x128x1024xbf16> to vector<128x1024xbf16>
    %cst_100 = arith.constant dense<0.000000e+00> : vector<2x1024xf32>
    %109 = tpu.matmul %106, %108, %cst_100 {dimension_numbers = #tpu.dot_dimension_numbers<[1], [0], [0], [1], [0, 0, 1, 1], [], []>} : vector<2x128xbf16>, vector<128x1024xbf16>, vector<2x1024xf32> -> vector<2x1024xf32>
    %110 = arith.addf %104, %109 : vector<2x1024xf32>
    %c0_101 = arith.constant 0 : index
    %c14 = arith.constant 14 : index
    %c0_102 = arith.constant 0 : index
    %111 = vector.load %arg10[%c0_101, %c14, %c0_102] : memref<2x16x128xbf16, #tpu.memory_space<vmem>>, vector<2x1x128xbf16>
    %112 = vector.shape_cast %111 : vector<2x1x128xbf16> to vector<2x128xbf16>
    %c14_103 = arith.constant 14 : index
    %c0_104 = arith.constant 0 : index
    %c0_105 = arith.constant 0 : index
    %113 = vector.load %arg5[%c14_103, %c0_104, %c0_105] : memref<16x128x1024xbf16, #tpu.memory_space<vmem>>, vector<1x128x1024xbf16>
    %114 = vector.shape_cast %113 : vector<1x128x1024xbf16> to vector<128x1024xbf16>
    %cst_106 = arith.constant dense<0.000000e+00> : vector<2x1024xf32>
    %115 = tpu.matmul %112, %114, %cst_106 {dimension_numbers = #tpu.dot_dimension_numbers<[1], [0], [0], [1], [0, 0, 1, 1], [], []>} : vector<2x128xbf16>, vector<128x1024xbf16>, vector<2x1024xf32> -> vector<2x1024xf32>
    %116 = arith.addf %110, %115 : vector<2x1024xf32>
    %c0_107 = arith.constant 0 : index
    %c15 = arith.constant 15 : index
    %c0_108 = arith.constant 0 : index
    %117 = vector.load %arg10[%c0_107, %c15, %c0_108] : memref<2x16x128xbf16, #tpu.memory_space<vmem>>, vector<2x1x128xbf16>
    %118 = vector.shape_cast %117 : vector<2x1x128xbf16> to vector<2x128xbf16>
    %c15_109 = arith.constant 15 : index
    %c0_110 = arith.constant 0 : index
    %c0_111 = arith.constant 0 : index
    %119 = vector.load %arg5[%c15_109, %c0_110, %c0_111] : memref<16x128x1024xbf16, #tpu.memory_space<vmem>>, vector<1x128x1024xbf16>
    %120 = vector.shape_cast %119 : vector<1x128x1024xbf16> to vector<128x1024xbf16>
    %cst_112 = arith.constant dense<0.000000e+00> : vector<2x1024xf32>
    %121 = tpu.matmul %118, %120, %cst_112 {dimension_numbers = #tpu.dot_dimension_numbers<[1], [0], [0], [1], [0, 0, 1, 1], [], []>} : vector<2x128xbf16>, vector<128x1024xbf16>, vector<2x1024xf32> -> vector<2x1024xf32>
    %122 = arith.addf %116, %121 : vector<2x1024xf32>
    %c0_113 = arith.constant 0 : index
    %c0_114 = arith.constant 0 : index
    %123 = vector.load %arg6[%c0_113, %c0_114] : memref<1x1024xf32, #tpu.memory_space<vmem>>, vector<1x1024xf32>
    %124 = vector.broadcast %123 : vector<1x1024xf32> to vector<2x1024xf32>
    %125 = arith.addf %122, %124 : vector<2x1024xf32>
    %cst_115 = arith.constant 0.000000e+00 : f32
    %126 = vector.broadcast %cst_115 : f32 to vector<2x1024xf32>
    %127 = arith.maximumf %125, %126 : vector<2x1024xf32>
    %128 = arith.truncf %127 : vector<2x1024xf32> to vector<2x1024xbf16>
    %c0_116 = arith.constant 0 : index
    %c0_117 = arith.constant 0 : index
    %129 = vector.load %arg7[%c0_116, %c0_117] : memref<1024x128xbf16, #tpu.memory_space<vmem>>, vector<1024x128xbf16>
    %cst_118 = arith.constant dense<0.000000e+00> : vector<2x128xf32>
    %130 = tpu.matmul %128, %129, %cst_118 {dimension_numbers = #tpu.dot_dimension_numbers<[1], [0], [0], [1], [0, 0, 1, 1], [], []>} : vector<2x1024xbf16>, vector<1024x128xbf16>, vector<2x128xf32> -> vector<2x128xf32>
    %c0_119 = arith.constant 0 : index
    %c0_120 = arith.constant 0 : index
    %131 = vector.load %arg8[%c0_119, %c0_120] : memref<1x128xf32, #tpu.memory_space<vmem>>, vector<1x128xf32>
    %132 = vector.broadcast %131 : vector<1x128xf32> to vector<2x128xf32>
    %133 = arith.addf %130, %132 : vector<2x128xf32>
    %c0_121 = arith.constant 0 : index
    %c0_122 = arith.constant 0 : index
    %134 = vector.load %arg9[%c0_121, %c0_122] : memref<2x128xf32, #tpu.memory_space<vmem>>, vector<2x128xf32>
    tpu.vector_store %arg9[%c0_121, %c0_122], %133 {strides = array<i32>} : memref<2x128xf32, #tpu.memory_space<vmem>>, vector<2x128xf32>,
    return
  }
  func.func @transform_0(%arg0: i32) -> (i32, i32) {
    %c0_i32 = arith.constant 0 : i32
    %c0_i32_0 = arith.constant 0 : i32
    return %arg0, %c0_i32 : i32, i32
  }
  func.func @transform_1(%arg0: i32) -> (i32, i32) {
    %c0_i32 = arith.constant 0 : i32
    %c0_i32_0 = arith.constant 0 : i32
    %c0_i32_1 = arith.constant 0 : i32
    return %c0_i32, %c0_i32_0 : i32, i32
  }
  func.func @transform_2(%arg0: i32) -> (i32, i32) {
    %c0_i32 = arith.constant 0 : i32
    %c0_i32_0 = arith.constant 0 : i32
    %c0_i32_1 = arith.constant 0 : i32
    return %c0_i32, %c0_i32_0 : i32, i32
  }
  func.func @transform_3(%arg0: i32) -> (i32, i32) {
    %c0_i32 = arith.constant 0 : i32
    %c0_i32_0 = arith.constant 0 : i32
    %c0_i32_1 = arith.constant 0 : i32
    return %c0_i32, %c0_i32_0 : i32, i32
  }
  func.func @transform_4(%arg0: i32) -> (i32, i32, i32) {
    %c0_i32 = arith.constant 0 : i32
    %c0_i32_0 = arith.constant 0 : i32
    %c0_i32_1 = arith.constant 0 : i32
    %c0_i32_2 = arith.constant 0 : i32
    return %c0_i32, %c0_i32_0, %c0_i32_1 : i32, i32, i32
  }
  func.func @transform_5(%arg0: i32) -> (i32, i32) {
    %c0_i32 = arith.constant 0 : i32
    %c0_i32_0 = arith.constant 0 : i32
    %c0_i32_1 = arith.constant 0 : i32
    return %c0_i32, %c0_i32_0 : i32, i32
  }
  func.func @transform_6(%arg0: i32) -> (i32, i32) {
    %c0_i32 = arith.constant 0 : i32
    %c0_i32_0 = arith.constant 0 : i32
    %c0_i32_1 = arith.constant 0 : i32
    return %c0_i32, %c0_i32_0 : i32, i32
  }
  func.func @transform_7(%arg0: i32) -> (i32, i32) {
    %c0_i32 = arith.constant 0 : i32
    %c0_i32_0 = arith.constant 0 : i32
    %c0_i32_1 = arith.constant 0 : i32
    return %c0_i32, %c0_i32_0 : i32, i32
  }
  func.func @transform_8(%arg0: i32) -> (i32, i32) {
    %c0_i32 = arith.constant 0 : i32
    %c0_i32_0 = arith.constant 0 : i32
    return %arg0, %c0_i32 : i32, i32
  }
}

</mosaic_0001>

<bundles_post_ra>
// kernel: tpu_custom_call.1
= control target key start
LH: loop header
LB: loop body
LE: loop exit
PB: predicated region body
PF: predicated region fallthrough
CT: control target
= control target key end

     0   :  { %13 = vsyncpa [#allocation4], 0  ;;  %s12531_s0 = inlined_call_operand.hbm [shape: f32[32,64], index: 0, kind: input, shape index: {}]   ;;  %s12532_s1 = inlined_call_operand.vmem [shape: bf16[64,16], index: 1, kind: input, shape index: {}]   ;;  %s12533_s2 = inlined_call_operand.hbm [shape: bf16[16,128], index: 2, kind: input, shape index: {}]   ;;  %s12534_s3 = inlined_call_operand.hbm [shape: f32[1,128], index: 3, kind: input, shape index: {}]   ;;  %s12535_s4 = inlined_call_operand.hbm [shape: bf16[16,128,1024], index: 4, kind: input, shape index: {}]   ;;  %s12536_s5 = inlined_call_operand.hbm [shape: f32[1,1024], index: 5, kind: input, shape index: {}]   ;;  %s12537_s6 = inlined_call_operand.hbm [shape: bf16[1024,128], index: 6, kind: input, shape index: {}]   ;;  %s12538_s7 = inlined_call_operand.hbm [shape: f32[1,128], index: 7, kind: input, shape index: {}]   ;;  %s12539_s8 = inlined_call_operand.hbm [shape: f32[2,128], index: 8, kind: output, shape index: {}]  }
   0x1   :  { %14 = vsyncpa [#allocation7], 0 }
   0x2   :  { %15 = vsyncpa [#allocation10], 0 }
   0x3   :  { %16 = vsyncpa [#allocation13], 0 }
   0x4   :  { %17 = vsyncpa [#allocation5], 0  ;;  %s11666_s27 = smov [#allocation6]   ;;  %s11480_s9 = scalar_lea.hbm %s12533_s2, 128 }
   0x5   :  { %s37_s28 = sshll.u32 %s11666_s27, 4  ;;  %p11481_p0 = scmp.ne.s32.totalorder %s12533_s2, %s11480_s9  ;;  %s38_s28 = int_to_ptr.vmem [resolvable:$true] %s37_s28 }
   0x6   :  { %p11484_p1 = scmp.lt.u32.totalorder %s11480_s9, %s12533_s2 }
   0x8   :  { %p11486_p2 = pnand %p11484_p1, %p11481_p0 }
   0xa   :  { %11489 = shalt.err (!%p11486_p2)
}
   0xb   :  { %s11490_s14 = scalar_lea.vmem %s38_s28, 128  ;;  %p11495_p4 = scmp.lt.s32.totalorder %s38_s28, %s38_s28 }
   0xc   :  { %p11491_p3 = scmp.ne.s32.totalorder %s38_s28, %s11490_s14  ;;  %p11496_p5 = scmp.lt.s32.totalorder %s11490_s14, %s11490_s14 }
   0xe   :  { %p11497_p6 = por %p11496_p5, %p11495_p4 }
  0x10   :  { %p11498_p7 = pnand %p11497_p6, %p11491_p3 }
  0x12   :  { %11501 = shalt.err (!%p11498_p7)
}
  0x13   :  { %s11667_s15 = smov 64   ;;  %s11668_s16 = smov 4  }
  0x14   :  { %43 = dma.hbm_to_vmem [thread:$0]  %s12533_s2, 128, %s38_s28, [#allocation7], %s11667_s15, %s11667_s15, %s11668_s16  }
  0x15   :  { %s11669_s19 = smov [#allocation9]   ;;  %s11502_s23 = scalar_lea.hbm %s12535_s4, 131072 }
  0x16   :  { %s59_s20 = sshll.u32 %s11669_s19, 4  ;;  %p11503_p8 = scmp.ne.s32.totalorder %s12535_s4, %s11502_s23  ;;  %s60_s20 = int_to_ptr.vmem [resolvable:$true] %s59_s20 }
  0x17   :  { %p11506_p9 = scmp.lt.u32.totalorder %s11502_s23, %s12535_s4 }
  0x19   :  { %p11508_p10 = pnand %p11506_p9, %p11503_p8 }
  0x1b   :  { %11511 = shalt.err (!%p11508_p10)
}
  0x1c   :  { %s11512_s29 = scalar_lea.vmem %s60_s20, 131072  ;;  %p11517_p12 = scmp.lt.s32.totalorder %s60_s20, %s60_s20 }
  0x1d   :  { %p11513_p11 = scmp.ne.s32.totalorder %s60_s20, %s11512_s29  ;;  %p11518_p13 = scmp.lt.s32.totalorder %s11512_s29, %s11512_s29 }
  0x1f   :  { %p11519_p0 = por %p11518_p13, %p11517_p12 }
  0x21   :  { %p11520_p1 = pnand %p11519_p0, %p11513_p11 }
  0x23   :  { %11523 = shalt.err (!%p11520_p1)
}
  0x24   :  { %s11670_s2 = smov 512   ;;  %s11671_s28 = smov 32  }
  0x25   :  { %65 = dma.hbm_to_vmem [thread:$0]  %s12535_s4, 131072, %s60_s20, [#allocation10], %s11670_s2, %s11670_s2, %s11671_s28  }
  0x26   :  { %s11672_s10 = smov [#allocation12]   ;;  %s11673_s12 = smov [#allocation3]  }
  0x27   :  { %s81_s11 = sshll.u32 %s11672_s10, 4  ;;  %s23_s13 = sshll.u32 %s11673_s12, 4  ;;  %s82_s11 = int_to_ptr.vmem [resolvable:$true] %s81_s11  ;;  %s11755_s13 = int_to_ptr.vmem [resolvable:$true] %s23_s13 }
  0x28   :  { %s11524_s18 = scalar_lea.hbm %s12537_s6, 8192 }
  0x29   :  { %p11525_p2 = scmp.ne.s32.totalorder %s12537_s6, %s11524_s18  ;;  %p11528_p3 = scmp.lt.u32.totalorder %s11524_s18, %s12537_s6 }
  0x2b   :  { %p11530_p4 = pnand %p11528_p3, %p11525_p2 }
  0x2d   :  { %11533 = shalt.err (!%p11530_p4)
}
  0x2e   :  { %s11534_s4 = scalar_lea.vmem %s82_s11, 8192  ;;  %p11539_p6 = scmp.lt.s32.totalorder %s82_s11, %s82_s11 }
  0x2f   :  { %p11535_p5 = scmp.ne.s32.totalorder %s82_s11, %s11534_s4  ;;  %p11540_p7 = scmp.lt.s32.totalorder %s11534_s4, %s11534_s4 }
  0x31   :  { %p11541_p8 = por %p11540_p7, %p11539_p6 }
  0x33   :  { %p11542_p9 = pnand %p11541_p8, %p11535_p5 }
  0x35   :  { %11545 = shalt.err (!%p11542_p9)
}
  0x36   :  { %87 = dma.hbm_to_vmem [thread:$0]  %s12537_s6, 8192, %s82_s11, [#allocation13], %s11667_s15, %s11667_s15, %s11668_s16  }
  0x37   :  { %s11546_s27 = scalar_lea.hbm %s12531_s0, 512 }
  0x38   :  { %p11547_p10 = scmp.ne.s32.totalorder %s12531_s0, %s11546_s27  ;;  %p11550_p11 = scmp.lt.u32.totalorder %s11546_s27, %s12531_s0 }
  0x3a   :  { %p11552_p12 = pnand %p11550_p11, %p11547_p10 }
  0x3c   :  { %11555 = shalt.err (!%p11552_p12)
}
  0x3d   :  { %s11556_s9 = scalar_lea.vmem %s11755_s13, 512  ;;  %p11561_p0 = scmp.lt.s32.totalorder %s11755_s13, %s11755_s13 }
  0x3e   :  { %p11557_p13 = scmp.ne.s32.totalorder %s11755_s13, %s11556_s9  ;;  %p11562_p1 = scmp.lt.s32.totalorder %s11556_s9, %s11556_s9 }
  0x40   :  { %p11563_p2 = por %p11562_p1, %p11561_p0 }
  0x42   :  { %p11564_p3 = pnand %p11563_p2, %p11557_p13 }
  0x44   :  { %11567 = shalt.err (!%p11564_p3)
}
  0x45   :  { %s11674_s6 = smov 128   ;;  %s11675_s15 = smov 8  }
  0x46   :  { %29 = dma.hbm_to_vmem [thread:$0]  %s12531_s0, 512, %s11755_s13, [#allocation4], %s11674_s6, %s11674_s6, %s11675_s15  }
  0x47   :  { %s11676_s11 = smov [#allocation8]   ;;  %s11677_s14 = smov [#allocation11]  }
  0x48   :  { %s50_s12 = sshll.u32 %s11676_s11, 4  ;;  %s72_s17 = sshll.u32 %s11677_s14, 4  ;;  %s51_s12 = int_to_ptr.vmem [resolvable:$true] %s50_s12  ;;  %s73_s17 = int_to_ptr.vmem [resolvable:$true] %s72_s17 }
  0x49   :  { %s11568_s21 = scalar_lea.hbm %s12534_s3, 16 }
  0x4a   :  { %p11569_p4 = scmp.ne.s32.totalorder %s12534_s3, %s11568_s21  ;;  %p11572_p5 = scmp.lt.u32.totalorder %s11568_s21, %s12534_s3 }
  0x4c   :  { %p11574_p6 = pnand %p11572_p5, %p11569_p4 }
  0x4e   :  { %11577 = shalt.err (!%p11574_p6)
}
  0x4f   :  { %s11578_s0 = scalar_lea.vmem %s51_s12, 16  ;;  %s11582_s13 = scalar_lea.vmem %s51_s12, 32 }
  0x50   :  { %p11579_p7 = scmp.ne.s32.totalorder %s51_s12, %s11578_s0  ;;  %p11583_p8 = scmp.lt.s32.totalorder %s51_s12, %s51_s12 }
  0x51   :  { %p11584_p9 = scmp.lt.s32.totalorder %s11582_s13, %s11578_s0 }
  0x53   :  { %p11585_p10 = por %p11584_p9, %p11583_p8 }
  0x55   :  { %p11586_p11 = pnand %p11585_p10, %p11579_p7 }
  0x57   :  { %11589 = shalt.err (!%p11586_p11)
}
  0x58   :  { %53 = dma.hbm_to_vmem [thread:$0]  %s12534_s3, 16, %s51_s12, [#allocation7]  }
  0x59   :  { %s11590_s29 = scalar_lea.hbm %s12536_s5, 128 }
  0x5a   :  { %p11591_p12 = scmp.ne.s32.totalorder %s12536_s5, %s11590_s29  ;;  %p11594_p13 = scmp.lt.u32.totalorder %s11590_s29, %s12536_s5 }
  0x5c   :  { %p11596_p0 = pnand %p11594_p13, %p11591_p12 }
  0x5e   :  { %11599 = shalt.err (!%p11596_p0)
}
  0x5f   :  { %s11600_s6 = scalar_lea.vmem %s73_s17, 128  ;;  %p11605_p2 = scmp.lt.s32.totalorder %s73_s17, %s73_s17 }
  0x60   :  { %p11601_p1 = scmp.ne.s32.totalorder %s73_s17, %s11600_s6  ;;  %p11606_p3 = scmp.lt.s32.totalorder %s11600_s6, %s11600_s6 }
  0x62   :  { %p11607_p4 = por %p11606_p3, %p11605_p2 }
  0x64   :  { %p11608_p5 = pnand %p11607_p4, %p11601_p1 }
  0x66   :  { %11611 = shalt.err (!%p11608_p5)
}
  0x67   :  { %75 = dma.hbm_to_vmem [thread:$0]  %s12536_s5, 128, %s73_s17, [#allocation10]  }
  0x68   :  { %s11678_s16 = smov [#allocation14]   ;;  %s11612_s14 = scalar_lea.hbm %s12538_s7, 16 }
  0x69   :  { %s94_s10 = sshll.u32 %s11678_s16, 4  ;;  %p11613_p6 = scmp.ne.s32.totalorder %s12538_s7, %s11612_s14  ;;  %s95_s10 = int_to_ptr.vmem [resolvable:$true] %s94_s10 }
  0x6a   :  { %p11616_p7 = scmp.lt.u32.totalorder %s11612_s14, %s12538_s7 }
  0x6c   :  { %p11618_p8 = pnand %p11616_p7, %p11613_p6 }
  0x6e   :  { %11621 = shalt.err (!%p11618_p8)
}
  0x6f   :  { %s11622_s23 = scalar_lea.vmem %s95_s10, 16  ;;  %s11626_s5 = scalar_lea.vmem %s95_s10, 32 }
  0x70   :  { %p11623_p9 = scmp.ne.s32.totalorder %s95_s10, %s11622_s23  ;;  %p11627_p10 = scmp.lt.s32.totalorder %s95_s10, %s95_s10 }
  0x71   :  { %p11628_p11 = scmp.lt.s32.totalorder %s11626_s5, %s11622_s23 }
  0x73   :  { %p11629_p12 = por %p11628_p11, %p11627_p10 }
  0x75   :  { %p11630_p13 = pnand %p11629_p12, %p11623_p9 }
  0x77   :  { %11633 = shalt.err (!%p11630_p13)
}
  0x78   :  { %97 = dma.hbm_to_vmem [thread:$0]  %s12538_s7, 16, %s95_s10, [#allocation13]  }
  0x79   :  { %11656 = dma.done.wait [#allocation4], 512  }
  0x7a   :  { %11657 = vsyncadd [#allocation4], 4294966784 }
  0x7b   :  { %11658 = dma.done.wait [#allocation7], 144  }
  0x7c   :  { %11659 = vsyncadd [#allocation7], 4294967152 }
  0x7d   :  { %11660 = dma.done.wait [#allocation10], 131200  }
  0x7e   :  { %11661 = vsyncadd [#allocation10], 4294836096 }
  0x7f   :  { %11662 = dma.done.wait [#allocation13], 8208  }
  0x80   :  { %11663 = vsyncadd [#allocation13], 4294959088  ;;  %v11411_v0 = vld [vmem:[%s12532_s1] sm:$0xff]   ;;  %v11412_v1 = vld [vmem:[%s12532_s1 + $0x8] sm:$0xff]   ;;  %vm158_vm0 = vcmask 523264   ;;  %v11679_v15 = vmov 0.0  }
  0x81   :  { %11370 = vmatprep.subr.bf16.mxu0 %v11411_v0  ;;  %v11413_v2 = vld [vmem:[%s12532_s1 + $0x10] sm:$0xff]   ;;  %v121_v4 = vld [vmem:[#allocation3 + $0x8] sm:$0xff]  ;;  %v122_v7 = vld [vmem:[#allocation3 + $0x10] sm:$0xff]  ;;  %11382 = vmatprep.subr.bf16.mxu1 %v11679_v15  ;;  %vm11680_vm1 = vmmov 0   ;;  %vm262_vm2 = vcmask 130048   ;;  %vm525_vm3 = vcmask 1041409  }
  0x82   :  { %11371 = vmatpush3.bf16.msra.mxu0 %v11411_v0  ;;  %v120_v3 = vld [vmem:[#allocation3] sm:$0xff]  ;;  %v11414_v6 = vld [vmem:[%s12532_s1 + $0x18] sm:$0xff]   ;;  %v123_v8 = vld [vmem:[#allocation3 + $0x18] sm:$0xff]  ;;  %11384 = vmatprep.mubr.msk.bf16.mxu1 %vm11680_vm1, %v11679_v15  ;;  %s11682_s1 = smov [#allocation15]  }
  0x83   :  { %11372 = vmatprep.subr.bf16.mxu0 %v11412_v1  ;;  %v124_v5 = vpack.c.bf16 %v121_v4, %v120_v3  ;;  %v125_v9 = vpack.c.bf16 %v123_v8, %v122_v7  ;;  %v11415_v13 = vld [vmem:[#allocation6] sm:$0xff]   ;;  %v457_v16 = vld [vmem:[#allocation9 + $0x208] sm:$0xff]  ;;  %v456_v25 = vld [vmem:[#allocation9 + $0x200] sm:$0xff]  ;;  %s10161_s29 = sshll.u32 %s11682_s1, 4  ;;  %s10162_s29 = int_to_ptr.vmem [resolvable:$true] %s10161_s29 }
  0x84   :  { %11383 = vmatpush3.bf16.msra.mxu1 %v11415_v13  ;;  %v461_v17 = vld [vmem:[#allocation9 + $0x228] sm:$0xff]  ;;  %v460_v26 = vld [vmem:[#allocation9 + $0x220] sm:$0xff]  ;;  %s11634_s2 = scalar_lea.vmem %s10162_s29, 32  ;;  %p11639_p1 = scmp.lt.s32.totalorder %s10162_s29, %s10162_s29 }
  0x85   :  { %11378 = vmatprep.mubr.msk.bf16.mxu0 %vm158_vm0, %v124_v5  ;;  %11388 = vmatprep.subr.bf16.mxu1 %v11679_v15  ;;  %v10185_v18 = vcombine.low %v457_v16, %v461_v17  ;;  %v10186_v19 = vcombine.high %v457_v16, %v461_v17  ;;  %v465_v20 = vld [vmem:[#allocation9 + $0x248] sm:$0xff]  ;;  %v10184_v30 = vcombine.high %v456_v25, %v460_v26  ;;  %v464_v32 = vld [vmem:[#allocation9 + $0x240] sm:$0xff]  ;;  %p11635_p0 = scmp.ne.s32.totalorder %s10162_s29, %s11634_s2  ;;  %p11640_p2 = scmp.lt.s32.totalorder %s11634_s2, %s11634_s2 }
  0x86   :  { %11373 = vmatpush3.bf16.msra.mxu0 %v11412_v1  ;;  %v469_v21 = vld [vmem:[#allocation9 + $0x268] sm:$0xff]  ;;  %v468_v33 = vld [vmem:[#allocation9 + $0x260] sm:$0xff]  ;;  %v10183_v34 = vcombine.low %v456_v25, %v460_v26 }
  0x87   :  { %11374 = vmatprep.subr.bf16.mxu0 %v11413_v2  ;;  %v10194_v22 = vcombine.high %v465_v20, %v469_v21  ;;  %v10193_v23 = vcombine.low %v465_v20, %v469_v21  ;;  %v10192_v36 = vcombine.high %v464_v32, %v468_v33  ;;  %v10191_v37 = vcombine.low %v464_v32, %v468_v33  ;;  %v472_v38 = vld [vmem:[#allocation9 + $0x280] sm:$0xff]  ;;  %v473_v40 = vld [vmem:[#allocation9 + $0x288] sm:$0xff]  ;;  %p11641_p3 = por %p11640_p2, %p11639_p1 }
  0x88   :  { %v476_v39 = vld [vmem:[#allocation9 + $0x2a0] sm:$0xff]  ;;  %v477_v42 = vld [vmem:[#allocation9 + $0x2a8] sm:$0xff]  ;;  %v11681_v21 = vmov 0  }
  0x89   :  { %v10200_v41 = vcombine.high %v472_v38, %v476_v39  ;;  %v10199_v43 = vcombine.low %v472_v38, %v476_v39  ;;  %v10201_v44 = vcombine.low %v473_v40, %v477_v42  ;;  %v10202_v45 = vcombine.high %v473_v40, %v477_v42  ;;  %v480_v46 = vld [vmem:[#allocation9 + $0x2c0] sm:$0xff]  ;;  %v481_v48 = vld [vmem:[#allocation9 + $0x2c8] sm:$0xff]  ;;  %p11642_p4 = pnand %p11641_p3, %p11635_p0 }
  0x8a   :  { %11375 = vmatpush3.bf16.msra.mxu0 %v11413_v2  ;;  %v484_v47 = vld [vmem:[#allocation9 + $0x2e0] sm:$0xff]  ;;  %v485_v50 = vld [vmem:[#allocation9 + $0x2e8] sm:$0xff] }
  0x8b   :  { %11376 = vmatprep.subr.bf16.mxu0 %v11414_v6  ;;  %v10208_v49 = vcombine.high %v480_v46, %v484_v47  ;;  %v10207_v51 = vcombine.low %v480_v46, %v484_v47  ;;  %v10209_v52 = vcombine.low %v481_v48, %v485_v50  ;;  %v10210_v53 = vcombine.high %v481_v48, %v485_v50  ;;  %v488_v54 = vld [vmem:[#allocation9 + $0x300] sm:$0xff]  ;;  %v489_v56 = vld [vmem:[#allocation9 + $0x308] sm:$0xff]  ;;  %v11861_v50 = vld [vmem:[#allocation9 + $0x250] sm:$0xff] }
  0x8c   :  { %v492_v55 = vld [vmem:[#allocation9 + $0x320] sm:$0xff]  ;;  %v493_v58 = vld [vmem:[#allocation9 + $0x328] sm:$0xff] }
  0x8d   :  { %v10216_v57 = vcombine.high %v488_v54, %v492_v55  ;;  %v10215_v59 = vcombine.low %v488_v54, %v492_v55  ;;  %v10217_v60 = vcombine.low %v489_v56, %v493_v58  ;;  %v10218_v61 = vcombine.high %v489_v56, %v493_v58  ;;  %v496_v62 = vld [vmem:[#allocation9 + $0x340] sm:$0xff]  ;;  %v497_v0 = vld [vmem:[#allocation9 + $0x348] sm:$0xff] }
  0x8e   :  { %11377 = vmatpush3.bf16.msra.mxu0 %v11414_v6  ;;  %v500_v63 = vld [vmem:[#allocation9 + $0x360] sm:$0xff]  ;;  %v501_v2 = vld [vmem:[#allocation9 + $0x368] sm:$0xff] }
  0x8f   :  { %890 = vmatprep.subr.bf16.mxu0 %v10186_v19  ;;  %v10224_v1 = vcombine.high %v496_v62, %v500_v63  ;;  %v10223_v3 = vcombine.low %v496_v62, %v500_v63  ;;  %v10225_v4 = vcombine.low %v497_v0, %v501_v2  ;;  %v10226_v5 = vcombine.high %v497_v0, %v501_v2  ;;  %v504_v6 = vld [vmem:[#allocation9 + $0x380] sm:$0xff]  ;;  %v505_v8 = vld [vmem:[#allocation9 + $0x388] sm:$0xff]  ;;  %v11839_v19 = vld [vmem:[#allocation9 + $0x210] sm:$0xff] }
  0x90   :  { %v508_v7 = vld [vmem:[#allocation9 + $0x3a0] sm:$0xff]  ;;  %v513_v17 = vld [vmem:[#allocation9 + $0x3c8] sm:$0xff] }
  0x91   :  { %11379 = vmatmul.mubr.msk.bf16.vlgmr.msra.gmra.mrb[0].mxu0 %vm158_vm0, %v125_v9  ;;  %v10231_v9 = vcombine.low %v504_v6, %v508_v7 }
  0x92   :  { %891 = vmatpush1.bf16.msra.mxu0 %v10185_v18  ;;  %v517_v18 = vld [vmem:[#allocation9 + $0x3e8] sm:$0xff]  ;;  %922 = vmatprep.mubr.bf16.mxu0 %v11681_v21 }
  0x93   :  { %892 = vmatprep.subr.bf16.mxu0 %v10194_v22  ;;  %v10242_v20 = vcombine.high %v513_v17, %v517_v18  ;;  %v11842_v22 = vld [vmem:[#allocation9 + $0x230] sm:$0xff] }
  0x94   :  { %v10187_v25 = vcombine.low %v11839_v19, %v11842_v22 }
  0x96   :  { %893 = vmatpush1.bf16.msra.mxu0 %v10193_v23  ;;  %v11844_v23 = vld [vmem:[#allocation9 + $0x218] sm:$0xff] }
  0x97   :  { %894 = vmatprep.subr.bf16.mxu0 %v10202_v45 }
  0x9a   :  { %895 = vmatpush1.bf16.msra.mxu0 %v10201_v44 }
  0x9b   :  { %896 = vmatprep.subr.bf16.mxu0 %v10210_v53 }
  0x9e   :  { %897 = vmatpush1.bf16.msra.mxu0 %v10209_v52  ;;  %v467_v52 = vld [vmem:[#allocation9 + $0x258] sm:$0xff] }
  0x9f   :  { %898 = vmatprep.subr.bf16.mxu0 %v10218_v61 }
  0xa2   :  { %899 = vmatpush1.bf16.msra.mxu0 %v10217_v60 }
  0xa3   :  { %900 = vmatprep.subr.bf16.mxu0 %v10226_v5 }
  0xa6   :  { %901 = vmatpush1.bf16.msra.mxu0 %v10225_v4 }
 0x164   :  { %v11380_v10 = vpop.f32.mrb[0].mxu0 }
 0x165   :  { %309 = vxpose.xlu1.b32.start [1/2] (short) (narrow) %v11380_v10, 16  ;;  %v199_v11 = vpop.f32.mrb[1].mxu0  ;;  %v10232_v10 = vcombine.high %v504_v6, %v508_v7 }
 0x166   :  { %217 = vxpose.xlu0.b32.start [1/2] (short) (narrow) %v199_v11, 16  ;;  %v11381_v12 = vpop.f32.mrb[2].mxu0  ;;  %v509_v11 = vld [vmem:[#allocation9 + $0x3a8] sm:$0xff] }
 0x167   :  { %v202_v14 = vpop.f32.mrb[3].mxu0 }
 0x169   :  { %310 = vxpose.xlu1.b32.end [2/2] (short) (narrow) %v11381_v12, 16  ;;  %v512_v12 = vld [vmem:[#allocation9 + $0x3c0] sm:$0xff] }
 0x16a   :  { %218 = vxpose.xlu0.b32.end [2/2] (short) (narrow) %v202_v14, 16  ;;  %v10233_v14 = vcombine.low %v505_v8, %v509_v11 }
 0x1e5   :  { %v325_v27 = vpop.trf.xlu1 }
 0x1e6   :  { %v233_v24 = vpop.trf.xlu0 }
 0x1e9   :  { %v326_v31 = vpop.trf.xlu1 }
 0x1ea   :  { %v234_v28 = vpop.trf.xlu0  ;;  %v341_v35 = vpack.c.bf16 %v326_v31, %v325_v27  ;;  %v10179_v31 = vld [vmem:[#allocation8] ss:$0 sm:$0xff] }
 0x1eb   :  { %v249_v29 = vpack.c.bf16 %v234_v28, %v233_v24  ;;  %v11846_v24 = vld [vmem:[#allocation9 + $0x238] sm:$0xff]  ;;  %v10241_v28 = vcombine.low %v513_v17, %v517_v18 }
 0x1ec   :  { %v10189_v26 = vcombine.low %v11844_v23, %v11846_v24 }
 0x1ed   :  { %11385 = vmatmul.mubr.msk.bf16.vlgmr.msra.gmra.mrb[0].mxu1 %vm262_vm2, %v249_v29  ;;  %v10188_v29 = vcombine.high %v11839_v19, %v11842_v22  ;;  %v486_v22 = vld [vmem:[#allocation9 + $0x2f0] sm:$0xff] }
 0x1ee   :  { %11389 = vmatpush3.bf16.msra.mxu1 %v11415_v13  ;;  %11390 = vmatprep.mubr.msk.bf16.mxu1 %vm11680_vm1, %v11679_v15  ;;  %v516_v13 = vld [vmem:[#allocation9 + $0x3e0] sm:$0xff]  ;;  %v10234_v15 = vcombine.high %v505_v8, %v509_v11  ;;  %v475_v11 = vld [vmem:[#allocation9 + $0x298] sm:$0xff] }
 0x1ef   :  { %849 = vmatprep.subr.bf16.mxu1 %v10184_v30  ;;  %v10240_v16 = vcombine.high %v512_v12, %v516_v13  ;;  %v10239_v27 = vcombine.low %v512_v12, %v516_v13  ;;  %v10190_v30 = vcombine.high %v11844_v23, %v11846_v24  ;;  %v479_v12 = vld [vmem:[#allocation9 + $0x2b8] sm:$0xff] }
 0x1f0   :  { %902 = vmatprep.subr.bf16.mxu0 %v10234_v15  ;;  %v10206_v19 = vcombine.high %v475_v11, %v479_v12 }
 0x1f1   :  { %903 = vmatpush1.bf16.msra.mxu0 %v10233_v14 }
 0x1f2   :  { %904 = vmatprep.subr.bf16.mxu0 %v10242_v20 }
 0x1f5   :  { %11391 = vmatmul.mubr.msk.bf16.vlgmr.msra.gmra.mrb[4].mxu1 %vm262_vm2, %v341_v35  ;;  %905 = vmatpush1.bf16.msra.mxu0 %v10241_v28 }
 0x1f6   :  { %850 = vmatpush1.bf16.msra.mxu1 %v10183_v34  ;;  %881 = vmatprep.mubr.bf16.mxu1 %v11681_v21 }
 0x1f7   :  { %851 = vmatprep.subr.bf16.mxu1 %v10192_v36  ;;  %972 = vmatprep.subr.bf16.mxu0 %v10190_v30 }
 0x1fa   :  { %852 = vmatpush1.bf16.msra.mxu1 %v10191_v37 }
 0x1fb   :  { %853 = vmatprep.subr.bf16.mxu1 %v10200_v41 }
 0x1fe   :  { %854 = vmatpush1.bf16.msra.mxu1 %v10199_v43 }
 0x1ff   :  { %855 = vmatprep.subr.bf16.mxu1 %v10208_v49 }
 0x202   :  { %856 = vmatpush1.bf16.msra.mxu1 %v10207_v51  ;;  %v470_v51 = vld [vmem:[#allocation9 + $0x270] sm:$0xff] }
 0x203   :  { %857 = vmatprep.subr.bf16.mxu1 %v10216_v57  ;;  %v10196_v0 = vcombine.high %v11861_v50, %v470_v51 }
 0x206   :  { %858 = vmatpush1.bf16.msra.mxu1 %v10215_v59  ;;  %v471_v59 = vld [vmem:[#allocation9 + $0x278] sm:$0xff] }
 0x207   :  { %859 = vmatprep.subr.bf16.mxu1 %v10224_v1  ;;  %v10197_v28 = vcombine.low %v467_v52, %v471_v59 }
 0x20a   :  { %860 = vmatpush1.bf16.msra.mxu1 %v10223_v3  ;;  %v11877_v3 = vld [vmem:[#allocation9 + $0x290] sm:$0xff] }
 0x20b   :  { %861 = vmatprep.subr.bf16.mxu1 %v10232_v10  ;;  %v478_v10 = vld [vmem:[#allocation9 + $0x2b0] sm:$0xff] }
 0x20e   :  { %862 = vmatpush1.bf16.msra.mxu1 %v10231_v9  ;;  %v10198_v9 = vcombine.high %v467_v52, %v471_v59  ;;  %v491_v59 = vld [vmem:[#allocation9 + $0x318] sm:$0xff] }
 0x20f   :  { %863 = vmatprep.subr.bf16.mxu1 %v10240_v16 }
 0x212   :  { %864 = vmatpush1.bf16.msra.mxu1 %v10239_v27  ;;  %v10195_v27 = vcombine.low %v11861_v50, %v470_v51 }
 0x213   :  { %931 = vmatprep.subr.bf16.mxu1 %v10188_v29 }
 0x2c0   :  { %v300_v32 = vpop.f32.mrb[0].mxu1 }
 0x2c1   :  { %v11386_v33 = vpop.f32.mrb[1].mxu1  ;;  %v301_v35 = vadd.f32 %v10179_v31, %v300_v32  ;;  %v482_v32 = vld [vmem:[#allocation9 + $0x2d0] sm:$0xff] }
 0x2c2   :  { %v303_v34 = vpop.f32.mrb[2].mxu1 }
 0x2c3   :  { %v304_v36 = vadd.f32 %v10179_v31, %v303_v34  ;;  %v11387_v37 = vpop.f32.mrb[3].mxu1 }
 0x2c5   :  { %v307_v38 = vpack.c.bf16 %v304_v36, %v301_v35  ;;  %v487_v36 = vld [vmem:[#allocation9 + $0x2f8] sm:$0xff] }
 0x2c7   :  { %308 = vst [vmem:[#allocation2] sm:$0xff] %v307_v38 }
 0x2c8   :  { %v379_v39 = vpop.f32.mrb[4].mxu1 }
 0x2c9   :  { %v11392_v40 = vpop.f32.mrb[5].mxu1  ;;  %v380_v42 = vadd.f32 %v10179_v31, %v379_v39  ;;  %v10203_v39 = vcombine.low %v11877_v3, %v478_v10 }
 0x2ca   :  { %v382_v41 = vpop.f32.mrb[6].mxu1 }
 0x2cb   :  { %v383_v43 = vadd.f32 %v10179_v31, %v382_v41  ;;  %v11393_v44 = vpop.f32.mrb[7].mxu1  ;;  %v10204_v31 = vcombine.high %v11877_v3, %v478_v10 }
 0x2cd   :  { %v386_v45 = vpack.c.bf16 %v383_v43, %v380_v42  ;;  %v10205_v42 = vcombine.low %v475_v11, %v479_v12  ;;  %v10212_v43 = vcombine.high %v482_v32, %v486_v22 }
 0x2ce   :  { %v389_v46 = vld [vmem:[#allocation2] sm:$0x1]  ;;  %v11857_v48 = vld [vmem:[#allocation2] sm:$0x2]  ;;  %v11859_v49 = vld [vmem:[#allocation2] sm:$0x4] }
 0x2cf   :  { %388 = vst [vmem:[#allocation2 + $0x8] sm:$0xff] %v386_v45  ;;  %v522_v47 = vunpack.c.l.b16 %v389_v46  ;;  %v1570_v55 = vunpack.c.l.b16 %v11857_v48  ;;  %v11866_v56 = vld [vmem:[#allocation2] sm:$0x8]  ;;  %v2700_v62 = vunpack.c.l.b16 %v11859_v49  ;;  %v11882_v7 = vld [vmem:[#allocation2] sm:$0x10] }
 0x2d0   :  { %v3830_v14 = vunpack.c.l.b16 %v11866_v56  ;;  %v11898_v20 = vld [vmem:[#allocation2] sm:$0x20]  ;;  %v4960_v29 = vunpack.c.h.b16 %v11882_v7  ;;  %v11928_v38 = vld [vmem:[#allocation2] sm:$0x40] }
 0x2d1   :  { %v524_v58 = vrot.slane %v522_v47, 1  ;;  %v2134_v16 = vrot.slane %v1570_v55, 3  ;;  %v3264_v17 = vrot.slane %v2700_v62, 5 }
 0x2d2   :  { %v4394_v23 = vrot.slane %v3830_v14, 7  ;;  %v5523_v41 = vrot.slane %v4960_v29, 1 }
 0x2d6   :  { %v390_v53 = vld [vmem:[#allocation2 + $0x8] sm:$0x1]  ;;  %v11863_v54 = vld [vmem:[#allocation2 + $0x8] sm:$0x2]  ;;  %v11869_v61 = vld [vmem:[#allocation2 + $0x8] sm:$0x4] }
 0x2d7   :  { %v523_v57 = vunpack.c.l.b16 %v390_v53  ;;  %v1571_v60 = vunpack.c.l.b16 %v11863_v54  ;;  %v11872_v63 = vld [vmem:[#allocation2 + $0x8] sm:$0x8]  ;;  %v2701_v1 = vunpack.c.l.b16 %v11869_v61  ;;  %v11896_v18 = vld [vmem:[#allocation2 + $0x8] sm:$0x10]  ;;  %v11904_v30 = vld [vmem:[#allocation2 + $0x8] sm:$0x20]  ;;  %v7218_v53 = vunpack.c.h.b16 %v11928_v38 }
 0x2d8   :  { %v3831_v6 = vunpack.c.l.b16 %v11872_v63  ;;  %v4961_v24 = vunpack.c.h.b16 %v11896_v18  ;;  %v6089_v37 = vunpack.c.h.b16 %v11904_v30  ;;  %v11936_v45 = vld [vmem:[#allocation2 + $0x8] sm:$0x40]  ;;  %v11938_v46 = vld [vmem:[#allocation2 + $0x8] sm:$0x80]  ;;  %v1515_v54 = vld [vmem:[#allocation9 + $0x458] sm:$0xff] }
 0x2d9   :  { %v526_v2 = vsel %vm525_vm3, %v523_v57, %v524_v58  ;;  %v1013_v4 = vrot.slane %v523_v57, 7  ;;  %v2135_v5 = vrot.slane %v1571_v60, 2  ;;  %v3265_v13 = vrot.slane %v2701_v1, 4  ;;  %v11950_v57 = vld [vmem:[#allocation2] sm:$0x80]  ;;  %v494_v58 = vld [vmem:[#allocation9 + $0x330] sm:$0xff] }
 0x2da   :  { %v11884_v8 = vpack.c.b16 %v526_v2, %v526_v2  ;;  %v4395_v35 = vrot.slane %v3831_v6, 6  ;;  %v11943_v50 = vsel %vm525_vm3, %v4961_v24, %v5523_v41  ;;  %v6653_v52 = vrot.slane %v6089_v37, 2  ;;  %v510_v41 = vld [vmem:[#allocation9 + $0x3b0] sm:$0xff]  ;;  %v2645_v61 = vld [vmem:[#allocation9 + $0x858] sm:$0xff] }
 0x2db   :  { %v11890_v15 = vsel %vm525_vm3, %v1013_v4, %v522_v47  ;;  %v11914_v33 = vsel %vm525_vm3, %v2135_v5, %v2134_v16  ;;  %v11917_v34 = vsel %vm525_vm3, %v3265_v13, %v3264_v17  ;;  %v490_v47 = vld [vmem:[#allocation9 + $0x310] sm:$0xff]  ;;  %v7219_v3 = vunpack.c.h.b16 %v11936_v45  ;;  %v3775_v63 = vld [vmem:[#allocation9 + $0xc58] sm:$0xff] }
 0x2dc   :  { %882 = vmatmul.mubr.bf16.vlgmr.msra.gmra.mrb[8].mxu1 %v11884_v8  ;;  %923 = vmatmul.mubr.bf16.vlgmr.msra.gmra.mrb[4].mxu0 %v11884_v8  ;;  %v11932_v40 = vsel %vm525_vm3, %v4395_v35, %v4394_v23  ;;  %v8349_v4 = vunpack.c.h.b16 %v11938_v46  ;;  %v10211_v5 = vcombine.low %v482_v32, %v486_v22  ;;  %v8348_v10 = vunpack.c.h.b16 %v11950_v57  ;;  %v498_v13 = vld [vmem:[#allocation9 + $0x350] sm:$0xff]  ;;  %v4909_v18 = vld [vmem:[#allocation9 + $0x1078] sm:$0xff] }
 0x2dd   :  { %932 = vmatpush1.bf16.msra.mxu1 %v10187_v25  ;;  %973 = vmatpush1.bf16.msra.mxu0 %v10189_v26  ;;  %v483_v25 = vld [vmem:[#allocation9 + $0x2d8] sm:$0xff]  ;;  %v6088_v26 = vunpack.c.h.b16 %v11898_v20  ;;  %v10220_v11 = vcombine.high %v490_v47, %v494_v58  ;;  %v7782_v16 = vrot.slane %v7218_v53, 5  ;;  %v7783_v17 = vrot.slane %v7219_v3, 4 }
 0x2de   :  { %933 = vmatprep.subr.bf16.mxu1 %v10196_v0  ;;  %974 = vmatprep.subr.bf16.mxu0 %v10198_v9  ;;  %v10214_v44 = vcombine.high %v483_v25, %v487_v36  ;;  %v495_v0 = vld [vmem:[#allocation9 + $0x338] sm:$0xff]  ;;  %v10213_v9 = vcombine.low %v483_v25, %v487_v36  ;;  %v8913_v32 = vrot.slane %v8349_v4, 6  ;;  %v8912_v25 = vrot.slane %v8348_v10, 7 }
 0x2df   :  { %963 = vmatprep.mubr.bf16.mxu1 %v11681_v21  ;;  %1004 = vmatprep.mubr.bf16.mxu0 %v11681_v21  ;;  %v6652_v51 = vrot.slane %v6088_v26, 3  ;;  %v10222_v12 = vcombine.high %v491_v59, %v495_v0  ;;  %v11965_v35 = vsel %vm525_vm3, %v7783_v17, %v7782_v16  ;;  %v10221_v22 = vcombine.low %v491_v59, %v495_v0  ;;  %v514_v59 = vld [vmem:[#allocation9 + $0x3d0] sm:$0xff]  ;;  %v6033_v30 = vld [vmem:[#allocation9 + $0x1458] sm:$0xff] }
 0x2e0   :  { %v518_v0 = vld [vmem:[#allocation9 + $0x3f0] sm:$0xff]  ;;  %v7163_v45 = vld [vmem:[#allocation9 + $0x1858] sm:$0xff] }
 0x2e1   :  { %934 = vmatpush1.bf16.msra.mxu1 %v10195_v27  ;;  %975 = vmatpush1.bf16.msra.mxu0 %v10197_v28  ;;  %v11953_v2 = vsel %vm525_vm3, %v6653_v52, %v6652_v51  ;;  %v502_v27 = vld [vmem:[#allocation9 + $0x370] sm:$0xff]  ;;  %v499_v28 = vld [vmem:[#allocation9 + $0x358] sm:$0xff]  ;;  %v10244_v16 = vcombine.high %v514_v59, %v518_v0 }
 0x2e2   :  { %935 = vmatprep.subr.bf16.mxu1 %v10204_v31  ;;  %976 = vmatprep.subr.bf16.mxu0 %v10206_v19  ;;  %v503_v31 = vld [vmem:[#allocation9 + $0x378] sm:$0xff]  ;;  %v10219_v19 = vcombine.low %v490_v47, %v494_v58  ;;  %v10228_v36 = vcombine.high %v498_v13, %v502_v27  ;;  %v10227_v51 = vcombine.low %v498_v13, %v502_v27  ;;  %v392_v13 = vld [vmem:[#allocation9 + $0x8] sm:$0xff] }
 0x2e3   :  { %v10230_v23 = vcombine.high %v499_v28, %v503_v31  ;;  %v10229_v52 = vcombine.low %v499_v28, %v503_v31  ;;  %v396_v27 = vld [vmem:[#allocation9 + $0x28] sm:$0xff]  ;;  %v10243_v28 = vcombine.low %v514_v59, %v518_v0  ;;  %v8293_v46 = vld [vmem:[#allocation9 + $0x1c58] sm:$0xff] }
 0x2e4   :  { %v408_v59 = vld [vmem:[#allocation9 + $0x88] sm:$0xff] }
 0x2e5   :  { %936 = vmatpush1.bf16.msra.mxu1 %v10203_v39  ;;  %977 = vmatpush1.bf16.msra.mxu0 %v10205_v42  ;;  %v506_v39 = vld [vmem:[#allocation9 + $0x390] sm:$0xff]  ;;  %v507_v42 = vld [vmem:[#allocation9 + $0x398] sm:$0xff]  ;;  %v412_v0 = vld [vmem:[#allocation9 + $0xa8] sm:$0xff] }
 0x2e6   :  { %937 = vmatprep.subr.bf16.mxu1 %v10212_v43  ;;  %978 = vmatprep.subr.bf16.mxu0 %v10214_v44  ;;  %v511_v43 = vld [vmem:[#allocation9 + $0x3b8] sm:$0xff]  ;;  %v11970_v44 = vsel %vm525_vm3, %v8913_v32, %v8912_v25  ;;  %v10236_v47 = vcombine.high %v506_v39, %v510_v41  ;;  %v391_v32 = vld [vmem:[#allocation9] sm:$0xff]  ;;  %v10250_v25 = vcombine.high %v392_v13, %v396_v27 }
 0x2e7   :  { %v10238_v58 = vcombine.high %v507_v42, %v511_v43 }
 0x2e9   :  { %938 = vmatpush1.bf16.msra.mxu1 %v10211_v5  ;;  %979 = vmatpush1.bf16.msra.mxu0 %v10213_v9  ;;  %v515_v5 = vld [vmem:[#allocation9 + $0x3d8] sm:$0xff] }
 0x2ea   :  { %939 = vmatprep.subr.bf16.mxu1 %v10220_v11  ;;  %980 = vmatprep.subr.bf16.mxu0 %v10222_v12  ;;  %v519_v9 = vld [vmem:[#allocation9 + $0x3f8] sm:$0xff]  ;;  %v10235_v11 = vcombine.low %v506_v39, %v510_v41  ;;  %v10237_v12 = vcombine.low %v507_v42, %v511_v43  ;;  %v400_v39 = vld [vmem:[#allocation9 + $0x48] sm:$0xff]  ;;  %v10249_v43 = vcombine.low %v392_v13, %v396_v27 }
 0x2eb   :  { %v10246_v17 = vcombine.high %v515_v5, %v519_v9  ;;  %v10245_v31 = vcombine.low %v515_v5, %v519_v9  ;;  %v404_v41 = vld [vmem:[#allocation9 + $0x68] sm:$0xff] }
 0x2ec   :  { %v10257_v9 = vcombine.low %v400_v39, %v404_v41 }
 0x2ed   :  { %940 = vmatpush1.bf16.msra.mxu1 %v10219_v19  ;;  %981 = vmatpush1.bf16.msra.mxu0 %v10221_v22  ;;  %v395_v19 = vld [vmem:[#allocation9 + $0x20] sm:$0xff] }
 0x2ee   :  { %941 = vmatprep.subr.bf16.mxu1 %v10228_v36  ;;  %982 = vmatprep.subr.bf16.mxu0 %v10230_v23  ;;  %v10248_v22 = vcombine.high %v391_v32, %v395_v19  ;;  %v399_v36 = vld [vmem:[#allocation9 + $0x40] sm:$0xff]  ;;  %v10247_v42 = vcombine.low %v391_v32, %v395_v19  ;;  %v416_v32 = vld [vmem:[#allocation9 + $0xc8] sm:$0xff] }
 0x2ef   :  { %v403_v23 = vld [vmem:[#allocation9 + $0x60] sm:$0xff]  ;;  %v420_v19 = vld [vmem:[#allocation9 + $0xe8] sm:$0xff] }
 0x2f0   :  { %v10255_v5 = vcombine.low %v399_v36, %v403_v23 }
 0x2f1   :  { %942 = vmatpush1.bf16.msra.mxu1 %v10227_v51  ;;  %983 = vmatpush1.bf16.msra.mxu0 %v10229_v52  ;;  %v10256_v51 = vcombine.high %v399_v36, %v403_v23  ;;  %v10258_v52 = vcombine.high %v400_v39, %v404_v41  ;;  %v428_v36 = vld [vmem:[#allocation9 + $0x128] sm:$0xff]  ;;  %v10273_v39 = vcombine.low %v416_v32, %v420_v19 }
 0x2f2   :  { %943 = vmatprep.subr.bf16.mxu1 %v10236_v47  ;;  %984 = vmatprep.subr.bf16.mxu0 %v10238_v58  ;;  %v407_v47 = vld [vmem:[#allocation9 + $0x80] sm:$0xff] }
 0x2f3   :  { %v411_v58 = vld [vmem:[#allocation9 + $0xa0] sm:$0xff] }
 0x2f4   :  { %v10263_v13 = vcombine.low %v407_v47, %v411_v58 }
 0x2f5   :  { %944 = vmatpush1.bf16.msra.mxu1 %v10235_v11  ;;  %985 = vmatpush1.bf16.msra.mxu0 %v10237_v12  ;;  %v10264_v11 = vcombine.high %v407_v47, %v411_v58  ;;  %v10266_v12 = vcombine.high %v408_v59, %v412_v0  ;;  %v436_v47 = vld [vmem:[#allocation9 + $0x168] sm:$0xff] }
 0x2f6   :  { %945 = vmatprep.subr.bf16.mxu1 %v10244_v16  ;;  %986 = vmatprep.subr.bf16.mxu0 %v10246_v17  ;;  %v415_v16 = vld [vmem:[#allocation9 + $0xc0] sm:$0xff] }
 0x2f7   :  { %v419_v17 = vld [vmem:[#allocation9 + $0xe0] sm:$0xff] }
 0x2f8   :  { %v10272_v27 = vcombine.high %v415_v16, %v419_v17  ;;  %v10271_v23 = vcombine.low %v415_v16, %v419_v17  ;;  %v444_v16 = vld [vmem:[#allocation9 + $0x1a8] sm:$0xff] }
 0x2f9   :  { %946 = vmatpush1.bf16.msra.mxu1 %v10243_v28  ;;  %987 = vmatpush1.bf16.msra.mxu0 %v10245_v31  ;;  %v10274_v28 = vcombine.high %v416_v32, %v420_v19  ;;  %v423_v31 = vld [vmem:[#allocation9 + $0x100] sm:$0xff] }
 0x2fa   :  { %1337 = vmatprep.subr.bf16.mxu1 %v10248_v22  ;;  %1378 = vmatprep.subr.bf16.mxu0 %v10250_v25  ;;  %v427_v22 = vld [vmem:[#allocation9 + $0x120] sm:$0xff]  ;;  %v424_v25 = vld [vmem:[#allocation9 + $0x108] sm:$0xff] }
 0x2fb   :  { %v10280_v41 = vcombine.high %v423_v31, %v427_v22  ;;  %v10279_v58 = vcombine.low %v423_v31, %v427_v22  ;;  %v452_v31 = vld [vmem:[#allocation9 + $0x1e8] sm:$0xff] }
 0x2fc   :  { %964 = vmatmul.mubr.bf16.vlgmr.msra.gmra.mrb[12].mxu1 %v11884_v8  ;;  %1005 = vmatmul.mubr.bf16.vlgmr.msra.gmra.mrb[8].mxu0 %v11884_v8  ;;  %v10265_v8 = vcombine.low %v408_v59, %v412_v0  ;;  %v10281_v59 = vcombine.low %v424_v25, %v428_v36 }
 0x2fd   :  { %1338 = vmatpush1.bf16.msra.mxu1 %v10247_v42  ;;  %1379 = vmatpush1.bf16.msra.mxu0 %v10249_v43  ;;  %v10282_v42 = vcombine.high %v424_v25, %v428_v36  ;;  %v431_v43 = vld [vmem:[#allocation9 + $0x140] sm:$0xff] }
 0x2fe   :  { %1339 = vmatprep.subr.bf16.mxu1 %v10256_v51  ;;  %1380 = vmatprep.subr.bf16.mxu0 %v10258_v52  ;;  %v435_v51 = vld [vmem:[#allocation9 + $0x160] sm:$0xff]  ;;  %v432_v52 = vld [vmem:[#allocation9 + $0x148] sm:$0xff] }
 0x2ff   :  { %1369 = vmatprep.mubr.bf16.mxu1 %v11681_v21  ;;  %1410 = vmatprep.mubr.bf16.mxu0 %v11681_v21  ;;  %v10288_v0 = vcombine.high %v431_v43, %v435_v51  ;;  %v10287_v17 = vcombine.low %v431_v43, %v435_v51  ;;  %v10289_v32 = vcombine.low %v432_v52, %v436_v47  ;;  %v398_v43 = vld [vmem:[#allocation9 + $0x38] sm:$0xff] }
 0x301   :  { %1340 = vmatpush1.bf16.msra.mxu1 %v10255_v5  ;;  %1381 = vmatpush1.bf16.msra.mxu0 %v10257_v9  ;;  %v10290_v5 = vcombine.high %v432_v52, %v436_v47  ;;  %v439_v9 = vld [vmem:[#allocation9 + $0x180] sm:$0xff] }
 0x302   :  { %1341 = vmatprep.subr.bf16.mxu1 %v10264_v11  ;;  %1382 = vmatprep.subr.bf16.mxu0 %v10266_v12  ;;  %v443_v11 = vld [vmem:[#allocation9 + $0x1a0] sm:$0xff]  ;;  %v440_v12 = vld [vmem:[#allocation9 + $0x188] sm:$0xff] }
 0x303   :  { %v10296_v19 = vcombine.high %v439_v9, %v443_v11  ;;  %v10295_v22 = vcombine.low %v439_v9, %v443_v11  ;;  %v10297_v25 = vcombine.low %v440_v12, %v444_v16  ;;  %v406_v9 = vld [vmem:[#allocation9 + $0x78] sm:$0xff] }
 0x305   :  { %1342 = vmatpush1.bf16.msra.mxu1 %v10263_v13  ;;  %1383 = vmatpush1.bf16.msra.mxu0 %v10265_v8  ;;  %v10298_v13 = vcombine.high %v440_v12, %v444_v16  ;;  %v447_v8 = vld [vmem:[#allocation9 + $0x1c0] sm:$0xff]  ;;  %v11978_v16 = vpack.c.b16 %v11890_v15, %v11890_v15 }
 0x306   :  { %1343 = vmatprep.subr.bf16.mxu1 %v10272_v27  ;;  %1384 = vmatprep.subr.bf16.mxu0 %v10274_v28  ;;  %v451_v27 = vld [vmem:[#allocation9 + $0x1e0] sm:$0xff]  ;;  %v448_v28 = vld [vmem:[#allocation9 + $0x1c8] sm:$0xff] }
 0x307   :  { %v10304_v36 = vcombine.high %v447_v8, %v451_v27  ;;  %v10303_v51 = vcombine.low %v447_v8, %v451_v27  ;;  %v10305_v52 = vcombine.low %v448_v28, %v452_v31  ;;  %v410_v8 = vld [vmem:[#allocation9 + $0x98] sm:$0xff] }
 0x308   :  { %v414_v27 = vld [vmem:[#allocation9 + $0xb8] sm:$0xff] }
 0x309   :  { %1344 = vmatpush1.bf16.msra.mxu1 %v10271_v23  ;;  %1385 = vmatpush1.bf16.msra.mxu0 %v10273_v39  ;;  %v10306_v23 = vcombine.high %v448_v28, %v452_v31  ;;  %v393_v39 = vld [vmem:[#allocation9 + $0x10] sm:$0xff] }
 0x30a   :  { %1345 = vmatprep.subr.bf16.mxu1 %v10280_v41  ;;  %1386 = vmatprep.subr.bf16.mxu0 %v10282_v42  ;;  %v397_v41 = vld [vmem:[#allocation9 + $0x30] sm:$0xff]  ;;  %v394_v42 = vld [vmem:[#allocation9 + $0x18] sm:$0xff] }
 0x30b   :  { %v10252_v47 = vcombine.high %v393_v39, %v397_v41  ;;  %v10251_v11 = vcombine.low %v393_v39, %v397_v41  ;;  %v10253_v12 = vcombine.low %v394_v42, %v398_v43  ;;  %v422_v39 = vld [vmem:[#allocation9 + $0xf8] sm:$0xff] }
 0x30d   :  { %1346 = vmatpush1.bf16.msra.mxu1 %v10279_v58  ;;  %1387 = vmatpush1.bf16.msra.mxu0 %v10281_v59  ;;  %v10254_v58 = vcombine.high %v394_v42, %v398_v43  ;;  %v401_v59 = vld [vmem:[#allocation9 + $0x50] sm:$0xff]  ;;  %v10269_v42 = vcombine.low %v410_v8, %v414_v27 }
 0x30e   :  { %1347 = vmatprep.subr.bf16.mxu1 %v10288_v0  ;;  %1388 = vmatprep.subr.bf16.mxu0 %v10290_v5  ;;  %v405_v0 = vld [vmem:[#allocation9 + $0x70] sm:$0xff]  ;;  %v402_v5 = vld [vmem:[#allocation9 + $0x58] sm:$0xff] }
 0x30f   :  { %v10259_v28 = vcombine.low %v401_v59, %v405_v0  ;;  %v10261_v31 = vcombine.low %v402_v5, %v406_v9 }
 0x311   :  { %1348 = vmatpush1.bf16.msra.mxu1 %v10287_v17  ;;  %1389 = vmatpush1.bf16.msra.mxu0 %v10289_v32  ;;  %v10260_v17 = vcombine.high %v401_v59, %v405_v0  ;;  %v10262_v32 = vcombine.high %v402_v5, %v406_v9  ;;  %v430_v59 = vld [vmem:[#allocation9 + $0x138] sm:$0xff] }
 0x312   :  { %1349 = vmatprep.subr.bf16.mxu1 %v10296_v19  ;;  %1390 = vmatprep.subr.bf16.mxu0 %v10298_v13  ;;  %v409_v19 = vld [vmem:[#allocation9 + $0x90] sm:$0xff] }
 0x313   :  { %v413_v13 = vld [vmem:[#allocation9 + $0xb0] sm:$0xff] }
 0x314   :  { %v10268_v15 = vcombine.high %v409_v19, %v413_v13  ;;  %v10267_v41 = vcombine.low %v409_v19, %v413_v13  ;;  %v438_v19 = vld [vmem:[#allocation9 + $0x178] sm:$0xff] }
 0x315   :  { %1350 = vmatpush1.bf16.msra.mxu1 %v10295_v22  ;;  %1391 = vmatpush1.bf16.msra.mxu0 %v10297_v25  ;;  %v10270_v22 = vcombine.high %v410_v8, %v414_v27  ;;  %v417_v25 = vld [vmem:[#allocation9 + $0xd0] sm:$0xff] }
 0x316   :  { %1351 = vmatprep.subr.bf16.mxu1 %v10304_v36  ;;  %1392 = vmatprep.subr.bf16.mxu0 %v10306_v23  ;;  %v421_v36 = vld [vmem:[#allocation9 + $0xf0] sm:$0xff]  ;;  %v418_v23 = vld [vmem:[#allocation9 + $0xd8] sm:$0xff] }
 0x317   :  { %v10276_v43 = vcombine.high %v417_v25, %v421_v36  ;;  %v10275_v0 = vcombine.low %v417_v25, %v421_v36  ;;  %v10277_v5 = vcombine.low %v418_v23, %v422_v39  ;;  %v446_v25 = vld [vmem:[#allocation9 + $0x1b8] sm:$0xff] }
 0x319   :  { %1352 = vmatpush1.bf16.msra.mxu1 %v10303_v51  ;;  %1393 = vmatpush1.bf16.msra.mxu0 %v10305_v52  ;;  %v10278_v51 = vcombine.high %v418_v23, %v422_v39  ;;  %v425_v52 = vld [vmem:[#allocation9 + $0x110] sm:$0xff] }
 0x31a   :  { %1419 = vmatprep.subr.bf16.mxu1 %v10252_v47  ;;  %1460 = vmatprep.subr.bf16.mxu0 %v10254_v58  ;;  %v429_v47 = vld [vmem:[#allocation9 + $0x130] sm:$0xff]  ;;  %v426_v58 = vld [vmem:[#allocation9 + $0x118] sm:$0xff] }
 0x31b   :  { %v10284_v9 = vcombine.high %v425_v52, %v429_v47  ;;  %v10283_v13 = vcombine.low %v425_v52, %v429_v47  ;;  %v10285_v8 = vcombine.low %v426_v58, %v430_v59  ;;  %v454_v52 = vld [vmem:[#allocation9 + $0x1f8] sm:$0xff] }
 0x31c   :  { %1370 = vmatmul.mubr.bf16.vlgmr.msra.gmra.mrb[16].mxu1 %v11978_v16  ;;  %1411 = vmatmul.mubr.bf16.vlgmr.msra.gmra.mrb[12].mxu0 %v11978_v16 }
 0x31d   :  { %1420 = vmatpush1.bf16.msra.mxu1 %v10251_v11  ;;  %1461 = vmatpush1.bf16.msra.mxu0 %v10253_v12  ;;  %v10286_v11 = vcombine.high %v426_v58, %v430_v59  ;;  %v433_v12 = vld [vmem:[#allocation9 + $0x150] sm:$0xff] }
 0x31e   :  { %1421 = vmatprep.subr.bf16.mxu1 %v10260_v17  ;;  %1462 = vmatprep.subr.bf16.mxu0 %v10262_v32  ;;  %v437_v17 = vld [vmem:[#allocation9 + $0x170] sm:$0xff]  ;;  %v434_v32 = vld [vmem:[#allocation9 + $0x158] sm:$0xff] }
 0x31f   :  { %1451 = vmatprep.mubr.bf16.mxu1 %v11681_v21  ;;  %1492 = vmatprep.mubr.bf16.mxu0 %v11681_v21  ;;  %v10292_v27 = vcombine.high %v433_v12, %v437_v17  ;;  %v10291_v36 = vcombine.low %v433_v12, %v437_v17  ;;  %v10293_v23 = vcombine.low %v434_v32, %v438_v19  ;;  %v1509_v12 = vld [vmem:[#allocation9 + $0x428] sm:$0xff] }
 0x321   :  { %1422 = vmatpush1.bf16.msra.mxu1 %v10259_v28  ;;  %1463 = vmatpush1.bf16.msra.mxu0 %v10261_v31  ;;  %v10294_v28 = vcombine.high %v434_v32, %v438_v19  ;;  %v441_v31 = vld [vmem:[#allocation9 + $0x190] sm:$0xff] }
 0x322   :  { %1423 = vmatprep.subr.bf16.mxu1 %v10268_v15  ;;  %1464 = vmatprep.subr.bf16.mxu0 %v10270_v22  ;;  %v445_v15 = vld [vmem:[#allocation9 + $0x1b0] sm:$0xff]  ;;  %v442_v22 = vld [vmem:[#allocation9 + $0x198] sm:$0xff] }
 0x323   :  { %v10300_v39 = vcombine.high %v441_v31, %v445_v15  ;;  %v10299_v47 = vcombine.low %v441_v31, %v445_v15  ;;  %v10301_v58 = vcombine.low %v442_v22, %v446_v25  ;;  %v1517_v31 = vld [vmem:[#allocation9 + $0x468] sm:$0xff] }
 0x325   :  { %1424 = vmatpush1.bf16.msra.mxu1 %v10267_v41  ;;  %1465 = vmatpush1.bf16.msra.mxu0 %v10269_v42  ;;  %v10302_v41 = vcombine.high %v442_v22, %v446_v25  ;;  %v449_v42 = vld [vmem:[#allocation9 + $0x1d0] sm:$0xff] }
 0x326   :  { %1425 = vmatprep.subr.bf16.mxu1 %v10276_v43  ;;  %1466 = vmatprep.subr.bf16.mxu0 %v10278_v51  ;;  %v453_v43 = vld [vmem:[#allocation9 + $0x1f0] sm:$0xff]  ;;  %v450_v51 = vld [vmem:[#allocation9 + $0x1d8] sm:$0xff] }
 0x327   :  { %v10308_v59 = vcombine.high %v449_v42, %v453_v43  ;;  %v10307_v17 = vcombine.low %v449_v42, %v453_v43  ;;  %v10309_v32 = vcombine.low %v450_v51, %v454_v52  ;;  %v1525_v42 = vld [vmem:[#allocation9 + $0x4a8] sm:$0xff] }
 0x329   :  { %1426 = vmatpush1.bf16.msra.mxu1 %v10275_v0  ;;  %1467 = vmatpush1.bf16.msra.mxu0 %v10277_v5  ;;  %v10310_v0 = vcombine.high %v450_v51, %v454_v52  ;;  %v1504_v5 = vld [vmem:[#allocation9 + $0x400] sm:$0xff] }
 0x32a   :  { %1427 = vmatprep.subr.bf16.mxu1 %v10284_v9  ;;  %1468 = vmatprep.subr.bf16.mxu0 %v10286_v11  ;;  %v1508_v9 = vld [vmem:[#allocation9 + $0x420] sm:$0xff]  ;;  %v1505_v11 = vld [vmem:[#allocation9 + $0x408] sm:$0xff] }
 0x32b   :  { %v10312_v19 = vcombine.high %v1504_v5, %v1508_v9  ;;  %v10311_v15 = vcombine.low %v1504_v5, %v1508_v9  ;;  %v10313_v22 = vcombine.low %v1505_v11, %v1509_v12  ;;  %v1533_v5 = vld [vmem:[#allocation9 + $0x4e8] sm:$0xff] }
 0x32d   :  { %1428 = vmatpush1.bf16.msra.mxu1 %v10283_v13  ;;  %1469 = vmatpush1.bf16.msra.mxu0 %v10285_v8  ;;  %v10314_v13 = vcombine.high %v1505_v11, %v1509_v12  ;;  %v1512_v8 = vld [vmem:[#allocation9 + $0x440] sm:$0xff] }
 0x32e   :  { %1429 = vmatprep.subr.bf16.mxu1 %v10292_v27  ;;  %1470 = vmatprep.subr.bf16.mxu0 %v10294_v28  ;;  %v1516_v27 = vld [vmem:[#allocation9 + $0x460] sm:$0xff]  ;;  %v1513_v28 = vld [vmem:[#allocation9 + $0x448] sm:$0xff] }
 0x32f   :  { %v10320_v25 = vcombine.high %v1512_v8, %v1516_v27  ;;  %v10319_v43 = vcombine.low %v1512_v8, %v1516_v27  ;;  %v10321_v51 = vcombine.low %v1513_v28, %v1517_v31 }
 0x331   :  { %1430 = vmatpush1.bf16.msra.mxu1 %v10291_v36  ;;  %1471 = vmatpush1.bf16.msra.mxu0 %v10293_v23  ;;  %v10322_v36 = vcombine.high %v1513_v28, %v1517_v31  ;;  %v1520_v23 = vld [vmem:[#allocation9 + $0x480] sm:$0xff] }
 0x332   :  { %1431 = vmatprep.subr.bf16.mxu1 %v10300_v39  ;;  %1472 = vmatprep.subr.bf16.mxu0 %v10302_v41  ;;  %v1524_v39 = vld [vmem:[#allocation9 + $0x4a0] sm:$0xff]  ;;  %v1521_v41 = vld [vmem:[#allocation9 + $0x488] sm:$0xff] }
 0x333   :  { %v10328_v52 = vcombine.high %v1520_v23, %v1524_v39  ;;  %v10327_v9 = vcombine.low %v1520_v23, %v1524_v39 }
 0x335   :  { %1432 = vmatpush1.bf16.msra.mxu1 %v10299_v47  ;;  %1473 = vmatpush1.bf16.msra.mxu0 %v10301_v58  ;;  %v10330_v47 = vcombine.high %v1521_v41, %v1525_v42  ;;  %v1528_v58 = vld [vmem:[#allocation9 + $0x4c0] sm:$0xff] }
 0x336   :  { %1433 = vmatprep.subr.bf16.mxu1 %v10308_v59  ;;  %1474 = vmatprep.subr.bf16.mxu0 %v10310_v0  ;;  %v1532_v59 = vld [vmem:[#allocation9 + $0x4e0] sm:$0xff]  ;;  %v1529_v0 = vld [vmem:[#allocation9 + $0x4c8] sm:$0xff] }
 0x337   :  { %v10336_v11 = vcombine.high %v1528_v58, %v1532_v59  ;;  %v10338_v12 = vcombine.high %v1529_v0, %v1533_v5  ;;  %v10335_v8 = vcombine.low %v1528_v58, %v1532_v59  ;;  %v10337_v27 = vcombine.low %v1529_v0, %v1533_v5 }
 0x339   :  { %1434 = vmatpush1.bf16.msra.mxu1 %v10307_v17  ;;  %1475 = vmatpush1.bf16.msra.mxu0 %v10309_v32  ;;  %v1536_v17 = vld [vmem:[#allocation9 + $0x500] sm:$0xff] }
 0x33a   :  { %1897 = vmatprep.subr.bf16.mxu1 %v10312_v19  ;;  %1938 = vmatprep.subr.bf16.mxu0 %v10314_v13  ;;  %v1540_v32 = vld [vmem:[#allocation9 + $0x520] sm:$0xff]  ;;  %v1537_v19 = vld [vmem:[#allocation9 + $0x508] sm:$0xff] }
 0x33b   :  { %v1541_v13 = vld [vmem:[#allocation9 + $0x528] sm:$0xff]  ;;  %v10344_v28 = vcombine.high %v1536_v17, %v1540_v32  ;;  %v10343_v23 = vcombine.low %v1536_v17, %v1540_v32 }
 0x33c   :  { %1452 = vmatmul.mubr.bf16.vlgmr.msra.gmra.mrb[20].mxu1 %v11978_v16  ;;  %1493 = vmatmul.mubr.bf16.vlgmr.msra.gmra.mrb[16].mxu0 %v11978_v16  ;;  %v10329_v16 = vcombine.low %v1521_v41, %v1525_v42  ;;  %v10346_v31 = vcombine.high %v1537_v19, %v1541_v13  ;;  %v10345_v39 = vcombine.low %v1537_v19, %v1541_v13 }
 0x33d   :  { %1898 = vmatpush1.bf16.msra.mxu1 %v10311_v15  ;;  %1939 = vmatpush1.bf16.msra.mxu0 %v10313_v22  ;;  %v1544_v15 = vld [vmem:[#allocation9 + $0x540] sm:$0xff] }
 0x33e   :  { %1899 = vmatprep.subr.bf16.mxu1 %v10320_v25  ;;  %1940 = vmatprep.subr.bf16.mxu0 %v10322_v36  ;;  %v1548_v22 = vld [vmem:[#allocation9 + $0x560] sm:$0xff]  ;;  %v1545_v25 = vld [vmem:[#allocation9 + $0x548] sm:$0xff] }
 0x33f   :  { %1929 = vmatprep.mubr.bf16.mxu1 %v11681_v21  ;;  %1970 = vmatprep.mubr.bf16.mxu0 %v11681_v21  ;;  %v1549_v36 = vld [vmem:[#allocation9 + $0x568] sm:$0xff]  ;;  %v10352_v41 = vcombine.high %v1544_v15, %v1548_v22  ;;  %v10351_v58 = vcombine.low %v1544_v15, %v1548_v22  ;;  %v1511_v15 = vld [vmem:[#allocation9 + $0x438] sm:$0xff] }
 0x340   :  { %v10354_v42 = vcombine.high %v1545_v25, %v1549_v36  ;;  %v10353_v59 = vcombine.low %v1545_v25, %v1549_v36  ;;  %v1572_v36 = vrot.slane %v1570_v55, 2 }
 0x341   :  { %1900 = vmatpush1.bf16.msra.mxu1 %v10319_v43  ;;  %1941 = vmatpush1.bf16.msra.mxu0 %v10321_v51  ;;  %v1552_v43 = vld [vmem:[#allocation9 + $0x580] sm:$0xff] }
 0x342   :  { %1901 = vmatprep.subr.bf16.mxu1 %v10328_v52  ;;  %1942 = vmatprep.subr.bf16.mxu0 %v10330_v47  ;;  %v1556_v51 = vld [vmem:[#allocation9 + $0x5a0] sm:$0xff]  ;;  %v1553_v52 = vld [vmem:[#allocation9 + $0x588] sm:$0xff] }
 0x343   :  { %v1557_v47 = vld [vmem:[#allocation9 + $0x5a8] sm:$0xff]  ;;  %v10360_v0 = vcombine.high %v1552_v43, %v1556_v51  ;;  %v10359_v17 = vcombine.low %v1552_v43, %v1556_v51  ;;  %v1518_v43 = vld [vmem:[#allocation9 + $0x470] sm:$0xff] }
 0x344   :  { %v10362_v5 = vcombine.high %v1553_v52, %v1557_v47  ;;  %v10361_v32 = vcombine.low %v1553_v52, %v1557_v47 }
 0x345   :  { %1902 = vmatpush1.bf16.msra.mxu1 %v10327_v9  ;;  %1943 = vmatpush1.bf16.msra.mxu0 %v10329_v16  ;;  %v1560_v9 = vld [vmem:[#allocation9 + $0x5c0] sm:$0xff] }
 0x346   :  { %1903 = vmatprep.subr.bf16.mxu1 %v10336_v11  ;;  %1944 = vmatprep.subr.bf16.mxu0 %v10338_v12  ;;  %v1564_v16 = vld [vmem:[#allocation9 + $0x5e0] sm:$0xff]  ;;  %v1561_v11 = vld [vmem:[#allocation9 + $0x5c8] sm:$0xff] }
 0x347   :  { %v1565_v12 = vld [vmem:[#allocation9 + $0x5e8] sm:$0xff]  ;;  %v10368_v19 = vcombine.high %v1560_v9, %v1564_v16  ;;  %v10367_v22 = vcombine.low %v1560_v9, %v1564_v16 }
 0x348   :  { %v10370_v13 = vcombine.high %v1561_v11, %v1565_v12  ;;  %v10369_v25 = vcombine.low %v1561_v11, %v1565_v12 }
 0x349   :  { %1904 = vmatpush1.bf16.msra.mxu1 %v10335_v8  ;;  %1945 = vmatpush1.bf16.msra.mxu0 %v10337_v27  ;;  %v1506_v8 = vld [vmem:[#allocation9 + $0x410] sm:$0xff]  ;;  %v1573_v27 = vrot.slane %v1571_v60, 1  ;;  %v1519_v60 = vld [vmem:[#allocation9 + $0x478] sm:$0xff] }
 0x34a   :  { %1905 = vmatprep.subr.bf16.mxu1 %v10344_v28  ;;  %1946 = vmatprep.subr.bf16.mxu0 %v10346_v31  ;;  %v1510_v28 = vld [vmem:[#allocation9 + $0x430] sm:$0xff]  ;;  %v1507_v31 = vld [vmem:[#allocation9 + $0x418] sm:$0xff]  ;;  %v10326_v55 = vcombine.high %v1515_v54, %v1519_v60  ;;  %v10325_v16 = vcombine.low %v1515_v54, %v1519_v60 }
 0x34b   :  { %v10315_v51 = vcombine.low %v1506_v8, %v1510_v28  ;;  %v10317_v52 = vcombine.low %v1507_v31, %v1511_v15  ;;  %v1550_v54 = vld [vmem:[#allocation9 + $0x570] sm:$0xff]  ;;  %v1547_v60 = vld [vmem:[#allocation9 + $0x558] sm:$0xff] }
 0x34d   :  { %1906 = vmatpush1.bf16.msra.mxu1 %v10343_v23  ;;  %1947 = vmatpush1.bf16.msra.mxu0 %v10345_v39  ;;  %v10316_v23 = vcombine.high %v1506_v8, %v1510_v28  ;;  %v10318_v39 = vcombine.high %v1507_v31, %v1511_v15  ;;  %v1538_v15 = vld [vmem:[#allocation9 + $0x510] sm:$0xff] }
 0x34e   :  { %1907 = vmatprep.subr.bf16.mxu1 %v10352_v41  ;;  %1948 = vmatprep.subr.bf16.mxu0 %v10354_v42  ;;  %v1514_v41 = vld [vmem:[#allocation9 + $0x450] sm:$0xff]  ;;  %v1574_v42 = vsel %vm525_vm3, %v1573_v27, %v1572_v36  ;;  %v1543_v36 = vld [vmem:[#allocation9 + $0x538] sm:$0xff] }
 0x34f   :  { %v11993_v47 = vpack.c.b16 %v1574_v42, %v1574_v42  ;;  %v10324_v48 = vcombine.high %v1514_v41, %v1518_v43  ;;  %v10323_v9 = vcombine.low %v1514_v41, %v1518_v43  ;;  %v1546_v43 = vld [vmem:[#allocation9 + $0x550] sm:$0xff] }
 0x351   :  { %1908 = vmatpush1.bf16.msra.mxu1 %v10351_v58  ;;  %1949 = vmatpush1.bf16.msra.mxu0 %v10353_v59  ;;  %v1522_v58 = vld [vmem:[#allocation9 + $0x490] sm:$0xff] }
 0x352   :  { %1909 = vmatprep.subr.bf16.mxu1 %v10360_v0  ;;  %1950 = vmatprep.subr.bf16.mxu0 %v10362_v5  ;;  %v1526_v59 = vld [vmem:[#allocation9 + $0x4b0] sm:$0xff]  ;;  %v1523_v0 = vld [vmem:[#allocation9 + $0x498] sm:$0xff] }
 0x353   :  { %v1527_v5 = vld [vmem:[#allocation9 + $0x4b8] sm:$0xff]  ;;  %v10332_v11 = vcombine.high %v1522_v58, %v1526_v59  ;;  %v10331_v8 = vcombine.low %v1522_v58, %v1526_v59  ;;  %v1554_v59 = vld [vmem:[#allocation9 + $0x590] sm:$0xff] }
 0x354   :  { %v10334_v12 = vcombine.high %v1523_v0, %v1527_v5  ;;  %v10333_v27 = vcombine.low %v1523_v0, %v1527_v5  ;;  %v1558_v0 = vld [vmem:[#allocation9 + $0x5b0] sm:$0xff]  ;;  %v1555_v5 = vld [vmem:[#allocation9 + $0x598] sm:$0xff] }
 0x355   :  { %1910 = vmatpush1.bf16.msra.mxu1 %v10359_v17  ;;  %1951 = vmatpush1.bf16.msra.mxu0 %v10361_v32  ;;  %v1530_v17 = vld [vmem:[#allocation9 + $0x4d0] sm:$0xff] }
 0x356   :  { %1911 = vmatprep.subr.bf16.mxu1 %v10368_v19  ;;  %1952 = vmatprep.subr.bf16.mxu0 %v10370_v13  ;;  %v1534_v32 = vld [vmem:[#allocation9 + $0x4f0] sm:$0xff]  ;;  %v1531_v19 = vld [vmem:[#allocation9 + $0x4d8] sm:$0xff] }
 0x357   :  { %v1535_v13 = vld [vmem:[#allocation9 + $0x4f8] sm:$0xff]  ;;  %v10340_v28 = vcombine.high %v1530_v17, %v1534_v32 }
 0x358   :  { %v10342_v31 = vcombine.high %v1531_v19, %v1535_v13 }
 0x359   :  { %1912 = vmatpush1.bf16.msra.mxu1 %v10367_v22  ;;  %1953 = vmatpush1.bf16.msra.mxu0 %v10369_v25  ;;  %v1542_v22 = vld [vmem:[#allocation9 + $0x530] sm:$0xff]  ;;  %v1539_v25 = vld [vmem:[#allocation9 + $0x518] sm:$0xff] }
 0x35a   :  { %1979 = vmatprep.subr.bf16.mxu1 %v10316_v23  ;;  %2020 = vmatprep.subr.bf16.mxu0 %v10318_v39  ;;  %v10339_v23 = vcombine.low %v1530_v17, %v1534_v32  ;;  %v10341_v39 = vcombine.low %v1531_v19, %v1535_v13  ;;  %v10348_v41 = vcombine.high %v1538_v15, %v1542_v22  ;;  %v1562_v32 = vld [vmem:[#allocation9 + $0x5d0] sm:$0xff]  ;;  %v1563_v13 = vld [vmem:[#allocation9 + $0x5d8] sm:$0xff] }
 0x35b   :  { %v10350_v42 = vcombine.high %v1539_v25, %v1543_v36  ;;  %v1566_v19 = vld [vmem:[#allocation9 + $0x5f0] sm:$0xff] }
 0x35c   :  { %1930 = vmatmul.mubr.bf16.vlgmr.msra.gmra.mrb[24].mxu1 %v11993_v47  ;;  %1971 = vmatmul.mubr.bf16.vlgmr.msra.gmra.mrb[20].mxu0 %v11993_v47 }
 0x35d   :  { %1980 = vmatpush1.bf16.msra.mxu1 %v10315_v51  ;;  %2021 = vmatpush1.bf16.msra.mxu0 %v10317_v52  ;;  %v1551_v51 = vld [vmem:[#allocation9 + $0x578] sm:$0xff]  ;;  %v10347_v52 = vcombine.low %v1538_v15, %v1542_v22  ;;  %v2070_v22 = vld [vmem:[#allocation9 + $0x600] sm:$0xff] }
 0x35e   :  { %1981 = vmatprep.subr.bf16.mxu1 %v10324_v48  ;;  %2022 = vmatprep.subr.bf16.mxu0 %v10326_v55  ;;  %v10349_v48 = vcombine.low %v1539_v25, %v1543_v36  ;;  %v10356_v55 = vcombine.high %v1546_v43, %v1550_v54  ;;  %v10358_v58 = vcombine.high %v1547_v60, %v1551_v51  ;;  %v2074_v25 = vld [vmem:[#allocation9 + $0x620] sm:$0xff]  ;;  %v2071_v36 = vld [vmem:[#allocation9 + $0x608] sm:$0xff] }
 0x35f   :  { %2011 = vmatprep.mubr.bf16.mxu1 %v11681_v21  ;;  %2052 = vmatprep.mubr.bf16.mxu0 %v11681_v21 }
 0x361   :  { %1982 = vmatpush1.bf16.msra.mxu1 %v10323_v9  ;;  %2023 = vmatpush1.bf16.msra.mxu0 %v10325_v16  ;;  %v1559_v9 = vld [vmem:[#allocation9 + $0x5b8] sm:$0xff]  ;;  %v10355_v16 = vcombine.low %v1546_v43, %v1550_v54  ;;  %v2078_v54 = vld [vmem:[#allocation9 + $0x640] sm:$0xff] }
 0x362   :  { %1983 = vmatprep.subr.bf16.mxu1 %v10332_v11  ;;  %2024 = vmatprep.subr.bf16.mxu0 %v10334_v12  ;;  %v10357_v11 = vcombine.low %v1547_v60, %v1551_v51  ;;  %v10364_v12 = vcombine.high %v1554_v59, %v1558_v0  ;;  %v10366_v17 = vcombine.high %v1555_v5, %v1559_v9  ;;  %v2082_v60 = vld [vmem:[#allocation9 + $0x660] sm:$0xff]  ;;  %v2079_v51 = vld [vmem:[#allocation9 + $0x648] sm:$0xff] }
 0x365   :  { %1984 = vmatpush1.bf16.msra.mxu1 %v10331_v8  ;;  %2025 = vmatpush1.bf16.msra.mxu0 %v10333_v27  ;;  %v1567_v8 = vld [vmem:[#allocation9 + $0x5f8] sm:$0xff]  ;;  %v10363_v27 = vcombine.low %v1554_v59, %v1558_v0  ;;  %v2086_v0 = vld [vmem:[#allocation9 + $0x680] sm:$0xff] }
 0x366   :  { %1985 = vmatprep.subr.bf16.mxu1 %v10340_v28  ;;  %2026 = vmatprep.subr.bf16.mxu0 %v10342_v31  ;;  %v10365_v28 = vcombine.low %v1555_v5, %v1559_v9  ;;  %v10372_v31 = vcombine.high %v1562_v32, %v1566_v19  ;;  %v10374_v15 = vcombine.high %v1563_v13, %v1567_v8  ;;  %v2090_v5 = vld [vmem:[#allocation9 + $0x6a0] sm:$0xff]  ;;  %v2087_v9 = vld [vmem:[#allocation9 + $0x688] sm:$0xff] }
 0x369   :  { %1986 = vmatpush1.bf16.msra.mxu1 %v10339_v23  ;;  %2027 = vmatpush1.bf16.msra.mxu0 %v10341_v39  ;;  %v2075_v23 = vld [vmem:[#allocation9 + $0x628] sm:$0xff]  ;;  %v10371_v39 = vcombine.low %v1562_v32, %v1566_v19  ;;  %v2094_v19 = vld [vmem:[#allocation9 + $0x6c0] sm:$0xff] }
 0x36a   :  { %1987 = vmatprep.subr.bf16.mxu1 %v10348_v41  ;;  %2028 = vmatprep.subr.bf16.mxu0 %v10350_v42  ;;  %v10373_v41 = vcombine.low %v1563_v13, %v1567_v8  ;;  %v10376_v42 = vcombine.high %v2070_v22, %v2074_v25  ;;  %v10378_v43 = vcombine.high %v2071_v36, %v2075_v23  ;;  %v2098_v13 = vld [vmem:[#allocation9 + $0x6e0] sm:$0xff]  ;;  %v2095_v8 = vld [vmem:[#allocation9 + $0x6c8] sm:$0xff] }
 0x36d   :  { %1988 = vmatpush1.bf16.msra.mxu1 %v10347_v52  ;;  %2029 = vmatpush1.bf16.msra.mxu0 %v10349_v48  ;;  %v2083_v52 = vld [vmem:[#allocation9 + $0x668] sm:$0xff]  ;;  %v10375_v48 = vcombine.low %v2070_v22, %v2074_v25  ;;  %v2102_v22 = vld [vmem:[#allocation9 + $0x700] sm:$0xff] }
 0x36e   :  { %1989 = vmatprep.subr.bf16.mxu1 %v10356_v55  ;;  %2030 = vmatprep.subr.bf16.mxu0 %v10358_v58  ;;  %v10377_v55 = vcombine.low %v2071_v36, %v2075_v23  ;;  %v10384_v58 = vcombine.high %v2078_v54, %v2082_v60  ;;  %v10386_v59 = vcombine.high %v2079_v51, %v2083_v52  ;;  %v2106_v25 = vld [vmem:[#allocation9 + $0x720] sm:$0xff]  ;;  %v2103_v36 = vld [vmem:[#allocation9 + $0x708] sm:$0xff] }
 0x36f   :  { %v2107_v23 = vld [vmem:[#allocation9 + $0x728] sm:$0xff] }
 0x371   :  { %1990 = vmatpush1.bf16.msra.mxu1 %v10355_v16  ;;  %2031 = vmatpush1.bf16.msra.mxu0 %v10357_v11  ;;  %v2091_v16 = vld [vmem:[#allocation9 + $0x6a8] sm:$0xff]  ;;  %v10383_v11 = vcombine.low %v2078_v54, %v2082_v60  ;;  %v2110_v54 = vld [vmem:[#allocation9 + $0x740] sm:$0xff] }
 0x372   :  { %1991 = vmatprep.subr.bf16.mxu1 %v10364_v12  ;;  %2032 = vmatprep.subr.bf16.mxu0 %v10366_v17  ;;  %v10385_v12 = vcombine.low %v2079_v51, %v2083_v52  ;;  %v10392_v17 = vcombine.high %v2086_v0, %v2090_v5  ;;  %v10394_v32 = vcombine.high %v2087_v9, %v2091_v16  ;;  %v2114_v60 = vld [vmem:[#allocation9 + $0x760] sm:$0xff]  ;;  %v2111_v51 = vld [vmem:[#allocation9 + $0x748] sm:$0xff] }
 0x373   :  { %v2115_v52 = vld [vmem:[#allocation9 + $0x768] sm:$0xff] }
 0x375   :  { %1992 = vmatpush1.bf16.msra.mxu1 %v10363_v27  ;;  %2033 = vmatpush1.bf16.msra.mxu0 %v10365_v28  ;;  %v2099_v27 = vld [vmem:[#allocation9 + $0x6e8] sm:$0xff]  ;;  %v10391_v28 = vcombine.low %v2086_v0, %v2090_v5  ;;  %v2118_v0 = vld [vmem:[#allocation9 + $0x780] sm:$0xff] }
 0x376   :  { %1993 = vmatprep.subr.bf16.mxu1 %v10372_v31  ;;  %2034 = vmatprep.subr.bf16.mxu0 %v10374_v15  ;;  %v10400_v31 = vcombine.high %v2094_v19, %v2098_v13  ;;  %v10402_v15 = vcombine.high %v2095_v8, %v2099_v27  ;;  %v2122_v5 = vld [vmem:[#allocation9 + $0x7a0] sm:$0xff] }
 0x379   :  { %1994 = vmatpush1.bf16.msra.mxu1 %v10371_v39  ;;  %2035 = vmatpush1.bf16.msra.mxu0 %v10373_v41  ;;  %v10399_v39 = vcombine.low %v2094_v19, %v2098_v13  ;;  %v10401_v41 = vcombine.low %v2095_v8, %v2099_v27  ;;  %v2126_v19 = vld [vmem:[#allocation9 + $0x7c0] sm:$0xff]  ;;  %v2127_v8 = vld [vmem:[#allocation9 + $0x7c8] sm:$0xff] }
 0x37a   :  { %2459 = vmatprep.subr.bf16.mxu1 %v10376_v42  ;;  %2500 = vmatprep.subr.bf16.mxu0 %v10378_v43  ;;  %v10408_v42 = vcombine.high %v2102_v22, %v2106_v25  ;;  %v10410_v43 = vcombine.high %v2103_v36, %v2107_v23  ;;  %v2130_v13 = vld [vmem:[#allocation9 + $0x7e0] sm:$0xff]  ;;  %v2131_v27 = vld [vmem:[#allocation9 + $0x7e8] sm:$0xff] }
 0x37c   :  { %2012 = vmatmul.mubr.bf16.vlgmr.msra.gmra.mrb[28].mxu1 %v11993_v47  ;;  %2053 = vmatmul.mubr.bf16.vlgmr.msra.gmra.mrb[24].mxu0 %v11993_v47  ;;  %v10393_v47 = vcombine.low %v2087_v9, %v2091_v16  ;;  %v2119_v9 = vld [vmem:[#allocation9 + $0x788] sm:$0xff] }
 0x37d   :  { %2460 = vmatpush1.bf16.msra.mxu1 %v10375_v48  ;;  %2501 = vmatpush1.bf16.msra.mxu0 %v10377_v55  ;;  %v10407_v48 = vcombine.low %v2102_v22, %v2106_v25  ;;  %v10409_v55 = vcombine.low %v2103_v36, %v2107_v23  ;;  %v2123_v16 = vld [vmem:[#allocation9 + $0x7a8] sm:$0xff]  ;;  %v2072_v22 = vld [vmem:[#allocation9 + $0x610] sm:$0xff]  ;;  %v2073_v36 = vld [vmem:[#allocation9 + $0x618] sm:$0xff] }
 0x37e   :  { %2461 = vmatprep.subr.bf16.mxu1 %v10384_v58  ;;  %2502 = vmatprep.subr.bf16.mxu0 %v10386_v59  ;;  %v10416_v58 = vcombine.high %v2110_v54, %v2114_v60  ;;  %v10418_v59 = vcombine.high %v2111_v51, %v2115_v52  ;;  %v2076_v25 = vld [vmem:[#allocation9 + $0x630] sm:$0xff]  ;;  %v2077_v23 = vld [vmem:[#allocation9 + $0x638] sm:$0xff] }
 0x37f   :  { %2491 = vmatprep.mubr.bf16.mxu1 %v11681_v21  ;;  %2532 = vmatprep.mubr.bf16.mxu0 %v11681_v21 }
 0x381   :  { %2462 = vmatpush1.bf16.msra.mxu1 %v10383_v11  ;;  %2503 = vmatpush1.bf16.msra.mxu0 %v10385_v12  ;;  %v10415_v11 = vcombine.low %v2110_v54, %v2114_v60  ;;  %v10417_v12 = vcombine.low %v2111_v51, %v2115_v52  ;;  %v2080_v54 = vld [vmem:[#allocation9 + $0x650] sm:$0xff]  ;;  %v2081_v51 = vld [vmem:[#allocation9 + $0x658] sm:$0xff] }
 0x382   :  { %2463 = vmatprep.subr.bf16.mxu1 %v10392_v17  ;;  %2504 = vmatprep.subr.bf16.mxu0 %v10394_v32  ;;  %v10424_v17 = vcombine.high %v2118_v0, %v2122_v5  ;;  %v10426_v32 = vcombine.high %v2119_v9, %v2123_v16  ;;  %v2084_v60 = vld [vmem:[#allocation9 + $0x670] sm:$0xff]  ;;  %v2085_v52 = vld [vmem:[#allocation9 + $0x678] sm:$0xff] }
 0x385   :  { %2464 = vmatpush1.bf16.msra.mxu1 %v10391_v28  ;;  %2505 = vmatpush1.bf16.msra.mxu0 %v10393_v47  ;;  %v10423_v28 = vcombine.low %v2118_v0, %v2122_v5  ;;  %v10425_v47 = vcombine.low %v2119_v9, %v2123_v16  ;;  %v10390_v0 = vcombine.high %v2081_v51, %v2085_v52  ;;  %v2088_v5 = vld [vmem:[#allocation9 + $0x690] sm:$0xff]  ;;  %v2089_v16 = vld [vmem:[#allocation9 + $0x698] sm:$0xff] }
 0x386   :  { %2465 = vmatprep.subr.bf16.mxu1 %v10400_v31  ;;  %2506 = vmatprep.subr.bf16.mxu0 %v10402_v15  ;;  %v10432_v31 = vcombine.high %v2126_v19, %v2130_v13  ;;  %v10434_v15 = vcombine.high %v2127_v8, %v2131_v27  ;;  %v2092_v9 = vld [vmem:[#allocation9 + $0x6b0] sm:$0xff] }
 0x389   :  { %2466 = vmatpush1.bf16.msra.mxu1 %v10399_v39  ;;  %2507 = vmatpush1.bf16.msra.mxu0 %v10401_v41  ;;  %v10431_v39 = vcombine.low %v2126_v19, %v2130_v13  ;;  %v10433_v41 = vcombine.low %v2127_v8, %v2131_v27  ;;  %v2096_v19 = vld [vmem:[#allocation9 + $0x6d0] sm:$0xff]  ;;  %v2097_v8 = vld [vmem:[#allocation9 + $0x6d8] sm:$0xff] }
 0x38a   :  { %2467 = vmatprep.subr.bf16.mxu1 %v10408_v42  ;;  %2508 = vmatprep.subr.bf16.mxu0 %v10410_v43  ;;  %v10380_v42 = vcombine.high %v2072_v22, %v2076_v25  ;;  %v10382_v43 = vcombine.high %v2073_v36, %v2077_v23  ;;  %v2100_v13 = vld [vmem:[#allocation9 + $0x6f0] sm:$0xff]  ;;  %v2101_v27 = vld [vmem:[#allocation9 + $0x6f8] sm:$0xff] }
 0x38d   :  { %2468 = vmatpush1.bf16.msra.mxu1 %v10407_v48  ;;  %2509 = vmatpush1.bf16.msra.mxu0 %v10409_v55  ;;  %v10379_v48 = vcombine.low %v2072_v22, %v2076_v25  ;;  %v10381_v55 = vcombine.low %v2073_v36, %v2077_v23  ;;  %v2104_v22 = vld [vmem:[#allocation9 + $0x710] sm:$0xff]  ;;  %v2105_v36 = vld [vmem:[#allocation9 + $0x718] sm:$0xff] }
 0x38e   :  { %2469 = vmatprep.subr.bf16.mxu1 %v10416_v58  ;;  %2510 = vmatprep.subr.bf16.mxu0 %v10418_v59  ;;  %v12005_v58 = vpack.c.b16 %v11914_v33, %v11914_v33  ;;  %v10388_v59 = vcombine.high %v2080_v54, %v2084_v60  ;;  %v10396_v33 = vcombine.high %v2088_v5, %v2092_v9  ;;  %v2108_v25 = vld [vmem:[#allocation9 + $0x730] sm:$0xff]  ;;  %v2109_v23 = vld [vmem:[#allocation9 + $0x738] sm:$0xff] }
 0x391   :  { %2470 = vmatpush1.bf16.msra.mxu1 %v10415_v11  ;;  %2511 = vmatpush1.bf16.msra.mxu0 %v10417_v12  ;;  %v2093_v11 = vld [vmem:[#allocation9 + $0x6b8] sm:$0xff]  ;;  %v10387_v12 = vcombine.low %v2080_v54, %v2084_v60  ;;  %v2112_v54 = vld [vmem:[#allocation9 + $0x750] sm:$0xff] }
 0x392   :  { %2471 = vmatprep.subr.bf16.mxu1 %v10424_v17  ;;  %2512 = vmatprep.subr.bf16.mxu0 %v10426_v32  ;;  %v10389_v17 = vcombine.low %v2081_v51, %v2085_v52  ;;  %v10398_v32 = vcombine.high %v2089_v16, %v2093_v11  ;;  %v2116_v60 = vld [vmem:[#allocation9 + $0x770] sm:$0xff]  ;;  %v2113_v51 = vld [vmem:[#allocation9 + $0x758] sm:$0xff] }
 0x393   :  { %v2117_v52 = vld [vmem:[#allocation9 + $0x778] sm:$0xff] }
 0x395   :  { %2472 = vmatpush1.bf16.msra.mxu1 %v10423_v28  ;;  %2513 = vmatpush1.bf16.msra.mxu0 %v10425_v47  ;;  %v10395_v28 = vcombine.low %v2088_v5, %v2092_v9  ;;  %v10397_v47 = vcombine.low %v2089_v16, %v2093_v11  ;;  %v2120_v5 = vld [vmem:[#allocation9 + $0x790] sm:$0xff]  ;;  %v2121_v16 = vld [vmem:[#allocation9 + $0x798] sm:$0xff] }
 0x396   :  { %2473 = vmatprep.subr.bf16.mxu1 %v10432_v31  ;;  %2514 = vmatprep.subr.bf16.mxu0 %v10434_v15  ;;  %v10404_v31 = vcombine.high %v2096_v19, %v2100_v13  ;;  %v10406_v15 = vcombine.high %v2097_v8, %v2101_v27  ;;  %v2124_v9 = vld [vmem:[#allocation9 + $0x7b0] sm:$0xff]  ;;  %v2125_v11 = vld [vmem:[#allocation9 + $0x7b8] sm:$0xff] }
 0x399   :  { %2474 = vmatpush1.bf16.msra.mxu1 %v10431_v39  ;;  %2515 = vmatpush1.bf16.msra.mxu0 %v10433_v41  ;;  %v10403_v39 = vcombine.low %v2096_v19, %v2100_v13  ;;  %v10405_v41 = vcombine.low %v2097_v8, %v2101_v27  ;;  %v2128_v19 = vld [vmem:[#allocation9 + $0x7d0] sm:$0xff] }
 0x39a   :  { %2541 = vmatprep.subr.bf16.mxu1 %v10380_v42  ;;  %2582 = vmatprep.subr.bf16.mxu0 %v10382_v43  ;;  %v10412_v42 = vcombine.high %v2104_v22, %v2108_v25  ;;  %v10414_v43 = vcombine.high %v2105_v36, %v2109_v23  ;;  %v2132_v27 = vld [vmem:[#allocation9 + $0x7f0] sm:$0xff] }
 0x39c   :  { %2492 = vmatmul.mubr.bf16.vlgmr.msra.gmra.mrb[32].mxu1 %v12005_v58  ;;  %2533 = vmatmul.mubr.bf16.vlgmr.msra.gmra.mrb[28].mxu0 %v12005_v58 }
 0x39d   :  { %2542 = vmatpush1.bf16.msra.mxu1 %v10379_v48  ;;  %2583 = vmatpush1.bf16.msra.mxu0 %v10381_v55  ;;  %v10411_v48 = vcombine.low %v2104_v22, %v2108_v25  ;;  %v10413_v55 = vcombine.low %v2105_v36, %v2109_v23  ;;  %v10427_v36 = vcombine.low %v2120_v5, %v2124_v9 }
 0x39e   :  { %2543 = vmatprep.subr.bf16.mxu1 %v10388_v59  ;;  %2584 = vmatprep.subr.bf16.mxu0 %v10390_v0  ;;  %v10420_v59 = vcombine.high %v2112_v54, %v2116_v60  ;;  %v10422_v0 = vcombine.high %v2113_v51, %v2117_v52  ;;  %v10429_v23 = vcombine.low %v2121_v16, %v2125_v11 }
 0x39f   :  { %2573 = vmatprep.mubr.bf16.mxu1 %v11681_v21  ;;  %2614 = vmatprep.mubr.bf16.mxu0 %v11681_v21 }
 0x3a1   :  { %2544 = vmatpush1.bf16.msra.mxu1 %v10387_v12  ;;  %2585 = vmatpush1.bf16.msra.mxu0 %v10389_v17  ;;  %v10419_v12 = vcombine.low %v2112_v54, %v2116_v60  ;;  %v10421_v17 = vcombine.low %v2113_v51, %v2117_v52  ;;  %v2634_v54 = vld [vmem:[#allocation9 + $0x800] sm:$0xff]  ;;  %v2635_v51 = vld [vmem:[#allocation9 + $0x808] sm:$0xff] }
 0x3a2   :  { %2545 = vmatprep.subr.bf16.mxu1 %v10396_v33  ;;  %2586 = vmatprep.subr.bf16.mxu0 %v10398_v32  ;;  %v10428_v33 = vcombine.high %v2120_v5, %v2124_v9  ;;  %v10430_v32 = vcombine.high %v2121_v16, %v2125_v11  ;;  %v2638_v60 = vld [vmem:[#allocation9 + $0x820] sm:$0xff]  ;;  %v2639_v52 = vld [vmem:[#allocation9 + $0x828] sm:$0xff] }
 0x3a3   :  { %v2642_v5 = vld [vmem:[#allocation9 + $0x840] sm:$0xff]  ;;  %v2643_v16 = vld [vmem:[#allocation9 + $0x848] sm:$0xff] }
 0x3a4   :  { %v2646_v9 = vld [vmem:[#allocation9 + $0x860] sm:$0xff]  ;;  %v2647_v11 = vld [vmem:[#allocation9 + $0x868] sm:$0xff] }
 0x3a5   :  { %2546 = vmatpush1.bf16.msra.mxu1 %v10395_v28  ;;  %2587 = vmatpush1.bf16.msra.mxu0 %v10397_v47  ;;  %v2129_v28 = vld [vmem:[#allocation9 + $0x7d8] sm:$0xff] }
 0x3a6   :  { %2547 = vmatprep.subr.bf16.mxu1 %v10404_v31  ;;  %2588 = vmatprep.subr.bf16.mxu0 %v10406_v15  ;;  %v2133_v47 = vld [vmem:[#allocation9 + $0x7f8] sm:$0xff] }
 0x3a9   :  { %2548 = vmatpush1.bf16.msra.mxu1 %v10403_v39  ;;  %2589 = vmatpush1.bf16.msra.mxu0 %v10405_v41 }
 0x3aa   :  { %2549 = vmatprep.subr.bf16.mxu1 %v10412_v42  ;;  %2590 = vmatprep.subr.bf16.mxu0 %v10414_v43  ;;  %v10436_v42 = vcombine.high %v2128_v19, %v2132_v27  ;;  %v10438_v43 = vcombine.high %v2129_v28, %v2133_v47 }
 0x3ad   :  { %2550 = vmatpush1.bf16.msra.mxu1 %v10411_v48  ;;  %2591 = vmatpush1.bf16.msra.mxu0 %v10413_v55  ;;  %v10435_v48 = vcombine.low %v2128_v19, %v2132_v27  ;;  %v10437_v55 = vcombine.low %v2129_v28, %v2133_v47  ;;  %v2651_v19 = vld [vmem:[#allocation9 + $0x888] sm:$0xff]  ;;  %v10447_v28 = vcombine.low %v2642_v5, %v2646_v9 }
 0x3ae   :  { %2551 = vmatprep.subr.bf16.mxu1 %v10420_v59  ;;  %2592 = vmatprep.subr.bf16.mxu0 %v10422_v0  ;;  %v10440_v59 = vcombine.high %v2634_v54, %v2638_v60  ;;  %v10442_v0 = vcombine.high %v2635_v51, %v2639_v52  ;;  %v2655_v27 = vld [vmem:[#allocation9 + $0x8a8] sm:$0xff]  ;;  %v10449_v47 = vcombine.low %v2643_v16, %v2647_v11 }
 0x3af   :  { %v12011_v13 = vpop.f32.mrb[8].mxu1  ;;  %v12013_v8 = vpop.f32.mrb[4].mxu0 }
 0x3b0   :  { %v12015_v31 = vpop.f32.mrb[9].mxu1  ;;  %v12017_v15 = vpop.f32.mrb[5].mxu0 }
 0x3b1   :  { %2552 = vmatpush1.bf16.msra.mxu1 %v10419_v12  ;;  %2593 = vmatpush1.bf16.msra.mxu0 %v10421_v17  ;;  %v887_v22 = vpop.f32.mrb[10].mxu1  ;;  %v928_v25 = vpop.f32.mrb[6].mxu0  ;;  %v10439_v12 = vcombine.low %v2634_v54, %v2638_v60  ;;  %v10441_v17 = vcombine.low %v2635_v51, %v2639_v52  ;;  %v2666_v52 = vld [vmem:[#allocation9 + $0x900] sm:$0xff] }
 0x3b2   :  { %v888_v39 = vpop.f32.mrb[11].mxu1  ;;  %v929_v41 = vpop.f32.mrb[7].mxu0  ;;  %2553 = vmatprep.subr.bf16.mxu1 %v10428_v33  ;;  %2594 = vmatprep.subr.bf16.mxu0 %v10430_v32  ;;  %v10448_v33 = vcombine.high %v2642_v5, %v2646_v9  ;;  %v10450_v32 = vcombine.high %v2643_v16, %v2647_v11  ;;  %v2650_v22 = vld [vmem:[#allocation9 + $0x880] sm:$0xff] }
 0x3b3   :  { %v2654_v25 = vld [vmem:[#allocation9 + $0x8a0] sm:$0xff] }
 0x3b4   :  { %v2658_v39 = vld [vmem:[#allocation9 + $0x8c0] sm:$0xff]  ;;  %v10455_v54 = vcombine.low %v2650_v22, %v2654_v25 }
 0x3b5   :  { %2554 = vmatpush1.bf16.msra.mxu1 %v10427_v36  ;;  %2595 = vmatpush1.bf16.msra.mxu0 %v10429_v23  ;;  %v10456_v36 = vcombine.high %v2650_v22, %v2654_v25  ;;  %v10458_v23 = vcombine.high %v2651_v19, %v2655_v27  ;;  %v2662_v41 = vld [vmem:[#allocation9 + $0x8e0] sm:$0xff] }
 0x3b6   :  { %2555 = vmatprep.subr.bf16.mxu1 %v10436_v42  ;;  %2596 = vmatprep.subr.bf16.mxu0 %v10438_v43  ;;  %v2659_v42 = vld [vmem:[#allocation9 + $0x8c8] sm:$0xff]  ;;  %v10464_v60 = vcombine.high %v2658_v39, %v2662_v41  ;;  %v2674_v11 = vld [vmem:[#allocation9 + $0x940] sm:$0xff] }
 0x3b7   :  { %v2663_v43 = vld [vmem:[#allocation9 + $0x8e8] sm:$0xff] }
 0x3b8   :  { %v10466_v51 = vcombine.high %v2659_v42, %v2663_v43  ;;  %v10465_v5 = vcombine.low %v2659_v42, %v2663_v43  ;;  %v2690_v43 = vld [vmem:[#allocation9 + $0x9c0] sm:$0xff] }
 0x3b9   :  { %2556 = vmatpush1.bf16.msra.mxu1 %v10435_v48  ;;  %2597 = vmatpush1.bf16.msra.mxu0 %v10437_v55  ;;  %v2670_v48 = vld [vmem:[#allocation9 + $0x920] sm:$0xff]  ;;  %v2667_v55 = vld [vmem:[#allocation9 + $0x908] sm:$0xff] }
 0x3ba   :  { %3027 = vmatprep.subr.bf16.mxu1 %v10440_v59  ;;  %3068 = vmatprep.subr.bf16.mxu0 %v10442_v0  ;;  %v2671_v59 = vld [vmem:[#allocation9 + $0x928] sm:$0xff]  ;;  %v10463_v0 = vcombine.low %v2658_v39, %v2662_v41  ;;  %v10472_v9 = vcombine.high %v2666_v52, %v2670_v48 }
 0x3bb   :  { %v10474_v16 = vcombine.high %v2667_v55, %v2671_v59  ;;  %v10473_v22 = vcombine.low %v2667_v55, %v2671_v59 }
 0x3bc   :  { %2574 = vmatmul.mubr.bf16.vlgmr.msra.gmra.mrb[36].mxu1 %v12005_v58  ;;  %2615 = vmatmul.mubr.bf16.vlgmr.msra.gmra.mrb[32].mxu0 %v12005_v58  ;;  %v10457_v58 = vcombine.low %v2651_v19, %v2655_v27  ;;  %v2682_v27 = vld [vmem:[#allocation9 + $0x980] sm:$0xff] }
 0x3bd   :  { %3028 = vmatpush1.bf16.msra.mxu1 %v10439_v12  ;;  %3069 = vmatpush1.bf16.msra.mxu0 %v10441_v17  ;;  %v2678_v12 = vld [vmem:[#allocation9 + $0x960] sm:$0xff]  ;;  %v2675_v17 = vld [vmem:[#allocation9 + $0x948] sm:$0xff] }
 0x3be   :  { %3029 = vmatprep.subr.bf16.mxu1 %v10448_v33  ;;  %3070 = vmatprep.subr.bf16.mxu0 %v10450_v32  ;;  %v2679_v33 = vld [vmem:[#allocation9 + $0x968] sm:$0xff]  ;;  %v10471_v32 = vcombine.low %v2666_v52, %v2670_v48  ;;  %v10480_v25 = vcombine.high %v2674_v11, %v2678_v12 }
 0x3bf   :  { %3059 = vmatprep.mubr.bf16.mxu1 %v11681_v21  ;;  %3100 = vmatprep.mubr.bf16.mxu0 %v11681_v21  ;;  %v10482_v19 = vcombine.high %v2675_v17, %v2679_v33  ;;  %v10481_v39 = vcombine.low %v2675_v17, %v2679_v33  ;;  %v2695_v52 = vld [vmem:[#allocation9 + $0x9e8] sm:$0xff]  ;;  %v2636_v33 = vld [vmem:[#allocation9 + $0x810] sm:$0xff] }
 0x3c1   :  { %3030 = vmatpush1.bf16.msra.mxu1 %v10447_v28  ;;  %3071 = vmatpush1.bf16.msra.mxu0 %v10449_v47  ;;  %v2686_v28 = vld [vmem:[#allocation9 + $0x9a0] sm:$0xff]  ;;  %v2683_v47 = vld [vmem:[#allocation9 + $0x988] sm:$0xff] }
 0x3c2   :  { %3031 = vmatprep.subr.bf16.mxu1 %v10456_v36  ;;  %3072 = vmatprep.subr.bf16.mxu0 %v10458_v23  ;;  %v2687_v36 = vld [vmem:[#allocation9 + $0x9a8] sm:$0xff]  ;;  %v10479_v23 = vcombine.low %v2674_v11, %v2678_v12  ;;  %v10488_v41 = vcombine.high %v2682_v27, %v2686_v28 }
 0x3c3   :  { %v10490_v42 = vcombine.high %v2683_v47, %v2687_v36 }
 0x3c5   :  { %3032 = vmatpush1.bf16.msra.mxu1 %v10455_v54  ;;  %3073 = vmatpush1.bf16.msra.mxu0 %v10457_v58 }
 0x3c6   :  { %3033 = vmatprep.subr.bf16.mxu1 %v10464_v60  ;;  %3074 = vmatprep.subr.bf16.mxu0 %v10466_v51  ;;  %v2694_v60 = vld [vmem:[#allocation9 + $0x9e0] sm:$0xff]  ;;  %v2691_v51 = vld [vmem:[#allocation9 + $0x9c8] sm:$0xff] }
 0x3c7   :  { %v10496_v12 = vcombine.high %v2690_v43, %v2694_v60  ;;  %v10498_v17 = vcombine.high %v2691_v51, %v2695_v52 }
 0x3c9   :  { %3034 = vmatpush1.bf16.msra.mxu1 %v10463_v0  ;;  %3075 = vmatpush1.bf16.msra.mxu0 %v10465_v5  ;;  %v10487_v5 = vcombine.low %v2682_v27, %v2686_v28  ;;  %v2702_v27 = vrot.slane %v2700_v62, 4 }
 0x3ca   :  { %3035 = vmatprep.subr.bf16.mxu1 %v10472_v9  ;;  %3076 = vmatprep.subr.bf16.mxu0 %v10474_v16  ;;  %v10489_v9 = vcombine.low %v2683_v47, %v2687_v36  ;;  %v2644_v36 = vld [vmem:[#allocation9 + $0x850] sm:$0xff] }
 0x3cd   :  { %3036 = vmatpush1.bf16.msra.mxu1 %v10471_v32  ;;  %3077 = vmatpush1.bf16.msra.mxu0 %v10473_v22  ;;  %v2703_v32 = vrot.slane %v2701_v1, 3  ;;  %v2640_v22 = vld [vmem:[#allocation9 + $0x830] sm:$0xff]  ;;  %v2649_v1 = vld [vmem:[#allocation9 + $0x878] sm:$0xff] }
 0x3ce   :  { %3037 = vmatprep.subr.bf16.mxu1 %v10480_v25  ;;  %3078 = vmatprep.subr.bf16.mxu0 %v10482_v19  ;;  %v2637_v25 = vld [vmem:[#allocation9 + $0x818] sm:$0xff]  ;;  %v10444_v28 = vcombine.high %v2636_v33, %v2640_v22  ;;  %v10454_v62 = vcombine.high %v2645_v61, %v2649_v1 }
 0x3cf   :  { %v12023_v54 = vpop.f32.mrb[12].mxu1  ;;  %v12025_v58 = vpop.f32.mrb[8].mxu0  ;;  %v2641_v19 = vld [vmem:[#allocation9 + $0x838] sm:$0xff] }
 0x3d0   :  { %v12027_v48 = vpop.f32.mrb[13].mxu1  ;;  %v12029_v55 = vpop.f32.mrb[9].mxu0  ;;  %v10446_v47 = vcombine.high %v2637_v25, %v2641_v19 }
 0x3d1   :  { %v969_v59 = vpop.f32.mrb[14].mxu1  ;;  %v1010_v0 = vpop.f32.mrb[10].mxu0  ;;  %3038 = vmatpush1.bf16.msra.mxu1 %v10479_v23  ;;  %3079 = vmatpush1.bf16.msra.mxu0 %v10481_v39  ;;  %v10497_v23 = vcombine.low %v2691_v51, %v2695_v52  ;;  %v2704_v39 = vsel %vm525_vm3, %v2703_v32, %v2702_v27  ;;  %v2653_v51 = vld [vmem:[#allocation9 + $0x898] sm:$0xff]  ;;  %v2668_v27 = vld [vmem:[#allocation9 + $0x910] sm:$0xff] }
 0x3d2   :  { %v970_v16 = vpop.f32.mrb[15].mxu1  ;;  %v1011_v11 = vpop.f32.mrb[11].mxu0  ;;  %3039 = vmatprep.subr.bf16.mxu1 %v10488_v41  ;;  %3080 = vmatprep.subr.bf16.mxu0 %v10490_v42  ;;  %v10495_v59 = vcombine.low %v2690_v43, %v2694_v60  ;;  %v2648_v41 = vld [vmem:[#allocation9 + $0x870] sm:$0xff]  ;;  %v10443_v42 = vcombine.low %v2636_v33, %v2640_v22  ;;  %v10445_v0 = vcombine.low %v2637_v25, %v2641_v19  ;;  %v2657_v52 = vld [vmem:[#allocation9 + $0x8b8] sm:$0xff] }
 0x3d3   :  { %v10452_v49 = vcombine.high %v2644_v36, %v2648_v41  ;;  %v2652_v43 = vld [vmem:[#allocation9 + $0x890] sm:$0xff]  ;;  %v10453_v16 = vcombine.low %v2645_v61, %v2649_v1  ;;  %v2661_v32 = vld [vmem:[#allocation9 + $0x8d8] sm:$0xff]  ;;  %v10461_v19 = vcombine.low %v2653_v51, %v2657_v52 }
 0x3d4   :  { %v2656_v60 = vld [vmem:[#allocation9 + $0x8b0] sm:$0xff]  ;;  %v2665_v22 = vld [vmem:[#allocation9 + $0x8f8] sm:$0xff] }
 0x3d5   :  { %3040 = vmatpush1.bf16.msra.mxu1 %v10487_v5  ;;  %3081 = vmatpush1.bf16.msra.mxu0 %v10489_v9  ;;  %v12036_v5 = vpack.c.b16 %v2704_v39, %v2704_v39  ;;  %v10451_v9 = vcombine.low %v2644_v36, %v2648_v41  ;;  %v10460_v11 = vcombine.high %v2652_v43, %v2656_v60  ;;  %v2664_v33 = vld [vmem:[#allocation9 + $0x8f0] sm:$0xff]  ;;  %v2673_v36 = vld [vmem:[#allocation9 + $0x938] sm:$0xff] }
 0x3d6   :  { %3041 = vmatprep.subr.bf16.mxu1 %v10496_v12  ;;  %3082 = vmatprep.subr.bf16.mxu0 %v10498_v17  ;;  %v10462_v12 = vcombine.high %v2653_v51, %v2657_v52  ;;  %v2660_v17 = vld [vmem:[#allocation9 + $0x8d0] sm:$0xff]  ;;  %v10459_v25 = vcombine.low %v2652_v43, %v2656_v60  ;;  %v10469_v41 = vcombine.low %v2661_v32, %v2665_v22 }
 0x3d7   :  { %v10467_v39 = vcombine.low %v2660_v17, %v2664_v33 }
 0x3d9   :  { %3042 = vmatpush1.bf16.msra.mxu1 %v10495_v59  ;;  %3083 = vmatpush1.bf16.msra.mxu0 %v10497_v23  ;;  %v10468_v59 = vcombine.high %v2660_v17, %v2664_v33  ;;  %v10470_v23 = vcombine.high %v2661_v32, %v2665_v22 }
 0x3da   :  { %3109 = vmatprep.subr.bf16.mxu1 %v10444_v28  ;;  %3150 = vmatprep.subr.bf16.mxu0 %v10446_v47  ;;  %v2672_v28 = vld [vmem:[#allocation9 + $0x930] sm:$0xff]  ;;  %v2669_v47 = vld [vmem:[#allocation9 + $0x918] sm:$0xff] }
 0x3db   :  { %v10476_v61 = vcombine.high %v2668_v27, %v2672_v28  ;;  %v10478_v1 = vcombine.high %v2669_v47, %v2673_v36  ;;  %v10475_v43 = vcombine.low %v2668_v27, %v2672_v28  ;;  %v10477_v60 = vcombine.low %v2669_v47, %v2673_v36  ;;  %v2693_v27 = vld [vmem:[#allocation9 + $0x9d8] sm:$0xff] }
 0x3dc   :  { %3060 = vmatmul.mubr.bf16.vlgmr.msra.gmra.mrb[40].mxu1 %v12036_v5  ;;  %3101 = vmatmul.mubr.bf16.vlgmr.msra.gmra.mrb[36].mxu0 %v12036_v5  ;;  %v2697_v28 = vld [vmem:[#allocation9 + $0x9f8] sm:$0xff] }
 0x3dd   :  { %3110 = vmatpush1.bf16.msra.mxu1 %v10443_v42  ;;  %3151 = vmatpush1.bf16.msra.mxu0 %v10445_v0  ;;  %v2676_v42 = vld [vmem:[#allocation9 + $0x950] sm:$0xff] }
 0x3de   :  { %3111 = vmatprep.subr.bf16.mxu1 %v10452_v49  ;;  %3152 = vmatprep.subr.bf16.mxu0 %v10454_v62  ;;  %v2680_v0 = vld [vmem:[#allocation9 + $0x970] sm:$0xff]  ;;  %v2677_v49 = vld [vmem:[#allocation9 + $0x958] sm:$0xff] }
 0x3df   :  { %3141 = vmatprep.mubr.bf16.mxu1 %v11681_v21  ;;  %3182 = vmatprep.mubr.bf16.mxu0 %v11681_v21  ;;  %v2681_v62 = vld [vmem:[#allocation9 + $0x978] sm:$0xff]  ;;  %v10484_v51 = vcombine.high %v2676_v42, %v2680_v0  ;;  %v10483_v17 = vcombine.low %v2676_v42, %v2680_v0 }
 0x3e0   :  { %v10486_v52 = vcombine.high %v2677_v49, %v2681_v62  ;;  %v10485_v33 = vcombine.low %v2677_v49, %v2681_v62 }
 0x3e1   :  { %3112 = vmatpush1.bf16.msra.mxu1 %v10451_v9  ;;  %3153 = vmatpush1.bf16.msra.mxu0 %v10453_v16  ;;  %v2684_v9 = vld [vmem:[#allocation9 + $0x990] sm:$0xff] }
 0x3e2   :  { %3113 = vmatprep.subr.bf16.mxu1 %v10460_v11  ;;  %3154 = vmatprep.subr.bf16.mxu0 %v10462_v12  ;;  %v2688_v16 = vld [vmem:[#allocation9 + $0x9b0] sm:$0xff]  ;;  %v2685_v11 = vld [vmem:[#allocation9 + $0x998] sm:$0xff] }
 0x3e3   :  { %v2689_v12 = vld [vmem:[#allocation9 + $0x9b8] sm:$0xff]  ;;  %v10492_v32 = vcombine.high %v2684_v9, %v2688_v16 }
 0x3e4   :  { %v10494_v22 = vcombine.high %v2685_v11, %v2689_v12  ;;  %v10493_v62 = vcombine.low %v2685_v11, %v2689_v12  ;;  %v3212_v11 = vld [vmem:[#allocation9 + $0xa60] sm:$0xff]  ;;  %v3209_v12 = vld [vmem:[#allocation9 + $0xa48] sm:$0xff] }
 0x3e5   :  { %3114 = vmatpush1.bf16.msra.mxu1 %v10459_v25  ;;  %3155 = vmatpush1.bf16.msra.mxu0 %v10461_v19  ;;  %v2692_v25 = vld [vmem:[#allocation9 + $0x9d0] sm:$0xff] }
 0x3e6   :  { %3115 = vmatprep.subr.bf16.mxu1 %v10468_v59  ;;  %3156 = vmatprep.subr.bf16.mxu0 %v10470_v23  ;;  %v2696_v23 = vld [vmem:[#allocation9 + $0x9f0] sm:$0xff] }
 0x3e9   :  { %3116 = vmatpush1.bf16.msra.mxu1 %v10467_v39  ;;  %3157 = vmatpush1.bf16.msra.mxu0 %v10469_v41 }
 0x3ea   :  { %3117 = vmatprep.subr.bf16.mxu1 %v10476_v61  ;;  %3158 = vmatprep.subr.bf16.mxu0 %v10478_v1  ;;  %v10491_v61 = vcombine.low %v2684_v9, %v2688_v16  ;;  %v3201_v9 = vld [vmem:[#allocation9 + $0xa08] sm:$0xff] }
 0x3eb   :  { %v3205_v16 = vld [vmem:[#allocation9 + $0xa28] sm:$0xff] }
 0x3ed   :  { %3118 = vmatpush1.bf16.msra.mxu1 %v10475_v43  ;;  %3159 = vmatpush1.bf16.msra.mxu0 %v10477_v60  ;;  %v10502_v60 = vcombine.high %v2693_v27, %v2697_v28 }
 0x3ee   :  { %3119 = vmatprep.subr.bf16.mxu1 %v10484_v51  ;;  %3160 = vmatprep.subr.bf16.mxu0 %v10486_v52  ;;  %v3200_v51 = vld [vmem:[#allocation9 + $0xa00] sm:$0xff] }
 0x3ef   :  { %v1371_v19 = vpop.f32.mrb[16].mxu1  ;;  %v1412_v59 = vpop.f32.mrb[12].mxu0  ;;  %v3204_v52 = vld [vmem:[#allocation9 + $0xa20] sm:$0xff] }
 0x3f0   :  { %v12043_v47 = vadd.f32 %v1371_v19, %v12011_v13  ;;  %v12046_v36 = vadd.f32 %v1412_v59, %v12013_v8  ;;  %v1373_v39 = vpop.f32.mrb[17].mxu1  ;;  %v1414_v41 = vpop.f32.mrb[13].mxu0  ;;  %v10500_v8 = vcombine.high %v2692_v25, %v2696_v23  ;;  %v10504_v19 = vcombine.high %v3200_v51, %v3204_v52  ;;  %v3213_v59 = vld [vmem:[#allocation9 + $0xa68] sm:$0xff] }
 0x3f1   :  { %v12049_v1 = vadd.f32 %v1373_v39, %v12015_v31  ;;  %v12052_v42 = vadd.f32 %v1414_v41, %v12017_v15  ;;  %v1375_v0 = vpop.f32.mrb[18].mxu1  ;;  %v1416_v49 = vpop.f32.mrb[14].mxu0  ;;  %3120 = vmatpush1.bf16.msra.mxu1 %v10483_v17  ;;  %3161 = vmatpush1.bf16.msra.mxu0 %v10485_v33  ;;  %v10499_v31 = vcombine.low %v2692_v25, %v2696_v23  ;;  %v3208_v33 = vld [vmem:[#allocation9 + $0xa40] sm:$0xff]  ;;  %v3217_v25 = vld [vmem:[#allocation9 + $0xa88] sm:$0xff] }
 0x3f2   :  { %v1376_v43 = vpop.f32.mrb[19].mxu1  ;;  %v1417_v13 = vpop.f32.mrb[15].mxu0  ;;  %3121 = vmatprep.subr.bf16.mxu1 %v10492_v32  ;;  %3162 = vmatprep.subr.bf16.mxu0 %v10494_v22  ;;  %v10501_v15 = vcombine.low %v2693_v27, %v2697_v28  ;;  %v10506_v17 = vcombine.high %v3201_v9, %v3205_v16  ;;  %v10503_v32 = vcombine.low %v3200_v51, %v3204_v52  ;;  %v3220_v0 = vld [vmem:[#allocation9 + $0xaa0] sm:$0xff]  ;;  %v3221_v23 = vld [vmem:[#allocation9 + $0xaa8] sm:$0xff] }
 0x3f3   :  { %v10505_v22 = vcombine.low %v3201_v9, %v3205_v16  ;;  %v10512_v39 = vcombine.high %v3208_v33, %v3212_v11  ;;  %v10514_v41 = vcombine.high %v3209_v12, %v3213_v59  ;;  %v10511_v27 = vcombine.low %v3208_v33, %v3212_v11  ;;  %v3224_v43 = vld [vmem:[#allocation9 + $0xac0] sm:$0xff] }
 0x3f4   :  { %v10513_v28 = vcombine.low %v3209_v12, %v3213_v59  ;;  %v3228_v13 = vld [vmem:[#allocation9 + $0xae0] sm:$0xff] }
 0x3f5   :  { %3122 = vmatpush1.bf16.msra.mxu1 %v10491_v61  ;;  %3163 = vmatpush1.bf16.msra.mxu0 %v10493_v62  ;;  %v3216_v61 = vld [vmem:[#allocation9 + $0xa80] sm:$0xff]  ;;  %v10522_v62 = vcombine.high %v3217_v25, %v3221_v23  ;;  %v10528_v52 = vcombine.high %v3224_v43, %v3228_v13 }
 0x3f6   :  { %3123 = vmatprep.subr.bf16.mxu1 %v10500_v8  ;;  %3164 = vmatprep.subr.bf16.mxu0 %v10502_v60  ;;  %v10520_v49 = vcombine.high %v3216_v61, %v3220_v0  ;;  %v3225_v8 = vld [vmem:[#allocation9 + $0xac8] sm:$0xff]  ;;  %v10519_v51 = vcombine.low %v3216_v61, %v3220_v0  ;;  %v3232_v16 = vld [vmem:[#allocation9 + $0xb00] sm:$0xff] }
 0x3f7   :  { %v3229_v60 = vld [vmem:[#allocation9 + $0xae8] sm:$0xff]  ;;  %v3240_v59 = vld [vmem:[#allocation9 + $0xb40] sm:$0xff] }
 0x3f8   :  { %v10530_v9 = vcombine.high %v3225_v8, %v3229_v60  ;;  %v10529_v33 = vcombine.low %v3225_v8, %v3229_v60  ;;  %v3256_v60 = vld [vmem:[#allocation9 + $0xbc0] sm:$0xff] }
 0x3f9   :  { %3124 = vmatpush1.bf16.msra.mxu1 %v10499_v31  ;;  %3165 = vmatpush1.bf16.msra.mxu0 %v10501_v15  ;;  %v3236_v31 = vld [vmem:[#allocation9 + $0xb20] sm:$0xff]  ;;  %v3233_v15 = vld [vmem:[#allocation9 + $0xb08] sm:$0xff] }
 0x3fa   :  { %3589 = vmatprep.subr.bf16.mxu1 %v10504_v19  ;;  %3630 = vmatprep.subr.bf16.mxu0 %v10506_v17  ;;  %v3237_v19 = vld [vmem:[#allocation9 + $0xb28] sm:$0xff]  ;;  %v10527_v17 = vcombine.low %v3224_v43, %v3228_v13  ;;  %v10536_v11 = vcombine.high %v3232_v16, %v3236_v31 }
 0x3fb   :  { %v10538_v12 = vcombine.high %v3233_v15, %v3237_v19  ;;  %v10537_v61 = vcombine.low %v3233_v15, %v3237_v19 }
 0x3fc   :  { %3142 = vmatmul.mubr.bf16.vlgmr.msra.gmra.mrb[44].mxu1 %v12036_v5  ;;  %3183 = vmatmul.mubr.bf16.vlgmr.msra.gmra.mrb[40].mxu0 %v12036_v5  ;;  %v10521_v5 = vcombine.low %v3217_v25, %v3221_v23  ;;  %v3248_v23 = vld [vmem:[#allocation9 + $0xb80] sm:$0xff] }
 0x3fd   :  { %3590 = vmatpush1.bf16.msra.mxu1 %v10503_v32  ;;  %3631 = vmatpush1.bf16.msra.mxu0 %v10505_v22  ;;  %v3244_v32 = vld [vmem:[#allocation9 + $0xb60] sm:$0xff]  ;;  %v3241_v22 = vld [vmem:[#allocation9 + $0xb48] sm:$0xff] }
 0x3fe   :  { %3591 = vmatprep.subr.bf16.mxu1 %v10512_v39  ;;  %3632 = vmatprep.subr.bf16.mxu0 %v10514_v41  ;;  %v3245_v39 = vld [vmem:[#allocation9 + $0xb68] sm:$0xff]  ;;  %v10535_v41 = vcombine.low %v3232_v16, %v3236_v31  ;;  %v10544_v0 = vcombine.high %v3240_v59, %v3244_v32 }
 0x3ff   :  { %3621 = vmatprep.mubr.bf16.mxu1 %v11681_v21  ;;  %3662 = vmatprep.mubr.bf16.mxu0 %v11681_v21  ;;  %v10546_v25 = vcombine.high %v3241_v22, %v3245_v39  ;;  %v10545_v43 = vcombine.low %v3241_v22, %v3245_v39  ;;  %v3261_v16 = vld [vmem:[#allocation9 + $0xbe8] sm:$0xff] }
 0x401   :  { %3592 = vmatpush1.bf16.msra.mxu1 %v10511_v27  ;;  %3633 = vmatpush1.bf16.msra.mxu0 %v10513_v28  ;;  %v3252_v27 = vld [vmem:[#allocation9 + $0xba0] sm:$0xff]  ;;  %v3249_v28 = vld [vmem:[#allocation9 + $0xb88] sm:$0xff] }
 0x402   :  { %3593 = vmatprep.subr.bf16.mxu1 %v10520_v49  ;;  %3634 = vmatprep.subr.bf16.mxu0 %v10522_v62  ;;  %v3253_v49 = vld [vmem:[#allocation9 + $0xba8] sm:$0xff]  ;;  %v10543_v62 = vcombine.low %v3240_v59, %v3244_v32  ;;  %v10552_v13 = vcombine.high %v3248_v23, %v3252_v27 }
 0x403   :  { %v10554_v8 = vcombine.high %v3249_v28, %v3253_v49  ;;  %v10553_v22 = vcombine.low %v3249_v28, %v3253_v49  ;;  %v3214_v28 = vld [vmem:[#allocation9 + $0xa70] sm:$0xff]  ;;  %v3211_v49 = vld [vmem:[#allocation9 + $0xa58] sm:$0xff] }
 0x405   :  { %3594 = vmatpush1.bf16.msra.mxu1 %v10519_v51  ;;  %3635 = vmatpush1.bf16.msra.mxu0 %v10521_v5 }
 0x406   :  { %3595 = vmatprep.subr.bf16.mxu1 %v10528_v52  ;;  %3636 = vmatprep.subr.bf16.mxu0 %v10530_v9  ;;  %v3260_v52 = vld [vmem:[#allocation9 + $0xbe0] sm:$0xff]  ;;  %v3257_v9 = vld [vmem:[#allocation9 + $0xbc8] sm:$0xff] }
 0x409   :  { %3596 = vmatpush1.bf16.msra.mxu1 %v10527_v17  ;;  %3637 = vmatpush1.bf16.msra.mxu0 %v10529_v33  ;;  %v10551_v33 = vcombine.low %v3248_v23, %v3252_v27  ;;  %v3207_v23 = vld [vmem:[#allocation9 + $0xa38] sm:$0xff] }
 0x40a   :  { %3597 = vmatprep.subr.bf16.mxu1 %v10536_v11  ;;  %3638 = vmatprep.subr.bf16.mxu0 %v10538_v12 }
 0x40d   :  { %3598 = vmatpush1.bf16.msra.mxu1 %v10535_v41  ;;  %3639 = vmatpush1.bf16.msra.mxu0 %v10537_v61  ;;  %v10562_v41 = vcombine.high %v3257_v9, %v3261_v16  ;;  %v3202_v61 = vld [vmem:[#allocation9 + $0xa10] sm:$0xff] }
 0x40e   :  { %3599 = vmatprep.subr.bf16.mxu1 %v10544_v0  ;;  %3640 = vmatprep.subr.bf16.mxu0 %v10546_v25  ;;  %v3206_v0 = vld [vmem:[#allocation9 + $0xa30] sm:$0xff]  ;;  %v3203_v25 = vld [vmem:[#allocation9 + $0xa18] sm:$0xff] }
 0x40f   :  { %v1453_v51 = vpop.f32.mrb[20].mxu1  ;;  %v1494_v5 = vpop.f32.mrb[16].mxu0  ;;  %v10508_v27 = vcombine.high %v3202_v61, %v3206_v0 }
 0x410   :  { %v12059_v31 = vadd.f32 %v1453_v51, %v12023_v54  ;;  %v12062_v15 = vadd.f32 %v1494_v5, %v12025_v58  ;;  %v1455_v19 = vpop.f32.mrb[21].mxu1  ;;  %v1496_v17 = vpop.f32.mrb[17].mxu0  ;;  %v10560_v58 = vcombine.high %v3256_v60, %v3260_v52  ;;  %v3215_v51 = vld [vmem:[#allocation9 + $0xa78] sm:$0xff]  ;;  %v12072_v5 = vpack.c.b16 %v11917_v34, %v11917_v34 }
 0x411   :  { %v12065_v11 = vadd.f32 %v1455_v19, %v12027_v48  ;;  %v12068_v12 = vadd.f32 %v1496_v17, %v12029_v55  ;;  %v1457_v59 = vpop.f32.mrb[22].mxu1  ;;  %v1498_v32 = vpop.f32.mrb[18].mxu0  ;;  %3600 = vmatpush1.bf16.msra.mxu1 %v10543_v62  ;;  %3641 = vmatpush1.bf16.msra.mxu0 %v10545_v43  ;;  %v10559_v48 = vcombine.low %v3256_v60, %v3260_v52  ;;  %v3210_v43 = vld [vmem:[#allocation9 + $0xa50] sm:$0xff]  ;;  %v3219_v19 = vld [vmem:[#allocation9 + $0xa98] sm:$0xff] }
 0x412   :  { %v1458_v39 = vpop.f32.mrb[23].mxu1  ;;  %v1499_v54 = vpop.f32.mrb[19].mxu0  ;;  %3601 = vmatprep.subr.bf16.mxu1 %v10552_v13  ;;  %3642 = vmatprep.subr.bf16.mxu0 %v10554_v8  ;;  %v10561_v55 = vcombine.low %v3257_v9, %v3261_v16  ;;  %v10510_v62 = vcombine.high %v3203_v25, %v3207_v23  ;;  %v10507_v13 = vcombine.low %v3202_v61, %v3206_v0  ;;  %v3218_v9 = vld [vmem:[#allocation9 + $0xa90] sm:$0xff]  ;;  %v3223_v17 = vld [vmem:[#allocation9 + $0xab8] sm:$0xff] }
 0x413   :  { %v10509_v8 = vcombine.low %v3203_v25, %v3207_v23  ;;  %v10516_v60 = vcombine.high %v3210_v43, %v3214_v28  ;;  %v10518_v52 = vcombine.high %v3211_v49, %v3215_v51  ;;  %v3222_v16 = vld [vmem:[#allocation9 + $0xab0] sm:$0xff]  ;;  %v10517_v59 = vcombine.low %v3211_v49, %v3215_v51  ;;  %v3227_v54 = vld [vmem:[#allocation9 + $0xad8] sm:$0xff] }
 0x414   :  { %v10524_v34 = vcombine.high %v3218_v9, %v3222_v16  ;;  %v10526_v32 = vcombine.high %v3219_v19, %v3223_v17  ;;  %v3230_v39 = vld [vmem:[#allocation9 + $0xaf0] sm:$0xff]  ;;  %v10525_v61 = vcombine.low %v3219_v19, %v3223_v17 }
 0x415   :  { %3602 = vmatpush1.bf16.msra.mxu1 %v10551_v33  ;;  %3643 = vmatpush1.bf16.msra.mxu0 %v10553_v22  ;;  %v10515_v33 = vcombine.low %v3210_v43, %v3214_v28  ;;  %v3226_v22 = vld [vmem:[#allocation9 + $0xad0] sm:$0xff] }
 0x416   :  { %3603 = vmatprep.subr.bf16.mxu1 %v10560_v58  ;;  %3644 = vmatprep.subr.bf16.mxu0 %v10562_v41  ;;  %v3231_v58 = vld [vmem:[#allocation9 + $0xaf8] sm:$0xff]  ;;  %v10523_v41 = vcombine.low %v3218_v9, %v3222_v16  ;;  %v10532_v0 = vcombine.high %v3226_v22, %v3230_v39  ;;  %v3234_v23 = vld [vmem:[#allocation9 + $0xb10] sm:$0xff] }
 0x417   :  { %v10534_v25 = vcombine.high %v3227_v54, %v3231_v58  ;;  %v10533_v43 = vcombine.low %v3227_v54, %v3231_v58  ;;  %v3242_v51 = vld [vmem:[#allocation9 + $0xb50] sm:$0xff] }
 0x418   :  { %v3250_v17 = vld [vmem:[#allocation9 + $0xb90] sm:$0xff] }
 0x419   :  { %3604 = vmatpush1.bf16.msra.mxu1 %v10559_v48  ;;  %3645 = vmatpush1.bf16.msra.mxu0 %v10561_v55  ;;  %v3238_v48 = vld [vmem:[#allocation9 + $0xb30] sm:$0xff]  ;;  %v3235_v55 = vld [vmem:[#allocation9 + $0xb18] sm:$0xff] }
 0x41a   :  { %3671 = vmatprep.subr.bf16.mxu1 %v10508_v27  ;;  %3712 = vmatprep.subr.bf16.mxu0 %v10510_v62  ;;  %v3239_v27 = vld [vmem:[#allocation9 + $0xb38] sm:$0xff]  ;;  %v10531_v62 = vcombine.low %v3226_v22, %v3230_v39  ;;  %v10540_v28 = vcombine.high %v3234_v23, %v3238_v48  ;;  %v3258_v58 = vld [vmem:[#allocation9 + $0xbd0] sm:$0xff] }
 0x41b   :  { %v10542_v49 = vcombine.high %v3235_v55, %v3239_v27  ;;  %v10541_v9 = vcombine.low %v3235_v55, %v3239_v27 }
 0x41c   :  { %3622 = vmatmul.mubr.bf16.vlgmr.msra.gmra.mrb[48].mxu1 %v12072_v5  ;;  %3663 = vmatmul.mubr.bf16.vlgmr.msra.gmra.mrb[44].mxu0 %v12072_v5 }
 0x41d   :  { %3672 = vmatpush1.bf16.msra.mxu1 %v10507_v13  ;;  %3713 = vmatpush1.bf16.msra.mxu0 %v10509_v8  ;;  %v3246_v13 = vld [vmem:[#allocation9 + $0xb70] sm:$0xff]  ;;  %v3243_v8 = vld [vmem:[#allocation9 + $0xb58] sm:$0xff] }
 0x41e   :  { %3673 = vmatprep.subr.bf16.mxu1 %v10516_v60  ;;  %3714 = vmatprep.subr.bf16.mxu0 %v10518_v52  ;;  %v3247_v60 = vld [vmem:[#allocation9 + $0xb78] sm:$0xff]  ;;  %v10539_v52 = vcombine.low %v3234_v23, %v3238_v48  ;;  %v10548_v16 = vcombine.high %v3242_v51, %v3246_v13 }
 0x41f   :  { %3703 = vmatprep.mubr.bf16.mxu1 %v11681_v21  ;;  %3744 = vmatprep.mubr.bf16.mxu0 %v11681_v21  ;;  %v10550_v19 = vcombine.high %v3243_v8, %v3247_v60  ;;  %v10549_v22 = vcombine.low %v3243_v8, %v3247_v60  ;;  %v3263_v23 = vld [vmem:[#allocation9 + $0xbf8] sm:$0xff] }
 0x421   :  { %3674 = vmatpush1.bf16.msra.mxu1 %v10515_v33  ;;  %3715 = vmatpush1.bf16.msra.mxu0 %v10517_v59  ;;  %v3254_v33 = vld [vmem:[#allocation9 + $0xbb0] sm:$0xff]  ;;  %v3251_v59 = vld [vmem:[#allocation9 + $0xb98] sm:$0xff] }
 0x422   :  { %3675 = vmatprep.subr.bf16.mxu1 %v10524_v34  ;;  %3716 = vmatprep.subr.bf16.mxu0 %v10526_v32  ;;  %v3255_v34 = vld [vmem:[#allocation9 + $0xbb8] sm:$0xff]  ;;  %v10547_v32 = vcombine.low %v3242_v51, %v3246_v13  ;;  %v10556_v39 = vcombine.high %v3250_v17, %v3254_v33 }
 0x423   :  { %v10558_v54 = vcombine.high %v3251_v59, %v3255_v34  ;;  %v10557_v8 = vcombine.low %v3251_v59, %v3255_v34  ;;  %v3776_v59 = vld [vmem:[#allocation9 + $0xc60] sm:$0xff]  ;;  %v3773_v34 = vld [vmem:[#allocation9 + $0xc48] sm:$0xff] }
 0x425   :  { %3676 = vmatpush1.bf16.msra.mxu1 %v10523_v41  ;;  %3717 = vmatpush1.bf16.msra.mxu0 %v10525_v61 }
 0x426   :  { %3677 = vmatprep.subr.bf16.mxu1 %v10532_v0  ;;  %3718 = vmatprep.subr.bf16.mxu0 %v10534_v25  ;;  %v3262_v0 = vld [vmem:[#allocation9 + $0xbf0] sm:$0xff]  ;;  %v3259_v25 = vld [vmem:[#allocation9 + $0xbd8] sm:$0xff] }
 0x429   :  { %3678 = vmatpush1.bf16.msra.mxu1 %v10531_v62  ;;  %3719 = vmatpush1.bf16.msra.mxu0 %v10533_v43  ;;  %v10555_v43 = vcombine.low %v3250_v17, %v3254_v33  ;;  %v3769_v17 = vld [vmem:[#allocation9 + $0xc28] sm:$0xff] }
 0x42a   :  { %3679 = vmatprep.subr.bf16.mxu1 %v10540_v28  ;;  %3720 = vmatprep.subr.bf16.mxu0 %v10542_v49 }
 0x42d   :  { %3680 = vmatpush1.bf16.msra.mxu1 %v10539_v52  ;;  %3721 = vmatpush1.bf16.msra.mxu0 %v10541_v9  ;;  %v10566_v52 = vcombine.high %v3259_v25, %v3263_v23  ;;  %v3764_v9 = vld [vmem:[#allocation9 + $0xc00] sm:$0xff] }
 0x42e   :  { %3681 = vmatprep.subr.bf16.mxu1 %v10548_v16  ;;  %3722 = vmatprep.subr.bf16.mxu0 %v10550_v19  ;;  %v3768_v16 = vld [vmem:[#allocation9 + $0xc20] sm:$0xff]  ;;  %v3765_v19 = vld [vmem:[#allocation9 + $0xc08] sm:$0xff] }
 0x42f   :  { %v1931_v41 = vpop.f32.mrb[24].mxu1  ;;  %v1972_v61 = vpop.f32.mrb[20].mxu0  ;;  %v10568_v33 = vcombine.high %v3764_v9, %v3768_v16 }
 0x430   :  { %v12079_v48 = vadd.f32 %v1931_v41, %v12043_v47  ;;  %v12082_v55 = vadd.f32 %v1972_v61, %v12046_v36  ;;  %v1933_v27 = vpop.f32.mrb[25].mxu1  ;;  %v1974_v62 = vpop.f32.mrb[21].mxu0  ;;  %v10564_v36 = vcombine.high %v3258_v58, %v3262_v0  ;;  %v3777_v41 = vld [vmem:[#allocation9 + $0xc68] sm:$0xff] }
 0x431   :  { %v12085_v28 = vadd.f32 %v1933_v27, %v12049_v1  ;;  %v12088_v49 = vadd.f32 %v1974_v62, %v12052_v42  ;;  %v1935_v51 = vpop.f32.mrb[26].mxu1  ;;  %v1976_v13 = vpop.f32.mrb[22].mxu0  ;;  %3682 = vmatpush1.bf16.msra.mxu1 %v10547_v32  ;;  %3723 = vmatpush1.bf16.msra.mxu0 %v10549_v22  ;;  %v10563_v1 = vcombine.low %v3258_v58, %v3262_v0  ;;  %v3772_v22 = vld [vmem:[#allocation9 + $0xc40] sm:$0xff]  ;;  %v3781_v58 = vld [vmem:[#allocation9 + $0xc88] sm:$0xff] }
 0x432   :  { %v1936_v60 = vpop.f32.mrb[27].mxu1  ;;  %v1977_v47 = vpop.f32.mrb[23].mxu0  ;;  %3683 = vmatprep.subr.bf16.mxu1 %v10556_v39  ;;  %3724 = vmatprep.subr.bf16.mxu0 %v10558_v54  ;;  %v10565_v42 = vcombine.low %v3259_v25, %v3263_v23  ;;  %v10570_v32 = vcombine.high %v3765_v19, %v3769_v17  ;;  %v10567_v39 = vcombine.low %v3764_v9, %v3768_v16  ;;  %v3780_v62 = vld [vmem:[#allocation9 + $0xc80] sm:$0xff]  ;;  %v3785_v0 = vld [vmem:[#allocation9 + $0xca8] sm:$0xff] }
 0x433   :  { %v10569_v54 = vcombine.low %v3765_v19, %v3769_v17  ;;  %v10576_v61 = vcombine.high %v3772_v22, %v3776_v59  ;;  %v10578_v27 = vcombine.high %v3773_v34, %v3777_v41  ;;  %v10575_v25 = vcombine.low %v3772_v22, %v3776_v59  ;;  %v3792_v60 = vld [vmem:[#allocation9 + $0xce0] sm:$0xff]  ;;  %v3789_v47 = vld [vmem:[#allocation9 + $0xcc8] sm:$0xff] }
 0x434   :  { %v10577_v23 = vcombine.low %v3773_v34, %v3777_v41  ;;  %v10586_v13 = vcombine.high %v3781_v58, %v3785_v0  ;;  %v3796_v19 = vld [vmem:[#allocation9 + $0xd00] sm:$0xff] }
 0x435   :  { %3684 = vmatpush1.bf16.msra.mxu1 %v10555_v43  ;;  %3725 = vmatpush1.bf16.msra.mxu0 %v10557_v8  ;;  %v3784_v43 = vld [vmem:[#allocation9 + $0xca0] sm:$0xff] }
 0x436   :  { %3685 = vmatprep.subr.bf16.mxu1 %v10564_v36  ;;  %3726 = vmatprep.subr.bf16.mxu0 %v10566_v52  ;;  %v10584_v51 = vcombine.high %v3780_v62, %v3784_v43  ;;  %v3788_v8 = vld [vmem:[#allocation9 + $0xcc0] sm:$0xff]  ;;  %v3793_v36 = vld [vmem:[#allocation9 + $0xce8] sm:$0xff]  ;;  %v10583_v52 = vcombine.low %v3780_v62, %v3784_v43 }
 0x437   :  { %v10592_v9 = vcombine.high %v3788_v8, %v3792_v60  ;;  %v10594_v16 = vcombine.high %v3789_v47, %v3793_v36  ;;  %v3800_v17 = vld [vmem:[#allocation9 + $0xd20] sm:$0xff] }
 0x438   :  { %v10600_v22 = vcombine.high %v3796_v19, %v3800_v17  ;;  %v3804_v34 = vld [vmem:[#allocation9 + $0xd40] sm:$0xff] }
 0x439   :  { %3686 = vmatpush1.bf16.msra.mxu1 %v10563_v1  ;;  %3727 = vmatpush1.bf16.msra.mxu0 %v10565_v42  ;;  %v3797_v1 = vld [vmem:[#allocation9 + $0xd08] sm:$0xff]  ;;  %v3808_v41 = vld [vmem:[#allocation9 + $0xd60] sm:$0xff] }
 0x43a   :  { %4157 = vmatprep.subr.bf16.mxu1 %v10568_v33  ;;  %4198 = vmatprep.subr.bf16.mxu0 %v10570_v32  ;;  %v3801_v42 = vld [vmem:[#allocation9 + $0xd28] sm:$0xff]  ;;  %v10591_v33 = vcombine.low %v3788_v8, %v3792_v60  ;;  %v10593_v32 = vcombine.low %v3789_v47, %v3793_v36  ;;  %v10608_v62 = vcombine.high %v3804_v34, %v3808_v41  ;;  %v3820_v47 = vld [vmem:[#allocation9 + $0xdc0] sm:$0xff] }
 0x43b   :  { %v10602_v59 = vcombine.high %v3797_v1, %v3801_v42 }
 0x43c   :  { %3704 = vmatmul.mubr.bf16.vlgmr.msra.gmra.mrb[52].mxu1 %v12072_v5  ;;  %3745 = vmatmul.mubr.bf16.vlgmr.msra.gmra.mrb[48].mxu0 %v12072_v5  ;;  %v10585_v5 = vcombine.low %v3781_v58, %v3785_v0  ;;  %v3812_v58 = vld [vmem:[#allocation9 + $0xd80] sm:$0xff] }
 0x43d   :  { %4158 = vmatpush1.bf16.msra.mxu1 %v10567_v39  ;;  %4199 = vmatpush1.bf16.msra.mxu0 %v10569_v54  ;;  %v3805_v39 = vld [vmem:[#allocation9 + $0xd48] sm:$0xff]  ;;  %v3816_v0 = vld [vmem:[#allocation9 + $0xda0] sm:$0xff] }
 0x43e   :  { %4159 = vmatprep.subr.bf16.mxu1 %v10576_v61  ;;  %4200 = vmatprep.subr.bf16.mxu0 %v10578_v27  ;;  %v3809_v54 = vld [vmem:[#allocation9 + $0xd68] sm:$0xff]  ;;  %v10599_v61 = vcombine.low %v3796_v19, %v3800_v17  ;;  %v10601_v27 = vcombine.low %v3797_v1, %v3801_v42  ;;  %v10616_v8 = vcombine.high %v3812_v58, %v3816_v0 }
 0x43f   :  { %4189 = vmatprep.mubr.bf16.mxu1 %v11681_v21  ;;  %4230 = vmatprep.mubr.bf16.mxu0 %v11681_v21  ;;  %v10610_v43 = vcombine.high %v3805_v39, %v3809_v54 }
 0x441   :  { %4160 = vmatpush1.bf16.msra.mxu1 %v10575_v25  ;;  %4201 = vmatpush1.bf16.msra.mxu0 %v10577_v23  ;;  %v3813_v25 = vld [vmem:[#allocation9 + $0xd88] sm:$0xff] }
 0x442   :  { %4161 = vmatprep.subr.bf16.mxu1 %v10584_v51  ;;  %4202 = vmatprep.subr.bf16.mxu0 %v10586_v13  ;;  %v3817_v23 = vld [vmem:[#allocation9 + $0xda8] sm:$0xff]  ;;  %v10607_v51 = vcombine.low %v3804_v34, %v3808_v41  ;;  %v10609_v13 = vcombine.low %v3805_v39, %v3809_v54 }
 0x443   :  { %v10618_v60 = vcombine.high %v3813_v25, %v3817_v23  ;;  %v10617_v41 = vcombine.low %v3813_v25, %v3817_v23 }
 0x445   :  { %4162 = vmatpush1.bf16.msra.mxu1 %v10583_v52  ;;  %4203 = vmatpush1.bf16.msra.mxu0 %v10585_v5  ;;  %v3824_v5 = vld [vmem:[#allocation9 + $0xde0] sm:$0xff] }
 0x446   :  { %4163 = vmatprep.subr.bf16.mxu1 %v10592_v9  ;;  %4204 = vmatprep.subr.bf16.mxu0 %v10594_v16  ;;  %v3821_v9 = vld [vmem:[#allocation9 + $0xdc8] sm:$0xff] }
 0x447   :  { %v3825_v16 = vld [vmem:[#allocation9 + $0xde8] sm:$0xff] }
 0x448   :  { %v10626_v54 = vcombine.high %v3821_v9, %v3825_v16 }
 0x449   :  { %4164 = vmatpush1.bf16.msra.mxu1 %v10591_v33  ;;  %4205 = vmatpush1.bf16.msra.mxu0 %v10593_v32  ;;  %v10615_v33 = vcombine.low %v3812_v58, %v3816_v0  ;;  %v10625_v58 = vcombine.low %v3821_v9, %v3825_v16  ;;  %v3832_v0 = vrot.slane %v3830_v14, 6  ;;  %v3783_v9 = vld [vmem:[#allocation9 + $0xc98] sm:$0xff] }
 0x44a   :  { %4165 = vmatprep.subr.bf16.mxu1 %v10600_v22  ;;  %4206 = vmatprep.subr.bf16.mxu0 %v10602_v59  ;;  %v3787_v16 = vld [vmem:[#allocation9 + $0xcb8] sm:$0xff] }
 0x44d   :  { %4166 = vmatpush1.bf16.msra.mxu1 %v10599_v61  ;;  %4207 = vmatpush1.bf16.msra.mxu0 %v10601_v27  ;;  %v3766_v61 = vld [vmem:[#allocation9 + $0xc10] sm:$0xff]  ;;  %v3833_v27 = vrot.slane %v3831_v6, 5  ;;  %v3779_v6 = vld [vmem:[#allocation9 + $0xc78] sm:$0xff] }
 0x44e   :  { %4167 = vmatprep.subr.bf16.mxu1 %v10608_v62  ;;  %4208 = vmatprep.subr.bf16.mxu0 %v10610_v43  ;;  %v3767_v62 = vld [vmem:[#allocation9 + $0xc18] sm:$0xff]  ;;  %v10582_v14 = vcombine.high %v3775_v63, %v3779_v6 }
 0x44f   :  { %v2013_v36 = vpop.f32.mrb[28].mxu1  ;;  %v2054_v52 = vpop.f32.mrb[24].mxu0  ;;  %v3771_v43 = vld [vmem:[#allocation9 + $0xc38] sm:$0xff] }
 0x450   :  { %v12095_v19 = vadd.f32 %v2013_v36, %v12059_v31  ;;  %v12098_v17 = vadd.f32 %v2054_v52, %v12062_v15  ;;  %v2015_v1 = vpop.f32.mrb[29].mxu1  ;;  %v2056_v42 = vpop.f32.mrb[25].mxu0  ;;  %v10624_v15 = vcombine.high %v3820_v47, %v3824_v5  ;;  %v10574_v23 = vcombine.high %v3767_v62, %v3771_v43 }
 0x451   :  { %v12101_v32 = vadd.f32 %v2015_v1, %v12065_v11  ;;  %v12104_v22 = vadd.f32 %v2056_v42, %v12068_v12  ;;  %v2017_v59 = vpop.f32.mrb[30].mxu1  ;;  %v2058_v34 = vpop.f32.mrb[26].mxu0  ;;  %4168 = vmatpush1.bf16.msra.mxu1 %v10607_v51  ;;  %4209 = vmatpush1.bf16.msra.mxu0 %v10609_v13  ;;  %v3770_v11 = vld [vmem:[#allocation9 + $0xc30] sm:$0xff]  ;;  %v10623_v12 = vcombine.low %v3820_v47, %v3824_v5 }
 0x452   :  { %v2018_v39 = vpop.f32.mrb[31].mxu1  ;;  %v2059_v31 = vpop.f32.mrb[27].mxu0  ;;  %4169 = vmatprep.subr.bf16.mxu1 %v10616_v8  ;;  %4210 = vmatprep.subr.bf16.mxu0 %v10618_v60  ;;  %v10572_v25 = vcombine.high %v3766_v61, %v3770_v11  ;;  %v3774_v51 = vld [vmem:[#allocation9 + $0xc50] sm:$0xff]  ;;  %v3834_v13 = vsel %vm525_vm3, %v3833_v27, %v3832_v0  ;;  %v10571_v60 = vcombine.low %v3766_v61, %v3770_v11 }
 0x453   :  { %v3778_v8 = vld [vmem:[#allocation9 + $0xc70] sm:$0xff]  ;;  %v10573_v36 = vcombine.low %v3767_v62, %v3771_v43  ;;  %v12111_v52 = vpack.c.b16 %v3834_v13, %v3834_v13  ;;  %v10581_v42 = vcombine.low %v3775_v63, %v3779_v6  ;;  %v10590_v59 = vcombine.high %v3783_v9, %v3787_v16  ;;  %v3791_v39 = vld [vmem:[#allocation9 + $0xcd8] sm:$0xff] }
 0x454   :  { %v10580_v56 = vcombine.high %v3774_v51, %v3778_v8  ;;  %v3782_v47 = vld [vmem:[#allocation9 + $0xc90] sm:$0xff]  ;;  %v10579_v1 = vcombine.low %v3774_v51, %v3778_v8  ;;  %v3795_v31 = vld [vmem:[#allocation9 + $0xcf8] sm:$0xff] }
 0x455   :  { %4170 = vmatpush1.bf16.msra.mxu1 %v10615_v33  ;;  %4211 = vmatpush1.bf16.msra.mxu0 %v10617_v41  ;;  %v3786_v5 = vld [vmem:[#allocation9 + $0xcb0] sm:$0xff]  ;;  %v10598_v27 = vcombine.high %v3791_v39, %v3795_v31  ;;  %v3799_v43 = vld [vmem:[#allocation9 + $0xd18] sm:$0xff]  ;;  %v10597_v0 = vcombine.low %v3791_v39, %v3795_v31 }
 0x456   :  { %4171 = vmatprep.subr.bf16.mxu1 %v10624_v15  ;;  %4212 = vmatprep.subr.bf16.mxu0 %v10626_v54  ;;  %v10588_v33 = vcombine.high %v3782_v47, %v3786_v5  ;;  %v3790_v34 = vld [vmem:[#allocation9 + $0xcd0] sm:$0xff]  ;;  %v10587_v15 = vcombine.low %v3782_v47, %v3786_v5  ;;  %v10589_v54 = vcombine.low %v3783_v9, %v3787_v16  ;;  %v3807_v8 = vld [vmem:[#allocation9 + $0xd58] sm:$0xff] }
 0x457   :  { %v3794_v41 = vld [vmem:[#allocation9 + $0xcf0] sm:$0xff]  ;;  %v3811_v63 = vld [vmem:[#allocation9 + $0xd78] sm:$0xff] }
 0x458   :  { %v10596_v61 = vcombine.high %v3790_v34, %v3794_v41  ;;  %v3798_v11 = vld [vmem:[#allocation9 + $0xd10] sm:$0xff]  ;;  %v3815_v5 = vld [vmem:[#allocation9 + $0xd98] sm:$0xff] }
 0x459   :  { %4172 = vmatpush1.bf16.msra.mxu1 %v10623_v12  ;;  %4213 = vmatpush1.bf16.msra.mxu0 %v10625_v58  ;;  %v3802_v62 = vld [vmem:[#allocation9 + $0xd30] sm:$0xff]  ;;  %v3803_v12 = vld [vmem:[#allocation9 + $0xd38] sm:$0xff]  ;;  %v10595_v58 = vcombine.low %v3790_v34, %v3794_v41 }
 0x45a   :  { %4239 = vmatprep.subr.bf16.mxu1 %v10572_v25  ;;  %4280 = vmatprep.subr.bf16.mxu0 %v10574_v23  ;;  %v10604_v25 = vcombine.high %v3798_v11, %v3802_v62  ;;  %v10606_v23 = vcombine.high %v3799_v43, %v3803_v12  ;;  %v3806_v51 = vld [vmem:[#allocation9 + $0xd50] sm:$0xff]  ;;  %v10603_v6 = vcombine.low %v3798_v11, %v3802_v62  ;;  %v3819_v9 = vld [vmem:[#allocation9 + $0xdb8] sm:$0xff] }
 0x45b   :  { %v3810_v13 = vld [vmem:[#allocation9 + $0xd70] sm:$0xff]  ;;  %v3823_v31 = vld [vmem:[#allocation9 + $0xdd8] sm:$0xff] }
 0x45c   :  { %4190 = vmatmul.mubr.bf16.vlgmr.msra.gmra.mrb[56].mxu1 %v12111_v52  ;;  %4231 = vmatmul.mubr.bf16.vlgmr.msra.gmra.mrb[52].mxu0 %v12111_v52  ;;  %v3818_v47 = vld [vmem:[#allocation9 + $0xdb0] sm:$0xff]  ;;  %v10611_v16 = vcombine.low %v3806_v51, %v3810_v13 }
 0x45d   :  { %4240 = vmatpush1.bf16.msra.mxu1 %v10571_v60  ;;  %4281 = vmatpush1.bf16.msra.mxu0 %v10573_v36  ;;  %v10605_v60 = vcombine.low %v3799_v43, %v3803_v12  ;;  %v10612_v36 = vcombine.high %v3806_v51, %v3810_v13  ;;  %v3826_v39 = vld [vmem:[#allocation9 + $0xdf0] sm:$0xff]  ;;  %v4330_v13 = vld [vmem:[#allocation9 + $0xe00] sm:$0xff] }
 0x45e   :  { %4241 = vmatprep.subr.bf16.mxu1 %v10580_v56  ;;  %4282 = vmatprep.subr.bf16.mxu0 %v10582_v14  ;;  %v10614_v56 = vcombine.high %v3807_v8, %v3811_v63  ;;  %v3814_v14 = vld [vmem:[#allocation9 + $0xd90] sm:$0xff] }
 0x45f   :  { %4271 = vmatprep.mubr.bf16.mxu1 %v11681_v21  ;;  %4312 = vmatprep.mubr.bf16.mxu0 %v11681_v21  ;;  %v10619_v62 = vcombine.low %v3814_v14, %v3818_v47 }
 0x461   :  { %4242 = vmatpush1.bf16.msra.mxu1 %v10579_v1  ;;  %4283 = vmatpush1.bf16.msra.mxu0 %v10581_v42  ;;  %v10613_v1 = vcombine.low %v3807_v8, %v3811_v63  ;;  %v10620_v42 = vcombine.high %v3814_v14, %v3818_v47  ;;  %v4334_v8 = vld [vmem:[#allocation9 + $0xe20] sm:$0xff]  ;;  %v4331_v63 = vld [vmem:[#allocation9 + $0xe08] sm:$0xff] }
 0x462   :  { %4243 = vmatprep.subr.bf16.mxu1 %v10588_v33  ;;  %4284 = vmatprep.subr.bf16.mxu0 %v10590_v59  ;;  %v10622_v33 = vcombine.high %v3815_v5, %v3819_v9  ;;  %v3822_v59 = vld [vmem:[#allocation9 + $0xdd0] sm:$0xff]  ;;  %v4342_v14 = vld [vmem:[#allocation9 + $0xe60] sm:$0xff]  ;;  %v4339_v47 = vld [vmem:[#allocation9 + $0xe48] sm:$0xff] }
 0x465   :  { %4244 = vmatpush1.bf16.msra.mxu1 %v10587_v15  ;;  %4285 = vmatpush1.bf16.msra.mxu0 %v10589_v54  ;;  %v3827_v15 = vld [vmem:[#allocation9 + $0xdf8] sm:$0xff] }
 0x466   :  { %4245 = vmatprep.subr.bf16.mxu1 %v10596_v61  ;;  %4286 = vmatprep.subr.bf16.mxu0 %v10598_v27  ;;  %v10630_v51 = vcombine.high %v3823_v31, %v3827_v15 }
 0x469   :  { %4246 = vmatpush1.bf16.msra.mxu1 %v10595_v58  ;;  %4287 = vmatpush1.bf16.msra.mxu0 %v10597_v0 }
 0x46a   :  { %4247 = vmatprep.subr.bf16.mxu1 %v10604_v25  ;;  %4288 = vmatprep.subr.bf16.mxu0 %v10606_v23  ;;  %v10621_v25 = vcombine.low %v3815_v5, %v3819_v9  ;;  %v4343_v5 = vld [vmem:[#allocation9 + $0xe68] sm:$0xff]  ;;  %v10631_v9 = vcombine.low %v4330_v13, %v4334_v8 }
 0x46d   :  { %4248 = vmatpush1.bf16.msra.mxu1 %v10603_v6  ;;  %4289 = vmatpush1.bf16.msra.mxu0 %v10605_v60  ;;  %v4335_v6 = vld [vmem:[#allocation9 + $0xe28] sm:$0xff]  ;;  %v10632_v60 = vcombine.high %v4330_v13, %v4334_v8 }
 0x46e   :  { %4249 = vmatprep.subr.bf16.mxu1 %v10612_v36  ;;  %4290 = vmatprep.subr.bf16.mxu0 %v10614_v56  ;;  %v10634_v36 = vcombine.high %v4331_v63, %v4335_v6  ;;  %v4338_v56 = vld [vmem:[#allocation9 + $0xe40] sm:$0xff]  ;;  %v4363_v13 = vld [vmem:[#allocation9 + $0xf08] sm:$0xff] }
 0x46f   :  { %v2493_v34 = vpop.f32.mrb[32].mxu1  ;;  %v2534_v41 = vpop.f32.mrb[28].mxu0  ;;  %v4367_v8 = vld [vmem:[#allocation9 + $0xf28] sm:$0xff] }
 0x470   :  { %v12118_v54 = vadd.f32 %v2493_v34, %v12079_v48  ;;  %v12121_v61 = vadd.f32 %v2534_v41, %v12082_v55  ;;  %v2495_v27 = vpop.f32.mrb[33].mxu1  ;;  %v2536_v11 = vpop.f32.mrb[29].mxu0  ;;  %v10628_v55 = vcombine.high %v3822_v59, %v3826_v39  ;;  %v4350_v34 = vld [vmem:[#allocation9 + $0xea0] sm:$0xff]  ;;  %v4351_v41 = vld [vmem:[#allocation9 + $0xea8] sm:$0xff] }
 0x471   :  { %v12124_v43 = vadd.f32 %v2495_v27, %v12085_v28  ;;  %v12127_v12 = vadd.f32 %v2536_v11, %v12088_v49  ;;  %v2497_v58 = vpop.f32.mrb[34].mxu1  ;;  %v2538_v0 = vpop.f32.mrb[30].mxu0  ;;  %4250 = vmatpush1.bf16.msra.mxu1 %v10611_v16  ;;  %4291 = vmatpush1.bf16.msra.mxu0 %v10613_v1  ;;  %v10627_v28 = vcombine.low %v3822_v59, %v3826_v39  ;;  %v4347_v59 = vld [vmem:[#allocation9 + $0xe88] sm:$0xff]  ;;  %v4354_v11 = vld [vmem:[#allocation9 + $0xec0] sm:$0xff] }
 0x472   :  { %v2498_v23 = vpop.f32.mrb[35].mxu1  ;;  %v2539_v48 = vpop.f32.mrb[31].mxu0  ;;  %4251 = vmatprep.subr.bf16.mxu1 %v10620_v42  ;;  %4292 = vmatprep.subr.bf16.mxu0 %v10622_v33  ;;  %v10629_v49 = vcombine.low %v3823_v31, %v3827_v15  ;;  %v10633_v16 = vcombine.low %v4331_v63, %v4335_v6  ;;  %v10640_v1 = vcombine.high %v4338_v56, %v4342_v14  ;;  %v4346_v33 = vld [vmem:[#allocation9 + $0xe80] sm:$0xff]  ;;  %v4355_v58 = vld [vmem:[#allocation9 + $0xec8] sm:$0xff] }
 0x473   :  { %v10642_v42 = vcombine.high %v4339_v47, %v4343_v5  ;;  %v10639_v39 = vcombine.low %v4338_v56, %v4342_v14  ;;  %v10641_v31 = vcombine.low %v4339_v47, %v4343_v5  ;;  %v10648_v15 = vcombine.high %v4346_v33, %v4350_v34  ;;  %v4359_v0 = vld [vmem:[#allocation9 + $0xee8] sm:$0xff] }
 0x474   :  { %v10650_v27 = vcombine.high %v4347_v59, %v4351_v41  ;;  %v10658_v48 = vcombine.high %v4355_v58, %v4359_v0  ;;  %v10657_v6 = vcombine.low %v4355_v58, %v4359_v0  ;;  %v4371_v56 = vld [vmem:[#allocation9 + $0xf48] sm:$0xff]  ;;  %v10665_v5 = vcombine.low %v4363_v13, %v4367_v8 }
 0x475   :  { %4252 = vmatpush1.bf16.msra.mxu1 %v10619_v62  ;;  %4293 = vmatpush1.bf16.msra.mxu0 %v10621_v25  ;;  %v4358_v62 = vld [vmem:[#allocation9 + $0xee0] sm:$0xff]  ;;  %v10647_v25 = vcombine.low %v4346_v33, %v4350_v34  ;;  %v4375_v14 = vld [vmem:[#allocation9 + $0xf68] sm:$0xff] }
 0x476   :  { %4253 = vmatprep.subr.bf16.mxu1 %v10628_v55  ;;  %4294 = vmatprep.subr.bf16.mxu0 %v10630_v51  ;;  %v10656_v23 = vcombine.high %v4354_v11, %v4358_v62  ;;  %v4362_v55 = vld [vmem:[#allocation9 + $0xf00] sm:$0xff]  ;;  %v10655_v63 = vcombine.low %v4354_v11, %v4358_v62  ;;  %v4379_v33 = vld [vmem:[#allocation9 + $0xf88] sm:$0xff] }
 0x477   :  { %v4366_v51 = vld [vmem:[#allocation9 + $0xf20] sm:$0xff]  ;;  %v4383_v34 = vld [vmem:[#allocation9 + $0xfa8] sm:$0xff] }
 0x478   :  { %v10663_v47 = vcombine.low %v4362_v55, %v4366_v51  ;;  %v4390_v62 = vld [vmem:[#allocation9 + $0xfe0] sm:$0xff]  ;;  %v4387_v58 = vld [vmem:[#allocation9 + $0xfc8] sm:$0xff] }
 0x479   :  { %4254 = vmatpush1.bf16.msra.mxu1 %v10627_v28  ;;  %4295 = vmatpush1.bf16.msra.mxu0 %v10629_v49  ;;  %v10664_v28 = vcombine.high %v4362_v55, %v4366_v51  ;;  %v10666_v49 = vcombine.high %v4363_v13, %v4367_v8  ;;  %v4391_v0 = vld [vmem:[#allocation9 + $0xfe8] sm:$0xff] }
 0x47a   :  { %4719 = vmatprep.subr.bf16.mxu1 %v10632_v60  ;;  %4760 = vmatprep.subr.bf16.mxu0 %v10634_v36  ;;  %v4370_v60 = vld [vmem:[#allocation9 + $0xf40] sm:$0xff] }
 0x47b   :  { %v4374_v36 = vld [vmem:[#allocation9 + $0xf60] sm:$0xff] }
 0x47c   :  { %4272 = vmatmul.mubr.bf16.vlgmr.msra.gmra.mrb[60].mxu1 %v12111_v52  ;;  %4313 = vmatmul.mubr.bf16.vlgmr.msra.gmra.mrb[56].mxu0 %v12111_v52  ;;  %v10649_v52 = vcombine.low %v4347_v59, %v4351_v41  ;;  %v10671_v59 = vcombine.low %v4370_v60, %v4374_v36  ;;  %v10673_v41 = vcombine.low %v4371_v56, %v4375_v14 }
 0x47d   :  { %4720 = vmatpush1.bf16.msra.mxu1 %v10631_v9  ;;  %4761 = vmatpush1.bf16.msra.mxu0 %v10633_v16  ;;  %v10672_v9 = vcombine.high %v4370_v60, %v4374_v36  ;;  %v10674_v16 = vcombine.high %v4371_v56, %v4375_v14  ;;  %v4332_v60 = vld [vmem:[#allocation9 + $0xe10] sm:$0xff]  ;;  %v4333_v56 = vld [vmem:[#allocation9 + $0xe18] sm:$0xff] }
 0x47e   :  { %4721 = vmatprep.subr.bf16.mxu1 %v10640_v1  ;;  %4762 = vmatprep.subr.bf16.mxu0 %v10642_v42  ;;  %v4378_v1 = vld [vmem:[#allocation9 + $0xf80] sm:$0xff]  ;;  %v4336_v36 = vld [vmem:[#allocation9 + $0xe30] sm:$0xff]  ;;  %v4337_v14 = vld [vmem:[#allocation9 + $0xe38] sm:$0xff] }
 0x47f   :  { %4751 = vmatprep.mubr.bf16.mxu1 %v11681_v21  ;;  %4792 = vmatprep.mubr.bf16.mxu0 %v11681_v21  ;;  %v4382_v42 = vld [vmem:[#allocation9 + $0xfa0] sm:$0xff] }
 0x480   :  { %v10679_v55 = vcombine.low %v4378_v1, %v4382_v42 }
 0x481   :  { %4722 = vmatpush1.bf16.msra.mxu1 %v10639_v39  ;;  %4763 = vmatpush1.bf16.msra.mxu0 %v10641_v31  ;;  %v10680_v39 = vcombine.high %v4378_v1, %v4382_v42  ;;  %v10682_v31 = vcombine.high %v4379_v33, %v4383_v34  ;;  %v4341_v1 = vld [vmem:[#allocation9 + $0xe58] sm:$0xff] }
 0x482   :  { %4723 = vmatprep.subr.bf16.mxu1 %v10648_v15  ;;  %4764 = vmatprep.subr.bf16.mxu0 %v10650_v27  ;;  %v4386_v15 = vld [vmem:[#allocation9 + $0xfc0] sm:$0xff]  ;;  %v4345_v42 = vld [vmem:[#allocation9 + $0xe78] sm:$0xff] }
 0x485   :  { %4724 = vmatpush1.bf16.msra.mxu1 %v10647_v25  ;;  %4765 = vmatpush1.bf16.msra.mxu0 %v10649_v52 }
 0x486   :  { %4725 = vmatprep.subr.bf16.mxu1 %v10656_v23  ;;  %4766 = vmatprep.subr.bf16.mxu0 %v10658_v48 }
 0x489   :  { %4726 = vmatpush1.bf16.msra.mxu1 %v10655_v63  ;;  %4767 = vmatpush1.bf16.msra.mxu0 %v10657_v6  ;;  %v10681_v6 = vcombine.low %v4379_v33, %v4383_v34  ;;  %v10635_v33 = vcombine.low %v4332_v60, %v4336_v36  ;;  %v10637_v34 = vcombine.low %v4333_v56, %v4337_v14 }
 0x48a   :  { %4727 = vmatprep.subr.bf16.mxu1 %v10664_v28  ;;  %4768 = vmatprep.subr.bf16.mxu0 %v10666_v49  ;;  %v10690_v49 = vcombine.high %v4387_v58, %v4391_v0 }
 0x48d   :  { %4728 = vmatpush1.bf16.msra.mxu1 %v10663_v47  ;;  %4769 = vmatpush1.bf16.msra.mxu0 %v10665_v5  ;;  %v10636_v47 = vcombine.high %v4332_v60, %v4336_v36  ;;  %v10638_v5 = vcombine.high %v4333_v56, %v4337_v14  ;;  %v4365_v60 = vld [vmem:[#allocation9 + $0xf18] sm:$0xff] }
 0x48e   :  { %4729 = vmatprep.subr.bf16.mxu1 %v10672_v9  ;;  %4770 = vmatprep.subr.bf16.mxu0 %v10674_v16  ;;  %v4340_v9 = vld [vmem:[#allocation9 + $0xe50] sm:$0xff]  ;;  %v4369_v36 = vld [vmem:[#allocation9 + $0xf38] sm:$0xff] }
 0x48f   :  { %v2575_v27 = vpop.f32.mrb[36].mxu1  ;;  %v2616_v11 = vpop.f32.mrb[32].mxu0  ;;  %v4344_v16 = vld [vmem:[#allocation9 + $0xe70] sm:$0xff] }
 0x490   :  { %v12134_v25 = vadd.f32 %v2575_v27, %v12095_v19  ;;  %v12137_v52 = vadd.f32 %v2616_v11, %v12098_v17  ;;  %v2577_v23 = vpop.f32.mrb[37].mxu1  ;;  %v2618_v48 = vpop.f32.mrb[33].mxu0  ;;  %v10688_v17 = vcombine.high %v4386_v15, %v4390_v62  ;;  %v4349_v27 = vld [vmem:[#allocation9 + $0xe98] sm:$0xff] }
 0x491   :  { %v12140_v51 = vadd.f32 %v2577_v23, %v12101_v32  ;;  %v12143_v13 = vadd.f32 %v2618_v48, %v12104_v22  ;;  %v2579_v8 = vpop.f32.mrb[38].mxu1  ;;  %v2620_v63 = vpop.f32.mrb[34].mxu0  ;;  %4730 = vmatpush1.bf16.msra.mxu1 %v10671_v59  ;;  %4771 = vmatpush1.bf16.msra.mxu0 %v10673_v41  ;;  %v10687_v32 = vcombine.low %v4386_v15, %v4390_v62  ;;  %v4352_v15 = vld [vmem:[#allocation9 + $0xeb0] sm:$0xff]  ;;  %v4353_v11 = vld [vmem:[#allocation9 + $0xeb8] sm:$0xff] }
 0x492   :  { %v2580_v28 = vpop.f32.mrb[39].mxu1  ;;  %v2621_v19 = vpop.f32.mrb[35].mxu0  ;;  %4731 = vmatprep.subr.bf16.mxu1 %v10680_v39  ;;  %4772 = vmatprep.subr.bf16.mxu0 %v10682_v31  ;;  %v10689_v22 = vcombine.low %v4387_v58, %v4391_v0  ;;  %v12147_v59 = vpack.c.b16 %v11932_v40, %v11932_v40  ;;  %v10644_v41 = vcombine.high %v4340_v9, %v4344_v16  ;;  %v4348_v31 = vld [vmem:[#allocation9 + $0xe90] sm:$0xff]  ;;  %v4361_v8 = vld [vmem:[#allocation9 + $0xef8] sm:$0xff] }
 0x493   :  { %v10646_v39 = vcombine.high %v4341_v1, %v4345_v42  ;;  %v10643_v62 = vcombine.low %v4340_v9, %v4344_v16  ;;  %v10645_v58 = vcombine.low %v4341_v1, %v4345_v42  ;;  %v10652_v40 = vcombine.high %v4348_v31, %v4352_v15  ;;  %v4356_v23 = vld [vmem:[#allocation9 + $0xed0] sm:$0xff]  ;;  %v4373_v9 = vld [vmem:[#allocation9 + $0xf58] sm:$0xff] }
 0x494   :  { %v10654_v0 = vcombine.high %v4349_v27, %v4353_v11  ;;  %v4360_v48 = vld [vmem:[#allocation9 + $0xef0] sm:$0xff]  ;;  %v10651_v63 = vcombine.low %v4348_v31, %v4352_v15  ;;  %v4377_v16 = vld [vmem:[#allocation9 + $0xf78] sm:$0xff]  ;;  %v10669_v42 = vcombine.low %v4365_v60, %v4369_v36 }
 0x495   :  { %4732 = vmatpush1.bf16.msra.mxu1 %v10679_v55  ;;  %4773 = vmatpush1.bf16.msra.mxu0 %v10681_v6  ;;  %v4357_v55 = vld [vmem:[#allocation9 + $0xed8] sm:$0xff]  ;;  %v10653_v6 = vcombine.low %v4349_v27, %v4353_v11  ;;  %v10660_v28 = vcombine.high %v4356_v23, %v4360_v48  ;;  %v10659_v56 = vcombine.low %v4356_v23, %v4360_v48  ;;  %v4392_v48 = vld [vmem:[#allocation9 + $0xff0] sm:$0xff] }
 0x496   :  { %4733 = vmatprep.subr.bf16.mxu1 %v10688_v17  ;;  %4774 = vmatprep.subr.bf16.mxu0 %v10690_v49  ;;  %v10662_v19 = vcombine.high %v4357_v55, %v4361_v8  ;;  %v4364_v17 = vld [vmem:[#allocation9 + $0xf10] sm:$0xff]  ;;  %v10661_v14 = vcombine.low %v4357_v55, %v4361_v8  ;;  %v4381_v31 = vld [vmem:[#allocation9 + $0xf98] sm:$0xff]  ;;  %v10677_v11 = vcombine.low %v4373_v9, %v4377_v16 }
 0x497   :  { %v4368_v49 = vld [vmem:[#allocation9 + $0xf30] sm:$0xff]  ;;  %v4385_v15 = vld [vmem:[#allocation9 + $0xfb8] sm:$0xff] }
 0x498   :  { %v10667_v1 = vcombine.low %v4364_v17, %v4368_v49  ;;  %v4389_v55 = vld [vmem:[#allocation9 + $0xfd8] sm:$0xff] }
 0x499   :  { %4734 = vmatpush1.bf16.msra.mxu1 %v10687_v32  ;;  %4775 = vmatpush1.bf16.msra.mxu0 %v10689_v22  ;;  %v10668_v32 = vcombine.high %v4364_v17, %v4368_v49  ;;  %v10670_v22 = vcombine.high %v4365_v60, %v4369_v36  ;;  %v4393_v8 = vld [vmem:[#allocation9 + $0xff8] sm:$0xff] }
 0x49a   :  { %4801 = vmatprep.subr.bf16.mxu1 %v10636_v47  ;;  %4842 = vmatprep.subr.bf16.mxu0 %v10638_v5  ;;  %v4372_v47 = vld [vmem:[#allocation9 + $0xf50] sm:$0xff] }
 0x49b   :  { %v4376_v5 = vld [vmem:[#allocation9 + $0xf70] sm:$0xff] }
 0x49c   :  { %4752 = vmatmul.mubr.bf16.vlgmr.msra.gmra.mrb[64].mxu1 %v12147_v59  ;;  %4793 = vmatmul.mubr.bf16.vlgmr.msra.gmra.mrb[60].mxu0 %v12147_v59  ;;  %v10675_v27 = vcombine.low %v4372_v47, %v4376_v5 }
 0x49d   :  { %4802 = vmatpush1.bf16.msra.mxu1 %v10635_v33  ;;  %4843 = vmatpush1.bf16.msra.mxu0 %v10637_v34  ;;  %v10676_v33 = vcombine.high %v4372_v47, %v4376_v5  ;;  %v10678_v34 = vcombine.high %v4373_v9, %v4377_v16  ;;  %v4894_v47 = vld [vmem:[#allocation9 + $0x1000] sm:$0xff]  ;;  %v4895_v9 = vld [vmem:[#allocation9 + $0x1008] sm:$0xff] }
 0x49e   :  { %4803 = vmatprep.subr.bf16.mxu1 %v10644_v41  ;;  %4844 = vmatprep.subr.bf16.mxu0 %v10646_v39  ;;  %v4380_v41 = vld [vmem:[#allocation9 + $0xf90] sm:$0xff]  ;;  %v4898_v5 = vld [vmem:[#allocation9 + $0x1020] sm:$0xff]  ;;  %v4899_v16 = vld [vmem:[#allocation9 + $0x1028] sm:$0xff] }
 0x49f   :  { %4833 = vmatprep.mubr.bf16.mxu1 %v11681_v21  ;;  %4874 = vmatprep.mubr.bf16.mxu0 %v11681_v21  ;;  %v4384_v39 = vld [vmem:[#allocation9 + $0xfb0] sm:$0xff] }
 0x4a0   :  { %v10683_v17 = vcombine.low %v4380_v41, %v4384_v39 }
 0x4a1   :  { %4804 = vmatpush1.bf16.msra.mxu1 %v10643_v62  ;;  %4845 = vmatpush1.bf16.msra.mxu0 %v10645_v58  ;;  %v10684_v62 = vcombine.high %v4380_v41, %v4384_v39  ;;  %v10686_v58 = vcombine.high %v4381_v31, %v4385_v15  ;;  %v4903_v41 = vld [vmem:[#allocation9 + $0x1048] sm:$0xff] }
 0x4a2   :  { %4805 = vmatprep.subr.bf16.mxu1 %v10652_v40  ;;  %4846 = vmatprep.subr.bf16.mxu0 %v10654_v0  ;;  %v4388_v40 = vld [vmem:[#allocation9 + $0xfd0] sm:$0xff]  ;;  %v4907_v39 = vld [vmem:[#allocation9 + $0x1068] sm:$0xff] }
 0x4a5   :  { %4806 = vmatpush1.bf16.msra.mxu1 %v10651_v63  ;;  %4847 = vmatpush1.bf16.msra.mxu0 %v10653_v6 }
 0x4a6   :  { %4807 = vmatprep.subr.bf16.mxu1 %v10660_v28  ;;  %4848 = vmatprep.subr.bf16.mxu0 %v10662_v19 }
 0x4a9   :  { %4808 = vmatpush1.bf16.msra.mxu1 %v10659_v56  ;;  %4849 = vmatpush1.bf16.msra.mxu0 %v10661_v14  ;;  %v10685_v14 = vcombine.low %v4381_v31, %v4385_v15  ;;  %v10695_v31 = vcombine.low %v4894_v47, %v4898_v5  ;;  %v10697_v15 = vcombine.low %v4895_v9, %v4899_v16 }
 0x4aa   :  { %4809 = vmatprep.subr.bf16.mxu1 %v10668_v32  ;;  %4850 = vmatprep.subr.bf16.mxu0 %v10670_v22  ;;  %v10694_v22 = vcombine.high %v4389_v55, %v4393_v8 }
 0x4ad   :  { %4810 = vmatpush1.bf16.msra.mxu1 %v10667_v1  ;;  %4851 = vmatpush1.bf16.msra.mxu0 %v10669_v42  ;;  %v10696_v1 = vcombine.high %v4894_v47, %v4898_v5  ;;  %v10698_v42 = vcombine.high %v4895_v9, %v4899_v16  ;;  %v4931_v47 = vld [vmem:[#allocation9 + $0x1128] sm:$0xff] }
 0x4ae   :  { %4811 = vmatprep.subr.bf16.mxu1 %v10676_v33  ;;  %4852 = vmatprep.subr.bf16.mxu0 %v10678_v34  ;;  %v4902_v33 = vld [vmem:[#allocation9 + $0x1040] sm:$0xff] }
 0x4af   :  { %v3061_v0 = vpop.f32.mrb[40].mxu1  ;;  %v3102_v23 = vpop.f32.mrb[36].mxu0  ;;  %v4906_v34 = vld [vmem:[#allocation9 + $0x1060] sm:$0xff] }
 0x4b0   :  { %v12154_v63 = vadd.f32 %v3061_v0, %v12118_v54  ;;  %v12157_v6 = vadd.f32 %v3102_v23, %v12121_v61  ;;  %v3063_v28 = vpop.f32.mrb[41].mxu1  ;;  %v3104_v19 = vpop.f32.mrb[37].mxu0  ;;  %v10692_v61 = vcombine.high %v4388_v40, %v4392_v48  ;;  %v4915_v0 = vld [vmem:[#allocation9 + $0x10a8] sm:$0xff]  ;;  %v10703_v23 = vcombine.low %v4902_v33, %v4906_v34 }
 0x4b1   :  { %v12160_v49 = vadd.f32 %v3063_v28, %v12124_v43  ;;  %v12163_v60 = vadd.f32 %v3104_v19, %v12127_v12  ;;  %v3065_v36 = vpop.f32.mrb[42].mxu1  ;;  %v3106_v56 = vpop.f32.mrb[38].mxu0  ;;  %4812 = vmatpush1.bf16.msra.mxu1 %v10675_v27  ;;  %4853 = vmatpush1.bf16.msra.mxu0 %v10677_v11  ;;  %v10691_v43 = vcombine.low %v4388_v40, %v4392_v48  ;;  %v4911_v40 = vld [vmem:[#allocation9 + $0x1088] sm:$0xff]  ;;  %v4918_v28 = vld [vmem:[#allocation9 + $0x10c0] sm:$0xff] }
 0x4b2   :  { %v3066_v32 = vpop.f32.mrb[43].mxu1  ;;  %v3107_v54 = vpop.f32.mrb[39].mxu0  ;;  %4813 = vmatprep.subr.bf16.mxu1 %v10684_v62  ;;  %4854 = vmatprep.subr.bf16.mxu0 %v10686_v58  ;;  %v10693_v12 = vcombine.low %v4389_v55, %v4393_v8  ;;  %v10704_v27 = vcombine.high %v4902_v33, %v4906_v34  ;;  %v10706_v11 = vcombine.high %v4903_v41, %v4907_v39  ;;  %v4910_v62 = vld [vmem:[#allocation9 + $0x1080] sm:$0xff]  ;;  %v4923_v36 = vld [vmem:[#allocation9 + $0x10e8] sm:$0xff] }
 0x4b3   :  { %v4914_v58 = vld [vmem:[#allocation9 + $0x10a0] sm:$0xff]  ;;  %v10705_v48 = vcombine.low %v4903_v41, %v4907_v39  ;;  %v10714_v8 = vcombine.high %v4911_v40, %v4915_v0  ;;  %v4939_v33 = vld [vmem:[#allocation9 + $0x1168] sm:$0xff] }
 0x4b4   :  { %v10712_v55 = vcombine.high %v4910_v62, %v4914_v58  ;;  %v4922_v19 = vld [vmem:[#allocation9 + $0x10e0] sm:$0xff]  ;;  %v10711_v56 = vcombine.low %v4910_v62, %v4914_v58  ;;  %v4947_v62 = vld [vmem:[#allocation9 + $0x11a8] sm:$0xff] }
 0x4b5   :  { %4814 = vmatpush1.bf16.msra.mxu1 %v10683_v17  ;;  %4855 = vmatpush1.bf16.msra.mxu0 %v10685_v14  ;;  %v4919_v17 = vld [vmem:[#allocation9 + $0x10c8] sm:$0xff]  ;;  %v10720_v14 = vcombine.high %v4918_v28, %v4922_v19  ;;  %v4926_v54 = vld [vmem:[#allocation9 + $0x1100] sm:$0xff]  ;;  %v10719_v5 = vcombine.low %v4918_v28, %v4922_v19 }
 0x4b6   :  { %4815 = vmatprep.subr.bf16.mxu1 %v10692_v61  ;;  %4856 = vmatprep.subr.bf16.mxu0 %v10694_v22  ;;  %v10722_v32 = vcombine.high %v4919_v17, %v4923_v36  ;;  %v4930_v61 = vld [vmem:[#allocation9 + $0x1120] sm:$0xff]  ;;  %v4927_v22 = vld [vmem:[#allocation9 + $0x1108] sm:$0xff]  ;;  %v10721_v9 = vcombine.low %v4919_v17, %v4923_v36 }
 0x4b7   :  { %v10728_v16 = vcombine.high %v4926_v54, %v4930_v61  ;;  %v10727_v34 = vcombine.low %v4926_v54, %v4930_v61  ;;  %v10729_v41 = vcombine.low %v4927_v22, %v4931_v47  ;;  %v4954_v28 = vld [vmem:[#allocation9 + $0x11e0] sm:$0xff]  ;;  %v4951_v19 = vld [vmem:[#allocation9 + $0x11c8] sm:$0xff] }
 0x4b8   :  { %v4955_v17 = vld [vmem:[#allocation9 + $0x11e8] sm:$0xff] }
 0x4b9   :  { %4816 = vmatpush1.bf16.msra.mxu1 %v10691_v43  ;;  %4857 = vmatpush1.bf16.msra.mxu0 %v10693_v12  ;;  %v10730_v43 = vcombine.high %v4927_v22, %v4931_v47  ;;  %v4934_v12 = vld [vmem:[#allocation9 + $0x1140] sm:$0xff] }
 0x4ba   :  { %5286 = vmatprep.subr.bf16.mxu1 %v10696_v1  ;;  %5327 = vmatprep.subr.bf16.mxu0 %v10698_v42  ;;  %v4938_v1 = vld [vmem:[#allocation9 + $0x1160] sm:$0xff]  ;;  %v4935_v42 = vld [vmem:[#allocation9 + $0x1148] sm:$0xff] }
 0x4bb   :  { %v10736_v39 = vcombine.high %v4934_v12, %v4938_v1  ;;  %v10735_v58 = vcombine.low %v4934_v12, %v4938_v1  ;;  %v4962_v12 = vrot.slane %v4961_v24, 7  ;;  %v4897_v1 = vld [vmem:[#allocation9 + $0x1018] sm:$0xff] }
 0x4bc   :  { %4834 = vmatmul.mubr.bf16.vlgmr.msra.gmra.mrb[68].mxu1 %v12147_v59  ;;  %4875 = vmatmul.mubr.bf16.vlgmr.msra.gmra.mrb[64].mxu0 %v12147_v59  ;;  %v10713_v59 = vcombine.low %v4911_v40, %v4915_v0  ;;  %v10737_v40 = vcombine.low %v4935_v42, %v4939_v33 }
 0x4bd   :  { %5287 = vmatpush1.bf16.msra.mxu1 %v10695_v31  ;;  %5328 = vmatpush1.bf16.msra.mxu0 %v10697_v15  ;;  %v10738_v31 = vcombine.high %v4935_v42, %v4939_v33  ;;  %v4942_v15 = vld [vmem:[#allocation9 + $0x1180] sm:$0xff]  ;;  %v4901_v42 = vld [vmem:[#allocation9 + $0x1038] sm:$0xff]  ;;  %v10753_v33 = vcombine.low %v4951_v19, %v4955_v17 }
 0x4be   :  { %5288 = vmatprep.subr.bf16.mxu1 %v10704_v27  ;;  %5329 = vmatprep.subr.bf16.mxu0 %v10706_v11  ;;  %v4946_v27 = vld [vmem:[#allocation9 + $0x11a0] sm:$0xff]  ;;  %v4943_v11 = vld [vmem:[#allocation9 + $0x1188] sm:$0xff] }
 0x4bf   :  { %5318 = vmatprep.mubr.bf16.mxu1 %v11681_v21  ;;  %5359 = vmatprep.mubr.bf16.mxu0 %v11681_v21  ;;  %v10744_v0 = vcombine.high %v4942_v15, %v4946_v27 }
 0x4c1   :  { %5289 = vmatpush1.bf16.msra.mxu1 %v10703_v23  ;;  %5330 = vmatpush1.bf16.msra.mxu0 %v10705_v48  ;;  %v10746_v23 = vcombine.high %v4943_v11, %v4947_v62  ;;  %v4950_v48 = vld [vmem:[#allocation9 + $0x11c0] sm:$0xff] }
 0x4c2   :  { %5290 = vmatprep.subr.bf16.mxu1 %v10712_v55  ;;  %5331 = vmatprep.subr.bf16.mxu0 %v10714_v8 }
 0x4c5   :  { %5291 = vmatpush1.bf16.msra.mxu1 %v10711_v56  ;;  %5332 = vmatpush1.bf16.msra.mxu0 %v10713_v59 }
 0x4c6   :  { %5292 = vmatprep.subr.bf16.mxu1 %v10720_v14  ;;  %5333 = vmatprep.subr.bf16.mxu0 %v10722_v32  ;;  %v10743_v32 = vcombine.low %v4942_v15, %v4946_v27  ;;  %v4908_v15 = vld [vmem:[#allocation9 + $0x1070] sm:$0xff]  ;;  %v4905_v27 = vld [vmem:[#allocation9 + $0x1058] sm:$0xff] }
 0x4c9   :  { %5293 = vmatpush1.bf16.msra.mxu1 %v10719_v5  ;;  %5334 = vmatpush1.bf16.msra.mxu0 %v10721_v9  ;;  %v10745_v5 = vcombine.low %v4943_v11, %v4947_v62  ;;  %v10701_v11 = vcombine.low %v4897_v1, %v4901_v42 }
 0x4ca   :  { %5294 = vmatprep.subr.bf16.mxu1 %v10728_v16  ;;  %5335 = vmatprep.subr.bf16.mxu0 %v10730_v43  ;;  %v10754_v16 = vcombine.high %v4951_v19, %v4955_v17  ;;  %v4896_v43 = vld [vmem:[#allocation9 + $0x1010] sm:$0xff] }
 0x4cb   :  { %v4920_v19 = vld [vmem:[#allocation9 + $0x10d0] sm:$0xff] }
 0x4cc   :  { %v4924_v17 = vld [vmem:[#allocation9 + $0x10f0] sm:$0xff] }
 0x4cd   :  { %5295 = vmatpush1.bf16.msra.mxu1 %v10727_v34  ;;  %5336 = vmatpush1.bf16.msra.mxu0 %v10729_v41  ;;  %v10702_v41 = vcombine.high %v4897_v1, %v4901_v42  ;;  %v4936_v42 = vld [vmem:[#allocation9 + $0x1150] sm:$0xff] }
 0x4ce   :  { %5296 = vmatprep.subr.bf16.mxu1 %v10736_v39  ;;  %5337 = vmatprep.subr.bf16.mxu0 %v10738_v31  ;;  %v4904_v39 = vld [vmem:[#allocation9 + $0x1050] sm:$0xff]  ;;  %v4963_v31 = vsel %vm525_vm3, %v4962_v12, %v4960_v29  ;;  %v10709_v29 = vcombine.low %v4905_v27, %v4909_v18 }
 0x4cf   :  { %v3143_v55 = vpop.f32.mrb[44].mxu1  ;;  %v3184_v8 = vpop.f32.mrb[40].mxu0  ;;  %v12186_v62 = vpack.c.b16 %v4963_v31, %v4963_v31  ;;  %v10707_v7 = vcombine.low %v4904_v39, %v4908_v15 }
 0x4d0   :  { %v12170_v36 = vadd.f32 %v3143_v55, %v12134_v25  ;;  %v12173_v56 = vadd.f32 %v3184_v8, %v12137_v52  ;;  %v3145_v59 = vpop.f32.mrb[45].mxu1  ;;  %v3186_v14 = vpop.f32.mrb[41].mxu0  ;;  %v10752_v52 = vcombine.high %v4950_v48, %v4954_v28  ;;  %v4917_v55 = vld [vmem:[#allocation9 + $0x10b8] sm:$0xff] }
 0x4d1   :  { %v12176_v54 = vadd.f32 %v3145_v59, %v12140_v51  ;;  %v12179_v61 = vadd.f32 %v3186_v14, %v12143_v13  ;;  %v3147_v22 = vpop.f32.mrb[46].mxu1  ;;  %v3188_v47 = vpop.f32.mrb[42].mxu0  ;;  %5297 = vmatpush1.bf16.msra.mxu1 %v10735_v58  ;;  %5338 = vmatpush1.bf16.msra.mxu0 %v10737_v40  ;;  %v4900_v51 = vld [vmem:[#allocation9 + $0x1030] sm:$0xff]  ;;  %v10751_v13 = vcombine.low %v4950_v48, %v4954_v28  ;;  %v4913_v48 = vld [vmem:[#allocation9 + $0x1098] sm:$0xff] }
 0x4d2   :  { %v3148_v9 = vpop.f32.mrb[47].mxu1  ;;  %v3189_v25 = vpop.f32.mrb[43].mxu0  ;;  %5298 = vmatprep.subr.bf16.mxu1 %v10744_v0  ;;  %5339 = vmatprep.subr.bf16.mxu0 %v10746_v23  ;;  %v10700_v34 = vcombine.high %v4896_v43, %v4900_v51  ;;  %v10699_v24 = vcombine.low %v4896_v43, %v4900_v51  ;;  %v10708_v58 = vcombine.high %v4904_v39, %v4908_v15  ;;  %v4912_v0 = vld [vmem:[#allocation9 + $0x1090] sm:$0xff]  ;;  %v4921_v59 = vld [vmem:[#allocation9 + $0x10d8] sm:$0xff] }
 0x4d3   :  { %v10710_v40 = vcombine.high %v4905_v27, %v4909_v18  ;;  %v4916_v23 = vld [vmem:[#allocation9 + $0x10b0] sm:$0xff]  ;;  %v10718_v28 = vcombine.high %v4913_v48, %v4917_v55  ;;  %v4925_v14 = vld [vmem:[#allocation9 + $0x10f8] sm:$0xff]  ;;  %v10717_v22 = vcombine.low %v4913_v48, %v4917_v55  ;;  %v10724_v47 = vcombine.high %v4920_v19, %v4924_v17 }
 0x4d4   :  { %v10716_v8 = vcombine.high %v4912_v0, %v4916_v23  ;;  %v4928_v9 = vld [vmem:[#allocation9 + $0x1110] sm:$0xff]  ;;  %v10723_v43 = vcombine.low %v4920_v19, %v4924_v17  ;;  %v10725_v12 = vcombine.low %v4921_v59, %v4925_v14 }
 0x4d5   :  { %5299 = vmatpush1.bf16.msra.mxu1 %v10743_v32  ;;  %5340 = vmatpush1.bf16.msra.mxu0 %v10745_v5  ;;  %v10715_v32 = vcombine.low %v4912_v0, %v4916_v23  ;;  %v10726_v5 = vcombine.high %v4921_v59, %v4925_v14  ;;  %v4932_v25 = vld [vmem:[#allocation9 + $0x1130] sm:$0xff] }
 0x4d6   :  { %5300 = vmatprep.subr.bf16.mxu1 %v10752_v52  ;;  %5341 = vmatprep.subr.bf16.mxu0 %v10754_v16  ;;  %v4929_v52 = vld [vmem:[#allocation9 + $0x1118] sm:$0xff]  ;;  %v10732_v51 = vcombine.high %v4928_v9, %v4932_v25  ;;  %v4944_v27 = vld [vmem:[#allocation9 + $0x1190] sm:$0xff] }
 0x4d7   :  { %v4933_v16 = vld [vmem:[#allocation9 + $0x1138] sm:$0xff]  ;;  %v4948_v18 = vld [vmem:[#allocation9 + $0x11b0] sm:$0xff] }
 0x4d8   :  { %v10734_v1 = vcombine.high %v4929_v52, %v4933_v16  ;;  %v10733_v39 = vcombine.low %v4929_v52, %v4933_v16  ;;  %v10748_v0 = vcombine.high %v4944_v27, %v4948_v18  ;;  %v4952_v48 = vld [vmem:[#allocation9 + $0x11d0] sm:$0xff] }
 0x4d9   :  { %5301 = vmatpush1.bf16.msra.mxu1 %v10751_v13  ;;  %5342 = vmatpush1.bf16.msra.mxu0 %v10753_v33  ;;  %v4940_v13 = vld [vmem:[#allocation9 + $0x1170] sm:$0xff]  ;;  %v4937_v33 = vld [vmem:[#allocation9 + $0x1158] sm:$0xff] }
 0x4da   :  { %5368 = vmatprep.subr.bf16.mxu1 %v10700_v34  ;;  %5409 = vmatprep.subr.bf16.mxu0 %v10702_v41  ;;  %v4941_v34 = vld [vmem:[#allocation9 + $0x1178] sm:$0xff]  ;;  %v10731_v41 = vcombine.low %v4928_v9, %v4932_v25  ;;  %v10740_v31 = vcombine.high %v4936_v42, %v4940_v13 }
 0x4db   :  { %v10742_v15 = vcombine.high %v4937_v33, %v4941_v34 }
 0x4dc   :  { %5319 = vmatmul.mubr.bf16.vlgmr.msra.gmra.mrb[72].mxu1 %v12186_v62  ;;  %5360 = vmatmul.mubr.bf16.vlgmr.msra.gmra.mrb[68].mxu0 %v12186_v62 }
 0x4dd   :  { %5369 = vmatpush1.bf16.msra.mxu1 %v10699_v24  ;;  %5410 = vmatpush1.bf16.msra.mxu0 %v10701_v11  ;;  %v4945_v24 = vld [vmem:[#allocation9 + $0x1198] sm:$0xff] }
 0x4de   :  { %5370 = vmatprep.subr.bf16.mxu1 %v10708_v58  ;;  %5411 = vmatprep.subr.bf16.mxu0 %v10710_v40  ;;  %v4949_v11 = vld [vmem:[#allocation9 + $0x11b8] sm:$0xff]  ;;  %v10739_v58 = vcombine.low %v4936_v42, %v4940_v13  ;;  %v10741_v40 = vcombine.low %v4937_v33, %v4941_v34  ;;  %v5467_v33 = vld [vmem:[#allocation9 + $0x1240] sm:$0xff] }
 0x4df   :  { %5400 = vmatprep.mubr.bf16.mxu1 %v11681_v21  ;;  %5441 = vmatprep.mubr.bf16.mxu0 %v11681_v21  ;;  %v10750_v23 = vcombine.high %v4945_v24, %v4949_v11  ;;  %v10749_v25 = vcombine.low %v4945_v24, %v4949_v11  ;;  %v5471_v34 = vld [vmem:[#allocation9 + $0x1260] sm:$0xff] }
 0x4e0   :  { %v5475_v24 = vld [vmem:[#allocation9 + $0x1280] sm:$0xff] }
 0x4e1   :  { %5371 = vmatpush1.bf16.msra.mxu1 %v10707_v7  ;;  %5412 = vmatpush1.bf16.msra.mxu0 %v10709_v29  ;;  %v4956_v29 = vld [vmem:[#allocation9 + $0x11f0] sm:$0xff]  ;;  %v5479_v11 = vld [vmem:[#allocation9 + $0x12a0] sm:$0xff] }
 0x4e2   :  { %5372 = vmatprep.subr.bf16.mxu1 %v10716_v8  ;;  %5413 = vmatprep.subr.bf16.mxu0 %v10718_v28  ;;  %v4953_v8 = vld [vmem:[#allocation9 + $0x11d8] sm:$0xff] }
 0x4e3   :  { %v4957_v28 = vld [vmem:[#allocation9 + $0x11f8] sm:$0xff] }
 0x4e4   :  { %v10758_v16 = vcombine.high %v4953_v8, %v4957_v28 }
 0x4e5   :  { %5373 = vmatpush1.bf16.msra.mxu1 %v10715_v32  ;;  %5414 = vmatpush1.bf16.msra.mxu0 %v10717_v22  ;;  %v10747_v32 = vcombine.low %v4944_v27, %v4948_v18  ;;  %v10768_v27 = vcombine.high %v5467_v33, %v5471_v34 }
 0x4e6   :  { %5374 = vmatprep.subr.bf16.mxu1 %v10724_v47  ;;  %5415 = vmatprep.subr.bf16.mxu0 %v10726_v5 }
 0x4e9   :  { %5375 = vmatpush1.bf16.msra.mxu1 %v10723_v43  ;;  %5416 = vmatpush1.bf16.msra.mxu0 %v10725_v12  ;;  %v5459_v43 = vld [vmem:[#allocation9 + $0x1200] sm:$0xff] }
 0x4ea   :  { %5376 = vmatprep.subr.bf16.mxu1 %v10732_v51  ;;  %5417 = vmatprep.subr.bf16.mxu0 %v10734_v1  ;;  %v5463_v12 = vld [vmem:[#allocation9 + $0x1220] sm:$0xff]  ;;  %v5460_v51 = vld [vmem:[#allocation9 + $0x1208] sm:$0xff] }
 0x4eb   :  { %v5464_v1 = vld [vmem:[#allocation9 + $0x1228] sm:$0xff]  ;;  %v10760_v42 = vcombine.high %v5459_v43, %v5463_v12 }
 0x4ec   :  { %v10762_v13 = vcombine.high %v5460_v51, %v5464_v1 }
 0x4ed   :  { %5377 = vmatpush1.bf16.msra.mxu1 %v10731_v41  ;;  %5418 = vmatpush1.bf16.msra.mxu0 %v10733_v39  ;;  %v5468_v41 = vld [vmem:[#allocation9 + $0x1248] sm:$0xff] }
 0x4ee   :  { %5378 = vmatprep.subr.bf16.mxu1 %v10740_v31  ;;  %5419 = vmatprep.subr.bf16.mxu0 %v10742_v15  ;;  %v5472_v39 = vld [vmem:[#allocation9 + $0x1268] sm:$0xff]  ;;  %v10759_v31 = vcombine.low %v5459_v43, %v5463_v12  ;;  %v10761_v15 = vcombine.low %v5460_v51, %v5464_v1  ;;  %v5499_v12 = vld [vmem:[#allocation9 + $0x1340] sm:$0xff] }
 0x4ef   :  { %v3623_v55 = vpop.f32.mrb[48].mxu1  ;;  %v3664_v7 = vpop.f32.mrb[44].mxu0  ;;  %v10770_v18 = vcombine.high %v5468_v41, %v5472_v39  ;;  %v5503_v51 = vld [vmem:[#allocation9 + $0x1360] sm:$0xff]  ;;  %v5500_v1 = vld [vmem:[#allocation9 + $0x1348] sm:$0xff] }
 0x4f0   :  { %v12193_v19 = vadd.f32 %v3623_v55, %v12154_v63  ;;  %v12196_v17 = vadd.f32 %v3664_v7, %v12157_v6  ;;  %v3625_v59 = vpop.f32.mrb[49].mxu1  ;;  %v3666_v14 = vpop.f32.mrb[45].mxu0  ;;  %v10756_v6 = vcombine.high %v4952_v48, %v4956_v29  ;;  %v5483_v7 = vld [vmem:[#allocation9 + $0x12c0] sm:$0xff] }
 0x4f1   :  { %v12199_v22 = vadd.f32 %v3625_v59, %v12160_v49  ;;  %v12202_v47 = vadd.f32 %v3666_v14, %v12163_v60  ;;  %v3627_v5 = vpop.f32.mrb[50].mxu1  ;;  %v3668_v9 = vpop.f32.mrb[46].mxu0  ;;  %5379 = vmatpush1.bf16.msra.mxu1 %v10739_v58  ;;  %5420 = vmatpush1.bf16.msra.mxu0 %v10741_v40  ;;  %v10755_v49 = vcombine.low %v4952_v48, %v4956_v29  ;;  %v5476_v58 = vld [vmem:[#allocation9 + $0x1288] sm:$0xff]  ;;  %v5487_v29 = vld [vmem:[#allocation9 + $0x12e0] sm:$0xff] }
 0x4f2   :  { %v3628_v52 = vpop.f32.mrb[51].mxu1  ;;  %v3669_v63 = vpop.f32.mrb[47].mxu0  ;;  %5380 = vmatprep.subr.bf16.mxu1 %v10748_v0  ;;  %5421 = vmatprep.subr.bf16.mxu0 %v10750_v23  ;;  %v10757_v60 = vcombine.low %v4953_v8, %v4957_v28  ;;  %v5480_v40 = vld [vmem:[#allocation9 + $0x12a8] sm:$0xff]  ;;  %v10767_v0 = vcombine.low %v5467_v33, %v5471_v34  ;;  %v10769_v23 = vcombine.low %v5468_v41, %v5472_v39  ;;  %v5491_v5 = vld [vmem:[#allocation9 + $0x1300] sm:$0xff] }
 0x4f3   :  { %v10776_v48 = vcombine.high %v5475_v24, %v5479_v11  ;;  %v10778_v55 = vcombine.high %v5476_v58, %v5480_v40  ;;  %v5484_v8 = vld [vmem:[#allocation9 + $0x12c8] sm:$0xff]  ;;  %v10775_v59 = vcombine.low %v5475_v24, %v5479_v11  ;;  %v10784_v14 = vcombine.high %v5483_v7, %v5487_v29  ;;  %v5495_v9 = vld [vmem:[#allocation9 + $0x1320] sm:$0xff] }
 0x4f4   :  { %v5488_v28 = vld [vmem:[#allocation9 + $0x12e8] sm:$0xff]  ;;  %v10783_v63 = vcombine.low %v5483_v7, %v5487_v29  ;;  %v5507_v34 = vld [vmem:[#allocation9 + $0x1380] sm:$0xff] }
 0x4f5   :  { %5381 = vmatpush1.bf16.msra.mxu1 %v10747_v32  ;;  %5422 = vmatpush1.bf16.msra.mxu0 %v10749_v25  ;;  %v10786_v32 = vcombine.high %v5484_v8, %v5488_v28  ;;  %v5492_v25 = vld [vmem:[#allocation9 + $0x1308] sm:$0xff]  ;;  %v5511_v41 = vld [vmem:[#allocation9 + $0x13a0] sm:$0xff] }
 0x4f6   :  { %5382 = vmatprep.subr.bf16.mxu1 %v10756_v6  ;;  %5423 = vmatprep.subr.bf16.mxu0 %v10758_v16  ;;  %v5496_v52 = vld [vmem:[#allocation9 + $0x1328] sm:$0xff]  ;;  %v10785_v6 = vcombine.low %v5484_v8, %v5488_v28  ;;  %v10792_v16 = vcombine.high %v5491_v5, %v5495_v9  ;;  %v5515_v11 = vld [vmem:[#allocation9 + $0x13c0] sm:$0xff]  ;;  %v10807_v28 = vcombine.low %v5507_v34, %v5511_v41 }
 0x4f7   :  { %v10794_v43 = vcombine.high %v5492_v25, %v5496_v52  ;;  %v5508_v39 = vld [vmem:[#allocation9 + $0x1388] sm:$0xff] }
 0x4f9   :  { %5383 = vmatpush1.bf16.msra.mxu1 %v10755_v49  ;;  %5424 = vmatpush1.bf16.msra.mxu0 %v10757_v60  ;;  %v5504_v49 = vld [vmem:[#allocation9 + $0x1368] sm:$0xff]  ;;  %v10791_v60 = vcombine.low %v5491_v5, %v5495_v9 }
 0x4fa   :  { %5847 = vmatprep.subr.bf16.mxu1 %v10760_v42  ;;  %5888 = vmatprep.subr.bf16.mxu0 %v10762_v13  ;;  %v10793_v42 = vcombine.low %v5492_v25, %v5496_v52  ;;  %v10800_v13 = vcombine.high %v5499_v12, %v5503_v51  ;;  %v10802_v33 = vcombine.high %v5500_v1, %v5504_v49  ;;  %v5461_v52 = vld [vmem:[#allocation9 + $0x1210] sm:$0xff] }
 0x4fc   :  { %5401 = vmatmul.mubr.bf16.vlgmr.msra.gmra.mrb[76].mxu1 %v12186_v62  ;;  %5442 = vmatmul.mubr.bf16.vlgmr.msra.gmra.mrb[72].mxu0 %v12186_v62  ;;  %v10777_v62 = vcombine.low %v5476_v58, %v5480_v40 }
 0x4fd   :  { %5848 = vmatpush1.bf16.msra.mxu1 %v10759_v31  ;;  %5889 = vmatpush1.bf16.msra.mxu0 %v10761_v15  ;;  %v5512_v31 = vld [vmem:[#allocation9 + $0x13a8] sm:$0xff]  ;;  %v10799_v15 = vcombine.low %v5499_v12, %v5503_v51  ;;  %v5469_v51 = vld [vmem:[#allocation9 + $0x1250] sm:$0xff] }
 0x4fe   :  { %5849 = vmatprep.subr.bf16.mxu1 %v10768_v27  ;;  %5890 = vmatprep.subr.bf16.mxu0 %v10770_v18  ;;  %v10801_v27 = vcombine.low %v5500_v1, %v5504_v49  ;;  %v10808_v18 = vcombine.high %v5507_v34, %v5511_v41  ;;  %v10810_v24 = vcombine.high %v5508_v39, %v5512_v31  ;;  %v5473_v1 = vld [vmem:[#allocation9 + $0x1270] sm:$0xff]  ;;  %v5470_v49 = vld [vmem:[#allocation9 + $0x1258] sm:$0xff] }
 0x4ff   :  { %5879 = vmatprep.mubr.bf16.mxu1 %v11681_v21  ;;  %5920 = vmatprep.mubr.bf16.mxu0 %v11681_v21  ;;  %v10809_v5 = vcombine.low %v5508_v39, %v5512_v31  ;;  %v10772_v34 = vcombine.high %v5469_v51, %v5473_v1  ;;  %v5477_v39 = vld [vmem:[#allocation9 + $0x1290] sm:$0xff] }
 0x500   :  { %v5481_v31 = vld [vmem:[#allocation9 + $0x12b0] sm:$0xff] }
 0x501   :  { %5850 = vmatpush1.bf16.msra.mxu1 %v10767_v0  ;;  %5891 = vmatpush1.bf16.msra.mxu0 %v10769_v23  ;;  %v5519_v0 = vld [vmem:[#allocation9 + $0x13e0] sm:$0xff]  ;;  %v5516_v23 = vld [vmem:[#allocation9 + $0x13c8] sm:$0xff] }
 0x502   :  { %5851 = vmatprep.subr.bf16.mxu1 %v10776_v48  ;;  %5892 = vmatprep.subr.bf16.mxu0 %v10778_v55  ;;  %v5520_v48 = vld [vmem:[#allocation9 + $0x13e8] sm:$0xff] }
 0x503   :  { %v10818_v25 = vcombine.high %v5516_v23, %v5520_v48 }
 0x505   :  { %5852 = vmatpush1.bf16.msra.mxu1 %v10775_v59  ;;  %5893 = vmatpush1.bf16.msra.mxu0 %v10777_v62 }
 0x506   :  { %5853 = vmatprep.subr.bf16.mxu1 %v10784_v14  ;;  %5894 = vmatprep.subr.bf16.mxu0 %v10786_v32 }
 0x509   :  { %5854 = vmatpush1.bf16.msra.mxu1 %v10783_v63  ;;  %5895 = vmatpush1.bf16.msra.mxu0 %v10785_v6  ;;  %v5465_v63 = vld [vmem:[#allocation9 + $0x1230] sm:$0xff]  ;;  %v5462_v6 = vld [vmem:[#allocation9 + $0x1218] sm:$0xff] }
 0x50a   :  { %5855 = vmatprep.subr.bf16.mxu1 %v10792_v16  ;;  %5896 = vmatprep.subr.bf16.mxu0 %v10794_v43  ;;  %v5466_v16 = vld [vmem:[#allocation9 + $0x1238] sm:$0xff]  ;;  %v10764_v43 = vcombine.high %v5461_v52, %v5465_v63 }
 0x50b   :  { %v10766_v12 = vcombine.high %v5462_v6, %v5466_v16 }
 0x50d   :  { %5856 = vmatpush1.bf16.msra.mxu1 %v10791_v60  ;;  %5897 = vmatpush1.bf16.msra.mxu0 %v10793_v42  ;;  %v5474_v60 = vld [vmem:[#allocation9 + $0x1278] sm:$0xff]  ;;  %v10763_v42 = vcombine.low %v5461_v52, %v5465_v63  ;;  %v5501_v63 = vld [vmem:[#allocation9 + $0x1350] sm:$0xff] }
 0x50e   :  { %5857 = vmatprep.subr.bf16.mxu1 %v10800_v13  ;;  %5898 = vmatprep.subr.bf16.mxu0 %v10802_v33  ;;  %v10765_v13 = vcombine.low %v5462_v6, %v5466_v16  ;;  %v12222_v33 = vpack.c.b16 %v11943_v50, %v11943_v50  ;;  %v10774_v41 = vcombine.high %v5470_v49, %v5474_v60  ;;  %v5505_v6 = vld [vmem:[#allocation9 + $0x1370] sm:$0xff]  ;;  %v5502_v16 = vld [vmem:[#allocation9 + $0x1358] sm:$0xff] }
 0x50f   :  { %v3705_v58 = vpop.f32.mrb[52].mxu1  ;;  %v3746_v40 = vpop.f32.mrb[48].mxu0  ;;  %v10780_v50 = vcombine.high %v5477_v39, %v5481_v31 }
 0x510   :  { %v12209_v55 = vadd.f32 %v3705_v58, %v12170_v36  ;;  %v12212_v7 = vadd.f32 %v3746_v40, %v12173_v56  ;;  %v3707_v29 = vpop.f32.mrb[53].mxu1  ;;  %v3748_v8 = vpop.f32.mrb[49].mxu0  ;;  %v10816_v56 = vcombine.high %v5515_v11, %v5519_v0  ;;  %v5485_v58 = vld [vmem:[#allocation9 + $0x12d0] sm:$0xff] }
 0x511   :  { %v12215_v59 = vadd.f32 %v3707_v29, %v12176_v54  ;;  %v12218_v62 = vadd.f32 %v3748_v8, %v12179_v61  ;;  %v3709_v14 = vpop.f32.mrb[54].mxu1  ;;  %v3750_v32 = vpop.f32.mrb[50].mxu0  ;;  %5858 = vmatpush1.bf16.msra.mxu1 %v10799_v15  ;;  %5899 = vmatpush1.bf16.msra.mxu0 %v10801_v27  ;;  %v10815_v54 = vcombine.low %v5515_v11, %v5519_v0  ;;  %v5478_v15 = vld [vmem:[#allocation9 + $0x1298] sm:$0xff]  ;;  %v5489_v40 = vld [vmem:[#allocation9 + $0x12f0] sm:$0xff] }
 0x512   :  { %v3710_v9 = vpop.f32.mrb[55].mxu1  ;;  %v3751_v36 = vpop.f32.mrb[51].mxu0  ;;  %5859 = vmatprep.subr.bf16.mxu1 %v10808_v18  ;;  %5900 = vmatprep.subr.bf16.mxu0 %v10810_v24  ;;  %v10817_v61 = vcombine.low %v5516_v23, %v5520_v48  ;;  %v5482_v27 = vld [vmem:[#allocation9 + $0x12b8] sm:$0xff]  ;;  %v10771_v18 = vcombine.low %v5469_v51, %v5473_v1  ;;  %v10773_v24 = vcombine.low %v5470_v49, %v5474_v60  ;;  %v5493_v14 = vld [vmem:[#allocation9 + $0x1310] sm:$0xff] }
 0x513   :  { %v10782_v11 = vcombine.high %v5478_v15, %v5482_v27  ;;  %v5486_v0 = vld [vmem:[#allocation9 + $0x12d8] sm:$0xff]  ;;  %v10779_v48 = vcombine.low %v5477_v39, %v5481_v31  ;;  %v10781_v29 = vcombine.low %v5478_v15, %v5482_v27  ;;  %v10788_v8 = vcombine.high %v5485_v58, %v5489_v40  ;;  %v5497_v32 = vld [vmem:[#allocation9 + $0x1330] sm:$0xff] }
 0x514   :  { %v5490_v23 = vld [vmem:[#allocation9 + $0x12f8] sm:$0xff]  ;;  %v10787_v36 = vcombine.low %v5485_v58, %v5489_v40  ;;  %v5509_v1 = vld [vmem:[#allocation9 + $0x1390] sm:$0xff] }
 0x515   :  { %5860 = vmatpush1.bf16.msra.mxu1 %v10807_v28  ;;  %5901 = vmatpush1.bf16.msra.mxu0 %v10809_v5  ;;  %v10790_v28 = vcombine.high %v5486_v0, %v5490_v23  ;;  %v5494_v5 = vld [vmem:[#allocation9 + $0x1318] sm:$0xff]  ;;  %v5513_v49 = vld [vmem:[#allocation9 + $0x13b0] sm:$0xff] }
 0x516   :  { %5861 = vmatprep.subr.bf16.mxu1 %v10816_v56  ;;  %5902 = vmatprep.subr.bf16.mxu0 %v10818_v25  ;;  %v5498_v9 = vld [vmem:[#allocation9 + $0x1338] sm:$0xff]  ;;  %v10789_v56 = vcombine.low %v5486_v0, %v5490_v23  ;;  %v10796_v25 = vcombine.high %v5493_v14, %v5497_v32  ;;  %v5517_v31 = vld [vmem:[#allocation9 + $0x13d0] sm:$0xff]  ;;  %v10811_v23 = vcombine.low %v5509_v1, %v5513_v49 }
 0x517   :  { %v10798_v52 = vcombine.high %v5494_v5, %v5498_v9  ;;  %v5510_v60 = vld [vmem:[#allocation9 + $0x1398] sm:$0xff] }
 0x519   :  { %5862 = vmatpush1.bf16.msra.mxu1 %v10815_v54  ;;  %5903 = vmatpush1.bf16.msra.mxu0 %v10817_v61  ;;  %v5506_v54 = vld [vmem:[#allocation9 + $0x1378] sm:$0xff]  ;;  %v10795_v61 = vcombine.low %v5493_v14, %v5497_v32 }
 0x51a   :  { %5929 = vmatprep.subr.bf16.mxu1 %v10764_v43  ;;  %5970 = vmatprep.subr.bf16.mxu0 %v10766_v12  ;;  %v10797_v43 = vcombine.low %v5494_v5, %v5498_v9  ;;  %v10804_v12 = vcombine.high %v5501_v63, %v5505_v6  ;;  %v10806_v51 = vcombine.high %v5502_v16, %v5506_v54  ;;  %v6022_v9 = vld [vmem:[#allocation9 + $0x1400] sm:$0xff] }
 0x51c   :  { %5880 = vmatmul.mubr.bf16.vlgmr.msra.gmra.mrb[80].mxu1 %v12222_v33  ;;  %5921 = vmatmul.mubr.bf16.vlgmr.msra.gmra.mrb[76].mxu0 %v12222_v33 }
 0x51d   :  { %5930 = vmatpush1.bf16.msra.mxu1 %v10763_v42  ;;  %5971 = vmatpush1.bf16.msra.mxu0 %v10765_v13  ;;  %v5514_v42 = vld [vmem:[#allocation9 + $0x13b8] sm:$0xff]  ;;  %v10803_v13 = vcombine.low %v5501_v63, %v5505_v6  ;;  %v6030_v6 = vld [vmem:[#allocation9 + $0x1440] sm:$0xff] }
 0x51e   :  { %5931 = vmatprep.subr.bf16.mxu1 %v10772_v34  ;;  %5972 = vmatprep.subr.bf16.mxu0 %v10774_v41  ;;  %v10805_v34 = vcombine.low %v5502_v16, %v5506_v54  ;;  %v10812_v41 = vcombine.high %v5509_v1, %v5513_v49  ;;  %v10814_v39 = vcombine.high %v5510_v60, %v5514_v42  ;;  %v6034_v16 = vld [vmem:[#allocation9 + $0x1460] sm:$0xff]  ;;  %v6031_v54 = vld [vmem:[#allocation9 + $0x1448] sm:$0xff] }
 0x51f   :  { %5961 = vmatprep.mubr.bf16.mxu1 %v11681_v21  ;;  %6002 = vmatprep.mubr.bf16.mxu0 %v11681_v21  ;;  %v10813_v14 = vcombine.low %v5510_v60, %v5514_v42  ;;  %v6038_v49 = vld [vmem:[#allocation9 + $0x1480] sm:$0xff]  ;;  %v6039_v42 = vld [vmem:[#allocation9 + $0x1488] sm:$0xff] }
 0x520   :  { %v6042_v60 = vld [vmem:[#allocation9 + $0x14a0] sm:$0xff] }
 0x521   :  { %5932 = vmatpush1.bf16.msra.mxu1 %v10771_v18  ;;  %5973 = vmatpush1.bf16.msra.mxu0 %v10773_v24  ;;  %v5521_v18 = vld [vmem:[#allocation9 + $0x13f0] sm:$0xff]  ;;  %v5518_v24 = vld [vmem:[#allocation9 + $0x13d8] sm:$0xff] }
 0x522   :  { %5933 = vmatprep.subr.bf16.mxu1 %v10780_v50  ;;  %5974 = vmatprep.subr.bf16.mxu0 %v10782_v11  ;;  %v5522_v50 = vld [vmem:[#allocation9 + $0x13f8] sm:$0xff] }
 0x523   :  { %v10822_v5 = vcombine.high %v5518_v24, %v5522_v50 }
 0x525   :  { %5934 = vmatpush1.bf16.msra.mxu1 %v10779_v48  ;;  %5975 = vmatpush1.bf16.msra.mxu0 %v10781_v29 }
 0x526   :  { %5935 = vmatprep.subr.bf16.mxu1 %v10788_v8  ;;  %5976 = vmatprep.subr.bf16.mxu0 %v10790_v28 }
 0x529   :  { %5936 = vmatpush1.bf16.msra.mxu1 %v10787_v36  ;;  %5977 = vmatpush1.bf16.msra.mxu0 %v10789_v56  ;;  %v6026_v36 = vld [vmem:[#allocation9 + $0x1420] sm:$0xff]  ;;  %v6023_v56 = vld [vmem:[#allocation9 + $0x1408] sm:$0xff] }
 0x52a   :  { %5937 = vmatprep.subr.bf16.mxu1 %v10796_v25  ;;  %5978 = vmatprep.subr.bf16.mxu0 %v10798_v52  ;;  %v6027_v25 = vld [vmem:[#allocation9 + $0x1428] sm:$0xff]  ;;  %v10824_v52 = vcombine.high %v6022_v9, %v6026_v36 }
 0x52b   :  { %v10826_v63 = vcombine.high %v6023_v56, %v6027_v25 }
 0x52d   :  { %5938 = vmatpush1.bf16.msra.mxu1 %v10795_v61  ;;  %5979 = vmatpush1.bf16.msra.mxu0 %v10797_v43  ;;  %v6035_v61 = vld [vmem:[#allocation9 + $0x1468] sm:$0xff]  ;;  %v10823_v43 = vcombine.low %v6022_v9, %v6026_v36  ;;  %v6062_v9 = vld [vmem:[#allocation9 + $0x1540] sm:$0xff] }
 0x52e   :  { %5939 = vmatprep.subr.bf16.mxu1 %v10804_v12  ;;  %5980 = vmatprep.subr.bf16.mxu0 %v10806_v51  ;;  %v10825_v12 = vcombine.low %v6023_v56, %v6027_v25  ;;  %v10832_v51 = vcombine.high %v6030_v6, %v6034_v16  ;;  %v10834_v1 = vcombine.high %v6031_v54, %v6035_v61  ;;  %v6066_v36 = vld [vmem:[#allocation9 + $0x1560] sm:$0xff]  ;;  %v6063_v56 = vld [vmem:[#allocation9 + $0x1548] sm:$0xff] }
 0x52f   :  { %v4191_v15 = vpop.f32.mrb[56].mxu1  ;;  %v4232_v27 = vpop.f32.mrb[52].mxu0  ;;  %v6067_v25 = vld [vmem:[#allocation9 + $0x1568] sm:$0xff] }
 0x530   :  { %v12229_v11 = vadd.f32 %v4191_v15, %v12193_v19  ;;  %v12232_v58 = vadd.f32 %v4232_v27, %v12196_v17  ;;  %v4193_v40 = vpop.f32.mrb[57].mxu1  ;;  %v4234_v0 = vpop.f32.mrb[53].mxu0  ;;  %v10820_v17 = vcombine.high %v5517_v31, %v5521_v18  ;;  %v6046_v15 = vld [vmem:[#allocation9 + $0x14c0] sm:$0xff] }
 0x531   :  { %v12235_v48 = vadd.f32 %v4193_v40, %v12199_v22  ;;  %v12238_v29 = vadd.f32 %v4234_v0, %v12202_v47  ;;  %v4195_v8 = vpop.f32.mrb[58].mxu1  ;;  %v4236_v28 = vpop.f32.mrb[54].mxu0  ;;  %5940 = vmatpush1.bf16.msra.mxu1 %v10803_v13  ;;  %5981 = vmatpush1.bf16.msra.mxu0 %v10805_v34  ;;  %v10819_v22 = vcombine.low %v5517_v31, %v5521_v18  ;;  %v6043_v13 = vld [vmem:[#allocation9 + $0x14a8] sm:$0xff]  ;;  %v6050_v27 = vld [vmem:[#allocation9 + $0x14e0] sm:$0xff] }
 0x532   :  { %v4196_v32 = vpop.f32.mrb[59].mxu1  ;;  %v4237_v19 = vpop.f32.mrb[55].mxu0  ;;  %5941 = vmatprep.subr.bf16.mxu1 %v10812_v41  ;;  %5982 = vmatprep.subr.bf16.mxu0 %v10814_v39  ;;  %v10821_v47 = vcombine.low %v5518_v24, %v5522_v50  ;;  %v10831_v34 = vcombine.low %v6030_v6, %v6034_v16  ;;  %v10833_v41 = vcombine.low %v6031_v54, %v6035_v61  ;;  %v6047_v18 = vld [vmem:[#allocation9 + $0x14c8] sm:$0xff]  ;;  %v6058_v8 = vld [vmem:[#allocation9 + $0x1520] sm:$0xff] }
 0x533   :  { %v10840_v39 = vcombine.high %v6038_v49, %v6042_v60  ;;  %v10842_v31 = vcombine.high %v6039_v42, %v6043_v13  ;;  %v6051_v24 = vld [vmem:[#allocation9 + $0x14e8] sm:$0xff]  ;;  %v10839_v50 = vcombine.low %v6038_v49, %v6042_v60  ;;  %v10848_v40 = vcombine.high %v6046_v15, %v6050_v27  ;;  %v6070_v6 = vld [vmem:[#allocation9 + $0x1580] sm:$0xff] }
 0x534   :  { %v10850_v0 = vcombine.high %v6047_v18, %v6051_v24  ;;  %v6055_v28 = vld [vmem:[#allocation9 + $0x1508] sm:$0xff]  ;;  %v10847_v32 = vcombine.low %v6046_v15, %v6050_v27  ;;  %v10849_v19 = vcombine.low %v6047_v18, %v6051_v24  ;;  %v6074_v16 = vld [vmem:[#allocation9 + $0x15a0] sm:$0xff] }
 0x535   :  { %5942 = vmatpush1.bf16.msra.mxu1 %v10811_v23  ;;  %5983 = vmatpush1.bf16.msra.mxu0 %v10813_v14  ;;  %v6054_v23 = vld [vmem:[#allocation9 + $0x1500] sm:$0xff]  ;;  %v6059_v14 = vld [vmem:[#allocation9 + $0x1528] sm:$0xff]  ;;  %v10871_v18 = vcombine.low %v6070_v6, %v6074_v16 }
 0x536   :  { %5943 = vmatprep.subr.bf16.mxu1 %v10820_v17  ;;  %5984 = vmatprep.subr.bf16.mxu0 %v10822_v5  ;;  %v10856_v17 = vcombine.high %v6054_v23, %v6058_v8  ;;  %v10858_v5 = vcombine.high %v6055_v28, %v6059_v14  ;;  %v6071_v54 = vld [vmem:[#allocation9 + $0x1588] sm:$0xff]  ;;  %v6078_v49 = vld [vmem:[#allocation9 + $0x15c0] sm:$0xff] }
 0x537   :  { %v6075_v61 = vld [vmem:[#allocation9 + $0x15a8] sm:$0xff] }
 0x539   :  { %5944 = vmatpush1.bf16.msra.mxu1 %v10819_v22  ;;  %5985 = vmatpush1.bf16.msra.mxu0 %v10821_v47  ;;  %v10855_v22 = vcombine.low %v6054_v23, %v6058_v8  ;;  %v10857_v47 = vcombine.low %v6055_v28, %v6059_v14  ;;  %v6024_v28 = vld [vmem:[#allocation9 + $0x1410] sm:$0xff]  ;;  %v6091_v14 = vrot.slane %v6089_v37, 1  ;;  %v6037_v37 = vld [vmem:[#allocation9 + $0x1478] sm:$0xff] }
 0x53a   :  { %6415 = vmatprep.subr.bf16.mxu1 %v10824_v52  ;;  %6456 = vmatprep.subr.bf16.mxu0 %v10826_v63  ;;  %v10864_v52 = vcombine.high %v6062_v9, %v6066_v36  ;;  %v10866_v63 = vcombine.high %v6063_v56, %v6067_v25 }
 0x53c   :  { %5962 = vmatmul.mubr.bf16.vlgmr.msra.gmra.mrb[84].mxu1 %v12222_v33  ;;  %6003 = vmatmul.mubr.bf16.vlgmr.msra.gmra.mrb[80].mxu0 %v12222_v33  ;;  %v10841_v33 = vcombine.low %v6039_v42, %v6043_v13  ;;  %v6082_v13 = vld [vmem:[#allocation9 + $0x15e0] sm:$0xff] }
 0x53d   :  { %6416 = vmatpush1.bf16.msra.mxu1 %v10823_v43  ;;  %6457 = vmatpush1.bf16.msra.mxu0 %v10825_v12  ;;  %v10863_v43 = vcombine.low %v6062_v9, %v6066_v36  ;;  %v10865_v12 = vcombine.low %v6063_v56, %v6067_v25  ;;  %v6032_v56 = vld [vmem:[#allocation9 + $0x1450] sm:$0xff] }
 0x53e   :  { %6417 = vmatprep.subr.bf16.mxu1 %v10832_v51  ;;  %6458 = vmatprep.subr.bf16.mxu0 %v10834_v1  ;;  %v10872_v51 = vcombine.high %v6070_v6, %v6074_v16  ;;  %v10874_v1 = vcombine.high %v6071_v54, %v6075_v61  ;;  %v6040_v6 = vld [vmem:[#allocation9 + $0x1490] sm:$0xff] }
 0x53f   :  { %6447 = vmatprep.mubr.bf16.mxu1 %v11681_v21  ;;  %6488 = vmatprep.mubr.bf16.mxu0 %v11681_v21  ;;  %v6044_v16 = vld [vmem:[#allocation9 + $0x14b0] sm:$0xff] }
 0x541   :  { %6418 = vmatpush1.bf16.msra.mxu1 %v10831_v34  ;;  %6459 = vmatpush1.bf16.msra.mxu0 %v10833_v41  ;;  %v6079_v34 = vld [vmem:[#allocation9 + $0x15c8] sm:$0xff] }
 0x542   :  { %6419 = vmatprep.subr.bf16.mxu1 %v10840_v39  ;;  %6460 = vmatprep.subr.bf16.mxu0 %v10842_v31  ;;  %v6083_v41 = vld [vmem:[#allocation9 + $0x15e8] sm:$0xff] }
 0x543   :  { %v10882_v8 = vcombine.high %v6079_v34, %v6083_v41 }
 0x545   :  { %6420 = vmatpush1.bf16.msra.mxu1 %v10839_v50  ;;  %6461 = vmatpush1.bf16.msra.mxu0 %v10841_v33 }
 0x546   :  { %6421 = vmatprep.subr.bf16.mxu1 %v10848_v40  ;;  %6462 = vmatprep.subr.bf16.mxu0 %v10850_v0  ;;  %v10873_v0 = vcombine.low %v6071_v54, %v6075_v61  ;;  %v6041_v54 = vld [vmem:[#allocation9 + $0x1498] sm:$0xff] }
 0x547   :  { %v6045_v61 = vld [vmem:[#allocation9 + $0x14b8] sm:$0xff] }
 0x549   :  { %6422 = vmatpush1.bf16.msra.mxu1 %v10847_v32  ;;  %6463 = vmatpush1.bf16.msra.mxu0 %v10849_v19  ;;  %v6025_v32 = vld [vmem:[#allocation9 + $0x1418] sm:$0xff] }
 0x54a   :  { %6423 = vmatprep.subr.bf16.mxu1 %v10856_v17  ;;  %6464 = vmatprep.subr.bf16.mxu0 %v10858_v5  ;;  %v6029_v19 = vld [vmem:[#allocation9 + $0x1438] sm:$0xff]  ;;  %v10881_v17 = vcombine.low %v6079_v34, %v6083_v41  ;;  %v6090_v5 = vrot.slane %v6088_v26, 2  ;;  %v10838_v26 = vcombine.high %v6033_v30, %v6037_v37  ;;  %v10843_v34 = vcombine.low %v6040_v6, %v6044_v16 }
 0x54b   :  { %v10830_v36 = vcombine.high %v6025_v32, %v6029_v19  ;;  %v10845_v41 = vcombine.low %v6041_v54, %v6045_v61 }
 0x54c   :  { %v6092_v25 = vsel %vm525_vm3, %v6091_v14, %v6090_v5  ;;  %v6068_v14 = vld [vmem:[#allocation9 + $0x1570] sm:$0xff] }
 0x54d   :  { %6424 = vmatpush1.bf16.msra.mxu1 %v10855_v22  ;;  %6465 = vmatpush1.bf16.msra.mxu0 %v10857_v47  ;;  %v6036_v22 = vld [vmem:[#allocation9 + $0x1470] sm:$0xff] }
 0x54e   :  { %6425 = vmatprep.subr.bf16.mxu1 %v10864_v52  ;;  %6466 = vmatprep.subr.bf16.mxu0 %v10866_v63  ;;  %v10829_v52 = vcombine.low %v6025_v32, %v6029_v19  ;;  %v12261_v63 = vpack.c.b16 %v6092_v25, %v6092_v25  ;;  %v10836_v20 = vcombine.high %v6032_v56, %v6036_v22  ;;  %v6069_v32 = vld [vmem:[#allocation9 + $0x1578] sm:$0xff] }
 0x54f   :  { %v4273_v60 = vpop.f32.mrb[60].mxu1  ;;  %v4314_v42 = vpop.f32.mrb[56].mxu0  ;;  %v6077_v25 = vld [vmem:[#allocation9 + $0x15b8] sm:$0xff] }
 0x550   :  { %v12245_v39 = vadd.f32 %v4273_v60, %v12209_v55  ;;  %v12248_v31 = vadd.f32 %v4314_v42, %v12212_v7  ;;  %v4275_v15 = vpop.f32.mrb[61].mxu1  ;;  %v4316_v27 = vpop.f32.mrb[57].mxu0  ;;  %v10880_v7 = vcombine.high %v6078_v49, %v6082_v13  ;;  %v6052_v60 = vld [vmem:[#allocation9 + $0x14f0] sm:$0xff]  ;;  %v6049_v42 = vld [vmem:[#allocation9 + $0x14d8] sm:$0xff] }
 0x551   :  { %v12251_v24 = vadd.f32 %v4275_v15, %v12215_v59  ;;  %v12254_v50 = vadd.f32 %v4316_v27, %v12218_v62  ;;  %v4277_v33 = vpop.f32.mrb[62].mxu1  ;;  %v4318_v40 = vpop.f32.mrb[58].mxu0  ;;  %6426 = vmatpush1.bf16.msra.mxu1 %v10863_v43  ;;  %6467 = vmatpush1.bf16.msra.mxu0 %v10865_v12  ;;  %v6028_v59 = vld [vmem:[#allocation9 + $0x1430] sm:$0xff]  ;;  %v10879_v62 = vcombine.low %v6078_v49, %v6082_v13  ;;  %v6053_v13 = vld [vmem:[#allocation9 + $0x14f8] sm:$0xff] }
 0x552   :  { %v4278_v23 = vpop.f32.mrb[63].mxu1  ;;  %v4319_v55 = vpop.f32.mrb[59].mxu0  ;;  %6427 = vmatprep.subr.bf16.mxu1 %v10872_v51  ;;  %6468 = vmatprep.subr.bf16.mxu0 %v10874_v1  ;;  %v10828_v9 = vcombine.high %v6024_v28, %v6028_v59  ;;  %v10827_v47 = vcombine.low %v6024_v28, %v6028_v59  ;;  %v10835_v43 = vcombine.low %v6032_v56, %v6036_v22  ;;  %v6048_v49 = vld [vmem:[#allocation9 + $0x14d0] sm:$0xff]  ;;  %v6057_v40 = vld [vmem:[#allocation9 + $0x1518] sm:$0xff] }
 0x553   :  { %v10837_v12 = vcombine.low %v6033_v30, %v6037_v37  ;;  %v10844_v51 = vcombine.high %v6040_v6, %v6044_v16  ;;  %v10846_v1 = vcombine.high %v6041_v54, %v6045_v61  ;;  %v10852_v15 = vcombine.high %v6048_v49, %v6052_v60  ;;  %v6060_v33 = vld [vmem:[#allocation9 + $0x1530] sm:$0xff]  ;;  %v6065_v59 = vld [vmem:[#allocation9 + $0x1558] sm:$0xff] }
 0x554   :  { %v10854_v27 = vcombine.high %v6049_v42, %v6053_v13  ;;  %v10851_v23 = vcombine.low %v6048_v49, %v6052_v60  ;;  %v10853_v55 = vcombine.low %v6049_v42, %v6053_v13  ;;  %v6064_v28 = vld [vmem:[#allocation9 + $0x1550] sm:$0xff]  ;;  %v10870_v5 = vcombine.high %v6065_v59, %v6069_v32  ;;  %v6073_v56 = vld [vmem:[#allocation9 + $0x1598] sm:$0xff] }
 0x555   :  { %6428 = vmatpush1.bf16.msra.mxu1 %v10871_v18  ;;  %6469 = vmatpush1.bf16.msra.mxu0 %v10873_v0  ;;  %v6056_v18 = vld [vmem:[#allocation9 + $0x1510] sm:$0xff]  ;;  %v6061_v0 = vld [vmem:[#allocation9 + $0x1538] sm:$0xff]  ;;  %v10867_v22 = vcombine.low %v6064_v28, %v6068_v14  ;;  %v10869_v30 = vcombine.low %v6065_v59, %v6069_v32 }
 0x556   :  { %6429 = vmatprep.subr.bf16.mxu1 %v10880_v7  ;;  %6470 = vmatprep.subr.bf16.mxu0 %v10882_v8  ;;  %v10860_v7 = vcombine.high %v6056_v18, %v6060_v33  ;;  %v10862_v8 = vcombine.high %v6057_v40, %v6061_v0  ;;  %v10859_v19 = vcombine.low %v6056_v18, %v6060_v33  ;;  %v6084_v6 = vld [vmem:[#allocation9 + $0x15f0] sm:$0xff]  ;;  %v6081_v16 = vld [vmem:[#allocation9 + $0x15d8] sm:$0xff]  ;;  %v6592_v18 = vld [vmem:[#allocation9 + $0x1620] sm:$0xff] }
 0x557   :  { %v6085_v54 = vld [vmem:[#allocation9 + $0x15f8] sm:$0xff]  ;;  %v6589_v33 = vld [vmem:[#allocation9 + $0x1608] sm:$0xff] }
 0x559   :  { %6430 = vmatpush1.bf16.msra.mxu1 %v10879_v62  ;;  %6471 = vmatpush1.bf16.msra.mxu0 %v10881_v17  ;;  %v10861_v62 = vcombine.low %v6057_v40, %v6061_v0  ;;  %v10868_v17 = vcombine.high %v6064_v28, %v6068_v14  ;;  %v6593_v40 = vld [vmem:[#allocation9 + $0x1628] sm:$0xff] }
 0x55a   :  { %6497 = vmatprep.subr.bf16.mxu1 %v10828_v9  ;;  %6538 = vmatprep.subr.bf16.mxu0 %v10830_v36  ;;  %v6072_v9 = vld [vmem:[#allocation9 + $0x1590] sm:$0xff]  ;;  %v6601_v28 = vld [vmem:[#allocation9 + $0x1668] sm:$0xff]  ;;  %v10889_v59 = vcombine.low %v6589_v33, %v6593_v40 }
 0x55b   :  { %v6076_v36 = vld [vmem:[#allocation9 + $0x15b0] sm:$0xff] }
 0x55c   :  { %6448 = vmatmul.mubr.bf16.vlgmr.msra.gmra.mrb[88].mxu1 %v12261_v63  ;;  %6489 = vmatmul.mubr.bf16.vlgmr.msra.gmra.mrb[84].mxu0 %v12261_v63  ;;  %v10876_v37 = vcombine.high %v6072_v9, %v6076_v36 }
 0x55d   :  { %6498 = vmatpush1.bf16.msra.mxu1 %v10827_v47  ;;  %6539 = vmatpush1.bf16.msra.mxu0 %v10829_v52  ;;  %v10878_v47 = vcombine.high %v6073_v56, %v6077_v25  ;;  %v6080_v52 = vld [vmem:[#allocation9 + $0x15d0] sm:$0xff] }
 0x55e   :  { %6499 = vmatprep.subr.bf16.mxu1 %v10836_v20  ;;  %6540 = vmatprep.subr.bf16.mxu0 %v10838_v26 }
 0x55f   :  { %6529 = vmatprep.mubr.bf16.mxu1 %v11681_v21  ;;  %6570 = vmatprep.mubr.bf16.mxu0 %v11681_v21 }
 0x561   :  { %6500 = vmatpush1.bf16.msra.mxu1 %v10835_v43  ;;  %6541 = vmatpush1.bf16.msra.mxu0 %v10837_v12 }
 0x562   :  { %6501 = vmatprep.subr.bf16.mxu1 %v10844_v51  ;;  %6542 = vmatprep.subr.bf16.mxu0 %v10846_v1  ;;  %v10875_v1 = vcombine.low %v6072_v9, %v6076_v36  ;;  %v6609_v9 = vld [vmem:[#allocation9 + $0x16a8] sm:$0xff] }
 0x565   :  { %6502 = vmatpush1.bf16.msra.mxu1 %v10843_v34  ;;  %6543 = vmatpush1.bf16.msra.mxu0 %v10845_v41  ;;  %v10877_v34 = vcombine.low %v6073_v56, %v6077_v25 }
 0x566   :  { %6503 = vmatprep.subr.bf16.mxu1 %v10852_v15  ;;  %6544 = vmatprep.subr.bf16.mxu0 %v10854_v27  ;;  %v10886_v15 = vcombine.high %v6081_v16, %v6085_v54  ;;  %v6588_v27 = vld [vmem:[#allocation9 + $0x1600] sm:$0xff] }
 0x567   :  { %v10888_v0 = vcombine.high %v6588_v27, %v6592_v18  ;;  %v10887_v14 = vcombine.low %v6588_v27, %v6592_v18 }
 0x569   :  { %6504 = vmatpush1.bf16.msra.mxu1 %v10851_v23  ;;  %6545 = vmatpush1.bf16.msra.mxu0 %v10853_v55  ;;  %v10890_v23 = vcombine.high %v6589_v33, %v6593_v40  ;;  %v6596_v55 = vld [vmem:[#allocation9 + $0x1640] sm:$0xff] }
 0x56a   :  { %6505 = vmatprep.subr.bf16.mxu1 %v10860_v7  ;;  %6546 = vmatprep.subr.bf16.mxu0 %v10862_v8  ;;  %v6600_v7 = vld [vmem:[#allocation9 + $0x1660] sm:$0xff]  ;;  %v6597_v8 = vld [vmem:[#allocation9 + $0x1648] sm:$0xff] }
 0x56b   :  { %v10896_v32 = vcombine.high %v6596_v55, %v6600_v7  ;;  %v10895_v36 = vcombine.low %v6596_v55, %v6600_v7  ;;  %v10897_v56 = vcombine.low %v6597_v8, %v6601_v28 }
 0x56d   :  { %6506 = vmatpush1.bf16.msra.mxu1 %v10859_v19  ;;  %6547 = vmatpush1.bf16.msra.mxu0 %v10861_v62  ;;  %v10898_v19 = vcombine.high %v6597_v8, %v6601_v28  ;;  %v6604_v62 = vld [vmem:[#allocation9 + $0x1680] sm:$0xff] }
 0x56e   :  { %6507 = vmatprep.subr.bf16.mxu1 %v10868_v17  ;;  %6548 = vmatprep.subr.bf16.mxu0 %v10870_v5  ;;  %v6608_v17 = vld [vmem:[#allocation9 + $0x16a0] sm:$0xff]  ;;  %v6605_v5 = vld [vmem:[#allocation9 + $0x1688] sm:$0xff] }
 0x56f   :  { %v4753_v20 = vpop.f32.mrb[64].mxu1  ;;  %v4794_v26 = vpop.f32.mrb[60].mxu0  ;;  %v10904_v25 = vcombine.high %v6604_v62, %v6608_v17 }
 0x570   :  { %v12268_v61 = vadd.f32 %v4753_v20, %v12229_v11  ;;  %v12271_v43 = vadd.f32 %v4794_v26, %v12232_v58  ;;  %v4755_v12 = vpop.f32.mrb[65].mxu1  ;;  %v4796_v51 = vpop.f32.mrb[61].mxu0  ;;  %v10884_v58 = vcombine.high %v6080_v52, %v6084_v6  ;;  %v10903_v20 = vcombine.low %v6604_v62, %v6608_v17  ;;  %v6645_v62 = vld [vmem:[#allocation9 + $0x17c8] sm:$0xff] }
 0x571   :  { %v12274_v49 = vadd.f32 %v4755_v12, %v12235_v48  ;;  %v12277_v60 = vadd.f32 %v4796_v51, %v12238_v29  ;;  %v4757_v42 = vpop.f32.mrb[66].mxu1  ;;  %v4798_v13 = vpop.f32.mrb[62].mxu0  ;;  %6508 = vmatpush1.bf16.msra.mxu1 %v10867_v22  ;;  %6549 = vmatpush1.bf16.msra.mxu0 %v10869_v30  ;;  %v10883_v48 = vcombine.low %v6080_v52, %v6084_v6  ;;  %v6612_v30 = vld [vmem:[#allocation9 + $0x16c0] sm:$0xff]  ;;  %v6617_v52 = vld [vmem:[#allocation9 + $0x16e8] sm:$0xff] }
 0x572   :  { %v4758_v41 = vpop.f32.mrb[67].mxu1  ;;  %v4799_v11 = vpop.f32.mrb[63].mxu0  ;;  %6509 = vmatprep.subr.bf16.mxu1 %v10876_v37  ;;  %6550 = vmatprep.subr.bf16.mxu0 %v10878_v47  ;;  %v10885_v29 = vcombine.low %v6081_v16, %v6085_v54  ;;  %v10906_v22 = vcombine.high %v6605_v5, %v6609_v9  ;;  %v6616_v37 = vld [vmem:[#allocation9 + $0x16e0] sm:$0xff]  ;;  %v6613_v47 = vld [vmem:[#allocation9 + $0x16c8] sm:$0xff] }
 0x573   :  { %v10912_v26 = vcombine.high %v6612_v30, %v6616_v37  ;;  %v10914_v6 = vcombine.high %v6613_v47, %v6617_v52  ;;  %v6620_v16 = vld [vmem:[#allocation9 + $0x1700] sm:$0xff]  ;;  %v6621_v12 = vld [vmem:[#allocation9 + $0x1708] sm:$0xff]  ;;  %v10913_v42 = vcombine.low %v6613_v47, %v6617_v52 }
 0x574   :  { %v6624_v54 = vld [vmem:[#allocation9 + $0x1720] sm:$0xff]  ;;  %v6625_v51 = vld [vmem:[#allocation9 + $0x1728] sm:$0xff] }
 0x575   :  { %6510 = vmatpush1.bf16.msra.mxu1 %v10875_v1  ;;  %6551 = vmatpush1.bf16.msra.mxu0 %v10877_v34  ;;  %v10911_v1 = vcombine.low %v6612_v30, %v6616_v37  ;;  %v10920_v13 = vcombine.high %v6620_v16, %v6624_v54  ;;  %v10922_v34 = vcombine.high %v6621_v12, %v6625_v51  ;;  %v6628_v41 = vld [vmem:[#allocation9 + $0x1740] sm:$0xff]  ;;  %v6649_v17 = vld [vmem:[#allocation9 + $0x17e8] sm:$0xff] }
 0x576   :  { %6511 = vmatprep.subr.bf16.mxu1 %v10884_v58  ;;  %6552 = vmatprep.subr.bf16.mxu0 %v10886_v15  ;;  %v6632_v11 = vld [vmem:[#allocation9 + $0x1760] sm:$0xff]  ;;  %v6629_v58 = vld [vmem:[#allocation9 + $0x1748] sm:$0xff]  ;;  %v10919_v27 = vcombine.low %v6620_v16, %v6624_v54  ;;  %v10921_v18 = vcombine.low %v6621_v12, %v6625_v51  ;;  %v6591_v16 = vld [vmem:[#allocation9 + $0x1618] sm:$0xff] }
 0x577   :  { %v6633_v15 = vld [vmem:[#allocation9 + $0x1768] sm:$0xff]  ;;  %v10928_v33 = vcombine.high %v6628_v41, %v6632_v11  ;;  %v10927_v55 = vcombine.low %v6628_v41, %v6632_v11  ;;  %v6595_v54 = vld [vmem:[#allocation9 + $0x1638] sm:$0xff] }
 0x578   :  { %v10930_v40 = vcombine.high %v6629_v58, %v6633_v15  ;;  %v10929_v7 = vcombine.low %v6629_v58, %v6633_v15  ;;  %v10894_v51 = vcombine.high %v6591_v16, %v6595_v54  ;;  %v10893_v11 = vcombine.low %v6591_v16, %v6595_v54 }
 0x579   :  { %6512 = vmatpush1.bf16.msra.mxu1 %v10883_v48  ;;  %6553 = vmatpush1.bf16.msra.mxu0 %v10885_v29  ;;  %v6636_v48 = vld [vmem:[#allocation9 + $0x1780] sm:$0xff]  ;;  %v12297_v58 = vpack.c.b16 %v11953_v2, %v11953_v2 }
 0x57a   :  { %6977 = vmatprep.subr.bf16.mxu1 %v10888_v0  ;;  %7018 = vmatprep.subr.bf16.mxu0 %v10890_v23  ;;  %v6640_v29 = vld [vmem:[#allocation9 + $0x17a0] sm:$0xff]  ;;  %v6637_v0 = vld [vmem:[#allocation9 + $0x1788] sm:$0xff] }
 0x57b   :  { %v6641_v23 = vld [vmem:[#allocation9 + $0x17a8] sm:$0xff]  ;;  %v10936_v8 = vcombine.high %v6636_v48, %v6640_v29 }
 0x57c   :  { %6530 = vmatmul.mubr.bf16.vlgmr.msra.gmra.mrb[92].mxu1 %v12261_v63  ;;  %6571 = vmatmul.mubr.bf16.vlgmr.msra.gmra.mrb[88].mxu0 %v12261_v63  ;;  %v10905_v63 = vcombine.low %v6605_v5, %v6609_v9  ;;  %v10938_v28 = vcombine.high %v6637_v0, %v6641_v23  ;;  %v10937_v52 = vcombine.low %v6637_v0, %v6641_v23 }
 0x57d   :  { %6978 = vmatpush1.bf16.msra.mxu1 %v10887_v14  ;;  %7019 = vmatpush1.bf16.msra.mxu0 %v10889_v59  ;;  %v6644_v14 = vld [vmem:[#allocation9 + $0x17c0] sm:$0xff] }
 0x57e   :  { %6979 = vmatprep.subr.bf16.mxu1 %v10896_v32  ;;  %7020 = vmatprep.subr.bf16.mxu0 %v10898_v19  ;;  %v6648_v19 = vld [vmem:[#allocation9 + $0x17e0] sm:$0xff] }
 0x57f   :  { %7009 = vmatprep.mubr.bf16.mxu1 %v11681_v21  ;;  %7050 = vmatprep.mubr.bf16.mxu0 %v11681_v21 }
 0x581   :  { %6980 = vmatpush1.bf16.msra.mxu1 %v10895_v36  ;;  %7021 = vmatpush1.bf16.msra.mxu0 %v10897_v56 }
 0x582   :  { %6981 = vmatprep.subr.bf16.mxu1 %v10904_v25  ;;  %7022 = vmatprep.subr.bf16.mxu0 %v10906_v22  ;;  %v10935_v25 = vcombine.low %v6636_v48, %v6640_v29  ;;  %v6611_v48 = vld [vmem:[#allocation9 + $0x16b8] sm:$0xff] }
 0x585   :  { %6982 = vmatpush1.bf16.msra.mxu1 %v10903_v20  ;;  %7023 = vmatpush1.bf16.msra.mxu0 %v10905_v63  ;;  %v10946_v63 = vcombine.high %v6645_v62, %v6649_v17 }
 0x586   :  { %6983 = vmatprep.subr.bf16.mxu1 %v10912_v26  ;;  %7024 = vmatprep.subr.bf16.mxu0 %v10914_v6  ;;  %v6590_v26 = vld [vmem:[#allocation9 + $0x1610] sm:$0xff] }
 0x587   :  { %v6594_v6 = vld [vmem:[#allocation9 + $0x1630] sm:$0xff] }
 0x588   :  { %v10892_v12 = vcombine.high %v6590_v26, %v6594_v6  ;;  %v10891_v41 = vcombine.low %v6590_v26, %v6594_v6 }
 0x589   :  { %6984 = vmatpush1.bf16.msra.mxu1 %v10911_v1  ;;  %7025 = vmatpush1.bf16.msra.mxu0 %v10913_v42  ;;  %v6598_v1 = vld [vmem:[#allocation9 + $0x1650] sm:$0xff] }
 0x58a   :  { %6985 = vmatprep.subr.bf16.mxu1 %v10920_v13  ;;  %7026 = vmatprep.subr.bf16.mxu0 %v10922_v34  ;;  %v6602_v42 = vld [vmem:[#allocation9 + $0x1670] sm:$0xff]  ;;  %v6599_v13 = vld [vmem:[#allocation9 + $0x1658] sm:$0xff] }
 0x58b   :  { %v6603_v34 = vld [vmem:[#allocation9 + $0x1678] sm:$0xff]  ;;  %v10900_v15 = vcombine.high %v6598_v1, %v6602_v42  ;;  %v10899_v29 = vcombine.low %v6598_v1, %v6602_v42 }
 0x58c   :  { %v10901_v0 = vcombine.low %v6599_v13, %v6603_v34 }
 0x58d   :  { %6986 = vmatpush1.bf16.msra.mxu1 %v10919_v27  ;;  %7027 = vmatpush1.bf16.msra.mxu0 %v10921_v18  ;;  %v10902_v27 = vcombine.high %v6599_v13, %v6603_v34  ;;  %v6606_v18 = vld [vmem:[#allocation9 + $0x1690] sm:$0xff] }
 0x58e   :  { %6987 = vmatprep.subr.bf16.mxu1 %v10928_v33  ;;  %7028 = vmatprep.subr.bf16.mxu0 %v10930_v40  ;;  %v6610_v33 = vld [vmem:[#allocation9 + $0x16b0] sm:$0xff]  ;;  %v6607_v40 = vld [vmem:[#allocation9 + $0x1698] sm:$0xff] }
 0x58f   :  { %v4835_v59 = vpop.f32.mrb[68].mxu1  ;;  %v4876_v32 = vpop.f32.mrb[64].mxu0  ;;  %v10908_v2 = vcombine.high %v6606_v18, %v6610_v33  ;;  %v10910_v23 = vcombine.high %v6607_v40, %v6611_v48 }
 0x590   :  { %v12284_v5 = vadd.f32 %v4835_v59, %v12245_v39  ;;  %v12287_v9 = vadd.f32 %v4876_v32, %v12248_v31  ;;  %v4837_v36 = vpop.f32.mrb[69].mxu1  ;;  %v4878_v56 = vpop.f32.mrb[65].mxu0  ;;  %v10944_v31 = vcombine.high %v6644_v14, %v6648_v19  ;;  %v10909_v59 = vcombine.low %v6607_v40, %v6611_v48 }
 0x591   :  { %v12290_v22 = vadd.f32 %v4837_v36, %v12251_v24  ;;  %v12293_v30 = vadd.f32 %v4878_v56, %v12254_v50  ;;  %v4839_v37 = vpop.f32.mrb[70].mxu1  ;;  %v4880_v47 = vpop.f32.mrb[66].mxu0  ;;  %6988 = vmatpush1.bf16.msra.mxu1 %v10927_v55  ;;  %7029 = vmatpush1.bf16.msra.mxu0 %v10929_v7  ;;  %v10943_v24 = vcombine.low %v6644_v14, %v6648_v19  ;;  %v6614_v55 = vld [vmem:[#allocation9 + $0x16d0] sm:$0xff]  ;;  %v6623_v36 = vld [vmem:[#allocation9 + $0x1718] sm:$0xff] }
 0x592   :  { %v4840_v20 = vpop.f32.mrb[71].mxu1  ;;  %v4881_v39 = vpop.f32.mrb[67].mxu0  ;;  %6989 = vmatprep.subr.bf16.mxu1 %v10936_v8  ;;  %7030 = vmatprep.subr.bf16.mxu0 %v10938_v28  ;;  %v10945_v50 = vcombine.low %v6645_v62, %v6649_v17  ;;  %v6618_v7 = vld [vmem:[#allocation9 + $0x16f0] sm:$0xff]  ;;  %v6615_v8 = vld [vmem:[#allocation9 + $0x16d8] sm:$0xff]  ;;  %v10907_v14 = vcombine.low %v6606_v18, %v6610_v33 }
 0x593   :  { %v6619_v28 = vld [vmem:[#allocation9 + $0x16f8] sm:$0xff]  ;;  %v10916_v32 = vcombine.high %v6614_v55, %v6618_v7  ;;  %v6622_v62 = vld [vmem:[#allocation9 + $0x1710] sm:$0xff] }
 0x594   :  { %v10918_v19 = vcombine.high %v6615_v8, %v6619_v28  ;;  %v6626_v17 = vld [vmem:[#allocation9 + $0x1730] sm:$0xff]  ;;  %v6627_v56 = vld [vmem:[#allocation9 + $0x1738] sm:$0xff]  ;;  %v10917_v37 = vcombine.low %v6615_v8, %v6619_v28 }
 0x595   :  { %6990 = vmatpush1.bf16.msra.mxu1 %v10935_v25  ;;  %7031 = vmatpush1.bf16.msra.mxu0 %v10937_v52  ;;  %v10915_v25 = vcombine.low %v6614_v55, %v6618_v7  ;;  %v10924_v47 = vcombine.high %v6622_v62, %v6626_v17  ;;  %v10926_v52 = vcombine.high %v6623_v36, %v6627_v56  ;;  %v6630_v20 = vld [vmem:[#allocation9 + $0x1750] sm:$0xff]  ;;  %v6647_v18 = vld [vmem:[#allocation9 + $0x17d8] sm:$0xff] }
 0x596   :  { %6991 = vmatprep.subr.bf16.mxu1 %v10944_v31  ;;  %7032 = vmatprep.subr.bf16.mxu0 %v10946_v63  ;;  %v6634_v39 = vld [vmem:[#allocation9 + $0x1770] sm:$0xff]  ;;  %v6631_v31 = vld [vmem:[#allocation9 + $0x1758] sm:$0xff]  ;;  %v10923_v26 = vcombine.low %v6622_v62, %v6626_v17  ;;  %v10925_v6 = vcombine.low %v6623_v36, %v6627_v56  ;;  %v7153_v62 = vld [vmem:[#allocation9 + $0x1808] sm:$0xff] }
 0x597   :  { %v6635_v63 = vld [vmem:[#allocation9 + $0x1778] sm:$0xff]  ;;  %v10932_v16 = vcombine.high %v6630_v20, %v6634_v39  ;;  %v10931_v1 = vcombine.low %v6630_v20, %v6634_v39  ;;  %v7157_v17 = vld [vmem:[#allocation9 + $0x1828] sm:$0xff] }
 0x598   :  { %v10934_v54 = vcombine.high %v6631_v31, %v6635_v63  ;;  %v10933_v42 = vcombine.low %v6631_v31, %v6635_v63  ;;  %v6651_v33 = vld [vmem:[#allocation9 + $0x17f8] sm:$0xff]  ;;  %v10954_v56 = vcombine.high %v7153_v62, %v7157_v17  ;;  %v10953_v39 = vcombine.low %v7153_v62, %v7157_v17  ;;  %v7200_v17 = vld [vmem:[#allocation9 + $0x1980] sm:$0xff] }
 0x599   :  { %6992 = vmatpush1.bf16.msra.mxu1 %v10943_v24  ;;  %7033 = vmatpush1.bf16.msra.mxu0 %v10945_v50  ;;  %v6638_v24 = vld [vmem:[#allocation9 + $0x1790] sm:$0xff] }
 0x59a   :  { %7059 = vmatprep.subr.bf16.mxu1 %v10892_v12  ;;  %7100 = vmatprep.subr.bf16.mxu0 %v10894_v51  ;;  %v6642_v50 = vld [vmem:[#allocation9 + $0x17b0] sm:$0xff]  ;;  %v6639_v12 = vld [vmem:[#allocation9 + $0x1798] sm:$0xff] }
 0x59b   :  { %v6643_v51 = vld [vmem:[#allocation9 + $0x17b8] sm:$0xff]  ;;  %v10940_v13 = vcombine.high %v6638_v24, %v6642_v50 }
 0x59c   :  { %7010 = vmatmul.mubr.bf16.vlgmr.msra.gmra.mrb[96].mxu1 %v12297_v58  ;;  %7051 = vmatmul.mubr.bf16.vlgmr.msra.gmra.mrb[92].mxu0 %v12297_v58  ;;  %v10942_v34 = vcombine.high %v6639_v12, %v6643_v51  ;;  %v10941_v28 = vcombine.low %v6639_v12, %v6643_v51 }
 0x59d   :  { %7060 = vmatpush1.bf16.msra.mxu1 %v10891_v41  ;;  %7101 = vmatpush1.bf16.msra.mxu0 %v10893_v11  ;;  %v6646_v41 = vld [vmem:[#allocation9 + $0x17d0] sm:$0xff] }
 0x59e   :  { %7061 = vmatprep.subr.bf16.mxu1 %v10900_v15  ;;  %7102 = vmatprep.subr.bf16.mxu0 %v10902_v27  ;;  %v6650_v27 = vld [vmem:[#allocation9 + $0x17f0] sm:$0xff] }
 0x59f   :  { %7091 = vmatprep.mubr.bf16.mxu1 %v11681_v21  ;;  %7132 = vmatprep.mubr.bf16.mxu0 %v11681_v21 }
 0x5a1   :  { %7062 = vmatpush1.bf16.msra.mxu1 %v10899_v29  ;;  %7103 = vmatpush1.bf16.msra.mxu0 %v10901_v0 }
 0x5a2   :  { %7063 = vmatprep.subr.bf16.mxu1 %v10908_v2  ;;  %7104 = vmatprep.subr.bf16.mxu0 %v10910_v23  ;;  %v10939_v2 = vcombine.low %v6638_v24, %v6642_v50 }
 0x5a5   :  { %7064 = vmatpush1.bf16.msra.mxu1 %v10907_v14  ;;  %7105 = vmatpush1.bf16.msra.mxu0 %v10909_v59  ;;  %v10950_v59 = vcombine.high %v6647_v18, %v6651_v33 }
 0x5a6   :  { %7065 = vmatprep.subr.bf16.mxu1 %v10916_v32  ;;  %7106 = vmatprep.subr.bf16.mxu0 %v10918_v19  ;;  %v7152_v32 = vld [vmem:[#allocation9 + $0x1800] sm:$0xff] }
 0x5a7   :  { %v7156_v19 = vld [vmem:[#allocation9 + $0x1820] sm:$0xff] }
 0x5a8   :  { %v10952_v36 = vcombine.high %v7152_v32, %v7156_v19  ;;  %v10951_v20 = vcombine.low %v7152_v32, %v7156_v19 }
 0x5a9   :  { %7066 = vmatpush1.bf16.msra.mxu1 %v10915_v25  ;;  %7107 = vmatpush1.bf16.msra.mxu0 %v10917_v37  ;;  %v7160_v25 = vld [vmem:[#allocation9 + $0x1840] sm:$0xff] }
 0x5aa   :  { %7067 = vmatprep.subr.bf16.mxu1 %v10924_v47  ;;  %7108 = vmatprep.subr.bf16.mxu0 %v10926_v52  ;;  %v7164_v37 = vld [vmem:[#allocation9 + $0x1860] sm:$0xff]  ;;  %v7161_v47 = vld [vmem:[#allocation9 + $0x1848] sm:$0xff] }
 0x5ab   :  { %v7165_v52 = vld [vmem:[#allocation9 + $0x1868] sm:$0xff]  ;;  %v10960_v31 = vcombine.high %v7160_v25, %v7164_v37  ;;  %v10959_v24 = vcombine.low %v7160_v25, %v7164_v37 }
 0x5ac   :  { %v10962_v63 = vcombine.high %v7161_v47, %v7165_v52  ;;  %v10961_v50 = vcombine.low %v7161_v47, %v7165_v52  ;;  %v7208_v52 = vld [vmem:[#allocation9 + $0x19c0] sm:$0xff] }
 0x5ad   :  { %7068 = vmatpush1.bf16.msra.mxu1 %v10923_v26  ;;  %7109 = vmatpush1.bf16.msra.mxu0 %v10925_v6  ;;  %v7168_v26 = vld [vmem:[#allocation9 + $0x1880] sm:$0xff] }
 0x5ae   :  { %7069 = vmatprep.subr.bf16.mxu1 %v10932_v16  ;;  %7110 = vmatprep.subr.bf16.mxu0 %v10934_v54  ;;  %v7172_v6 = vld [vmem:[#allocation9 + $0x18a0] sm:$0xff]  ;;  %v7169_v16 = vld [vmem:[#allocation9 + $0x1888] sm:$0xff] }
 0x5af   :  { %v5320_v11 = vpop.f32.mrb[72].mxu1  ;;  %v5361_v15 = vpop.f32.mrb[68].mxu0  ;;  %v7173_v54 = vld [vmem:[#allocation9 + $0x18a8] sm:$0xff]  ;;  %v10968_v12 = vcombine.high %v7168_v26, %v7172_v6 }
 0x5b0   :  { %v12304_v40 = vadd.f32 %v5320_v11, %v12268_v61  ;;  %v12307_v48 = vadd.f32 %v5361_v15, %v12271_v43  ;;  %v5322_v29 = vpop.f32.mrb[73].mxu1  ;;  %v5363_v0 = vpop.f32.mrb[69].mxu0  ;;  %v10948_v43 = vcombine.high %v6646_v41, %v6650_v27  ;;  %v10970_v51 = vcombine.high %v7169_v16, %v7173_v54 }
 0x5b1   :  { %v12310_v23 = vadd.f32 %v5322_v29, %v12274_v49  ;;  %v12313_v55 = vadd.f32 %v5363_v0, %v12277_v60  ;;  %v5324_v7 = vpop.f32.mrb[74].mxu1  ;;  %v5365_v8 = vpop.f32.mrb[70].mxu0  ;;  %7070 = vmatpush1.bf16.msra.mxu1 %v10931_v1  ;;  %7111 = vmatpush1.bf16.msra.mxu0 %v10933_v42  ;;  %v10947_v49 = vcombine.low %v6646_v41, %v6650_v27  ;;  %v7176_v1 = vld [vmem:[#allocation9 + $0x18c0] sm:$0xff]  ;;  %v7189_v29 = vld [vmem:[#allocation9 + $0x1928] sm:$0xff] }
 0x5b2   :  { %v5325_v14 = vpop.f32.mrb[75].mxu1  ;;  %v5366_v61 = vpop.f32.mrb[71].mxu0  ;;  %7071 = vmatprep.subr.bf16.mxu1 %v10940_v13  ;;  %7112 = vmatprep.subr.bf16.mxu0 %v10942_v34  ;;  %v10949_v60 = vcombine.low %v6647_v18, %v6651_v33  ;;  %v7180_v42 = vld [vmem:[#allocation9 + $0x18e0] sm:$0xff]  ;;  %v7177_v13 = vld [vmem:[#allocation9 + $0x18c8] sm:$0xff]  ;;  %v10967_v41 = vcombine.low %v7168_v26, %v7172_v6 }
 0x5b3   :  { %v7181_v34 = vld [vmem:[#allocation9 + $0x18e8] sm:$0xff]  ;;  %v10976_v11 = vcombine.high %v7176_v1, %v7180_v42  ;;  %v7184_v27 = vld [vmem:[#allocation9 + $0x1900] sm:$0xff]  ;;  %v10975_v0 = vcombine.low %v7176_v1, %v7180_v42 }
 0x5b4   :  { %v10978_v15 = vcombine.high %v7177_v13, %v7181_v34  ;;  %v7188_v18 = vld [vmem:[#allocation9 + $0x1920] sm:$0xff]  ;;  %v7185_v33 = vld [vmem:[#allocation9 + $0x1908] sm:$0xff] }
 0x5b5   :  { %7072 = vmatpush1.bf16.msra.mxu1 %v10939_v2  ;;  %7113 = vmatpush1.bf16.msra.mxu0 %v10941_v28  ;;  %v10977_v2 = vcombine.low %v7177_v13, %v7181_v34  ;;  %v10984_v7 = vcombine.high %v7184_v27, %v7188_v18  ;;  %v10986_v8 = vcombine.high %v7185_v33, %v7189_v29  ;;  %v7192_v28 = vld [vmem:[#allocation9 + $0x1940] sm:$0xff]  ;;  %v7193_v61 = vld [vmem:[#allocation9 + $0x1948] sm:$0xff] }
 0x5b6   :  { %7073 = vmatprep.subr.bf16.mxu1 %v10948_v43  ;;  %7114 = vmatprep.subr.bf16.mxu0 %v10950_v59  ;;  %v7196_v14 = vld [vmem:[#allocation9 + $0x1960] sm:$0xff]  ;;  %v7197_v43 = vld [vmem:[#allocation9 + $0x1968] sm:$0xff]  ;;  %v10983_v59 = vcombine.low %v7184_v27, %v7188_v18  ;;  %v10985_v32 = vcombine.low %v7185_v33, %v7189_v29  ;;  %v7159_v27 = vld [vmem:[#allocation9 + $0x1838] sm:$0xff]  ;;  %v7220_v33 = vrot.slane %v7218_v53, 4 }
 0x5b7   :  { %v10992_v19 = vcombine.high %v7192_v28, %v7196_v14  ;;  %v10994_v62 = vcombine.high %v7193_v61, %v7197_v43  ;;  %v10993_v25 = vcombine.low %v7193_v61, %v7197_v43  ;;  %v7213_v26 = vld [vmem:[#allocation9 + $0x19e8] sm:$0xff]  ;;  %v7170_v43 = vld [vmem:[#allocation9 + $0x1890] sm:$0xff] }
 0x5b9   :  { %7074 = vmatpush1.bf16.msra.mxu1 %v10947_v49  ;;  %7115 = vmatpush1.bf16.msra.mxu0 %v10949_v60  ;;  %v7204_v49 = vld [vmem:[#allocation9 + $0x19a0] sm:$0xff]  ;;  %v7201_v60 = vld [vmem:[#allocation9 + $0x1988] sm:$0xff] }
 0x5ba   :  { %7545 = vmatprep.subr.bf16.mxu1 %v10952_v36  ;;  %7586 = vmatprep.subr.bf16.mxu0 %v10954_v56  ;;  %v7205_v36 = vld [vmem:[#allocation9 + $0x19a8] sm:$0xff]  ;;  %v10991_v56 = vcombine.low %v7192_v28, %v7196_v14  ;;  %v11000_v37 = vcombine.high %v7200_v17, %v7204_v49 }
 0x5bb   :  { %v11002_v47 = vcombine.high %v7201_v60, %v7205_v36  ;;  %v11001_v13 = vcombine.low %v7201_v60, %v7205_v36  ;;  %v7178_v36 = vld [vmem:[#allocation9 + $0x18d0] sm:$0xff] }
 0x5bc   :  { %7092 = vmatmul.mubr.bf16.vlgmr.msra.gmra.mrb[100].mxu1 %v12297_v58  ;;  %7133 = vmatmul.mubr.bf16.vlgmr.msra.gmra.mrb[96].mxu0 %v12297_v58  ;;  %v10969_v58 = vcombine.low %v7169_v16, %v7173_v54 }
 0x5bd   :  { %7546 = vmatpush1.bf16.msra.mxu1 %v10951_v20  ;;  %7587 = vmatpush1.bf16.msra.mxu0 %v10953_v39 }
 0x5be   :  { %7547 = vmatprep.subr.bf16.mxu1 %v10960_v31  ;;  %7588 = vmatprep.subr.bf16.mxu0 %v10962_v63  ;;  %v7212_v31 = vld [vmem:[#allocation9 + $0x19e0] sm:$0xff]  ;;  %v7209_v63 = vld [vmem:[#allocation9 + $0x19c8] sm:$0xff] }
 0x5bf   :  { %7577 = vmatprep.mubr.bf16.mxu1 %v11681_v21  ;;  %7618 = vmatprep.mubr.bf16.mxu0 %v11681_v21  ;;  %v11009_v18 = vcombine.low %v7209_v63, %v7213_v26 }
 0x5c1   :  { %7548 = vmatpush1.bf16.msra.mxu1 %v10959_v24  ;;  %7589 = vmatpush1.bf16.msra.mxu0 %v10961_v50  ;;  %v10999_v50 = vcombine.low %v7200_v17, %v7204_v49 }
 0x5c2   :  { %7549 = vmatprep.subr.bf16.mxu1 %v10968_v12  ;;  %7590 = vmatprep.subr.bf16.mxu0 %v10970_v51 }
 0x5c5   :  { %7550 = vmatpush1.bf16.msra.mxu1 %v10967_v41  ;;  %7591 = vmatpush1.bf16.msra.mxu0 %v10969_v58  ;;  %v11010_v41 = vcombine.high %v7209_v63, %v7213_v26  ;;  %v7154_v58 = vld [vmem:[#allocation9 + $0x1810] sm:$0xff]  ;;  %v7187_v26 = vld [vmem:[#allocation9 + $0x1918] sm:$0xff] }
 0x5c6   :  { %7551 = vmatprep.subr.bf16.mxu1 %v10976_v11  ;;  %7592 = vmatprep.subr.bf16.mxu0 %v10978_v15  ;;  %v7221_v11 = vrot.slane %v7219_v3, 3  ;;  %v7155_v15 = vld [vmem:[#allocation9 + $0x1818] sm:$0xff]  ;;  %v7190_v63 = vld [vmem:[#allocation9 + $0x1930] sm:$0xff] }
 0x5c7   :  { %v7167_v3 = vld [vmem:[#allocation9 + $0x1878] sm:$0xff]  ;;  %v10957_v14 = vcombine.low %v7155_v15, %v7159_v27 }
 0x5c8   :  { %v10966_v53 = vcombine.high %v7163_v45, %v7167_v3  ;;  %v10965_v17 = vcombine.low %v7163_v45, %v7167_v3  ;;  %v7214_v3 = vld [vmem:[#allocation9 + $0x19f0] sm:$0xff] }
 0x5c9   :  { %7552 = vmatpush1.bf16.msra.mxu1 %v10975_v0  ;;  %7593 = vmatpush1.bf16.msra.mxu0 %v10977_v2  ;;  %v10958_v0 = vcombine.high %v7155_v15, %v7159_v27  ;;  %v7162_v2 = vld [vmem:[#allocation9 + $0x1850] sm:$0xff] }
 0x5ca   :  { %7553 = vmatprep.subr.bf16.mxu1 %v10984_v7  ;;  %7594 = vmatprep.subr.bf16.mxu0 %v10986_v8  ;;  %v7222_v7 = vsel %vm525_vm3, %v7221_v11, %v7220_v33  ;;  %v7166_v8 = vld [vmem:[#allocation9 + $0x1870] sm:$0xff] }
 0x5cb   :  { %v12336_v61 = vpack.c.b16 %v7222_v7, %v7222_v7  ;;  %v10964_v38 = vcombine.high %v7162_v2, %v7166_v8  ;;  %v7202_v15 = vld [vmem:[#allocation9 + $0x1990] sm:$0xff] }
 0x5cc   :  { %v7206_v27 = vld [vmem:[#allocation9 + $0x19b0] sm:$0xff] }
 0x5cd   :  { %7554 = vmatpush1.bf16.msra.mxu1 %v10983_v59  ;;  %7595 = vmatpush1.bf16.msra.mxu0 %v10985_v32  ;;  %v7174_v59 = vld [vmem:[#allocation9 + $0x18b0] sm:$0xff]  ;;  %v7171_v32 = vld [vmem:[#allocation9 + $0x1898] sm:$0xff] }
 0x5ce   :  { %7555 = vmatprep.subr.bf16.mxu1 %v10992_v19  ;;  %7596 = vmatprep.subr.bf16.mxu0 %v10994_v62  ;;  %v7175_v19 = vld [vmem:[#allocation9 + $0x18b8] sm:$0xff]  ;;  %v10963_v62 = vcombine.low %v7162_v2, %v7166_v8  ;;  %v10972_v49 = vcombine.high %v7170_v43, %v7174_v59  ;;  %v7210_v7 = vld [vmem:[#allocation9 + $0x19d0] sm:$0xff] }
 0x5cf   :  { %v5402_v20 = vpop.f32.mrb[76].mxu1  ;;  %v5443_v39 = vpop.f32.mrb[72].mxu0  ;;  %v10974_v60 = vcombine.high %v7171_v32, %v7175_v19 }
 0x5d0   :  { %v12320_v6 = vadd.f32 %v5402_v20, %v12284_v5  ;;  %v12323_v16 = vadd.f32 %v5443_v39, %v12287_v9  ;;  %v5404_v54 = vpop.f32.mrb[77].mxu1  ;;  %v5445_v24 = vpop.f32.mrb[73].mxu0  ;;  %v11008_v9 = vcombine.high %v7208_v52, %v7212_v31 }
 0x5d1   :  { %v12326_v12 = vadd.f32 %v5404_v54, %v12290_v22  ;;  %v12329_v51 = vadd.f32 %v5445_v24, %v12293_v30  ;;  %v5406_v1 = vpop.f32.mrb[78].mxu1  ;;  %v5447_v42 = vpop.f32.mrb[74].mxu0  ;;  %7556 = vmatpush1.bf16.msra.mxu1 %v10991_v56  ;;  %7597 = vmatpush1.bf16.msra.mxu0 %v10993_v25  ;;  %v7158_v22 = vld [vmem:[#allocation9 + $0x1830] sm:$0xff]  ;;  %v11007_v30 = vcombine.low %v7208_v52, %v7212_v31  ;;  %v7179_v25 = vld [vmem:[#allocation9 + $0x18d8] sm:$0xff] }
 0x5d2   :  { %v5407_v34 = vpop.f32.mrb[79].mxu1  ;;  %v5448_v5 = vpop.f32.mrb[75].mxu0  ;;  %7557 = vmatprep.subr.bf16.mxu1 %v11000_v37  ;;  %7598 = vmatprep.subr.bf16.mxu0 %v11002_v47  ;;  %v10956_v29 = vcombine.high %v7154_v58, %v7158_v22  ;;  %v10955_v28 = vcombine.low %v7154_v58, %v7158_v22  ;;  %v7182_v56 = vld [vmem:[#allocation9 + $0x18f0] sm:$0xff]  ;;  %v7183_v37 = vld [vmem:[#allocation9 + $0x18f8] sm:$0xff]  ;;  %v10971_v47 = vcombine.low %v7170_v43, %v7174_v59 }
 0x5d3   :  { %v10973_v52 = vcombine.low %v7171_v32, %v7175_v19  ;;  %v10980_v20 = vcombine.high %v7178_v36, %v7182_v56  ;;  %v10982_v39 = vcombine.high %v7179_v25, %v7183_v37  ;;  %v7186_v31 = vld [vmem:[#allocation9 + $0x1910] sm:$0xff]  ;;  %v7191_v54 = vld [vmem:[#allocation9 + $0x1938] sm:$0xff]  ;;  %v10979_v24 = vcombine.low %v7178_v36, %v7182_v56 }
 0x5d4   :  { %v10988_v1 = vcombine.high %v7186_v31, %v7190_v63  ;;  %v10990_v42 = vcombine.high %v7187_v26, %v7191_v54  ;;  %v7198_v34 = vld [vmem:[#allocation9 + $0x1970] sm:$0xff]  ;;  %v7195_v5 = vld [vmem:[#allocation9 + $0x1958] sm:$0xff]  ;;  %v10989_v58 = vcombine.low %v7187_v26, %v7191_v54  ;;  %v11003_v32 = vcombine.low %v7202_v15, %v7206_v27  ;;  %v7727_v26 = vld [vmem:[#allocation9 + $0x1a48] sm:$0xff] }
 0x5d5   :  { %7558 = vmatpush1.bf16.msra.mxu1 %v10999_v50  ;;  %7599 = vmatpush1.bf16.msra.mxu0 %v11001_v13  ;;  %v10981_v50 = vcombine.low %v7179_v25, %v7183_v37  ;;  %v7194_v13 = vld [vmem:[#allocation9 + $0x1950] sm:$0xff]  ;;  %v7718_v25 = vld [vmem:[#allocation9 + $0x1a00] sm:$0xff]  ;;  %v7731_v54 = vld [vmem:[#allocation9 + $0x1a68] sm:$0xff] }
 0x5d6   :  { %7559 = vmatprep.subr.bf16.mxu1 %v11008_v9  ;;  %7600 = vmatprep.subr.bf16.mxu0 %v11010_v41  ;;  %v7199_v9 = vld [vmem:[#allocation9 + $0x1978] sm:$0xff]  ;;  %v10987_v41 = vcombine.low %v7186_v31, %v7190_v63  ;;  %v10996_v11 = vcombine.high %v7194_v13, %v7198_v34  ;;  %v10995_v33 = vcombine.low %v7194_v13, %v7198_v34  ;;  %v7722_v37 = vld [vmem:[#allocation9 + $0x1a20] sm:$0xff] }
 0x5d7   :  { %v10998_v22 = vcombine.high %v7195_v5, %v7199_v9  ;;  %v7726_v31 = vld [vmem:[#allocation9 + $0x1a40] sm:$0xff] }
 0x5d8   :  { %v7730_v63 = vld [vmem:[#allocation9 + $0x1a60] sm:$0xff] }
 0x5d9   :  { %7560 = vmatpush1.bf16.msra.mxu1 %v11007_v30  ;;  %7601 = vmatpush1.bf16.msra.mxu0 %v11009_v18  ;;  %v7203_v30 = vld [vmem:[#allocation9 + $0x1998] sm:$0xff]  ;;  %v7734_v13 = vld [vmem:[#allocation9 + $0x1a80] sm:$0xff] }
 0x5da   :  { %7627 = vmatprep.subr.bf16.mxu1 %v10956_v29  ;;  %7668 = vmatprep.subr.bf16.mxu0 %v10958_v0  ;;  %v7207_v18 = vld [vmem:[#allocation9 + $0x19b8] sm:$0xff]  ;;  %v10997_v29 = vcombine.low %v7195_v5, %v7199_v9  ;;  %v11004_v0 = vcombine.high %v7202_v15, %v7206_v27  ;;  %v7738_v34 = vld [vmem:[#allocation9 + $0x1aa0] sm:$0xff]  ;;  %v7735_v5 = vld [vmem:[#allocation9 + $0x1a88] sm:$0xff] }
 0x5db   :  { %v11006_v2 = vcombine.high %v7203_v30, %v7207_v18  ;;  %v7739_v9 = vld [vmem:[#allocation9 + $0x1aa8] sm:$0xff]  ;;  %v7742_v15 = vld [vmem:[#allocation9 + $0x1ac0] sm:$0xff] }
 0x5dc   :  { %7578 = vmatmul.mubr.bf16.vlgmr.msra.gmra.mrb[104].mxu1 %v12336_v61  ;;  %7619 = vmatmul.mubr.bf16.vlgmr.msra.gmra.mrb[100].mxu0 %v12336_v61  ;;  %v7746_v27 = vld [vmem:[#allocation9 + $0x1ae0] sm:$0xff] }
 0x5dd   :  { %7628 = vmatpush1.bf16.msra.mxu1 %v10955_v28  ;;  %7669 = vmatpush1.bf16.msra.mxu0 %v10957_v14  ;;  %v7211_v28 = vld [vmem:[#allocation9 + $0x19d8] sm:$0xff] }
 0x5de   :  { %7629 = vmatprep.subr.bf16.mxu1 %v10964_v38  ;;  %7670 = vmatprep.subr.bf16.mxu0 %v10966_v53  ;;  %v7215_v14 = vld [vmem:[#allocation9 + $0x19f8] sm:$0xff] }
 0x5df   :  { %7659 = vmatprep.mubr.bf16.mxu1 %v11681_v21  ;;  %7700 = vmatprep.mubr.bf16.mxu0 %v11681_v21  ;;  %v11014_v56 = vcombine.high %v7211_v28, %v7215_v14 }
 0x5e1   :  { %7630 = vmatpush1.bf16.msra.mxu1 %v10963_v62  ;;  %7671 = vmatpush1.bf16.msra.mxu0 %v10965_v17 }
 0x5e2   :  { %7631 = vmatprep.subr.bf16.mxu1 %v10972_v49  ;;  %7672 = vmatprep.subr.bf16.mxu0 %v10974_v60  ;;  %v11005_v60 = vcombine.low %v7203_v30, %v7207_v18  ;;  %v7743_v30 = vld [vmem:[#allocation9 + $0x1ac8] sm:$0xff] }
 0x5e3   :  { %v7747_v18 = vld [vmem:[#allocation9 + $0x1ae8] sm:$0xff] }
 0x5e5   :  { %7632 = vmatpush1.bf16.msra.mxu1 %v10971_v47  ;;  %7673 = vmatpush1.bf16.msra.mxu0 %v10973_v52  ;;  %v7719_v47 = vld [vmem:[#allocation9 + $0x1a08] sm:$0xff] }
 0x5e6   :  { %7633 = vmatprep.subr.bf16.mxu1 %v10980_v20  ;;  %7674 = vmatprep.subr.bf16.mxu0 %v10982_v39  ;;  %v7723_v52 = vld [vmem:[#allocation9 + $0x1a28] sm:$0xff]  ;;  %v11016_v20 = vcombine.high %v7718_v25, %v7722_v37 }
 0x5e7   :  { %v11018_v39 = vcombine.high %v7719_v47, %v7723_v52 }
 0x5e9   :  { %7634 = vmatpush1.bf16.msra.mxu1 %v10979_v24  ;;  %7675 = vmatpush1.bf16.msra.mxu0 %v10981_v50  ;;  %v11015_v24 = vcombine.low %v7718_v25, %v7722_v37  ;;  %v11017_v50 = vcombine.low %v7719_v47, %v7723_v52  ;;  %v7770_v25 = vld [vmem:[#allocation9 + $0x1ba0] sm:$0xff]  ;;  %v7767_v37 = vld [vmem:[#allocation9 + $0x1b88] sm:$0xff] }
 0x5ea   :  { %7635 = vmatprep.subr.bf16.mxu1 %v10988_v1  ;;  %7676 = vmatprep.subr.bf16.mxu0 %v10990_v42  ;;  %v11024_v1 = vcombine.high %v7726_v31, %v7730_v63  ;;  %v11026_v42 = vcombine.high %v7727_v26, %v7731_v54  ;;  %v7771_v47 = vld [vmem:[#allocation9 + $0x1ba8] sm:$0xff] }
 0x5ed   :  { %7636 = vmatpush1.bf16.msra.mxu1 %v10987_v41  ;;  %7677 = vmatpush1.bf16.msra.mxu0 %v10989_v58  ;;  %v11023_v41 = vcombine.low %v7726_v31, %v7730_v63  ;;  %v11025_v58 = vcombine.low %v7727_v26, %v7731_v54  ;;  %v7778_v26 = vld [vmem:[#allocation9 + $0x1be0] sm:$0xff]  ;;  %v7775_v54 = vld [vmem:[#allocation9 + $0x1bc8] sm:$0xff] }
 0x5ee   :  { %7637 = vmatprep.subr.bf16.mxu1 %v10996_v11  ;;  %7678 = vmatprep.subr.bf16.mxu0 %v10998_v22  ;;  %v11032_v11 = vcombine.high %v7734_v13, %v7738_v34  ;;  %v11034_v22 = vcombine.high %v7735_v5, %v7739_v9 }
 0x5ef   :  { %v5881_v8 = vpop.f32.mrb[80].mxu1  ;;  %v5922_v45 = vpop.f32.mrb[76].mxu0 }
 0x5f0   :  { %v12343_v38 = vadd.f32 %v5881_v8, %v12304_v40  ;;  %v12346_v53 = vadd.f32 %v5922_v45, %v12307_v48  ;;  %v5883_v43 = vpop.f32.mrb[81].mxu1  ;;  %v5924_v59 = vpop.f32.mrb[77].mxu0  ;;  %v11012_v48 = vcombine.high %v7210_v7, %v7214_v3  ;;  %v7751_v8 = vld [vmem:[#allocation9 + $0x1b08] sm:$0xff] }
 0x5f1   :  { %v12349_v19 = vadd.f32 %v5883_v43, %v12310_v23  ;;  %v12352_v62 = vadd.f32 %v5924_v59, %v12313_v55  ;;  %v5885_v17 = vpop.f32.mrb[82].mxu1  ;;  %v5926_v49 = vpop.f32.mrb[78].mxu0  ;;  %7638 = vmatpush1.bf16.msra.mxu1 %v10995_v33  ;;  %7679 = vmatpush1.bf16.msra.mxu0 %v10997_v29  ;;  %v11011_v23 = vcombine.low %v7210_v7, %v7214_v3  ;;  %v7754_v7 = vld [vmem:[#allocation9 + $0x1b20] sm:$0xff]  ;;  %v7755_v45 = vld [vmem:[#allocation9 + $0x1b28] sm:$0xff] }
 0x5f2   :  { %v5886_v36 = vpop.f32.mrb[83].mxu1  ;;  %v5927_v40 = vpop.f32.mrb[79].mxu0  ;;  %7639 = vmatprep.subr.bf16.mxu1 %v11004_v0  ;;  %7680 = vmatprep.subr.bf16.mxu0 %v11006_v2  ;;  %v11013_v55 = vcombine.low %v7211_v28, %v7215_v14  ;;  %v11031_v33 = vcombine.low %v7734_v13, %v7738_v34  ;;  %v11040_v29 = vcombine.high %v7742_v15, %v7746_v27  ;;  %v7750_v2 = vld [vmem:[#allocation9 + $0x1b00] sm:$0xff]  ;;  %v7759_v17 = vld [vmem:[#allocation9 + $0x1b48] sm:$0xff] }
 0x5f3   :  { %v11042_v0 = vcombine.high %v7743_v30, %v7747_v18  ;;  %v11039_v3 = vcombine.low %v7742_v15, %v7746_v27  ;;  %v11041_v28 = vcombine.low %v7743_v30, %v7747_v18  ;;  %v11048_v14 = vcombine.high %v7750_v2, %v7754_v7  ;;  %v7758_v59 = vld [vmem:[#allocation9 + $0x1b40] sm:$0xff]  ;;  %v7763_v49 = vld [vmem:[#allocation9 + $0x1b68] sm:$0xff]  ;;  %v7720_v27 = vld [vmem:[#allocation9 + $0x1a10] sm:$0xff] }
 0x5f4   :  { %v11050_v43 = vcombine.high %v7751_v8, %v7755_v45  ;;  %v11049_v36 = vcombine.low %v7751_v8, %v7755_v45  ;;  %v7724_v30 = vld [vmem:[#allocation9 + $0x1a30] sm:$0xff]  ;;  %v7721_v18 = vld [vmem:[#allocation9 + $0x1a18] sm:$0xff] }
 0x5f5   :  { %7640 = vmatpush1.bf16.msra.mxu1 %v11003_v32  ;;  %7681 = vmatpush1.bf16.msra.mxu0 %v11005_v60  ;;  %v7762_v32 = vld [vmem:[#allocation9 + $0x1b60] sm:$0xff]  ;;  %v11047_v60 = vcombine.low %v7750_v2, %v7754_v7  ;;  %v7732_v2 = vld [vmem:[#allocation9 + $0x1a70] sm:$0xff]  ;;  %v7729_v7 = vld [vmem:[#allocation9 + $0x1a58] sm:$0xff]  ;;  %v11019_v45 = vcombine.low %v7720_v27, %v7724_v30 }
 0x5f6   :  { %7641 = vmatprep.subr.bf16.mxu1 %v11012_v48  ;;  %7682 = vmatprep.subr.bf16.mxu0 %v11014_v56  ;;  %v11056_v40 = vcombine.high %v7758_v59, %v7762_v32  ;;  %v11058_v48 = vcombine.high %v7759_v17, %v7763_v49  ;;  %v7766_v56 = vld [vmem:[#allocation9 + $0x1b80] sm:$0xff]  ;;  %v11055_v52 = vcombine.low %v7758_v59, %v7762_v32  ;;  %v7733_v8 = vld [vmem:[#allocation9 + $0x1a78] sm:$0xff]  ;;  %v7736_v59 = vld [vmem:[#allocation9 + $0x1a90] sm:$0xff] }
 0x5f7   :  { %v11063_v34 = vcombine.low %v7766_v56, %v7770_v25  ;;  %v7740_v32 = vld [vmem:[#allocation9 + $0x1ab0] sm:$0xff] }
 0x5f9   :  { %7642 = vmatpush1.bf16.msra.mxu1 %v11011_v23  ;;  %7683 = vmatpush1.bf16.msra.mxu0 %v11013_v55  ;;  %v11057_v23 = vcombine.low %v7759_v17, %v7763_v49  ;;  %v11064_v55 = vcombine.high %v7766_v56, %v7770_v25  ;;  %v7737_v17 = vld [vmem:[#allocation9 + $0x1a98] sm:$0xff]  ;;  %v7748_v56 = vld [vmem:[#allocation9 + $0x1af0] sm:$0xff] }
 0x5fa   :  { %8107 = vmatprep.subr.bf16.mxu1 %v11016_v20  ;;  %8148 = vmatprep.subr.bf16.mxu0 %v11018_v39  ;;  %v11066_v20 = vcombine.high %v7767_v37, %v7771_v47  ;;  %v7774_v39 = vld [vmem:[#allocation9 + $0x1bc0] sm:$0xff]  ;;  %v7741_v49 = vld [vmem:[#allocation9 + $0x1ab8] sm:$0xff] }
 0x5fb   :  { %v7745_v25 = vld [vmem:[#allocation9 + $0x1ad8] sm:$0xff] }
 0x5fc   :  { %7660 = vmatmul.mubr.bf16.vlgmr.msra.gmra.mrb[108].mxu1 %v12336_v61  ;;  %7701 = vmatmul.mubr.bf16.vlgmr.msra.gmra.mrb[104].mxu0 %v12336_v61  ;;  %v11033_v61 = vcombine.low %v7735_v5, %v7739_v9 }
 0x5fd   :  { %8108 = vmatpush1.bf16.msra.mxu1 %v11015_v24  ;;  %8149 = vmatpush1.bf16.msra.mxu0 %v11017_v50  ;;  %v7779_v24 = vld [vmem:[#allocation9 + $0x1be8] sm:$0xff] }
 0x5fe   :  { %8109 = vmatprep.subr.bf16.mxu1 %v11024_v1  ;;  %8150 = vmatprep.subr.bf16.mxu0 %v11026_v42  ;;  %v11074_v15 = vcombine.high %v7775_v54, %v7779_v24 }
 0x5ff   :  { %8139 = vmatprep.mubr.bf16.mxu1 %v11681_v21  ;;  %8180 = vmatprep.mubr.bf16.mxu0 %v11681_v21 }
 0x601   :  { %8110 = vmatpush1.bf16.msra.mxu1 %v11023_v41  ;;  %8151 = vmatpush1.bf16.msra.mxu0 %v11025_v58 }
 0x602   :  { %8111 = vmatprep.subr.bf16.mxu1 %v11032_v11  ;;  %8152 = vmatprep.subr.bf16.mxu0 %v11034_v22  ;;  %v11065_v11 = vcombine.low %v7767_v37, %v7771_v47  ;;  %v7749_v37 = vld [vmem:[#allocation9 + $0x1af8] sm:$0xff]  ;;  %v11035_v47 = vcombine.low %v7736_v59, %v7740_v32 }
 0x605   :  { %8112 = vmatpush1.bf16.msra.mxu1 %v11031_v33  ;;  %8153 = vmatpush1.bf16.msra.mxu0 %v11033_v61  ;;  %v7725_v33 = vld [vmem:[#allocation9 + $0x1a38] sm:$0xff]  ;;  %v11020_v61 = vcombine.high %v7720_v27, %v7724_v30  ;;  %v7772_v27 = vld [vmem:[#allocation9 + $0x1bb0] sm:$0xff] }
 0x606   :  { %8113 = vmatprep.subr.bf16.mxu1 %v11040_v29  ;;  %8154 = vmatprep.subr.bf16.mxu0 %v11042_v0  ;;  %v11022_v29 = vcombine.high %v7721_v18, %v7725_v33  ;;  %v7728_v0 = vld [vmem:[#allocation9 + $0x1a50] sm:$0xff]  ;;  %v7769_v30 = vld [vmem:[#allocation9 + $0x1b98] sm:$0xff] }
 0x609   :  { %8114 = vmatpush1.bf16.msra.mxu1 %v11039_v3  ;;  %8155 = vmatpush1.bf16.msra.mxu0 %v11041_v28  ;;  %v11021_v3 = vcombine.low %v7721_v18, %v7725_v33  ;;  %v12372_v28 = vpack.c.b16 %v11965_v35, %v11965_v35  ;;  %v11036_v35 = vcombine.high %v7736_v59, %v7740_v32  ;;  %v7773_v18 = vld [vmem:[#allocation9 + $0x1bb8] sm:$0xff] }
 0x60a   :  { %8115 = vmatprep.subr.bf16.mxu1 %v11048_v14  ;;  %8156 = vmatprep.subr.bf16.mxu0 %v11050_v43  ;;  %v11028_v14 = vcombine.high %v7728_v0, %v7732_v2  ;;  %v11030_v43 = vcombine.high %v7729_v7, %v7733_v8 }
 0x60d   :  { %8116 = vmatpush1.bf16.msra.mxu1 %v11047_v60  ;;  %8157 = vmatpush1.bf16.msra.mxu0 %v11049_v36  ;;  %v11027_v60 = vcombine.low %v7728_v0, %v7732_v2  ;;  %v11029_v36 = vcombine.low %v7729_v7, %v7733_v8  ;;  %v7780_v7 = vld [vmem:[#allocation9 + $0x1bf0] sm:$0xff]  ;;  %v7777_v8 = vld [vmem:[#allocation9 + $0x1bd8] sm:$0xff] }
 0x60e   :  { %8117 = vmatprep.subr.bf16.mxu1 %v11056_v40  ;;  %8158 = vmatprep.subr.bf16.mxu0 %v11058_v48  ;;  %v11038_v40 = vcombine.high %v7737_v17, %v7741_v49  ;;  %v7744_v48 = vld [vmem:[#allocation9 + $0x1ad0] sm:$0xff] }
 0x60f   :  { %v5963_v31 = vpop.f32.mrb[84].mxu1  ;;  %v6004_v63 = vpop.f32.mrb[80].mxu0 }
 0x610   :  { %v12359_v50 = vadd.f32 %v5963_v31, %v12320_v6  ;;  %v12362_v1 = vadd.f32 %v6004_v63, %v12323_v16  ;;  %v5965_v42 = vpop.f32.mrb[85].mxu1  ;;  %v6006_v13 = vpop.f32.mrb[81].mxu0  ;;  %v11072_v16 = vcombine.high %v7774_v39, %v7778_v26  ;;  %v7753_v31 = vld [vmem:[#allocation9 + $0x1b18] sm:$0xff] }
 0x611   :  { %v12365_v5 = vadd.f32 %v5965_v42, %v12326_v12  ;;  %v12368_v9 = vadd.f32 %v6006_v13, %v12329_v51  ;;  %v5967_v41 = vpop.f32.mrb[86].mxu1  ;;  %v6008_v58 = vpop.f32.mrb[82].mxu0  ;;  %8118 = vmatpush1.bf16.msra.mxu1 %v11055_v52  ;;  %8159 = vmatpush1.bf16.msra.mxu0 %v11057_v23  ;;  %v11071_v12 = vcombine.low %v7774_v39, %v7778_v26  ;;  %v7756_v39 = vld [vmem:[#allocation9 + $0x1b30] sm:$0xff]  ;;  %v7757_v63 = vld [vmem:[#allocation9 + $0x1b38] sm:$0xff] }
 0x612   :  { %v5968_v22 = vpop.f32.mrb[87].mxu1  ;;  %v6009_v6 = vpop.f32.mrb[83].mxu0  ;;  %8119 = vmatprep.subr.bf16.mxu1 %v11064_v55  ;;  %8160 = vmatprep.subr.bf16.mxu0 %v11066_v20  ;;  %v11073_v51 = vcombine.low %v7775_v54, %v7779_v24  ;;  %v11037_v52 = vcombine.low %v7737_v17, %v7741_v49  ;;  %v11044_v23 = vcombine.high %v7744_v48, %v7748_v56  ;;  %v7752_v20 = vld [vmem:[#allocation9 + $0x1b10] sm:$0xff]  ;;  %v7761_v41 = vld [vmem:[#allocation9 + $0x1b58] sm:$0xff] }
 0x613   :  { %v11046_v55 = vcombine.high %v7745_v25, %v7749_v37  ;;  %v11043_v26 = vcombine.low %v7744_v48, %v7748_v56  ;;  %v11045_v54 = vcombine.low %v7745_v25, %v7749_v37  ;;  %v11052_v24 = vcombine.high %v7752_v20, %v7756_v39  ;;  %v7760_v13 = vld [vmem:[#allocation9 + $0x1b50] sm:$0xff]  ;;  %v7765_v58 = vld [vmem:[#allocation9 + $0x1b78] sm:$0xff]  ;;  %v8282_v56 = vld [vmem:[#allocation9 + $0x1c00] sm:$0xff] }
 0x614   :  { %v11054_v42 = vcombine.high %v7753_v31, %v7757_v63  ;;  %v11053_v22 = vcombine.low %v7753_v31, %v7757_v63  ;;  %v8286_v25 = vld [vmem:[#allocation9 + $0x1c20] sm:$0xff]  ;;  %v8283_v37 = vld [vmem:[#allocation9 + $0x1c08] sm:$0xff] }
 0x615   :  { %8120 = vmatpush1.bf16.msra.mxu1 %v11063_v34  ;;  %8161 = vmatpush1.bf16.msra.mxu0 %v11065_v11  ;;  %v7764_v34 = vld [vmem:[#allocation9 + $0x1b70] sm:$0xff]  ;;  %v11051_v11 = vcombine.low %v7752_v20, %v7756_v39  ;;  %v8294_v20 = vld [vmem:[#allocation9 + $0x1c60] sm:$0xff]  ;;  %v8291_v39 = vld [vmem:[#allocation9 + $0x1c48] sm:$0xff]  ;;  %v11079_v63 = vcombine.low %v8282_v56, %v8286_v25 }
 0x616   :  { %8121 = vmatprep.subr.bf16.mxu1 %v11072_v16  ;;  %8162 = vmatprep.subr.bf16.mxu0 %v11074_v15  ;;  %v11060_v6 = vcombine.high %v7760_v13, %v7764_v34  ;;  %v11062_v16 = vcombine.high %v7761_v41, %v7765_v58  ;;  %v7768_v15 = vld [vmem:[#allocation9 + $0x1b90] sm:$0xff]  ;;  %v11059_v33 = vcombine.low %v7760_v13, %v7764_v34  ;;  %v8295_v31 = vld [vmem:[#allocation9 + $0x1c68] sm:$0xff]  ;;  %v8302_v13 = vld [vmem:[#allocation9 + $0x1ca0] sm:$0xff] }
 0x617   :  { %v11067_v32 = vcombine.low %v7768_v15, %v7772_v27  ;;  %v8299_v34 = vld [vmem:[#allocation9 + $0x1c88] sm:$0xff] }
 0x619   :  { %8122 = vmatpush1.bf16.msra.mxu1 %v11071_v12  ;;  %8163 = vmatpush1.bf16.msra.mxu0 %v11073_v51  ;;  %v11061_v12 = vcombine.low %v7761_v41, %v7765_v58  ;;  %v11068_v51 = vcombine.high %v7768_v15, %v7772_v27  ;;  %v8303_v41 = vld [vmem:[#allocation9 + $0x1ca8] sm:$0xff]  ;;  %v8310_v15 = vld [vmem:[#allocation9 + $0x1ce0] sm:$0xff] }
 0x61a   :  { %8189 = vmatprep.subr.bf16.mxu1 %v11020_v61  ;;  %8230 = vmatprep.subr.bf16.mxu0 %v11022_v29  ;;  %v11070_v61 = vcombine.high %v7769_v30, %v7773_v18  ;;  %v7776_v29 = vld [vmem:[#allocation9 + $0x1bd0] sm:$0xff]  ;;  %v8307_v27 = vld [vmem:[#allocation9 + $0x1cc8] sm:$0xff] }
 0x61c   :  { %8140 = vmatmul.mubr.bf16.vlgmr.msra.gmra.mrb[112].mxu1 %v12372_v28  ;;  %8181 = vmatmul.mubr.bf16.vlgmr.msra.gmra.mrb[108].mxu0 %v12372_v28 }
 0x61d   :  { %8190 = vmatpush1.bf16.msra.mxu1 %v11019_v45  ;;  %8231 = vmatpush1.bf16.msra.mxu0 %v11021_v3  ;;  %v7781_v45 = vld [vmem:[#allocation9 + $0x1bf8] sm:$0xff] }
 0x61e   :  { %8191 = vmatprep.subr.bf16.mxu1 %v11028_v14  ;;  %8232 = vmatprep.subr.bf16.mxu0 %v11030_v43  ;;  %v11078_v48 = vcombine.high %v7777_v8, %v7781_v45 }
 0x61f   :  { %8221 = vmatprep.mubr.bf16.mxu1 %v11681_v21  ;;  %8262 = vmatprep.mubr.bf16.mxu0 %v11681_v21 }
 0x621   :  { %8192 = vmatpush1.bf16.msra.mxu1 %v11027_v60  ;;  %8233 = vmatpush1.bf16.msra.mxu0 %v11029_v36 }
 0x622   :  { %8193 = vmatprep.subr.bf16.mxu1 %v11036_v35  ;;  %8234 = vmatprep.subr.bf16.mxu0 %v11038_v40  ;;  %v11069_v35 = vcombine.low %v7769_v30, %v7773_v18  ;;  %v8311_v30 = vld [vmem:[#allocation9 + $0x1ce8] sm:$0xff] }
 0x625   :  { %8194 = vmatpush1.bf16.msra.mxu1 %v11035_v47  ;;  %8235 = vmatpush1.bf16.msra.mxu0 %v11037_v52  ;;  %v8287_v47 = vld [vmem:[#allocation9 + $0x1c28] sm:$0xff]  ;;  %v11080_v52 = vcombine.high %v8282_v56, %v8286_v25 }
 0x626   :  { %8195 = vmatprep.subr.bf16.mxu1 %v11044_v23  ;;  %8236 = vmatprep.subr.bf16.mxu0 %v11046_v55  ;;  %v11082_v23 = vcombine.high %v8283_v37, %v8287_v47  ;;  %v8290_v55 = vld [vmem:[#allocation9 + $0x1c40] sm:$0xff]  ;;  %v8331_v56 = vld [vmem:[#allocation9 + $0x1d88] sm:$0xff] }
 0x627   :  { %v11087_v58 = vcombine.low %v8290_v55, %v8294_v20  ;;  %v8335_v25 = vld [vmem:[#allocation9 + $0x1da8] sm:$0xff] }
 0x629   :  { %8196 = vmatpush1.bf16.msra.mxu1 %v11043_v26  ;;  %8237 = vmatpush1.bf16.msra.mxu0 %v11045_v54  ;;  %v11081_v26 = vcombine.low %v8283_v37, %v8287_v47  ;;  %v11088_v54 = vcombine.high %v8290_v55, %v8294_v20  ;;  %v8342_v20 = vld [vmem:[#allocation9 + $0x1de0] sm:$0xff] }
 0x62a   :  { %8197 = vmatprep.subr.bf16.mxu1 %v11052_v24  ;;  %8238 = vmatprep.subr.bf16.mxu0 %v11054_v42  ;;  %v11090_v24 = vcombine.high %v8291_v39, %v8295_v31  ;;  %v8298_v42 = vld [vmem:[#allocation9 + $0x1c80] sm:$0xff] }
 0x62b   :  { %v11095_v18 = vcombine.low %v8298_v42, %v8302_v13 }
 0x62d   :  { %8198 = vmatpush1.bf16.msra.mxu1 %v11051_v11  ;;  %8239 = vmatpush1.bf16.msra.mxu0 %v11053_v22  ;;  %v11089_v11 = vcombine.low %v8291_v39, %v8295_v31  ;;  %v11096_v22 = vcombine.high %v8298_v42, %v8302_v13  ;;  %v8339_v39 = vld [vmem:[#allocation9 + $0x1dc8] sm:$0xff] }
 0x62e   :  { %8199 = vmatprep.subr.bf16.mxu1 %v11060_v6  ;;  %8240 = vmatprep.subr.bf16.mxu0 %v11062_v16  ;;  %v11098_v6 = vcombine.high %v8299_v34, %v8303_v41  ;;  %v8306_v16 = vld [vmem:[#allocation9 + $0x1cc0] sm:$0xff]  ;;  %v8343_v31 = vld [vmem:[#allocation9 + $0x1de8] sm:$0xff] }
 0x62f   :  { %v6449_v0 = vpop.f32.mrb[88].mxu1  ;;  %v6490_v2 = vpop.f32.mrb[84].mxu0 }
 0x630   :  { %v12379_v3 = vadd.f32 %v6449_v0, %v12343_v38  ;;  %v12382_v14 = vadd.f32 %v6490_v2, %v12346_v53  ;;  %v6451_v43 = vpop.f32.mrb[89].mxu1  ;;  %v6492_v59 = vpop.f32.mrb[85].mxu0  ;;  %v11076_v53 = vcombine.high %v7776_v29, %v7780_v7  ;;  %v8319_v0 = vld [vmem:[#allocation9 + $0x1d28] sm:$0xff]  ;;  %v11103_v2 = vcombine.low %v8306_v16, %v8310_v15 }
 0x631   :  { %v12385_v17 = vadd.f32 %v6451_v43, %v12349_v19  ;;  %v12388_v49 = vadd.f32 %v6492_v59, %v12352_v62  ;;  %v6453_v60 = vpop.f32.mrb[90].mxu1  ;;  %v6494_v36 = vpop.f32.mrb[86].mxu0  ;;  %8200 = vmatpush1.bf16.msra.mxu1 %v11059_v33  ;;  %8241 = vmatpush1.bf16.msra.mxu0 %v11061_v12  ;;  %v11075_v19 = vcombine.low %v7776_v29, %v7780_v7  ;;  %v8315_v29 = vld [vmem:[#allocation9 + $0x1d08] sm:$0xff]  ;;  %v8322_v43 = vld [vmem:[#allocation9 + $0x1d40] sm:$0xff] }
 0x632   :  { %v6454_v40 = vpop.f32.mrb[91].mxu1  ;;  %v6495_v38 = vpop.f32.mrb[87].mxu0  ;;  %8201 = vmatprep.subr.bf16.mxu1 %v11068_v51  ;;  %8242 = vmatprep.subr.bf16.mxu0 %v11070_v61  ;;  %v11077_v62 = vcombine.low %v7777_v8, %v7781_v45  ;;  %v11104_v33 = vcombine.high %v8306_v16, %v8310_v15  ;;  %v11106_v12 = vcombine.high %v8307_v27, %v8311_v30  ;;  %v8314_v51 = vld [vmem:[#allocation9 + $0x1d00] sm:$0xff]  ;;  %v8327_v60 = vld [vmem:[#allocation9 + $0x1d68] sm:$0xff]  ;;  %v8284_v16 = vld [vmem:[#allocation9 + $0x1c10] sm:$0xff]  ;;  %v8351_v15 = vrot.slane %v8349_v4, 5 }
 0x633   :  { %v8318_v61 = vld [vmem:[#allocation9 + $0x1d20] sm:$0xff]  ;;  %v11105_v7 = vcombine.low %v8307_v27, %v8311_v30  ;;  %v11114_v45 = vcombine.high %v8315_v29, %v8319_v0  ;;  %v8285_v27 = vld [vmem:[#allocation9 + $0x1c18] sm:$0xff] }
 0x634   :  { %v11112_v8 = vcombine.high %v8314_v51, %v8318_v61  ;;  %v8326_v59 = vld [vmem:[#allocation9 + $0x1d60] sm:$0xff]  ;;  %v11111_v36 = vcombine.low %v8314_v51, %v8318_v61  ;;  %v8289_v30 = vld [vmem:[#allocation9 + $0x1c38] sm:$0xff]  ;;  %v8292_v51 = vld [vmem:[#allocation9 + $0x1c50] sm:$0xff] }
 0x635   :  { %8202 = vmatpush1.bf16.msra.mxu1 %v11067_v32  ;;  %8243 = vmatpush1.bf16.msra.mxu0 %v11069_v35  ;;  %v8323_v32 = vld [vmem:[#allocation9 + $0x1d48] sm:$0xff]  ;;  %v11113_v35 = vcombine.low %v8315_v29, %v8319_v0  ;;  %v11120_v40 = vcombine.high %v8322_v43, %v8326_v59  ;;  %v11119_v37 = vcombine.low %v8322_v43, %v8326_v59  ;;  %v8296_v29 = vld [vmem:[#allocation9 + $0x1c70] sm:$0xff]  ;;  %v8297_v4 = vld [vmem:[#allocation9 + $0x1c78] sm:$0xff] }
 0x636   :  { %8203 = vmatprep.subr.bf16.mxu1 %v11076_v53  ;;  %8244 = vmatprep.subr.bf16.mxu0 %v11078_v48  ;;  %v11122_v38 = vcombine.high %v8323_v32, %v8327_v60  ;;  %v8330_v53 = vld [vmem:[#allocation9 + $0x1d80] sm:$0xff]  ;;  %v11121_v47 = vcombine.low %v8323_v32, %v8327_v60  ;;  %v11092_v57 = vcombine.high %v8292_v51, %v8296_v29  ;;  %v8301_v43 = vld [vmem:[#allocation9 + $0x1c98] sm:$0xff] }
 0x637   :  { %v8334_v48 = vld [vmem:[#allocation9 + $0x1da0] sm:$0xff]  ;;  %v8305_v59 = vld [vmem:[#allocation9 + $0x1cb8] sm:$0xff]  ;;  %v11091_v32 = vcombine.low %v8292_v51, %v8296_v29  ;;  %v11093_v60 = vcombine.low %v8293_v46, %v8297_v4 }
 0x638   :  { %v11127_v42 = vcombine.low %v8330_v53, %v8334_v48  ;;  %v8341_v51 = vld [vmem:[#allocation9 + $0x1dd8] sm:$0xff] }
 0x639   :  { %8204 = vmatpush1.bf16.msra.mxu1 %v11075_v19  ;;  %8245 = vmatpush1.bf16.msra.mxu0 %v11077_v62  ;;  %v11128_v19 = vcombine.high %v8330_v53, %v8334_v48  ;;  %v11130_v62 = vcombine.high %v8331_v56, %v8335_v25  ;;  %v8309_v53 = vld [vmem:[#allocation9 + $0x1cd8] sm:$0xff] }
 0x63a   :  { %8675 = vmatprep.subr.bf16.mxu1 %v11080_v52  ;;  %8716 = vmatprep.subr.bf16.mxu0 %v11082_v23  ;;  %v8338_v52 = vld [vmem:[#allocation9 + $0x1dc0] sm:$0xff]  ;;  %v8313_v48 = vld [vmem:[#allocation9 + $0x1cf8] sm:$0xff] }
 0x63c   :  { %8222 = vmatmul.mubr.bf16.vlgmr.msra.gmra.mrb[116].mxu1 %v12372_v28  ;;  %8263 = vmatmul.mubr.bf16.vlgmr.msra.gmra.mrb[112].mxu0 %v12372_v28  ;;  %v11097_v28 = vcombine.low %v8299_v34, %v8303_v41 }
 0x63d   :  { %8676 = vmatpush1.bf16.msra.mxu1 %v11079_v63  ;;  %8717 = vmatpush1.bf16.msra.mxu0 %v11081_v26 }
 0x63e   :  { %8677 = vmatprep.subr.bf16.mxu1 %v11088_v54  ;;  %8718 = vmatprep.subr.bf16.mxu0 %v11090_v24 }
 0x63f   :  { %8707 = vmatprep.mubr.bf16.mxu1 %v11681_v21  ;;  %8748 = vmatprep.mubr.bf16.mxu0 %v11681_v21 }
 0x641   :  { %8678 = vmatpush1.bf16.msra.mxu1 %v11087_v58  ;;  %8719 = vmatpush1.bf16.msra.mxu0 %v11089_v11  ;;  %v11129_v11 = vcombine.low %v8331_v56, %v8335_v25  ;;  %v11101_v25 = vcombine.low %v8301_v43, %v8305_v59 }
 0x642   :  { %8679 = vmatprep.subr.bf16.mxu1 %v11096_v22  ;;  %8720 = vmatprep.subr.bf16.mxu0 %v11098_v6  ;;  %v11138_v6 = vcombine.high %v8339_v39, %v8343_v31 }
 0x645   :  { %8680 = vmatpush1.bf16.msra.mxu1 %v11095_v18  ;;  %8721 = vmatpush1.bf16.msra.mxu0 %v11097_v28  ;;  %v11137_v18 = vcombine.low %v8339_v39, %v8343_v31  ;;  %v8350_v28 = vrot.slane %v8348_v10, 6  ;;  %v11094_v10 = vcombine.high %v8293_v46, %v8297_v4 }
 0x646   :  { %8681 = vmatprep.subr.bf16.mxu1 %v11104_v33  ;;  %8722 = vmatprep.subr.bf16.mxu0 %v11106_v12  ;;  %v11086_v12 = vcombine.high %v8285_v27, %v8289_v30 }
 0x647   :  { %v8352_v61 = vsel %vm525_vm3, %v8351_v15, %v8350_v28  ;;  %v8337_v15 = vld [vmem:[#allocation9 + $0x1db8] sm:$0xff] }
 0x649   :  { %8682 = vmatpush1.bf16.msra.mxu1 %v11103_v2  ;;  %8723 = vmatpush1.bf16.msra.mxu0 %v11105_v7  ;;  %v11085_v2 = vcombine.low %v8285_v27, %v8289_v30  ;;  %v12411_v7 = vpack.c.b16 %v8352_v61, %v8352_v61  ;;  %v8345_v61 = vld [vmem:[#allocation9 + $0x1df8] sm:$0xff] }
 0x64a   :  { %8683 = vmatprep.subr.bf16.mxu1 %v11112_v8  ;;  %8724 = vmatprep.subr.bf16.mxu0 %v11114_v45  ;;  %v8300_v8 = vld [vmem:[#allocation9 + $0x1c90] sm:$0xff] }
 0x64b   :  { %v8304_v45 = vld [vmem:[#allocation9 + $0x1cb0] sm:$0xff] }
 0x64c   :  { %v11099_v56 = vcombine.low %v8300_v8, %v8304_v45 }
 0x64d   :  { %8684 = vmatpush1.bf16.msra.mxu1 %v11111_v36  ;;  %8725 = vmatpush1.bf16.msra.mxu0 %v11113_v35  ;;  %v11100_v36 = vcombine.high %v8300_v8, %v8304_v45  ;;  %v11102_v35 = vcombine.high %v8301_v43, %v8305_v59 }
 0x64e   :  { %8685 = vmatprep.subr.bf16.mxu1 %v11120_v40  ;;  %8726 = vmatprep.subr.bf16.mxu0 %v11122_v38  ;;  %v8308_v40 = vld [vmem:[#allocation9 + $0x1cd0] sm:$0xff] }
 0x64f   :  { %v6531_v23 = vpop.f32.mrb[92].mxu1  ;;  %v6572_v55 = vpop.f32.mrb[88].mxu0  ;;  %v8312_v38 = vld [vmem:[#allocation9 + $0x1cf0] sm:$0xff] }
 0x650   :  { %v12395_v63 = vadd.f32 %v6531_v23, %v12359_v50  ;;  %v12398_v26 = vadd.f32 %v6572_v55, %v12362_v1  ;;  %v6533_v54 = vpop.f32.mrb[93].mxu1  ;;  %v6574_v24 = vpop.f32.mrb[89].mxu0  ;;  %v11136_v1 = vcombine.high %v8338_v52, %v8342_v20  ;;  %v8321_v23 = vld [vmem:[#allocation9 + $0x1d38] sm:$0xff]  ;;  %v11107_v55 = vcombine.low %v8308_v40, %v8312_v38 }
 0x651   :  { %v12401_v13 = vadd.f32 %v6533_v54, %v12365_v5  ;;  %v12404_v34 = vadd.f32 %v6574_v24, %v12368_v9  ;;  %v6535_v41 = vpop.f32.mrb[94].mxu1  ;;  %v6576_v58 = vpop.f32.mrb[90].mxu0  ;;  %8686 = vmatpush1.bf16.msra.mxu1 %v11119_v37  ;;  %8727 = vmatpush1.bf16.msra.mxu0 %v11121_v47  ;;  %v8288_v5 = vld [vmem:[#allocation9 + $0x1c30] sm:$0xff]  ;;  %v11135_v9 = vcombine.low %v8338_v52, %v8342_v20  ;;  %v8317_v52 = vld [vmem:[#allocation9 + $0x1d18] sm:$0xff] }
 0x652   :  { %v6536_v22 = vpop.f32.mrb[95].mxu1  ;;  %v6577_v50 = vpop.f32.mrb[91].mxu0  ;;  %8687 = vmatprep.subr.bf16.mxu1 %v11128_v19  ;;  %8728 = vmatprep.subr.bf16.mxu0 %v11130_v62  ;;  %v11084_v33 = vcombine.high %v8284_v16, %v8288_v5  ;;  %v11083_v0 = vcombine.low %v8284_v16, %v8288_v5  ;;  %v11108_v37 = vcombine.high %v8308_v40, %v8312_v38  ;;  %v8316_v19 = vld [vmem:[#allocation9 + $0x1d10] sm:$0xff]  ;;  %v8329_v41 = vld [vmem:[#allocation9 + $0x1d78] sm:$0xff]  ;;  %v8853_v40 = vld [vmem:[#allocation9 + $0x1e28] sm:$0xff] }
 0x653   :  { %v11110_v47 = vcombine.high %v8309_v53, %v8313_v48  ;;  %v8320_v62 = vld [vmem:[#allocation9 + $0x1d30] sm:$0xff]  ;;  %v11109_v20 = vcombine.low %v8309_v53, %v8313_v48  ;;  %v11118_v31 = vcombine.high %v8317_v52, %v8321_v23  ;;  %v8333_v16 = vld [vmem:[#allocation9 + $0x1d98] sm:$0xff]  ;;  %v8856_v48 = vld [vmem:[#allocation9 + $0x1e40] sm:$0xff] }
 0x654   :  { %v11116_v39 = vcombine.high %v8316_v19, %v8320_v62  ;;  %v8324_v54 = vld [vmem:[#allocation9 + $0x1d50] sm:$0xff]  ;;  %v11115_v58 = vcombine.low %v8316_v19, %v8320_v62  ;;  %v11133_v43 = vcombine.low %v8333_v16, %v8337_v15 }
 0x655   :  { %8688 = vmatpush1.bf16.msra.mxu1 %v11127_v42  ;;  %8729 = vmatpush1.bf16.msra.mxu0 %v11129_v11  ;;  %v8328_v24 = vld [vmem:[#allocation9 + $0x1d70] sm:$0xff]  ;;  %v8325_v42 = vld [vmem:[#allocation9 + $0x1d58] sm:$0xff]  ;;  %v11117_v11 = vcombine.low %v8317_v52, %v8321_v23  ;;  %v8864_v23 = vld [vmem:[#allocation9 + $0x1e80] sm:$0xff] }
 0x656   :  { %8689 = vmatprep.subr.bf16.mxu1 %v11136_v1  ;;  %8730 = vmatprep.subr.bf16.mxu0 %v11138_v6  ;;  %v11124_v22 = vcombine.high %v8324_v54, %v8328_v24  ;;  %v11126_v50 = vcombine.high %v8325_v42, %v8329_v41  ;;  %v8332_v1 = vld [vmem:[#allocation9 + $0x1d90] sm:$0xff]  ;;  %v11123_v5 = vcombine.low %v8324_v54, %v8328_v24 }
 0x657   :  { %v8336_v6 = vld [vmem:[#allocation9 + $0x1db0] sm:$0xff]  ;;  %v11125_v27 = vcombine.low %v8325_v42, %v8329_v41  ;;  %v8872_v41 = vld [vmem:[#allocation9 + $0x1ec0] sm:$0xff] }
 0x658   :  { %v11132_v30 = vcombine.high %v8332_v1, %v8336_v6 }
 0x659   :  { %8690 = vmatpush1.bf16.msra.mxu1 %v11135_v9  ;;  %8731 = vmatpush1.bf16.msra.mxu0 %v11137_v18  ;;  %v11134_v9 = vcombine.high %v8333_v16, %v8337_v15  ;;  %v8340_v18 = vld [vmem:[#allocation9 + $0x1dd0] sm:$0xff]  ;;  %v8880_v16 = vld [vmem:[#allocation9 + $0x1f00] sm:$0xff] }
 0x65a   :  { %8757 = vmatprep.subr.bf16.mxu1 %v11084_v33  ;;  %8798 = vmatprep.subr.bf16.mxu0 %v11086_v12  ;;  %v8344_v12 = vld [vmem:[#allocation9 + $0x1df0] sm:$0xff]  ;;  %v8884_v15 = vld [vmem:[#allocation9 + $0x1f20] sm:$0xff] }
 0x65c   :  { %8708 = vmatmul.mubr.bf16.vlgmr.msra.gmra.mrb[120].mxu1 %v12411_v7  ;;  %8749 = vmatmul.mubr.bf16.vlgmr.msra.gmra.mrb[116].mxu0 %v12411_v7 }
 0x65d   :  { %8758 = vmatpush1.bf16.msra.mxu1 %v11083_v0  ;;  %8799 = vmatpush1.bf16.msra.mxu0 %v11085_v2  ;;  %v11131_v2 = vcombine.low %v8332_v1, %v8336_v6 }
 0x65e   :  { %8759 = vmatprep.subr.bf16.mxu1 %v11092_v57  ;;  %8800 = vmatprep.subr.bf16.mxu0 %v11094_v10 }
 0x65f   :  { %8789 = vmatprep.mubr.bf16.mxu1 %v11681_v21  ;;  %8830 = vmatprep.mubr.bf16.mxu0 %v11681_v21 }
 0x661   :  { %8760 = vmatpush1.bf16.msra.mxu1 %v11091_v32  ;;  %8801 = vmatpush1.bf16.msra.mxu0 %v11093_v60  ;;  %v11142_v32 = vcombine.high %v8341_v51, %v8345_v61  ;;  %v8848_v60 = vld [vmem:[#allocation9 + $0x1e00] sm:$0xff] }
 0x662   :  { %8761 = vmatprep.subr.bf16.mxu1 %v11100_v36  ;;  %8802 = vmatprep.subr.bf16.mxu0 %v11102_v35  ;;  %v8852_v36 = vld [vmem:[#allocation9 + $0x1e20] sm:$0xff]  ;;  %v8849_v35 = vld [vmem:[#allocation9 + $0x1e08] sm:$0xff] }
 0x663   :  { %v11144_v38 = vcombine.high %v8848_v60, %v8852_v36  ;;  %v11146_v53 = vcombine.high %v8849_v35, %v8853_v40  ;;  %v11145_v19 = vcombine.low %v8849_v35, %v8853_v40  ;;  %v8904_v35 = vld [vmem:[#allocation9 + $0x1fc0] sm:$0xff] }
 0x665   :  { %8762 = vmatpush1.bf16.msra.mxu1 %v11099_v56  ;;  %8803 = vmatpush1.bf16.msra.mxu0 %v11101_v25  ;;  %v8860_v56 = vld [vmem:[#allocation9 + $0x1e60] sm:$0xff]  ;;  %v8857_v25 = vld [vmem:[#allocation9 + $0x1e48] sm:$0xff] }
 0x666   :  { %8763 = vmatprep.subr.bf16.mxu1 %v11108_v37  ;;  %8804 = vmatprep.subr.bf16.mxu0 %v11110_v47  ;;  %v8861_v37 = vld [vmem:[#allocation9 + $0x1e68] sm:$0xff]  ;;  %v11143_v47 = vcombine.low %v8848_v60, %v8852_v36  ;;  %v11152_v62 = vcombine.high %v8856_v48, %v8860_v56 }
 0x667   :  { %v11154_v52 = vcombine.high %v8857_v25, %v8861_v37  ;;  %v11153_v54 = vcombine.low %v8857_v25, %v8861_v37 }
 0x669   :  { %8764 = vmatpush1.bf16.msra.mxu1 %v11107_v55  ;;  %8805 = vmatpush1.bf16.msra.mxu0 %v11109_v20  ;;  %v8868_v55 = vld [vmem:[#allocation9 + $0x1ea0] sm:$0xff]  ;;  %v8865_v20 = vld [vmem:[#allocation9 + $0x1e88] sm:$0xff] }
 0x66a   :  { %8765 = vmatprep.subr.bf16.mxu1 %v11116_v39  ;;  %8806 = vmatprep.subr.bf16.mxu0 %v11118_v31  ;;  %v8869_v39 = vld [vmem:[#allocation9 + $0x1ea8] sm:$0xff]  ;;  %v11151_v31 = vcombine.low %v8856_v48, %v8860_v56  ;;  %v11160_v24 = vcombine.high %v8864_v23, %v8868_v55 }
 0x66b   :  { %v11162_v42 = vcombine.high %v8865_v20, %v8869_v39 }
 0x66d   :  { %8766 = vmatpush1.bf16.msra.mxu1 %v11115_v58  ;;  %8807 = vmatpush1.bf16.msra.mxu0 %v11117_v11  ;;  %v8876_v58 = vld [vmem:[#allocation9 + $0x1ee0] sm:$0xff]  ;;  %v8873_v11 = vld [vmem:[#allocation9 + $0x1ec8] sm:$0xff] }
 0x66e   :  { %8767 = vmatprep.subr.bf16.mxu1 %v11124_v22  ;;  %8808 = vmatprep.subr.bf16.mxu0 %v11126_v50  ;;  %v8877_v22 = vld [vmem:[#allocation9 + $0x1ee8] sm:$0xff]  ;;  %v11159_v50 = vcombine.low %v8864_v23, %v8868_v55  ;;  %v11168_v1 = vcombine.high %v8872_v41, %v8876_v58 }
 0x66f   :  { %v7011_v28 = vpop.f32.mrb[96].mxu1  ;;  %v7052_v33 = vpop.f32.mrb[92].mxu0  ;;  %v11170_v6 = vcombine.high %v8873_v11, %v8877_v22 }
 0x670   :  { %v12418_v29 = vadd.f32 %v7011_v28, %v12379_v3  ;;  %v12421_v46 = vadd.f32 %v7052_v33, %v12382_v14  ;;  %v7013_v4 = vpop.f32.mrb[97].mxu1  ;;  %v7054_v0 = vpop.f32.mrb[93].mxu0  ;;  %v11140_v14 = vcombine.high %v8340_v18, %v8344_v12  ;;  %v8888_v33 = vld [vmem:[#allocation9 + $0x1f40] sm:$0xff] }
 0x671   :  { %v12424_v57 = vadd.f32 %v7013_v4, %v12385_v17  ;;  %v12427_v10 = vadd.f32 %v7054_v0, %v12388_v49  ;;  %v7015_v8 = vpop.f32.mrb[98].mxu1  ;;  %v7056_v45 = vpop.f32.mrb[94].mxu0  ;;  %8768 = vmatpush1.bf16.msra.mxu1 %v11123_v5  ;;  %8809 = vmatpush1.bf16.msra.mxu0 %v11125_v27  ;;  %v11139_v17 = vcombine.low %v8340_v18, %v8344_v12  ;;  %v8881_v5 = vld [vmem:[#allocation9 + $0x1f08] sm:$0xff]  ;;  %v8892_v12 = vld [vmem:[#allocation9 + $0x1f60] sm:$0xff] }
 0x672   :  { %v7016_v59 = vpop.f32.mrb[99].mxu1  ;;  %v7057_v3 = vpop.f32.mrb[95].mxu0  ;;  %8769 = vmatprep.subr.bf16.mxu1 %v11132_v30  ;;  %8810 = vmatprep.subr.bf16.mxu0 %v11134_v9  ;;  %v11141_v49 = vcombine.low %v8341_v51, %v8345_v61  ;;  %v8885_v27 = vld [vmem:[#allocation9 + $0x1f28] sm:$0xff]  ;;  %v11167_v30 = vcombine.low %v8872_v41, %v8876_v58  ;;  %v11169_v9 = vcombine.low %v8873_v11, %v8877_v22  ;;  %v8896_v45 = vld [vmem:[#allocation9 + $0x1f80] sm:$0xff]  ;;  %v8858_v11 = vld [vmem:[#allocation9 + $0x1e50] sm:$0xff] }
 0x673   :  { %v11176_v18 = vcombine.high %v8880_v16, %v8884_v15  ;;  %v11178_v28 = vcombine.high %v8881_v5, %v8885_v27  ;;  %v8889_v51 = vld [vmem:[#allocation9 + $0x1f48] sm:$0xff]  ;;  %v11175_v4 = vcombine.low %v8880_v16, %v8884_v15  ;;  %v11177_v0 = vcombine.low %v8881_v5, %v8885_v27  ;;  %v8862_v22 = vld [vmem:[#allocation9 + $0x1e70] sm:$0xff] }
 0x674   :  { %v8893_v61 = vld [vmem:[#allocation9 + $0x1f68] sm:$0xff]  ;;  %v12447_v16 = vpack.c.b16 %v11970_v44, %v11970_v44  ;;  %v11156_v15 = vcombine.high %v8858_v11, %v8862_v22  ;;  %v8866_v27 = vld [vmem:[#allocation9 + $0x1e90] sm:$0xff] }
 0x675   :  { %8770 = vmatpush1.bf16.msra.mxu1 %v11131_v2  ;;  %8811 = vmatpush1.bf16.msra.mxu0 %v11133_v43  ;;  %v11184_v2 = vcombine.high %v8888_v33, %v8892_v12  ;;  %v11186_v8 = vcombine.high %v8889_v51, %v8893_v61  ;;  %v8900_v43 = vld [vmem:[#allocation9 + $0x1fa0] sm:$0xff]  ;;  %v8897_v59 = vld [vmem:[#allocation9 + $0x1f88] sm:$0xff] }
 0x676   :  { %8771 = vmatprep.subr.bf16.mxu1 %v11140_v14  ;;  %8812 = vmatprep.subr.bf16.mxu0 %v11142_v32  ;;  %v8901_v3 = vld [vmem:[#allocation9 + $0x1fa8] sm:$0xff]  ;;  %v11183_v14 = vcombine.low %v8888_v33, %v8892_v12  ;;  %v11185_v32 = vcombine.low %v8889_v51, %v8893_v61  ;;  %v11192_v60 = vcombine.high %v8896_v45, %v8900_v43  ;;  %v8874_v51 = vld [vmem:[#allocation9 + $0x1ed0] sm:$0xff] }
 0x677   :  { %v11194_v36 = vcombine.high %v8897_v59, %v8901_v3  ;;  %v11193_v55 = vcombine.low %v8897_v59, %v8901_v3  ;;  %v8878_v61 = vld [vmem:[#allocation9 + $0x1ef0] sm:$0xff] }
 0x678   :  { %v8882_v59 = vld [vmem:[#allocation9 + $0x1f10] sm:$0xff] }
 0x679   :  { %8772 = vmatpush1.bf16.msra.mxu1 %v11139_v17  ;;  %8813 = vmatpush1.bf16.msra.mxu0 %v11141_v49  ;;  %v8908_v49 = vld [vmem:[#allocation9 + $0x1fe0] sm:$0xff]  ;;  %v8886_v3 = vld [vmem:[#allocation9 + $0x1f30] sm:$0xff] }
 0x67a   :  { %9237 = vmatprep.subr.bf16.mxu1 %v11144_v38  ;;  %9278 = vmatprep.subr.bf16.mxu0 %v11146_v53  ;;  %v8905_v38 = vld [vmem:[#allocation9 + $0x1fc8] sm:$0xff] }
 0x67b   :  { %v8909_v53 = vld [vmem:[#allocation9 + $0x1fe8] sm:$0xff] }
 0x67c   :  { %8790 = vmatmul.mubr.bf16.vlgmr.msra.gmra.mrb[124].mxu1 %v12411_v7  ;;  %8831 = vmatmul.mubr.bf16.vlgmr.msra.gmra.mrb[120].mxu0 %v12411_v7  ;;  %v11161_v7 = vcombine.low %v8865_v20, %v8869_v39  ;;  %v11202_v39 = vcombine.high %v8905_v38, %v8909_v53 }
 0x67d   :  { %9238 = vmatpush1.bf16.msra.mxu1 %v11143_v47  ;;  %9279 = vmatpush1.bf16.msra.mxu0 %v11145_v19  ;;  %v11191_v47 = vcombine.low %v8896_v45, %v8900_v43  ;;  %v11172_v45 = vcombine.high %v8874_v51, %v8878_v61 }
 0x67e   :  { %9239 = vmatprep.subr.bf16.mxu1 %v11152_v62  ;;  %9280 = vmatprep.subr.bf16.mxu0 %v11154_v52 }
 0x67f   :  { %9269 = vmatprep.mubr.bf16.mxu1 %v11681_v21  ;;  %9310 = vmatprep.mubr.bf16.mxu0 %v11681_v21 }
 0x681   :  { %9240 = vmatpush1.bf16.msra.mxu1 %v11151_v31  ;;  %9281 = vmatpush1.bf16.msra.mxu0 %v11153_v54  ;;  %v8850_v31 = vld [vmem:[#allocation9 + $0x1e10] sm:$0xff] }
 0x682   :  { %9241 = vmatprep.subr.bf16.mxu1 %v11160_v24  ;;  %9282 = vmatprep.subr.bf16.mxu0 %v11162_v42  ;;  %v8854_v54 = vld [vmem:[#allocation9 + $0x1e30] sm:$0xff]  ;;  %v8851_v24 = vld [vmem:[#allocation9 + $0x1e18] sm:$0xff] }
 0x683   :  { %v8855_v42 = vld [vmem:[#allocation9 + $0x1e38] sm:$0xff]  ;;  %v11148_v41 = vcombine.high %v8850_v31, %v8854_v54 }
 0x684   :  { %v11150_v58 = vcombine.high %v8851_v24, %v8855_v42 }
 0x685   :  { %9242 = vmatpush1.bf16.msra.mxu1 %v11159_v50  ;;  %9283 = vmatpush1.bf16.msra.mxu0 %v11161_v7  ;;  %v8859_v50 = vld [vmem:[#allocation9 + $0x1e58] sm:$0xff] }
 0x686   :  { %9243 = vmatprep.subr.bf16.mxu1 %v11168_v1  ;;  %9284 = vmatprep.subr.bf16.mxu0 %v11170_v6  ;;  %v8863_v7 = vld [vmem:[#allocation9 + $0x1e78] sm:$0xff]  ;;  %v11147_v1 = vcombine.low %v8850_v31, %v8854_v54  ;;  %v11149_v6 = vcombine.low %v8851_v24, %v8855_v42  ;;  %v8906_v54 = vld [vmem:[#allocation9 + $0x1fd0] sm:$0xff] }
 0x687   :  { %v11158_v5 = vcombine.high %v8859_v50, %v8863_v7  ;;  %v11157_v33 = vcombine.low %v8859_v50, %v8863_v7 }
 0x689   :  { %9244 = vmatpush1.bf16.msra.mxu1 %v11167_v30  ;;  %9285 = vmatpush1.bf16.msra.mxu0 %v11169_v9  ;;  %v8870_v30 = vld [vmem:[#allocation9 + $0x1eb0] sm:$0xff]  ;;  %v8867_v9 = vld [vmem:[#allocation9 + $0x1e98] sm:$0xff] }
 0x68a   :  { %9245 = vmatprep.subr.bf16.mxu1 %v11176_v18  ;;  %9286 = vmatprep.subr.bf16.mxu0 %v11178_v28  ;;  %v8871_v18 = vld [vmem:[#allocation9 + $0x1eb8] sm:$0xff]  ;;  %v11155_v28 = vcombine.low %v8858_v11, %v8862_v22  ;;  %v11164_v44 = vcombine.high %v8866_v27, %v8870_v30 }
 0x68b   :  { %v11166_v12 = vcombine.high %v8867_v9, %v8871_v18 }
 0x68d   :  { %9246 = vmatpush1.bf16.msra.mxu1 %v11175_v4  ;;  %9287 = vmatpush1.bf16.msra.mxu0 %v11177_v0  ;;  %v8875_v4 = vld [vmem:[#allocation9 + $0x1ed8] sm:$0xff] }
 0x68e   :  { %9247 = vmatprep.subr.bf16.mxu1 %v11184_v2  ;;  %9288 = vmatprep.subr.bf16.mxu0 %v11186_v8  ;;  %v8879_v0 = vld [vmem:[#allocation9 + $0x1ef8] sm:$0xff]  ;;  %v11163_v2 = vcombine.low %v8866_v27, %v8870_v30  ;;  %v11165_v8 = vcombine.low %v8867_v9, %v8871_v18 }
 0x68f   :  { %v7093_v40 = vpop.f32.mrb[100].mxu1  ;;  %v7134_v17 = vpop.f32.mrb[96].mxu0  ;;  %v11174_v43 = vcombine.high %v8875_v4, %v8879_v0 }
 0x690   :  { %v12434_v48 = vadd.f32 %v7093_v40, %v12395_v63  ;;  %v12437_v56 = vadd.f32 %v7134_v17, %v12398_v26  ;;  %v7095_v25 = vpop.f32.mrb[101].mxu1  ;;  %v7136_v37 = vpop.f32.mrb[97].mxu0  ;;  %v11200_v26 = vcombine.high %v8904_v35, %v8908_v49  ;;  %v8890_v40 = vld [vmem:[#allocation9 + $0x1f50] sm:$0xff] }
 0x691   :  { %v12440_v19 = vadd.f32 %v7095_v25, %v12401_v13  ;;  %v12443_v62 = vadd.f32 %v7136_v37, %v12404_v34  ;;  %v7097_v52 = vpop.f32.mrb[102].mxu1  ;;  %v7138_v23 = vpop.f32.mrb[98].mxu0  ;;  %9248 = vmatpush1.bf16.msra.mxu1 %v11183_v14  ;;  %9289 = vmatpush1.bf16.msra.mxu0 %v11185_v32  ;;  %v11199_v13 = vcombine.low %v8904_v35, %v8908_v49  ;;  %v8883_v14 = vld [vmem:[#allocation9 + $0x1f18] sm:$0xff]  ;;  %v8894_v17 = vld [vmem:[#allocation9 + $0x1f70] sm:$0xff] }
 0x692   :  { %v7098_v20 = vpop.f32.mrb[103].mxu1  ;;  %v7139_v63 = vpop.f32.mrb[99].mxu0  ;;  %9249 = vmatprep.subr.bf16.mxu1 %v11192_v60  ;;  %9290 = vmatprep.subr.bf16.mxu0 %v11194_v36  ;;  %v11201_v34 = vcombine.low %v8905_v38, %v8909_v53  ;;  %v8887_v32 = vld [vmem:[#allocation9 + $0x1f38] sm:$0xff]  ;;  %v11171_v60 = vcombine.low %v8874_v51, %v8878_v61  ;;  %v11173_v36 = vcombine.low %v8875_v4, %v8879_v0  ;;  %v8898_v52 = vld [vmem:[#allocation9 + $0x1f90] sm:$0xff] }
 0x693   :  { %v11180_v35 = vcombine.high %v8882_v59, %v8886_v3  ;;  %v8891_v49 = vld [vmem:[#allocation9 + $0x1f58] sm:$0xff]  ;;  %v11179_v53 = vcombine.low %v8882_v59, %v8886_v3  ;;  %v11181_v25 = vcombine.low %v8883_v14, %v8887_v32  ;;  %v11188_v37 = vcombine.high %v8890_v40, %v8894_v17  ;;  %v8902_v23 = vld [vmem:[#allocation9 + $0x1fb0] sm:$0xff]  ;;  %v11418_v59 = vld [vmem:[#allocation12] sm:$0xff]  }
 0x694   :  { %v8895_v38 = vld [vmem:[#allocation9 + $0x1f78] sm:$0xff]  ;;  %v11187_v63 = vcombine.low %v8890_v40, %v8894_v17  ;;  %v11195_v7 = vcombine.low %v8898_v52, %v8902_v23  ;;  %v11420_v3 = vld [vmem:[#allocation12 + $0x48] sm:$0xff]   ;;  %v11430_v40 = vld [vmem:[#allocation12 + $0x18] sm:$0xff]  }
 0x695   :  { %9250 = vmatpush1.bf16.msra.mxu1 %v11191_v47  ;;  %9291 = vmatpush1.bf16.msra.mxu0 %v11193_v55  ;;  %v11190_v47 = vcombine.high %v8891_v49, %v8895_v38  ;;  %v8899_v55 = vld [vmem:[#allocation9 + $0x1f98] sm:$0xff]  ;;  %v11431_v17 = vld [vmem:[#allocation12 + $0x98] sm:$0xff]  }
 0x696   :  { %9251 = vmatprep.subr.bf16.mxu1 %v11200_v26  ;;  %9292 = vmatprep.subr.bf16.mxu0 %v11202_v39  ;;  %v8903_v20 = vld [vmem:[#allocation9 + $0x1fb8] sm:$0xff]  ;;  %v11189_v26 = vcombine.low %v8891_v49, %v8895_v38  ;;  %v11196_v39 = vcombine.high %v8898_v52, %v8902_v23  ;;  %v11432_v49 = vld [vmem:[#allocation12 + $0x60] sm:$0xff]  }
 0x697   :  { %v11198_v31 = vcombine.high %v8899_v55, %v8903_v20  ;;  %v11197_v27 = vcombine.low %v8899_v55, %v8903_v20  ;;  %v11433_v38 = vld [vmem:[#allocation12 + $0xe0] sm:$0xff]  }
 0x699   :  { %9252 = vmatpush1.bf16.msra.mxu1 %v11199_v13  ;;  %9293 = vmatpush1.bf16.msra.mxu0 %v11201_v34  ;;  %v8910_v13 = vld [vmem:[#allocation9 + $0x1ff0] sm:$0xff]  ;;  %v8907_v34 = vld [vmem:[#allocation9 + $0x1fd8] sm:$0xff] }
 0x69a   :  { %9319 = vmatprep.subr.bf16.mxu1 %v11148_v41  ;;  %9360 = vmatprep.subr.bf16.mxu0 %v11150_v58  ;;  %v8911_v41 = vld [vmem:[#allocation9 + $0x1ff8] sm:$0xff]  ;;  %v11203_v18 = vcombine.low %v8906_v54, %v8910_v13 }
 0x69b   :  { %v11206_v9 = vcombine.high %v8907_v34, %v8911_v41 }
 0x69c   :  { %9270 = vmatmul.mubr.bf16.vlgmr.msra.gmra.mrb[128].mxu1 %v12447_v16  ;;  %9311 = vmatmul.mubr.bf16.vlgmr.msra.gmra.mrb[124].mxu0 %v12447_v16 }
 0x69d   :  { %9320 = vmatpush1.bf16.msra.mxu1 %v11147_v1  ;;  %9361 = vmatpush1.bf16.msra.mxu0 %v11149_v6 }
 0x69e   :  { %9321 = vmatprep.subr.bf16.mxu1 %v11156_v15  ;;  %9362 = vmatprep.subr.bf16.mxu0 %v11158_v5 }
 0x69f   :  { %9351 = vmatprep.mubr.bf16.mxu1 %v11681_v21  ;;  %9392 = vmatprep.mubr.bf16.mxu0 %v11681_v21  ;;  %v11182_v21 = vcombine.high %v8883_v14, %v8887_v32  ;;  %v11421_v14 = vld [vmem:[#allocation12 + $0xc8] sm:$0xff]   ;;  %v11425_v32 = vld [vmem:[#allocation12 + $0xd0] sm:$0xff]  }
 0x6a1   :  { %9322 = vmatpush1.bf16.msra.mxu1 %v11155_v28  ;;  %9363 = vmatpush1.bf16.msra.mxu0 %v11157_v33  ;;  %v11205_v28 = vcombine.low %v8907_v34, %v8911_v41  ;;  %v11438_v34 = vld [vmem:[#allocation12 + $0x28] sm:$0xff]  }
 0x6a2   :  { %9323 = vmatprep.subr.bf16.mxu1 %v11164_v44  ;;  %9364 = vmatprep.subr.bf16.mxu0 %v11166_v12  ;;  %v11439_v41 = vld [vmem:[#allocation12 + $0xa8] sm:$0xff]  }
 0x6a5   :  { %9324 = vmatpush1.bf16.msra.mxu1 %v11163_v2  ;;  %9365 = vmatpush1.bf16.msra.mxu0 %v11165_v8 }
 0x6a6   :  { %9325 = vmatprep.subr.bf16.mxu1 %v11172_v45  ;;  %9366 = vmatprep.subr.bf16.mxu0 %v11174_v43  ;;  %v11416_v45 = vld [vmem:[#allocation12 + $0x40] sm:$0xff]  }
 0x6a7   :  { %v11417_v43 = vld [vmem:[#allocation12 + $0xc0] sm:$0xff]  }
 0x6a9   :  { %9326 = vmatpush1.bf16.msra.mxu1 %v11171_v60  ;;  %9367 = vmatpush1.bf16.msra.mxu0 %v11173_v36  ;;  %v11426_v60 = vld [vmem:[#allocation12 + $0x10] sm:$0xff]  }
 0x6aa   :  { %9327 = vmatprep.subr.bf16.mxu1 %v11180_v35  ;;  %9368 = vmatprep.subr.bf16.mxu0 %v11182_v21  ;;  %v11427_v36 = vld [vmem:[#allocation12 + $0x90] sm:$0xff]   ;;  %v11428_v35 = vld [vmem:[#allocation12 + $0x58] sm:$0xff]  }
 0x6ab   :  { %v11429_v21 = vld [vmem:[#allocation12 + $0xd8] sm:$0xff]  }
 0x6ad   :  { %9328 = vmatpush1.bf16.msra.mxu1 %v11179_v53  ;;  %9369 = vmatpush1.bf16.msra.mxu0 %v11181_v25  ;;  %v11434_v53 = vld [vmem:[#allocation12 + $0x20] sm:$0xff]  }
 0x6ae   :  { %9329 = vmatprep.subr.bf16.mxu1 %v11188_v37  ;;  %9370 = vmatprep.subr.bf16.mxu0 %v11190_v47  ;;  %v11435_v25 = vld [vmem:[#allocation12 + $0xa0] sm:$0xff]   ;;  %v11436_v37 = vld [vmem:[#allocation12 + $0x68] sm:$0xff]  }
 0x6af   :  { %v7579_v24 = vpop.f32.mrb[104].mxu1  ;;  %v7620_v42 = vpop.f32.mrb[100].mxu0  ;;  %v11437_v47 = vld [vmem:[#allocation12 + $0xe8] sm:$0xff]  }
 0x6b0   :  { %v12454_v58 = vadd.f32 %v7579_v24, %v12418_v29  ;;  %v12457_v11 = vadd.f32 %v7620_v42, %v12421_v46  ;;  %v7581_v22 = vpop.f32.mrb[105].mxu1  ;;  %v7622_v50 = vpop.f32.mrb[101].mxu0  ;;  %v11204_v46 = vcombine.high %v8906_v54, %v8910_v13 }
 0x6b1   :  { %v12460_v1 = vadd.f32 %v7581_v22, %v12424_v57  ;;  %v12463_v6 = vadd.f32 %v7622_v50, %v12427_v10  ;;  %v7583_v15 = vpop.f32.mrb[106].mxu1  ;;  %v7624_v5 = vpop.f32.mrb[102].mxu0  ;;  %9330 = vmatpush1.bf16.msra.mxu1 %v11187_v63  ;;  %9371 = vmatpush1.bf16.msra.mxu0 %v11189_v26  ;;  %v11440_v22 = vld [vmem:[#allocation12 + $0x70] sm:$0xff]  }
 0x6b2   :  { %v7584_v30 = vpop.f32.mrb[107].mxu1  ;;  %v7625_v29 = vpop.f32.mrb[103].mxu0  ;;  %9331 = vmatprep.subr.bf16.mxu1 %v11196_v39  ;;  %9372 = vmatprep.subr.bf16.mxu0 %v11198_v31  ;;  %v11441_v50 = vld [vmem:[#allocation12 + $0xf0] sm:$0xff]   ;;  %v11445_v15 = vld [vmem:[#allocation12 + $0xf8] sm:$0xff]   ;;  %v11448_v5 = vld [vmem:[#allocation12 + $0x140] sm:$0xff]  }
 0x6b5   :  { %9332 = vmatpush1.bf16.msra.mxu1 %v11195_v7  ;;  %9373 = vmatpush1.bf16.msra.mxu0 %v11197_v27  ;;  %v11442_v7 = vld [vmem:[#allocation12 + $0x30] sm:$0xff]   ;;  %v11449_v27 = vld [vmem:[#allocation12 + $0x1c0] sm:$0xff]  }
 0x6b6   :  { %9333 = vmatprep.subr.bf16.mxu1 %v11204_v46  ;;  %9374 = vmatprep.subr.bf16.mxu0 %v11206_v9 }
 0x6b9   :  { %9334 = vmatpush1.bf16.msra.mxu1 %v11203_v18  ;;  %9375 = vmatpush1.bf16.msra.mxu0 %v11205_v28 }
 0x6ba   :  { %11282 = vmatprep.subr.bf16.mxu1 %v11416_v45  ;;  %11304 = vmatprep.subr.bf16.mxu0 %v11417_v43 }
 0x6bc   :  { %9352 = vmatmul.mubr.bf16.vlgmr.msra.gmra.mrb[132].mxu1 %v12447_v16  ;;  %9393 = vmatmul.mubr.bf16.vlgmr.msra.gmra.mrb[128].mxu0 %v12447_v16 }
 0x6bd   :  { %11283 = vmatpush3.bf16.msra.mxu1 %v11418_v59 }
 0x6be   :  { %11284 = vmatprep.subr.bf16.mxu1 %v11420_v3 }
 0x6cf   :  { %v7661_v57 = vpop.f32.mrb[108].mxu1  ;;  %v7702_v10 = vpop.f32.mrb[104].mxu0 }
 0x6d0   :  { %v12468_v33 = vadd.f32 %v7661_v57, %v12434_v48  ;;  %v12471_v44 = vadd.f32 %v7702_v10, %v12437_v56  ;;  %v7663_v12 = vpop.f32.mrb[109].mxu1  ;;  %v7704_v51 = vpop.f32.mrb[105].mxu0  ;;  %v11419_v48 = vld [vmem:[#allocation12 + $0x80] sm:$0xff]   ;;  %v11422_v56 = vld [vmem:[#allocation12 + $0x8] sm:$0xff]  }
 0x6d1   :  { %v12474_v61 = vadd.f32 %v7663_v12, %v12440_v19  ;;  %v12477_v4 = vadd.f32 %v7704_v51, %v12443_v62  ;;  %v7665_v0 = vpop.f32.mrb[110].mxu1  ;;  %v7706_v2 = vpop.f32.mrb[106].mxu0  ;;  %11305 = vmatpush3.bf16.msra.mxu0 %v11419_v48  ;;  %v11423_v19 = vld [vmem:[#allocation12 + $0x88] sm:$0xff]   ;;  %v11424_v62 = vld [vmem:[#allocation12 + $0x50] sm:$0xff]   ;;  %11285 = vmatpush3.bf16.msra.mxu1 %v11422_v56 }
 0x6d2   :  { %v7666_v8 = vpop.f32.mrb[111].mxu1  ;;  %v7707_v16 = vpop.f32.mrb[107].mxu0  ;;  %11306 = vmatprep.subr.bf16.mxu0 %v11421_v14  ;;  %11286 = vmatprep.subr.bf16.mxu1 %v11424_v62 }
 0x6d5   :  { %11307 = vmatpush3.bf16.msra.mxu0 %v11423_v19  ;;  %11287 = vmatpush3.bf16.msra.mxu1 %v11426_v60 }
 0x6d6   :  { %11308 = vmatprep.subr.bf16.mxu0 %v11425_v32  ;;  %11288 = vmatprep.subr.bf16.mxu1 %v11428_v35 }
 0x6d9   :  { %11309 = vmatpush3.bf16.msra.mxu0 %v11427_v36  ;;  %11289 = vmatpush3.bf16.msra.mxu1 %v11430_v40 }
 0x6da   :  { %11310 = vmatprep.subr.bf16.mxu0 %v11429_v21  ;;  %11290 = vmatprep.subr.bf16.mxu1 %v11432_v49 }
 0x6dd   :  { %11311 = vmatpush3.bf16.msra.mxu0 %v11431_v17  ;;  %11291 = vmatpush3.bf16.msra.mxu1 %v11434_v53  ;;  %v9411_v53 = vlaneseq }
 0x6de   :  { %11312 = vmatprep.subr.bf16.mxu0 %v11433_v38  ;;  %11292 = vmatprep.subr.bf16.mxu1 %v11436_v37 }
 0x6e1   :  { %11313 = vmatpush3.bf16.msra.mxu0 %v11435_v25  ;;  %11293 = vmatpush3.bf16.msra.mxu1 %v11438_v34  ;;  %v12495_v25 = vshrl.u32 %v9411_v53, 7 }
 0x6e2   :  { %11314 = vmatprep.subr.bf16.mxu0 %v11437_v47  ;;  %11294 = vmatprep.subr.bf16.mxu1 %v11440_v22 }
 0x6e3   :  { %v9413_v37 = vsub.s32 0, %v12495_v25  ;;  %v9421_v47 = vsub.s32 2, %v12495_v25  ;;  %v9441_v53 = vsub.s32 7, %v12495_v25 }
 0x6e5   :  { %11315 = vmatpush3.bf16.msra.mxu0 %v11439_v41  ;;  %11295 = vmatpush3.bf16.msra.mxu1 %v11442_v7 }
 0x6e6   :  { %11316 = vmatprep.subr.bf16.mxu0 %v11441_v50 }
 0x6ef   :  { %v8141_v52 = vpop.f32.mrb[112].mxu1  ;;  %v8182_v23 = vpop.f32.mrb[108].mxu0 }
 0x6f0   :  { %v8271_v55 = vadd.f32 %v8141_v52, %v12454_v58  ;;  %v8273_v20 = vadd.f32 %v8182_v23, %v12457_v11  ;;  %v8143_v63 = vpop.f32.mrb[113].mxu1  ;;  %v8184_v26 = vpop.f32.mrb[109].mxu0  ;;  %v11443_v58 = vld [vmem:[#allocation12 + $0xb0] sm:$0xff]   ;;  %v11444_v11 = vld [vmem:[#allocation12 + $0x78] sm:$0xff]   ;;  %v9417_v23 = vsub.s32 1, %v12495_v25 }
 0x6f1   :  { %v8272_v39 = vadd.f32 %v8143_v63, %v12460_v1  ;;  %v8274_v31 = vadd.f32 %v8184_v26, %v12463_v6  ;;  %v8145_v54 = vpop.f32.mrb[114].mxu1  ;;  %v8186_v24 = vpop.f32.mrb[110].mxu0  ;;  %11317 = vmatpush3.bf16.msra.mxu0 %v11443_v58  ;;  %v11446_v1 = vld [vmem:[#allocation12 + $0x38] sm:$0xff]   ;;  %11296 = vmatprep.subr.bf16.mxu1 %v11444_v11 }
 0x6f2   :  { %v8146_v42 = vpop.f32.mrb[115].mxu1  ;;  %v8187_v13 = vpop.f32.mrb[111].mxu0  ;;  %v11447_v6 = vld [vmem:[#allocation12 + $0xb8] sm:$0xff]   ;;  %11318 = vmatprep.subr.bf16.mxu0 %v11445_v15  ;;  %11297 = vmatpush3.bf16.msra.mxu1 %v11446_v1 }
 0x6f3   :  { %11326 = vmatprep.subr.bf16.mxu1 %v11448_v5  ;;  %v12499_v52 = vld [vmem:[#allocation11] sm:$0xff] }
 0x6f4   :  { %v9422_v63 = vrot.slane %v12499_v52, %v9421_v47  ;;  %v11473_v47 = vld [vmem:[#allocation12 + $0x1f0] sm:$0xff]  }
 0x6f5   :  { %11319 = vmatpush3.bf16.msra.mxu0 %v11447_v6 }
 0x6f6   :  { %11348 = vmatprep.subr.bf16.mxu0 %v11449_v27 }
 0x70f   :  { %v8223_v30 = vpop.f32.mrb[116].mxu1  ;;  %v8264_v29 = vpop.f32.mrb[112].mxu0 }
 0x710   :  { %v8275_v46 = vadd.f32 %v8223_v30, %v12468_v33  ;;  %v8277_v9 = vadd.f32 %v8264_v29, %v12471_v44  ;;  %v8225_v18 = vpop.f32.mrb[117].mxu1  ;;  %v8266_v28 = vpop.f32.mrb[113].mxu0 }
 0x711   :  { %v8276_v57 = vadd.f32 %v8225_v18, %v12474_v61  ;;  %v8278_v10 = vadd.f32 %v8266_v28, %v12477_v4  ;;  %v8227_v12 = vpop.f32.mrb[118].mxu1  ;;  %v8268_v51 = vpop.f32.mrb[114].mxu0  ;;  %v11450_v28 = vld [vmem:[#allocation12 + $0x100] sm:$0xff]  }
 0x712   :  { %v8228_v0 = vpop.f32.mrb[119].mxu1  ;;  %v8269_v2 = vpop.f32.mrb[115].mxu0  ;;  %v11452_v51 = vld [vmem:[#allocation12 + $0x148] sm:$0xff]  }
 0x713   :  { %v11453_v0 = vld [vmem:[#allocation12 + $0x1c8] sm:$0xff]  }
 0x714   :  { %v11454_v2 = vld [vmem:[#allocation12 + $0x108] sm:$0xff]  }
 0x72f   :  { %v8709_v8 = vpop.f32.mrb[120].mxu1  ;;  %v8750_v16 = vpop.f32.mrb[116].mxu0 }
 0x730   :  { %v8839_v45 = vadd.f32 %v8709_v8, %v8271_v55  ;;  %v8841_v43 = vadd.f32 %v8750_v16, %v8273_v20  ;;  %v8711_v59 = vpop.f32.mrb[121].mxu1  ;;  %v8752_v48 = vpop.f32.mrb[117].mxu0  ;;  %v9425_v55 = vsub.s32 3, %v12495_v25  ;;  %v9414_v20 = vrot.slane %v12499_v52, %v9413_v37  ;;  %v11455_v8 = vld [vmem:[#allocation12 + $0x188] sm:$0xff]   ;;  %v11456_v16 = vld [vmem:[#allocation12 + $0x150] sm:$0xff]  }
 0x731   :  { %v8840_v3 = vadd.f32 %v8711_v59, %v8272_v39  ;;  %v8842_v33 = vadd.f32 %v8752_v48, %v8274_v31  ;;  %v8713_v14 = vpop.f32.mrb[122].mxu1  ;;  %v8754_v44 = vpop.f32.mrb[118].mxu0  ;;  %v9418_v31 = vrot.slane %v12499_v52, %v9417_v23  ;;  %v11459_v59 = vld [vmem:[#allocation12 + $0x190] sm:$0xff]   ;;  %v11460_v48 = vld [vmem:[#allocation12 + $0x158] sm:$0xff]  }
 0x732   :  { %v8714_v56 = vpop.f32.mrb[123].mxu1  ;;  %v8755_v19 = vpop.f32.mrb[119].mxu0  ;;  %v9426_v54 = vrot.slane %v12499_v52, %v9425_v55  ;;  %v11463_v14 = vld [vmem:[#allocation12 + $0x198] sm:$0xff]   ;;  %v11464_v44 = vld [vmem:[#allocation12 + $0x160] sm:$0xff]   ;;  %v11472_v37 = vld [vmem:[#allocation12 + $0x170] sm:$0xff]  }
 0x733   :  { %v11465_v56 = vld [vmem:[#allocation12 + $0x1e0] sm:$0xff]  }
 0x734   :  { %v11466_v19 = vld [vmem:[#allocation12 + $0x120] sm:$0xff]  }
 0x74f   :  { %v8791_v62 = vpop.f32.mrb[124].mxu1  ;;  %v8832_v61 = vpop.f32.mrb[120].mxu0 }
 0x750   :  { %v12487_v32 = vadd.f32 %v8791_v62, %v8275_v46  ;;  %v12489_v4 = vadd.f32 %v8832_v61, %v8277_v9  ;;  %v8793_v60 = vpop.f32.mrb[125].mxu1  ;;  %v8834_v36 = vpop.f32.mrb[121].mxu0  ;;  %v11467_v62 = vld [vmem:[#allocation12 + $0x1a0] sm:$0xff]   ;;  %v11468_v61 = vld [vmem:[#allocation12 + $0x168] sm:$0xff]  }
 0x751   :  { %v12491_v35 = vadd.f32 %v8793_v60, %v8276_v57  ;;  %v12493_v21 = vadd.f32 %v8834_v36, %v8278_v10  ;;  %v8795_v40 = vpop.f32.mrb[126].mxu1  ;;  %v8836_v17 = vpop.f32.mrb[122].mxu0  ;;  %v11451_v57 = vld [vmem:[#allocation12 + $0x180] sm:$0xff]   ;;  %v11469_v60 = vld [vmem:[#allocation12 + $0x1e8] sm:$0xff]   ;;  %v9429_v36 = vsub.s32 4, %v12495_v25 }
 0x752   :  { %v8796_v49 = vpop.f32.mrb[127].mxu1  ;;  %v8837_v38 = vpop.f32.mrb[123].mxu0  ;;  %v9437_v40 = vsub.s32 6, %v12495_v25  ;;  %v11470_v17 = vld [vmem:[#allocation12 + $0x128] sm:$0xff]  }
 0x753   :  { %v11471_v49 = vld [vmem:[#allocation12 + $0x1a8] sm:$0xff]   ;;  %v9433_v38 = vsub.s32 5, %v12495_v25  ;;  %v9430_v23 = vrot.slane %v12499_v52, %v9429_v36 }
 0x754   :  { %v9438_v55 = vrot.slane %v12499_v52, %v9437_v40 }
 0x76f   :  { %v9271_v26 = vpop.f32.mrb[128].mxu1  ;;  %v9312_v39 = vpop.f32.mrb[124].mxu0 }
 0x770   :  { %v9401_v24 = vadd.f32 %v9271_v26, %v8839_v45  ;;  %v9403_v42 = vadd.f32 %v9312_v39, %v8841_v43  ;;  %v9273_v13 = vpop.f32.mrb[129].mxu1  ;;  %v9314_v34 = vpop.f32.mrb[125].mxu0  ;;  %v11457_v45 = vld [vmem:[#allocation12 + $0x1d0] sm:$0xff]   ;;  %v9434_v26 = vrot.slane %v12499_v52, %v9433_v38  ;;  %v9442_v39 = vrot.slane %v12499_v52, %v9441_v53 }
 0x771   :  { %v9402_v41 = vadd.f32 %v9273_v13, %v8840_v3  ;;  %v9404_v22 = vadd.f32 %v9314_v34, %v8842_v33  ;;  %v9275_v50 = vpop.f32.mrb[130].mxu1  ;;  %v9316_v7 = vpop.f32.mrb[126].mxu0  ;;  %v11458_v43 = vld [vmem:[#allocation12 + $0x110] sm:$0xff]   ;;  %v11461_v3 = vld [vmem:[#allocation12 + $0x1d8] sm:$0xff]  }
 0x772   :  { %v9451_v58 = vadd.f32 %v9414_v20, %v9401_v24  ;;  %v9453_v11 = vadd.f32 %v9422_v63, %v9403_v42  ;;  %v9276_v15 = vpop.f32.mrb[131].mxu1  ;;  %v9317_v1 = vpop.f32.mrb[127].mxu0  ;;  %v11462_v33 = vld [vmem:[#allocation12 + $0x118] sm:$0xff]  }
 0x773   :  { %v9452_v6 = vadd.f32 %v9418_v31, %v9402_v41  ;;  %v9454_v5 = vadd.f32 %v9426_v54, %v9404_v22  ;;  %v11474_v31 = vld [vmem:[#allocation12 + $0x130] sm:$0xff]   ;;  %v11476_v34 = vld [vmem:[#allocation12 + $0x178] sm:$0xff]  }
 0x774   :  { %v9459_v27 = vmax.f32 %v9451_v58, 0.0  ;;  %v9461_v30 = vmax.f32 %v9453_v11, 0.0  ;;  %v11475_v54 = vld [vmem:[#allocation12 + $0x1b0] sm:$0xff]   ;;  %v11477_v41 = vld [vmem:[#allocation12 + $0x1f8] sm:$0xff]  }
 0x775   :  { %v9460_v29 = vmax.f32 %v9452_v6, 0.0  ;;  %v9462_v46 = vmax.f32 %v9454_v5, 0.0  ;;  %v11479_v5 = vld [vmem:[#allocation12 + $0x1b8] sm:$0xff]  }
 0x776   :  { %v9467_v10 = vpack.c.bf16 %v9459_v27, %v9459_v27  ;;  %v9469_v12 = vpack.c.bf16 %v9461_v30, %v9461_v30 }
 0x777   :  { %v9468_v9 = vpack.c.bf16 %v9460_v29, %v9460_v29  ;;  %v9470_v18 = vpack.c.bf16 %v9462_v46, %v9462_v46 }
 0x779   :  { %10026 = vmatprep.mubr.bf16.mxu1 %v9468_v9  ;;  %10066 = vmatprep.mubr.bf16.mxu0 %v9470_v18 }
 0x77a   :  { %10027 = vmatmul.mubr.bf16.vlgmr.msra.gmra.mrb[136].mxu1 %v9467_v10  ;;  %10067 = vmatmul.mubr.bf16.vlgmr.msra.gmra.mrb[132].mxu0 %v9469_v12  ;;  %v11207_v10 = vld [vmem:[#allocation14] ss:$0 sm:$0xff] }
 0x77b   :  { %11327 = vmatpush3.bf16.msra.mxu1 %v11450_v28  ;;  %11349 = vmatpush3.bf16.msra.mxu0 %v11451_v57 }
 0x77c   :  { %11328 = vmatprep.subr.bf16.mxu1 %v11452_v51  ;;  %11350 = vmatprep.subr.bf16.mxu0 %v11453_v0 }
 0x77f   :  { %11329 = vmatpush3.bf16.msra.mxu1 %v11454_v2  ;;  %11351 = vmatpush3.bf16.msra.mxu0 %v11455_v8 }
 0x780   :  { %11330 = vmatprep.subr.bf16.mxu1 %v11456_v16  ;;  %11352 = vmatprep.subr.bf16.mxu0 %v11457_v45 }
 0x783   :  { %11331 = vmatpush3.bf16.msra.mxu1 %v11458_v43  ;;  %11353 = vmatpush3.bf16.msra.mxu0 %v11459_v59 }
 0x784   :  { %11332 = vmatprep.subr.bf16.mxu1 %v11460_v48  ;;  %11354 = vmatprep.subr.bf16.mxu0 %v11461_v3 }
 0x787   :  { %11333 = vmatpush3.bf16.msra.mxu1 %v11462_v33  ;;  %11355 = vmatpush3.bf16.msra.mxu0 %v11463_v14 }
 0x788   :  { %11334 = vmatprep.subr.bf16.mxu1 %v11464_v44  ;;  %11356 = vmatprep.subr.bf16.mxu0 %v11465_v56 }
 0x78b   :  { %11335 = vmatpush3.bf16.msra.mxu1 %v11466_v19  ;;  %11357 = vmatpush3.bf16.msra.mxu0 %v11467_v62 }
 0x78c   :  { %11336 = vmatprep.subr.bf16.mxu1 %v11468_v61  ;;  %11358 = vmatprep.subr.bf16.mxu0 %v11469_v60 }
 0x78f   :  { %v9353_v20 = vpop.f32.mrb[132].mxu1  ;;  %v9394_v63 = vpop.f32.mrb[128].mxu0  ;;  %11337 = vmatpush3.bf16.msra.mxu1 %v11470_v17  ;;  %11359 = vmatpush3.bf16.msra.mxu0 %v11471_v49 }
 0x790   :  { %v9405_v25 = vadd.f32 %v9353_v20, %v12487_v32  ;;  %v9407_v24 = vadd.f32 %v9394_v63, %v12489_v4  ;;  %v9355_v42 = vpop.f32.mrb[133].mxu1  ;;  %v9396_v13 = vpop.f32.mrb[129].mxu0  ;;  %11338 = vmatprep.subr.bf16.mxu1 %v11472_v37  ;;  %11360 = vmatprep.subr.bf16.mxu0 %v11473_v47  ;;  %v11478_v4 = vld [vmem:[#allocation12 + $0x138] sm:$0xff]  }
 0x791   :  { %v9406_v22 = vadd.f32 %v9355_v42, %v12491_v35  ;;  %v9408_v50 = vadd.f32 %v9396_v13, %v12493_v21  ;;  %v9357_v7 = vpop.f32.mrb[134].mxu1  ;;  %v9398_v58 = vpop.f32.mrb[130].mxu0 }
 0x792   :  { %v9455_v11 = vadd.f32 %v9430_v23, %v9405_v25  ;;  %v9457_v52 = vadd.f32 %v9438_v55, %v9407_v24  ;;  %v9358_v15 = vpop.f32.mrb[135].mxu1  ;;  %v9399_v1 = vpop.f32.mrb[131].mxu0 }
 0x793   :  { %v9456_v6 = vadd.f32 %v9434_v26, %v9406_v22  ;;  %v9458_v32 = vadd.f32 %v9442_v39, %v9408_v50  ;;  %11339 = vmatpush3.bf16.msra.mxu1 %v11474_v31  ;;  %11361 = vmatpush3.bf16.msra.mxu0 %v11475_v54 }
 0x794   :  { %v9463_v27 = vmax.f32 %v9455_v11, 0.0  ;;  %v9465_v30 = vmax.f32 %v9457_v52, 0.0  ;;  %11340 = vmatprep.subr.bf16.mxu1 %v11476_v34  ;;  %11362 = vmatprep.subr.bf16.mxu0 %v11477_v41 }
 0x795   :  { %v9464_v29 = vmax.f32 %v9456_v6, 0.0  ;;  %v9466_v35 = vmax.f32 %v9458_v32, 0.0 }
 0x796   :  { %v9471_v9 = vpack.c.bf16 %v9463_v27, %v9463_v27  ;;  %v9473_v18 = vpack.c.bf16 %v9465_v30, %v9465_v30 }
 0x797   :  { %v9472_v46 = vpack.c.bf16 %v9464_v29, %v9464_v29  ;;  %v9474_v21 = vpack.c.bf16 %v9466_v35, %v9466_v35  ;;  %11341 = vmatpush3.bf16.msra.mxu1 %v11478_v4  ;;  %11363 = vmatpush3.bf16.msra.mxu0 %v11479_v5 }
 0x799   :  { %10106 = vmatprep.mubr.bf16.mxu1 %v9472_v46  ;;  %10146 = vmatprep.mubr.bf16.mxu0 %v9474_v21 }
 0x79a   :  { %10107 = vmatmul.mubr.bf16.vlgmr.msra.gmra.mrb[140].mxu1 %v9471_v9  ;;  %10147 = vmatmul.mubr.bf16.vlgmr.msra.gmra.mrb[136].mxu0 %v9473_v18 }
 0x84d   :  { %v11298_v28 = vpop.f32.mrb[136].mxu1  ;;  %v11320_v57 = vpop.f32.mrb[132].mxu0 }
 0x84e   :  { %v11299_v12 = vpop.f32.mrb[137].mxu1  ;;  %v11321_v51 = vpop.f32.mrb[133].mxu0 }
 0x84f   :  { %v11300_v0 = vadd.f32 %v11299_v12, %v11298_v28  ;;  %v11322_v2 = vadd.f32 %v11321_v51, %v11320_v57  ;;  %v11301_v8 = vpop.f32.mrb[138].mxu1  ;;  %v11323_v16 = vpop.f32.mrb[134].mxu0 }
 0x850   :  { %v11302_v45 = vpop.f32.mrb[139].mxu1  ;;  %v11324_v43 = vpop.f32.mrb[135].mxu0 }
 0x851   :  { %v10029_v59 = vadd.f32 %v11300_v0, %v11207_v10 }
 0x853   :  { %v10069_v48 = vadd.f32 %v11322_v2, %v10029_v59 }
 0x86d   :  { %v11342_v3 = vpop.f32.mrb[140].mxu1  ;;  %v11364_v33 = vpop.f32.mrb[136].mxu0 }
 0x86e   :  { %v11343_v14 = vpop.f32.mrb[141].mxu1  ;;  %v11365_v44 = vpop.f32.mrb[137].mxu0 }
 0x86f   :  { %v11344_v56 = vadd.f32 %v11343_v14, %v11342_v3  ;;  %v11366_v19 = vadd.f32 %v11365_v44, %v11364_v33  ;;  %v11345_v62 = vpop.f32.mrb[142].mxu1  ;;  %v11367_v61 = vpop.f32.mrb[138].mxu0 }
 0x870   :  { %v11346_v60 = vpop.f32.mrb[143].mxu1  ;;  %v11368_v36 = vpop.f32.mrb[139].mxu0 }
 0x871   :  { %v10109_v40 = vadd.f32 %v11344_v56, %v10069_v48 }
 0x873   :  { %v10149_v17 = vadd.f32 %v11366_v19, %v10109_v40 }
 0x875   :  { %10154 = vst [vmem:[#allocation15] sm:$0x3] %v10149_v17 }
 0x876   :  { %11645 = shalt.err (!%p11642_p4)
}
 0x877   :  { %s11646_s9 = scalar_lea.hbm %s12539_s8, 32 }
 0x878   :  { %p11647_p5 = scmp.ne.s32.totalorder %s12539_s8, %s11646_s9  ;;  %p11650_p6 = scmp.lt.u32.totalorder %s11646_s9, %s12539_s8 }
 0x87a   :  { %p11652_p7 = pnand %p11650_p6, %p11647_p5 }
 0x87c   :  { %11655 = shalt.err (!%p11652_p7)
}
 0x87d   :  { %10164 = dma.vmem_to_hbm [thread:$0]  %s10162_s29, 32, %s12539_s8, [#allocation5]  }
 0x87e   :  { %11664 = dma.done.wait [#allocation5], 32  }
 0x87f   :  { %11665 = vsyncadd [#allocation5], 4294967264 }
 0x880   :  { %10168 = vsyncpa [#allocation4], 1 }
 0x881   :  { %10169 = vsyncpa [#allocation7], 1 }
 0x882   :  { %10170 = vsyncpa [#allocation10], 1 }
 0x883   :  { %10171 = vsyncpa [#allocation13], 1 }
 0x884   :  { %10172 = vsyncpa [#allocation5], 1 }

</bundles_post_ra>
